<compile_context>
chip_gen: v7x
topology: tpu7x:2x2x1
jax: 0.10.0
libtpu: 0.0.40
codegen_flags: <defaults>
</compile_context>

<pallas_src>
import functools

import jax
import jax.numpy as jnp
from jax import lax
from jax.experimental import pallas as pl
from jax.experimental.pallas import tpu as pltpu


LANE = 128       # TPU lane width; channel dims are padded to this
ROW_TILE = 256   # flattened voxels processed per in-kernel chunk (mult. of 16)


def _round_up(x, m):
    return (x + m - 1) // m * m


# ---------------------------------------------------------------------------
# Fused DoubleConv kernel (one grid step == one batch element)
# ---------------------------------------------------------------------------
def _double_conv_kernel(x_ref, w1_ref, b1_ref, w2_ref, b2_ref, mask_ref,
                        o_ref, y1_ref, *, offs, center, num_chunks, tm):
    """Refs per grid step:
      x_ref    (P_pad, Cin)  f32   zero-padded input volume, flattened spatial
      w1_ref   (27, Cin, Cp) bf16  conv1 weights (BN1 scale folded), per tap
      b1_ref   (1, Cp)       f32   folded BN1 bias
      w2_ref   (27, Cp, Cp)  bf16  conv2 weights (BN2 scale folded), per tap
      b2_ref   (1, Cp)       f32   folded BN2 bias
      mask_ref (R, 1)        f32   1.0 where a flattened "corner" row is a voxel
      o_ref    (R, Cp)       f32   conv2 output, corner-indexed rows
      y1_ref   (P_pad, Cp)   f32   scratch: y1 in padded layout (zero halo)
    """
    cp = o_ref.shape[-1]

    # conv2 reads a 1-voxel halo around y1: it must be exactly zero.
    y1_ref[...] = jnp.zeros_like(y1_ref)

    def conv1_chunk(m, carry):
        base = m * tm
        acc = jnp.zeros((tm, cp), jnp.float32)
        for i, off in enumerate(offs):          # 27 shifted-slice matmuls (MXU)
            xs = x_ref[pl.ds(base + off, tm), :].astype(jnp.bfloat16)
            acc = acc + jnp.dot(xs, w1_ref[i],
                                preferred_element_type=jnp.float32)
        y1 = jnp.maximum(acc + b1_ref[...], 0.0)          # BN bias + ReLU (f32)
        y1 = y1 * mask_ref[pl.ds(base, tm), :]            # keep halo rows == 0
        y1_ref[pl.ds(base + center, tm), :] = y1          # corner -> padded layout
        return carry

    lax.fori_loop(0, num_chunks, conv1_chunk, 0)

    def conv2_chunk(m, carry):
        base = m * tm
        acc = jnp.zeros((tm, cp), jnp.float32)
        for i, off in enumerate(offs):
            ys = y1_ref[pl.ds(base + off, tm), :].astype(jnp.bfloat16)
            acc = acc + jnp.dot(ys, w2_ref[i],
                                preferred_element_type=jnp.float32)
        o_ref[pl.ds(base, tm), :] = jnp.maximum(acc + b2_ref[...], 0.0)
        return carry

    lax.fori_loop(0, num_chunks, conv2_chunk, 0)


# ---------------------------------------------------------------------------
# Parameter folding / packing (plain JAX, tiny)
# ---------------------------------------------------------------------------
def fold_bn(gamma, beta, running_mean, running_var, eps=1e-5):
    scale = gamma / jnp.sqrt(running_var + eps)
    bias = beta - running_mean * scale
    return scale, bias


def fold_conv_bn_bf16(w_oidhw, bn):
    """Fold BN scale into the conv weights; return (bf16 weights, f32 bias)."""
    scale, bias = fold_bn(*bn)
    w_folded = w_oidhw.astype(jnp.float32) * scale[:, None, None, None, None]
    return w_folded.astype(jnp.bfloat16), bias.astype(jnp.float32)


def _pack_conv_weight(wq_oidhw, cin_pad, cout_pad):
    """(Cout, Cin, 3, 3, 3) -> (27, cin_pad, cout_pad); tap order (kd, kh, kw)."""
    cout, cin = wq_oidhw.shape[0], wq_oidhw.shape[1]
    wk = jnp.transpose(wq_oidhw, (2, 3, 4, 1, 0)).reshape(27, cin, cout)
    return jnp.pad(wk, ((0, 0), (0, cin_pad - cin), (0, cout_pad - cout)))


def _pack_bias(bias, cp):
    return jnp.pad(bias, (0, cp - bias.shape[0])).reshape(1, cp).astype(jnp.float32)


# ---------------------------------------------------------------------------
# DoubleConv forward (NCDHW in / NCDHW out)
# ---------------------------------------------------------------------------
@jax.jit
def double_conv_forward(x_ncdhw, params):
    (w1, bn1, w2, bn2) = params
    B, Cin, D, H, W = x_ncdhw.shape
    Cout = w1.shape[0]
    Cp = _round_up(Cout, LANE)              # lane-dense output channel width

    Dp, Hp, Wp = D + 2, H + 2, W + 2
    P = Dp * Hp * Wp                        # padded voxels per batch element
    center = Hp * Wp + Wp + 1               # flat offset of the (1,1,1) tap
    off_max = 2 * center                    # largest tap offset
    R = _round_up(D * Hp * Wp, ROW_TILE)    # corner-indexed rows computed
    num_chunks = R // ROW_TILE
    P_pad = _round_up(R + off_max, 8)       # rows of padded-flat buffers (>= P)
    offs = tuple(kd * Hp * Wp + kh * Wp + kw
                 for kd in range(3) for kh in range(3) for kw in range(3))

    # ---- input: NCDHW -> zero-padded channels-last, flattened spatial ------
    xt = jnp.transpose(x_ncdhw, (0, 2, 3, 4, 1)).astype(jnp.float32)
    xp = jnp.pad(xt, ((0, 0), (1, 1), (1, 1), (1, 1), (0, 0)))
    xf = jnp.pad(xp.reshape(B, P, Cin), ((0, 0), (0, P_pad - P), (0, 0)))

    # ---- weights / bias: BN folded, bf16, channel-padded to LANE -----------
    w1q, b1 = fold_conv_bn_bf16(w1, bn1)
    w2q, b2 = fold_conv_bn_bf16(w2, bn2)
    w1k = _pack_conv_weight(w1q, Cin, Cp)   # (27, Cin, Cp)
    w2k = _pack_conv_weight(w2q, Cp, Cp)    # (27, Cp,  Cp)
    b1k = _pack_bias(b1, Cp)
    b2k = _pack_bias(b2, Cp)

    # ---- validity mask for corner-indexed rows ------------------------------
    rows = jnp.arange(R, dtype=jnp.int32)
    d_idx = rows // (Hp * Wp)
    rem = rows % (Hp * Wp)
    h_idx = rem // Wp
    w_idx = rem % Wp
    mask = ((d_idx < D) & (h_idx < H) & (w_idx < W)).astype(jnp.float32)
    mask = mask.reshape(R, 1)

    kernel = functools.partial(
        _double_conv_kernel, offs=offs, center=center,
        num_chunks=num_chunks, tm=ROW_TILE)

    out = pl.pallas_call(
        kernel,
        out_shape=jax.ShapeDtypeStruct((B, R, Cp), jnp.float32),
        grid_spec=pltpu.PrefetchScalarGridSpec(
            num_scalar_prefetch=0,
            grid=(B,),
            in_specs=[
                pl.BlockSpec((None, P_pad, Cin), lambda b: (b, 0, 0)),
                pl.BlockSpec((27, Cin, Cp), lambda b: (0, 0, 0)),
                pl.BlockSpec((1, Cp), lambda b: (0, 0)),
                pl.BlockSpec((27, Cp, Cp), lambda b: (0, 0, 0)),
                pl.BlockSpec((1, Cp), lambda b: (0, 0)),
                pl.BlockSpec((R, 1), lambda b: (0, 0)),
            ],
            out_specs=pl.BlockSpec((None, R, Cp), lambda b: (b, 0, 0)),
            scratch_shapes=[pltpu.VMEM((P_pad, Cp), jnp.float32)],
        ),
        compiler_params=pltpu.CompilerParams(
            dimension_semantics=("parallel",),
            vmem_limit_bytes=48 * 1024 * 1024,
        ),
    )(xf, w1k, b1k, w2k, b2k, mask)

    # ---- unpack: corner rows -> (B, D, H, W, Cout) -> NCDHW -----------------
    out = out[:, :D * Hp * Wp, :].reshape(B, D, Hp, Wp, Cp)
    out = out[:, :, :H, :W, :Cout]
    return jnp.transpose(out, (0, 4, 1, 2, 3))


# ---------------------------------------------------------------------------
# References
# ---------------------------------------------------------------------------
def reference_forward(x_ncdhw, params):
    """Exact eval-mode DoubleConv (f32 lax.conv)."""
    (w1, bn1, w2, bn2) = params
    dn = lax.conv_dimension_numbers(x_ncdhw.shape, w1.shape,
                                    ("NCDHW", "OIDHW", "NCDHW"))

    def block(x, w, bn):
        y = lax.conv_general_dilated(
            x, w, window_strides=(1, 1, 1),
            padding=((1, 1), (1, 1), (1, 1)), dimension_numbers=dn,
            precision=lax.Precision.HIGHEST)
        s, b = fold_bn(*bn)
        y = y * s[None, :, None, None, None] + b[None, :, None, None, None]
        return jnp.maximum(y, 0.0)

    return block(block(x_ncdhw.astype(jnp.float32), w1, bn1), w2, bn2)


def reference_forward_matched(x_ncdhw, params):
    """Reference applying the same bf16 quantization points as the kernel."""
    (w1, bn1, w2, bn2) = params
    w1q, b1 = fold_conv_bn_bf16(w1, bn1)
    w2q, b2 = fold_conv_bn_bf16(w2, bn2)
    dn = lax.conv_dimension_numbers(x_ncdhw.shape, w1.shape,
                                    ("NCDHW", "OIDHW", "NCDHW"))

    def conv(x, w):
        return lax.conv_general_dilated(
            x, w.astype(jnp.float32), window_strides=(1, 1, 1),
            padding=((1, 1), (1, 1), (1, 1)), dimension_numbers=dn,
            precision=lax.Precision.HIGHEST)

    xq = x_ncdhw.astype(jnp.bfloat16).astype(jnp.float32)
    y1 = jnp.maximum(conv(xq, w1q) + b1[None, :, None, None, None], 0.0)
    y1q = y1.astype(jnp.bfloat16).astype(jnp.float32)
    return jnp.maximum(conv(y1q, w2q) + b2[None, :, None, None, None], 0.0)


if __name__ == "__main__":
    B, in_ch, out_ch, D, H, W = 2, 4, 8, 8, 8, 8

    key = jax.random.PRNGKey(0)
    k = jax.random.split(key, 11)

    x = jax.random.normal(k[0], (B, in_ch, D, H, W), jnp.float32)

    # PyTorch-shaped parameters (OIDHW conv weights, per-channel BN stats).
    w1 = 0.1 * jax.random.normal(k[1], (out_ch, in_ch, 3, 3, 3), jnp.float32)
    w2 = 0.1 * jax.random.normal(k[2], (out_ch, out_ch, 3, 3, 3), jnp.float32)
    bn1 = (1.0 + 0.1 * jax.random.normal(k[3], (out_ch,), jnp.float32),   # gamma
           0.1 * jax.random.normal(k[4], (out_ch,), jnp.float32),          # beta
           0.05 * jax.random.normal(k[5], (out_ch,), jnp.float32),         # running_mean
           1.0 + 0.1 * jnp.abs(jax.random.normal(k[6], (out_ch,), jnp.float32)))  # running_var
    bn2 = (1.0 + 0.1 * jax.random.normal(k[7], (out_ch,), jnp.float32),
           0.1 * jax.random.normal(k[8], (out_ch,), jnp.float32),
           0.05 * jax.random.normal(k[9], (out_ch,), jnp.float32),
           1.0 + 0.1 * jnp.abs(jax.random.normal(k[10], (out_ch,), jnp.float32)))
    params = (w1, bn1, w2, bn2)

    out = jax.block_until_ready(double_conv_forward(x, params))
    assert out.shape == (B, out_ch, D, H, W), out.shape

    ref_matched = jax.block_until_ready(jax.jit(reference_forward_matched)(x, params))
    ref_exact = jax.block_until_ready(jax.jit(reference_forward)(x, params))

    err_matched = float(jnp.max(jnp.abs(out - ref_matched)))
    err_exact = float(jnp.max(jnp.abs(out - ref_exact)))

    # Tight check vs a reference using the same bf16 quantization points.
    assert jnp.allclose(out, ref_matched, atol=5e-3, rtol=5e-3), err_matched
    # Looser check vs exact f32 module semantics (bf16 MXU operands).
    assert jnp.allclose(out, ref_exact, atol=5e-2, rtol=5e-2), err_exact

    print("KERNEL_OK")
</pallas_src>

<mosaic_0001>
module attributes {stable_mosaic.version = 11 : i64} {
  func.func @_double_conv_kernel(%arg0: i32, %arg1: memref<1x1248x4xf32, #tpu.memory_space<vmem>>, %arg2: memref<27x4x128xbf16, #tpu.memory_space<vmem>>, %arg3: memref<1x128xf32, #tpu.memory_space<vmem>>, %arg4: memref<27x128x128xbf16, #tpu.memory_space<vmem>>, %arg5: memref<1x128xf32, #tpu.memory_space<vmem>>, %arg6: memref<1024x1xf32, #tpu.memory_space<vmem>>, %arg7: memref<1x1024x128xf32, #tpu.memory_space<vmem>>, %arg8: memref<1248x128xf32, #tpu.memory_space<vmem>>) attributes {dimension_semantics = [#tpu.dimension_semantics<parallel>], iteration_bounds = array<i64: 2>, scalar_prefetch = 0 : i64, scratch_operands = 1 : i64, tpu.core_type = #tpu.core_type<tc>, window_params = [{transform_indices = @transform_0, window_bounds = array<i64: 1, 1248, 4>}, {pipeline_mode = #tpu.pipeline_mode<synchronous>, transform_indices = @transform_1, window_bounds = array<i64: 27, 4, 128>}, {pipeline_mode = #tpu.pipeline_mode<synchronous>, transform_indices = @transform_2, window_bounds = array<i64: 1, 128>}, {pipeline_mode = #tpu.pipeline_mode<synchronous>, transform_indices = @transform_3, window_bounds = array<i64: 27, 128, 128>}, {pipeline_mode = #tpu.pipeline_mode<synchronous>, transform_indices = @transform_4, window_bounds = array<i64: 1, 128>}, {pipeline_mode = #tpu.pipeline_mode<synchronous>, transform_indices = @transform_5, window_bounds = array<i64: 1024, 1>}, {transform_indices = @transform_6, window_bounds = array<i64: 1, 1024, 128>}]} {
    %cst = arith.constant 0.000000e+00 : f32
    %0 = vector.broadcast %cst : f32 to vector<1248x128xf32>
    %c0 = arith.constant 0 : index
    %c0_0 = arith.constant 0 : index
    %1 = vector.load %arg8[%c0, %c0_0] : memref<1248x128xf32, #tpu.memory_space<vmem>>, vector<1248x128xf32>
    tpu.vector_store %arg8[%c0, %c0_0], %0 {strides = array<i32>} : memref<1248x128xf32, #tpu.memory_space<vmem>>, vector<1248x128xf32>,
    %c0_i32 = arith.constant 0 : i32
    %c4_i32 = arith.constant 4 : i32
    %2 = arith.addi %c0_i32, %c4_i32 : i32
    %c1_i32 = arith.constant 1 : i32
    scf.for %arg9 = %c0_i32 to %2 step %c1_i32  : i32 {
      %c256_i32 = arith.constant 256 : i32
      %4 = arith.muli %arg9, %c256_i32 : i32
      %cst_6 = arith.constant 0.000000e+00 : f32
      %5 = vector.broadcast %cst_6 : f32 to vector<256x128xf32>
      %c0_i32_7 = arith.constant 0 : i32
      %6 = arith.addi %4, %c0_i32_7 : i32
      %c0_8 = arith.constant 0 : index
      %7 = arith.index_cast %6 : i32 to index
      %c0_9 = arith.constant 0 : index
      %8 = vector.load %arg1[%c0_8, %7, %c0_9] : memref<1x1248x4xf32, #tpu.memory_space<vmem>>, vector<1x256x4xf32>
      %9 = vector.shape_cast %8 : vector<1x256x4xf32> to vector<256x4xf32>
      %10 = arith.truncf %9 : vector<256x4xf32> to vector<256x4xbf16>
      %c0_10 = arith.constant 0 : index
      %c0_11 = arith.constant 0 : index
      %c0_12 = arith.constant 0 : index
      %11 = vector.load %arg2[%c0_10, %c0_11, %c0_12] : memref<27x4x128xbf16, #tpu.memory_space<vmem>>, vector<1x4x128xbf16>
      %12 = vector.shape_cast %11 : vector<1x4x128xbf16> to vector<4x128xbf16>
      %cst_13 = arith.constant dense<0.000000e+00> : vector<256x128xf32>
      %13 = tpu.matmul %10, %12, %cst_13 {dimension_numbers = #tpu.dot_dimension_numbers<[1], [0], [0], [1], [0, 0, 1, 1], [], []>} : vector<256x4xbf16>, vector<4x128xbf16>, vector<256x128xf32> -> vector<256x128xf32>
      %14 = arith.addf %5, %13 : vector<256x128xf32>
      %c1_i32_14 = arith.constant 1 : i32
      %15 = arith.addi %4, %c1_i32_14 : i32
      %c0_15 = arith.constant 0 : index
      %16 = arith.index_cast %15 : i32 to index
      %c0_16 = arith.constant 0 : index
      %17 = vector.load %arg1[%c0_15, %16, %c0_16] : memref<1x1248x4xf32, #tpu.memory_space<vmem>>, vector<1x256x4xf32>
      %18 = vector.shape_cast %17 : vector<1x256x4xf32> to vector<256x4xf32>
      %19 = arith.truncf %18 : vector<256x4xf32> to vector<256x4xbf16>
      %c1 = arith.constant 1 : index
      %c0_17 = arith.constant 0 : index
      %c0_18 = arith.constant 0 : index
      %20 = vector.load %arg2[%c1, %c0_17, %c0_18] : memref<27x4x128xbf16, #tpu.memory_space<vmem>>, vector<1x4x128xbf16>
      %21 = vector.shape_cast %20 : vector<1x4x128xbf16> to vector<4x128xbf16>
      %cst_19 = arith.constant dense<0.000000e+00> : vector<256x128xf32>
      %22 = tpu.matmul %19, %21, %cst_19 {dimension_numbers = #tpu.dot_dimension_numbers<[1], [0], [0], [1], [0, 0, 1, 1], [], []>} : vector<256x4xbf16>, vector<4x128xbf16>, vector<256x128xf32> -> vector<256x128xf32>
      %23 = arith.addf %14, %22 : vector<256x128xf32>
      %c2_i32 = arith.constant 2 : i32
      %24 = arith.addi %4, %c2_i32 : i32
      %c0_20 = arith.constant 0 : index
      %25 = arith.index_cast %24 : i32 to index
      %c0_21 = arith.constant 0 : index
      %26 = vector.load %arg1[%c0_20, %25, %c0_21] : memref<1x1248x4xf32, #tpu.memory_space<vmem>>, vector<1x256x4xf32>
      %27 = vector.shape_cast %26 : vector<1x256x4xf32> to vector<256x4xf32>
      %28 = arith.truncf %27 : vector<256x4xf32> to vector<256x4xbf16>
      %c2 = arith.constant 2 : index
      %c0_22 = arith.constant 0 : index
      %c0_23 = arith.constant 0 : index
      %29 = vector.load %arg2[%c2, %c0_22, %c0_23] : memref<27x4x128xbf16, #tpu.memory_space<vmem>>, vector<1x4x128xbf16>
      %30 = vector.shape_cast %29 : vector<1x4x128xbf16> to vector<4x128xbf16>
      %cst_24 = arith.constant dense<0.000000e+00> : vector<256x128xf32>
      %31 = tpu.matmul %28, %30, %cst_24 {dimension_numbers = #tpu.dot_dimension_numbers<[1], [0], [0], [1], [0, 0, 1, 1], [], []>} : vector<256x4xbf16>, vector<4x128xbf16>, vector<256x128xf32> -> vector<256x128xf32>
      %32 = arith.addf %23, %31 : vector<256x128xf32>
      %c10_i32 = arith.constant 10 : i32
      %33 = arith.addi %4, %c10_i32 : i32
      %c0_25 = arith.constant 0 : index
      %34 = arith.index_cast %33 : i32 to index
      %c0_26 = arith.constant 0 : index
      %35 = vector.load %arg1[%c0_25, %34, %c0_26] : memref<1x1248x4xf32, #tpu.memory_space<vmem>>, vector<1x256x4xf32>
      %36 = vector.shape_cast %35 : vector<1x256x4xf32> to vector<256x4xf32>
      %37 = arith.truncf %36 : vector<256x4xf32> to vector<256x4xbf16>
      %c3 = arith.constant 3 : index
      %c0_27 = arith.constant 0 : index
      %c0_28 = arith.constant 0 : index
      %38 = vector.load %arg2[%c3, %c0_27, %c0_28] : memref<27x4x128xbf16, #tpu.memory_space<vmem>>, vector<1x4x128xbf16>
      %39 = vector.shape_cast %38 : vector<1x4x128xbf16> to vector<4x128xbf16>
      %cst_29 = arith.constant dense<0.000000e+00> : vector<256x128xf32>
      %40 = tpu.matmul %37, %39, %cst_29 {dimension_numbers = #tpu.dot_dimension_numbers<[1], [0], [0], [1], [0, 0, 1, 1], [], []>} : vector<256x4xbf16>, vector<4x128xbf16>, vector<256x128xf32> -> vector<256x128xf32>
      %41 = arith.addf %32, %40 : vector<256x128xf32>
      %c11_i32 = arith.constant 11 : i32
      %42 = arith.addi %4, %c11_i32 : i32
      %c0_30 = arith.constant 0 : index
      %43 = arith.index_cast %42 : i32 to index
      %c0_31 = arith.constant 0 : index
      %44 = vector.load %arg1[%c0_30, %43, %c0_31] : memref<1x1248x4xf32, #tpu.memory_space<vmem>>, vector<1x256x4xf32>
      %45 = vector.shape_cast %44 : vector<1x256x4xf32> to vector<256x4xf32>
      %46 = arith.truncf %45 : vector<256x4xf32> to vector<256x4xbf16>
      %c4 = arith.constant 4 : index
      %c0_32 = arith.constant 0 : index
      %c0_33 = arith.constant 0 : index
      %47 = vector.load %arg2[%c4, %c0_32, %c0_33] : memref<27x4x128xbf16, #tpu.memory_space<vmem>>, vector<1x4x128xbf16>
      %48 = vector.shape_cast %47 : vector<1x4x128xbf16> to vector<4x128xbf16>
      %cst_34 = arith.constant dense<0.000000e+00> : vector<256x128xf32>
      %49 = tpu.matmul %46, %48, %cst_34 {dimension_numbers = #tpu.dot_dimension_numbers<[1], [0], [0], [1], [0, 0, 1, 1], [], []>} : vector<256x4xbf16>, vector<4x128xbf16>, vector<256x128xf32> -> vector<256x128xf32>
      %50 = arith.addf %41, %49 : vector<256x128xf32>
      %c12_i32 = arith.constant 12 : i32
      %51 = arith.addi %4, %c12_i32 : i32
      %c0_35 = arith.constant 0 : index
      %52 = arith.index_cast %51 : i32 to index
      %c0_36 = arith.constant 0 : index
      %53 = vector.load %arg1[%c0_35, %52, %c0_36] : memref<1x1248x4xf32, #tpu.memory_space<vmem>>, vector<1x256x4xf32>
      %54 = vector.shape_cast %53 : vector<1x256x4xf32> to vector<256x4xf32>
      %55 = arith.truncf %54 : vector<256x4xf32> to vector<256x4xbf16>
      %c5 = arith.constant 5 : index
      %c0_37 = arith.constant 0 : index
      %c0_38 = arith.constant 0 : index
      %56 = vector.load %arg2[%c5, %c0_37, %c0_38] : memref<27x4x128xbf16, #tpu.memory_space<vmem>>, vector<1x4x128xbf16>
      %57 = vector.shape_cast %56 : vector<1x4x128xbf16> to vector<4x128xbf16>
      %cst_39 = arith.constant dense<0.000000e+00> : vector<256x128xf32>
      %58 = tpu.matmul %55, %57, %cst_39 {dimension_numbers = #tpu.dot_dimension_numbers<[1], [0], [0], [1], [0, 0, 1, 1], [], []>} : vector<256x4xbf16>, vector<4x128xbf16>, vector<256x128xf32> -> vector<256x128xf32>
      %59 = arith.addf %50, %58 : vector<256x128xf32>
      %c20_i32 = arith.constant 20 : i32
      %60 = arith.addi %4, %c20_i32 : i32
      %c0_40 = arith.constant 0 : index
      %61 = arith.index_cast %60 : i32 to index
      %c0_41 = arith.constant 0 : index
      %62 = vector.load %arg1[%c0_40, %61, %c0_41] : memref<1x1248x4xf32, #tpu.memory_space<vmem>>, vector<1x256x4xf32>
      %63 = vector.shape_cast %62 : vector<1x256x4xf32> to vector<256x4xf32>
      %64 = arith.truncf %63 : vector<256x4xf32> to vector<256x4xbf16>
      %c6 = arith.constant 6 : index
      %c0_42 = arith.constant 0 : index
      %c0_43 = arith.constant 0 : index
      %65 = vector.load %arg2[%c6, %c0_42, %c0_43] : memref<27x4x128xbf16, #tpu.memory_space<vmem>>, vector<1x4x128xbf16>
      %66 = vector.shape_cast %65 : vector<1x4x128xbf16> to vector<4x128xbf16>
      %cst_44 = arith.constant dense<0.000000e+00> : vector<256x128xf32>
      %67 = tpu.matmul %64, %66, %cst_44 {dimension_numbers = #tpu.dot_dimension_numbers<[1], [0], [0], [1], [0, 0, 1, 1], [], []>} : vector<256x4xbf16>, vector<4x128xbf16>, vector<256x128xf32> -> vector<256x128xf32>
      %68 = arith.addf %59, %67 : vector<256x128xf32>
      %c21_i32 = arith.constant 21 : i32
      %69 = arith.addi %4, %c21_i32 : i32
      %c0_45 = arith.constant 0 : index
      %70 = arith.index_cast %69 : i32 to index
      %c0_46 = arith.constant 0 : index
      %71 = vector.load %arg1[%c0_45, %70, %c0_46] : memref<1x1248x4xf32, #tpu.memory_space<vmem>>, vector<1x256x4xf32>
      %72 = vector.shape_cast %71 : vector<1x256x4xf32> to vector<256x4xf32>
      %73 = arith.truncf %72 : vector<256x4xf32> to vector<256x4xbf16>
      %c7 = arith.constant 7 : index
      %c0_47 = arith.constant 0 : index
      %c0_48 = arith.constant 0 : index
      %74 = vector.load %arg2[%c7, %c0_47, %c0_48] : memref<27x4x128xbf16, #tpu.memory_space<vmem>>, vector<1x4x128xbf16>
      %75 = vector.shape_cast %74 : vector<1x4x128xbf16> to vector<4x128xbf16>
      %cst_49 = arith.constant dense<0.000000e+00> : vector<256x128xf32>
      %76 = tpu.matmul %73, %75, %cst_49 {dimension_numbers = #tpu.dot_dimension_numbers<[1], [0], [0], [1], [0, 0, 1, 1], [], []>} : vector<256x4xbf16>, vector<4x128xbf16>, vector<256x128xf32> -> vector<256x128xf32>
      %77 = arith.addf %68, %76 : vector<256x128xf32>
      %c22_i32 = arith.constant 22 : i32
      %78 = arith.addi %4, %c22_i32 : i32
      %c0_50 = arith.constant 0 : index
      %79 = arith.index_cast %78 : i32 to index
      %c0_51 = arith.constant 0 : index
      %80 = vector.load %arg1[%c0_50, %79, %c0_51] : memref<1x1248x4xf32, #tpu.memory_space<vmem>>, vector<1x256x4xf32>
      %81 = vector.shape_cast %80 : vector<1x256x4xf32> to vector<256x4xf32>
      %82 = arith.truncf %81 : vector<256x4xf32> to vector<256x4xbf16>
      %c8 = arith.constant 8 : index
      %c0_52 = arith.constant 0 : index
      %c0_53 = arith.constant 0 : index
      %83 = vector.load %arg2[%c8, %c0_52, %c0_53] : memref<27x4x128xbf16, #tpu.memory_space<vmem>>, vector<1x4x128xbf16>
      %84 = vector.shape_cast %83 : vector<1x4x128xbf16> to vector<4x128xbf16>
      %cst_54 = arith.constant dense<0.000000e+00> : vector<256x128xf32>
      %85 = tpu.matmul %82, %84, %cst_54 {dimension_numbers = #tpu.dot_dimension_numbers<[1], [0], [0], [1], [0, 0, 1, 1], [], []>} : vector<256x4xbf16>, vector<4x128xbf16>, vector<256x128xf32> -> vector<256x128xf32>
      %86 = arith.addf %77, %85 : vector<256x128xf32>
      %c100_i32 = arith.constant 100 : i32
      %87 = arith.addi %4, %c100_i32 : i32
      %c0_55 = arith.constant 0 : index
      %88 = arith.index_cast %87 : i32 to index
      %c0_56 = arith.constant 0 : index
      %89 = vector.load %arg1[%c0_55, %88, %c0_56] : memref<1x1248x4xf32, #tpu.memory_space<vmem>>, vector<1x256x4xf32>
      %90 = vector.shape_cast %89 : vector<1x256x4xf32> to vector<256x4xf32>
      %91 = arith.truncf %90 : vector<256x4xf32> to vector<256x4xbf16>
      %c9 = arith.constant 9 : index
      %c0_57 = arith.constant 0 : index
      %c0_58 = arith.constant 0 : index
      %92 = vector.load %arg2[%c9, %c0_57, %c0_58] : memref<27x4x128xbf16, #tpu.memory_space<vmem>>, vector<1x4x128xbf16>
      %93 = vector.shape_cast %92 : vector<1x4x128xbf16> to vector<4x128xbf16>
      %cst_59 = arith.constant dense<0.000000e+00> : vector<256x128xf32>
      %94 = tpu.matmul %91, %93, %cst_59 {dimension_numbers = #tpu.dot_dimension_numbers<[1], [0], [0], [1], [0, 0, 1, 1], [], []>} : vector<256x4xbf16>, vector<4x128xbf16>, vector<256x128xf32> -> vector<256x128xf32>
      %95 = arith.addf %86, %94 : vector<256x128xf32>
      %c101_i32 = arith.constant 101 : i32
      %96 = arith.addi %4, %c101_i32 : i32
      %c0_60 = arith.constant 0 : index
      %97 = arith.index_cast %96 : i32 to index
      %c0_61 = arith.constant 0 : index
      %98 = vector.load %arg1[%c0_60, %97, %c0_61] : memref<1x1248x4xf32, #tpu.memory_space<vmem>>, vector<1x256x4xf32>
      %99 = vector.shape_cast %98 : vector<1x256x4xf32> to vector<256x4xf32>
      %100 = arith.truncf %99 : vector<256x4xf32> to vector<256x4xbf16>
      %c10 = arith.constant 10 : index
      %c0_62 = arith.constant 0 : index
      %c0_63 = arith.constant 0 : index
      %101 = vector.load %arg2[%c10, %c0_62, %c0_63] : memref<27x4x128xbf16, #tpu.memory_space<vmem>>, vector<1x4x128xbf16>
      %102 = vector.shape_cast %101 : vector<1x4x128xbf16> to vector<4x128xbf16>
      %cst_64 = arith.constant dense<0.000000e+00> : vector<256x128xf32>
      %103 = tpu.matmul %100, %102, %cst_64 {dimension_numbers = #tpu.dot_dimension_numbers<[1], [0], [0], [1], [0, 0, 1, 1], [], []>} : vector<256x4xbf16>, vector<4x128xbf16>, vector<256x128xf32> -> vector<256x128xf32>
      %104 = arith.addf %95, %103 : vector<256x128xf32>
      %c102_i32 = arith.constant 102 : i32
      %105 = arith.addi %4, %c102_i32 : i32
      %c0_65 = arith.constant 0 : index
      %106 = arith.index_cast %105 : i32 to index
      %c0_66 = arith.constant 0 : index
      %107 = vector.load %arg1[%c0_65, %106, %c0_66] : memref<1x1248x4xf32, #tpu.memory_space<vmem>>, vector<1x256x4xf32>
      %108 = vector.shape_cast %107 : vector<1x256x4xf32> to vector<256x4xf32>
      %109 = arith.truncf %108 : vector<256x4xf32> to vector<256x4xbf16>
      %c11 = arith.constant 11 : index
      %c0_67 = arith.constant 0 : index
      %c0_68 = arith.constant 0 : index
      %110 = vector.load %arg2[%c11, %c0_67, %c0_68] : memref<27x4x128xbf16, #tpu.memory_space<vmem>>, vector<1x4x128xbf16>
      %111 = vector.shape_cast %110 : vector<1x4x128xbf16> to vector<4x128xbf16>
      %cst_69 = arith.constant dense<0.000000e+00> : vector<256x128xf32>
      %112 = tpu.matmul %109, %111, %cst_69 {dimension_numbers = #tpu.dot_dimension_numbers<[1], [0], [0], [1], [0, 0, 1, 1], [], []>} : vector<256x4xbf16>, vector<4x128xbf16>, vector<256x128xf32> -> vector<256x128xf32>
      %113 = arith.addf %104, %112 : vector<256x128xf32>
      %c110_i32 = arith.constant 110 : i32
      %114 = arith.addi %4, %c110_i32 : i32
      %c0_70 = arith.constant 0 : index
      %115 = arith.index_cast %114 : i32 to index
      %c0_71 = arith.constant 0 : index
      %116 = vector.load %arg1[%c0_70, %115, %c0_71] : memref<1x1248x4xf32, #tpu.memory_space<vmem>>, vector<1x256x4xf32>
      %117 = vector.shape_cast %116 : vector<1x256x4xf32> to vector<256x4xf32>
      %118 = arith.truncf %117 : vector<256x4xf32> to vector<256x4xbf16>
      %c12 = arith.constant 12 : index
      %c0_72 = arith.constant 0 : index
      %c0_73 = arith.constant 0 : index
      %119 = vector.load %arg2[%c12, %c0_72, %c0_73] : memref<27x4x128xbf16, #tpu.memory_space<vmem>>, vector<1x4x128xbf16>
      %120 = vector.shape_cast %119 : vector<1x4x128xbf16> to vector<4x128xbf16>
      %cst_74 = arith.constant dense<0.000000e+00> : vector<256x128xf32>
      %121 = tpu.matmul %118, %120, %cst_74 {dimension_numbers = #tpu.dot_dimension_numbers<[1], [0], [0], [1], [0, 0, 1, 1], [], []>} : vector<256x4xbf16>, vector<4x128xbf16>, vector<256x128xf32> -> vector<256x128xf32>
      %122 = arith.addf %113, %121 : vector<256x128xf32>
      %c111_i32 = arith.constant 111 : i32
      %123 = arith.addi %4, %c111_i32 : i32
      %c0_75 = arith.constant 0 : index
      %124 = arith.index_cast %123 : i32 to index
      %c0_76 = arith.constant 0 : index
      %125 = vector.load %arg1[%c0_75, %124, %c0_76] : memref<1x1248x4xf32, #tpu.memory_space<vmem>>, vector<1x256x4xf32>
      %126 = vector.shape_cast %125 : vector<1x256x4xf32> to vector<256x4xf32>
      %127 = arith.truncf %126 : vector<256x4xf32> to vector<256x4xbf16>
      %c13 = arith.constant 13 : index
      %c0_77 = arith.constant 0 : index
      %c0_78 = arith.constant 0 : index
      %128 = vector.load %arg2[%c13, %c0_77, %c0_78] : memref<27x4x128xbf16, #tpu.memory_space<vmem>>, vector<1x4x128xbf16>
      %129 = vector.shape_cast %128 : vector<1x4x128xbf16> to vector<4x128xbf16>
      %cst_79 = arith.constant dense<0.000000e+00> : vector<256x128xf32>
      %130 = tpu.matmul %127, %129, %cst_79 {dimension_numbers = #tpu.dot_dimension_numbers<[1], [0], [0], [1], [0, 0, 1, 1], [], []>} : vector<256x4xbf16>, vector<4x128xbf16>, vector<256x128xf32> -> vector<256x128xf32>
      %131 = arith.addf %122, %130 : vector<256x128xf32>
      %c112_i32 = arith.constant 112 : i32
      %132 = arith.addi %4, %c112_i32 : i32
      %c0_80 = arith.constant 0 : index
      %133 = arith.index_cast %132 : i32 to index
      %c0_81 = arith.constant 0 : index
      %134 = vector.load %arg1[%c0_80, %133, %c0_81] : memref<1x1248x4xf32, #tpu.memory_space<vmem>>, vector<1x256x4xf32>
      %135 = vector.shape_cast %134 : vector<1x256x4xf32> to vector<256x4xf32>
      %136 = arith.truncf %135 : vector<256x4xf32> to vector<256x4xbf16>
      %c14 = arith.constant 14 : index
      %c0_82 = arith.constant 0 : index
      %c0_83 = arith.constant 0 : index
      %137 = vector.load %arg2[%c14, %c0_82, %c0_83] : memref<27x4x128xbf16, #tpu.memory_space<vmem>>, vector<1x4x128xbf16>
      %138 = vector.shape_cast %137 : vector<1x4x128xbf16> to vector<4x128xbf16>
      %cst_84 = arith.constant dense<0.000000e+00> : vector<256x128xf32>
      %139 = tpu.matmul %136, %138, %cst_84 {dimension_numbers = #tpu.dot_dimension_numbers<[1], [0], [0], [1], [0, 0, 1, 1], [], []>} : vector<256x4xbf16>, vector<4x128xbf16>, vector<256x128xf32> -> vector<256x128xf32>
      %140 = arith.addf %131, %139 : vector<256x128xf32>
      %c120_i32 = arith.constant 120 : i32
      %141 = arith.addi %4, %c120_i32 : i32
      %c0_85 = arith.constant 0 : index
      %142 = arith.index_cast %141 : i32 to index
      %c0_86 = arith.constant 0 : index
      %143 = vector.load %arg1[%c0_85, %142, %c0_86] : memref<1x1248x4xf32, #tpu.memory_space<vmem>>, vector<1x256x4xf32>
      %144 = vector.shape_cast %143 : vector<1x256x4xf32> to vector<256x4xf32>
      %145 = arith.truncf %144 : vector<256x4xf32> to vector<256x4xbf16>
      %c15 = arith.constant 15 : index
      %c0_87 = arith.constant 0 : index
      %c0_88 = arith.constant 0 : index
      %146 = vector.load %arg2[%c15, %c0_87, %c0_88] : memref<27x4x128xbf16, #tpu.memory_space<vmem>>, vector<1x4x128xbf16>
      %147 = vector.shape_cast %146 : vector<1x4x128xbf16> to vector<4x128xbf16>
      %cst_89 = arith.constant dense<0.000000e+00> : vector<256x128xf32>
      %148 = tpu.matmul %145, %147, %cst_89 {dimension_numbers = #tpu.dot_dimension_numbers<[1], [0], [0], [1], [0, 0, 1, 1], [], []>} : vector<256x4xbf16>, vector<4x128xbf16>, vector<256x128xf32> -> vector<256x128xf32>
      %149 = arith.addf %140, %148 : vector<256x128xf32>
      %c121_i32 = arith.constant 121 : i32
      %150 = arith.addi %4, %c121_i32 : i32
      %c0_90 = arith.constant 0 : index
      %151 = arith.index_cast %150 : i32 to index
      %c0_91 = arith.constant 0 : index
      %152 = vector.load %arg1[%c0_90, %151, %c0_91] : memref<1x1248x4xf32, #tpu.memory_space<vmem>>, vector<1x256x4xf32>
      %153 = vector.shape_cast %152 : vector<1x256x4xf32> to vector<256x4xf32>
      %154 = arith.truncf %153 : vector<256x4xf32> to vector<256x4xbf16>
      %c16 = arith.constant 16 : index
      %c0_92 = arith.constant 0 : index
      %c0_93 = arith.constant 0 : index
      %155 = vector.load %arg2[%c16, %c0_92, %c0_93] : memref<27x4x128xbf16, #tpu.memory_space<vmem>>, vector<1x4x128xbf16>
      %156 = vector.shape_cast %155 : vector<1x4x128xbf16> to vector<4x128xbf16>
      %cst_94 = arith.constant dense<0.000000e+00> : vector<256x128xf32>
      %157 = tpu.matmul %154, %156, %cst_94 {dimension_numbers = #tpu.dot_dimension_numbers<[1], [0], [0], [1], [0, 0, 1, 1], [], []>} : vector<256x4xbf16>, vector<4x128xbf16>, vector<256x128xf32> -> vector<256x128xf32>
      %158 = arith.addf %149, %157 : vector<256x128xf32>
      %c122_i32 = arith.constant 122 : i32
      %159 = arith.addi %4, %c122_i32 : i32
      %c0_95 = arith.constant 0 : index
      %160 = arith.index_cast %159 : i32 to index
      %c0_96 = arith.constant 0 : index
      %161 = vector.load %arg1[%c0_95, %160, %c0_96] : memref<1x1248x4xf32, #tpu.memory_space<vmem>>, vector<1x256x4xf32>
      %162 = vector.shape_cast %161 : vector<1x256x4xf32> to vector<256x4xf32>
      %163 = arith.truncf %162 : vector<256x4xf32> to vector<256x4xbf16>
      %c17 = arith.constant 17 : index
      %c0_97 = arith.constant 0 : index
      %c0_98 = arith.constant 0 : index
      %164 = vector.load %arg2[%c17, %c0_97, %c0_98] : memref<27x4x128xbf16, #tpu.memory_space<vmem>>, vector<1x4x128xbf16>
      %165 = vector.shape_cast %164 : vector<1x4x128xbf16> to vector<4x128xbf16>
      %cst_99 = arith.constant dense<0.000000e+00> : vector<256x128xf32>
      %166 = tpu.matmul %163, %165, %cst_99 {dimension_numbers = #tpu.dot_dimension_numbers<[1], [0], [0], [1], [0, 0, 1, 1], [], []>} : vector<256x4xbf16>, vector<4x128xbf16>, vector<256x128xf32> -> vector<256x128xf32>
      %167 = arith.addf %158, %166 : vector<256x128xf32>
      %c200_i32 = arith.constant 200 : i32
      %168 = arith.addi %4, %c200_i32 : i32
      %c0_100 = arith.constant 0 : index
      %169 = arith.index_cast %168 : i32 to index
      %c0_101 = arith.constant 0 : index
      %170 = vector.load %arg1[%c0_100, %169, %c0_101] : memref<1x1248x4xf32, #tpu.memory_space<vmem>>, vector<1x256x4xf32>
      %171 = vector.shape_cast %170 : vector<1x256x4xf32> to vector<256x4xf32>
      %172 = arith.truncf %171 : vector<256x4xf32> to vector<256x4xbf16>
      %c18 = arith.constant 18 : index
      %c0_102 = arith.constant 0 : index
      %c0_103 = arith.constant 0 : index
      %173 = vector.load %arg2[%c18, %c0_102, %c0_103] : memref<27x4x128xbf16, #tpu.memory_space<vmem>>, vector<1x4x128xbf16>
      %174 = vector.shape_cast %173 : vector<1x4x128xbf16> to vector<4x128xbf16>
      %cst_104 = arith.constant dense<0.000000e+00> : vector<256x128xf32>
      %175 = tpu.matmul %172, %174, %cst_104 {dimension_numbers = #tpu.dot_dimension_numbers<[1], [0], [0], [1], [0, 0, 1, 1], [], []>} : vector<256x4xbf16>, vector<4x128xbf16>, vector<256x128xf32> -> vector<256x128xf32>
      %176 = arith.addf %167, %175 : vector<256x128xf32>
      %c201_i32 = arith.constant 201 : i32
      %177 = arith.addi %4, %c201_i32 : i32
      %c0_105 = arith.constant 0 : index
      %178 = arith.index_cast %177 : i32 to index
      %c0_106 = arith.constant 0 : index
      %179 = vector.load %arg1[%c0_105, %178, %c0_106] : memref<1x1248x4xf32, #tpu.memory_space<vmem>>, vector<1x256x4xf32>
      %180 = vector.shape_cast %179 : vector<1x256x4xf32> to vector<256x4xf32>
      %181 = arith.truncf %180 : vector<256x4xf32> to vector<256x4xbf16>
      %c19 = arith.constant 19 : index
      %c0_107 = arith.constant 0 : index
      %c0_108 = arith.constant 0 : index
      %182 = vector.load %arg2[%c19, %c0_107, %c0_108] : memref<27x4x128xbf16, #tpu.memory_space<vmem>>, vector<1x4x128xbf16>
      %183 = vector.shape_cast %182 : vector<1x4x128xbf16> to vector<4x128xbf16>
      %cst_109 = arith.constant dense<0.000000e+00> : vector<256x128xf32>
      %184 = tpu.matmul %181, %183, %cst_109 {dimension_numbers = #tpu.dot_dimension_numbers<[1], [0], [0], [1], [0, 0, 1, 1], [], []>} : vector<256x4xbf16>, vector<4x128xbf16>, vector<256x128xf32> -> vector<256x128xf32>
      %185 = arith.addf %176, %184 : vector<256x128xf32>
      %c202_i32 = arith.constant 202 : i32
      %186 = arith.addi %4, %c202_i32 : i32
      %c0_110 = arith.constant 0 : index
      %187 = arith.index_cast %186 : i32 to index
      %c0_111 = arith.constant 0 : index
      %188 = vector.load %arg1[%c0_110, %187, %c0_111] : memref<1x1248x4xf32, #tpu.memory_space<vmem>>, vector<1x256x4xf32>
      %189 = vector.shape_cast %188 : vector<1x256x4xf32> to vector<256x4xf32>
      %190 = arith.truncf %189 : vector<256x4xf32> to vector<256x4xbf16>
      %c20 = arith.constant 20 : index
      %c0_112 = arith.constant 0 : index
      %c0_113 = arith.constant 0 : index
      %191 = vector.load %arg2[%c20, %c0_112, %c0_113] : memref<27x4x128xbf16, #tpu.memory_space<vmem>>, vector<1x4x128xbf16>
      %192 = vector.shape_cast %191 : vector<1x4x128xbf16> to vector<4x128xbf16>
      %cst_114 = arith.constant dense<0.000000e+00> : vector<256x128xf32>
      %193 = tpu.matmul %190, %192, %cst_114 {dimension_numbers = #tpu.dot_dimension_numbers<[1], [0], [0], [1], [0, 0, 1, 1], [], []>} : vector<256x4xbf16>, vector<4x128xbf16>, vector<256x128xf32> -> vector<256x128xf32>
      %194 = arith.addf %185, %193 : vector<256x128xf32>
      %c210_i32 = arith.constant 210 : i32
      %195 = arith.addi %4, %c210_i32 : i32
      %c0_115 = arith.constant 0 : index
      %196 = arith.index_cast %195 : i32 to index
      %c0_116 = arith.constant 0 : index
      %197 = vector.load %arg1[%c0_115, %196, %c0_116] : memref<1x1248x4xf32, #tpu.memory_space<vmem>>, vector<1x256x4xf32>
      %198 = vector.shape_cast %197 : vector<1x256x4xf32> to vector<256x4xf32>
      %199 = arith.truncf %198 : vector<256x4xf32> to vector<256x4xbf16>
      %c21 = arith.constant 21 : index
      %c0_117 = arith.constant 0 : index
      %c0_118 = arith.constant 0 : index
      %200 = vector.load %arg2[%c21, %c0_117, %c0_118] : memref<27x4x128xbf16, #tpu.memory_space<vmem>>, vector<1x4x128xbf16>
      %201 = vector.shape_cast %200 : vector<1x4x128xbf16> to vector<4x128xbf16>
      %cst_119 = arith.constant dense<0.000000e+00> : vector<256x128xf32>
      %202 = tpu.matmul %199, %201, %cst_119 {dimension_numbers = #tpu.dot_dimension_numbers<[1], [0], [0], [1], [0, 0, 1, 1], [], []>} : vector<256x4xbf16>, vector<4x128xbf16>, vector<256x128xf32> -> vector<256x128xf32>
      %203 = arith.addf %194, %202 : vector<256x128xf32>
      %c211_i32 = arith.constant 211 : i32
      %204 = arith.addi %4, %c211_i32 : i32
      %c0_120 = arith.constant 0 : index
      %205 = arith.index_cast %204 : i32 to index
      %c0_121 = arith.constant 0 : index
      %206 = vector.load %arg1[%c0_120, %205, %c0_121] : memref<1x1248x4xf32, #tpu.memory_space<vmem>>, vector<1x256x4xf32>
      %207 = vector.shape_cast %206 : vector<1x256x4xf32> to vector<256x4xf32>
      %208 = arith.truncf %207 : vector<256x4xf32> to vector<256x4xbf16>
      %c22 = arith.constant 22 : index
      %c0_122 = arith.constant 0 : index
      %c0_123 = arith.constant 0 : index
      %209 = vector.load %arg2[%c22, %c0_122, %c0_123] : memref<27x4x128xbf16, #tpu.memory_space<vmem>>, vector<1x4x128xbf16>
      %210 = vector.shape_cast %209 : vector<1x4x128xbf16> to vector<4x128xbf16>
      %cst_124 = arith.constant dense<0.000000e+00> : vector<256x128xf32>
      %211 = tpu.matmul %208, %210, %cst_124 {dimension_numbers = #tpu.dot_dimension_numbers<[1], [0], [0], [1], [0, 0, 1, 1], [], []>} : vector<256x4xbf16>, vector<4x128xbf16>, vector<256x128xf32> -> vector<256x128xf32>
      %212 = arith.addf %203, %211 : vector<256x128xf32>
      %c212_i32 = arith.constant 212 : i32
      %213 = arith.addi %4, %c212_i32 : i32
      %c0_125 = arith.constant 0 : index
      %214 = arith.index_cast %213 : i32 to index
      %c0_126 = arith.constant 0 : index
      %215 = vector.load %arg1[%c0_125, %214, %c0_126] : memref<1x1248x4xf32, #tpu.memory_space<vmem>>, vector<1x256x4xf32>
      %216 = vector.shape_cast %215 : vector<1x256x4xf32> to vector<256x4xf32>
      %217 = arith.truncf %216 : vector<256x4xf32> to vector<256x4xbf16>
      %c23 = arith.constant 23 : index
      %c0_127 = arith.constant 0 : index
      %c0_128 = arith.constant 0 : index
      %218 = vector.load %arg2[%c23, %c0_127, %c0_128] : memref<27x4x128xbf16, #tpu.memory_space<vmem>>, vector<1x4x128xbf16>
      %219 = vector.shape_cast %218 : vector<1x4x128xbf16> to vector<4x128xbf16>
      %cst_129 = arith.constant dense<0.000000e+00> : vector<256x128xf32>
      %220 = tpu.matmul %217, %219, %cst_129 {dimension_numbers = #tpu.dot_dimension_numbers<[1], [0], [0], [1], [0, 0, 1, 1], [], []>} : vector<256x4xbf16>, vector<4x128xbf16>, vector<256x128xf32> -> vector<256x128xf32>
      %221 = arith.addf %212, %220 : vector<256x128xf32>
      %c220_i32 = arith.constant 220 : i32
      %222 = arith.addi %4, %c220_i32 : i32
      %c0_130 = arith.constant 0 : index
      %223 = arith.index_cast %222 : i32 to index
      %c0_131 = arith.constant 0 : index
      %224 = vector.load %arg1[%c0_130, %223, %c0_131] : memref<1x1248x4xf32, #tpu.memory_space<vmem>>, vector<1x256x4xf32>
      %225 = vector.shape_cast %224 : vector<1x256x4xf32> to vector<256x4xf32>
      %226 = arith.truncf %225 : vector<256x4xf32> to vector<256x4xbf16>
      %c24 = arith.constant 24 : index
      %c0_132 = arith.constant 0 : index
      %c0_133 = arith.constant 0 : index
      %227 = vector.load %arg2[%c24, %c0_132, %c0_133] : memref<27x4x128xbf16, #tpu.memory_space<vmem>>, vector<1x4x128xbf16>
      %228 = vector.shape_cast %227 : vector<1x4x128xbf16> to vector<4x128xbf16>
      %cst_134 = arith.constant dense<0.000000e+00> : vector<256x128xf32>
      %229 = tpu.matmul %226, %228, %cst_134 {dimension_numbers = #tpu.dot_dimension_numbers<[1], [0], [0], [1], [0, 0, 1, 1], [], []>} : vector<256x4xbf16>, vector<4x128xbf16>, vector<256x128xf32> -> vector<256x128xf32>
      %230 = arith.addf %221, %229 : vector<256x128xf32>
      %c221_i32 = arith.constant 221 : i32
      %231 = arith.addi %4, %c221_i32 : i32
      %c0_135 = arith.constant 0 : index
      %232 = arith.index_cast %231 : i32 to index
      %c0_136 = arith.constant 0 : index
      %233 = vector.load %arg1[%c0_135, %232, %c0_136] : memref<1x1248x4xf32, #tpu.memory_space<vmem>>, vector<1x256x4xf32>
      %234 = vector.shape_cast %233 : vector<1x256x4xf32> to vector<256x4xf32>
      %235 = arith.truncf %234 : vector<256x4xf32> to vector<256x4xbf16>
      %c25 = arith.constant 25 : index
      %c0_137 = arith.constant 0 : index
      %c0_138 = arith.constant 0 : index
      %236 = vector.load %arg2[%c25, %c0_137, %c0_138] : memref<27x4x128xbf16, #tpu.memory_space<vmem>>, vector<1x4x128xbf16>
      %237 = vector.shape_cast %236 : vector<1x4x128xbf16> to vector<4x128xbf16>
      %cst_139 = arith.constant dense<0.000000e+00> : vector<256x128xf32>
      %238 = tpu.matmul %235, %237, %cst_139 {dimension_numbers = #tpu.dot_dimension_numbers<[1], [0], [0], [1], [0, 0, 1, 1], [], []>} : vector<256x4xbf16>, vector<4x128xbf16>, vector<256x128xf32> -> vector<256x128xf32>
      %239 = arith.addf %230, %238 : vector<256x128xf32>
      %c222_i32 = arith.constant 222 : i32
      %240 = arith.addi %4, %c222_i32 : i32
      %c0_140 = arith.constant 0 : index
      %241 = arith.index_cast %240 : i32 to index
      %c0_141 = arith.constant 0 : index
      %242 = vector.load %arg1[%c0_140, %241, %c0_141] : memref<1x1248x4xf32, #tpu.memory_space<vmem>>, vector<1x256x4xf32>
      %243 = vector.shape_cast %242 : vector<1x256x4xf32> to vector<256x4xf32>
      %244 = arith.truncf %243 : vector<256x4xf32> to vector<256x4xbf16>
      %c26 = arith.constant 26 : index
      %c0_142 = arith.constant 0 : index
      %c0_143 = arith.constant 0 : index
      %245 = vector.load %arg2[%c26, %c0_142, %c0_143] : memref<27x4x128xbf16, #tpu.memory_space<vmem>>, vector<1x4x128xbf16>
      %246 = vector.shape_cast %245 : vector<1x4x128xbf16> to vector<4x128xbf16>
      %cst_144 = arith.constant dense<0.000000e+00> : vector<256x128xf32>
      %247 = tpu.matmul %244, %246, %cst_144 {dimension_numbers = #tpu.dot_dimension_numbers<[1], [0], [0], [1], [0, 0, 1, 1], [], []>} : vector<256x4xbf16>, vector<4x128xbf16>, vector<256x128xf32> -> vector<256x128xf32>
      %248 = arith.addf %239, %247 : vector<256x128xf32>
      %c0_145 = arith.constant 0 : index
      %c0_146 = arith.constant 0 : index
      %249 = vector.load %arg3[%c0_145, %c0_146] : memref<1x128xf32, #tpu.memory_space<vmem>>, vector<1x128xf32>
      %250 = vector.broadcast %249 : vector<1x128xf32> to vector<256x128xf32>
      %251 = arith.addf %248, %250 : vector<256x128xf32>
      %cst_147 = arith.constant 0.000000e+00 : f32
      %252 = vector.broadcast %cst_147 : f32 to vector<256x128xf32>
      %253 = arith.maximumf %251, %252 : vector<256x128xf32>
      %254 = arith.index_cast %4 : i32 to index
      %c0_148 = arith.constant 0 : index
      %255 = vector.load %arg6[%254, %c0_148] : memref<1024x1xf32, #tpu.memory_space<vmem>>, vector<256x1xf32>
      %256 = vector.broadcast %255 : vector<256x1xf32> to vector<256x128xf32>
      %257 = arith.mulf %253, %256 : vector<256x128xf32>
      %c111_i32_149 = arith.constant 111 : i32
      %258 = arith.addi %4, %c111_i32_149 : i32
      %259 = arith.index_cast %258 : i32 to index
      %c0_150 = arith.constant 0 : index
      %260 = vector.load %arg8[%259, %c0_150] : memref<1248x128xf32, #tpu.memory_space<vmem>>, vector<256x128xf32>
      tpu.vector_store %arg8[%259, %c0_150], %257 {strides = array<i32>} : memref<1248x128xf32, #tpu.memory_space<vmem>>, vector<256x128xf32>,
    }
    %c4_i32_1 = arith.constant 4 : i32
    %c0_i32_2 = arith.constant 0 : i32
    %c4_i32_3 = arith.constant 4 : i32
    %3 = arith.addi %c0_i32_2, %c4_i32_3 : i32
    %c1_i32_4 = arith.constant 1 : i32
    scf.for %arg9 = %c0_i32_2 to %3 step %c1_i32_4  : i32 {
      %c256_i32 = arith.constant 256 : i32
      %4 = arith.muli %arg9, %c256_i32 : i32
      %cst_6 = arith.constant 0.000000e+00 : f32
      %5 = vector.broadcast %cst_6 : f32 to vector<256x128xf32>
      %c0_i32_7 = arith.constant 0 : i32
      %6 = arith.addi %4, %c0_i32_7 : i32
      %7 = arith.index_cast %6 : i32 to index
      %c0_8 = arith.constant 0 : index
      %8 = vector.load %arg8[%7, %c0_8] : memref<1248x128xf32, #tpu.memory_space<vmem>>, vector<256x128xf32>
      %9 = arith.truncf %8 : vector<256x128xf32> to vector<256x128xbf16>
      %c0_9 = arith.constant 0 : index
      %c0_10 = arith.constant 0 : index
      %c0_11 = arith.constant 0 : index
      %10 = vector.load %arg4[%c0_9, %c0_10, %c0_11] : memref<27x128x128xbf16, #tpu.memory_space<vmem>>, vector<1x128x128xbf16>
      %11 = vector.shape_cast %10 : vector<1x128x128xbf16> to vector<128x128xbf16>
      %cst_12 = arith.constant dense<0.000000e+00> : vector<256x128xf32>
      %12 = tpu.matmul %9, %11, %cst_12 {dimension_numbers = #tpu.dot_dimension_numbers<[1], [0], [0], [1], [0, 0, 1, 1], [], []>} : vector<256x128xbf16>, vector<128x128xbf16>, vector<256x128xf32> -> vector<256x128xf32>
      %13 = arith.addf %5, %12 : vector<256x128xf32>
      %c1_i32_13 = arith.constant 1 : i32
      %14 = arith.addi %4, %c1_i32_13 : i32
      %15 = arith.index_cast %14 : i32 to index
      %c0_14 = arith.constant 0 : index
      %16 = vector.load %arg8[%15, %c0_14] : memref<1248x128xf32, #tpu.memory_space<vmem>>, vector<256x128xf32>
      %17 = arith.truncf %16 : vector<256x128xf32> to vector<256x128xbf16>
      %c1 = arith.constant 1 : index
      %c0_15 = arith.constant 0 : index
      %c0_16 = arith.constant 0 : index
      %18 = vector.load %arg4[%c1, %c0_15, %c0_16] : memref<27x128x128xbf16, #tpu.memory_space<vmem>>, vector<1x128x128xbf16>
      %19 = vector.shape_cast %18 : vector<1x128x128xbf16> to vector<128x128xbf16>
      %cst_17 = arith.constant dense<0.000000e+00> : vector<256x128xf32>
      %20 = tpu.matmul %17, %19, %cst_17 {dimension_numbers = #tpu.dot_dimension_numbers<[1], [0], [0], [1], [0, 0, 1, 1], [], []>} : vector<256x128xbf16>, vector<128x128xbf16>, vector<256x128xf32> -> vector<256x128xf32>
      %21 = arith.addf %13, %20 : vector<256x128xf32>
      %c2_i32 = arith.constant 2 : i32
      %22 = arith.addi %4, %c2_i32 : i32
      %23 = arith.index_cast %22 : i32 to index
      %c0_18 = arith.constant 0 : index
      %24 = vector.load %arg8[%23, %c0_18] : memref<1248x128xf32, #tpu.memory_space<vmem>>, vector<256x128xf32>
      %25 = arith.truncf %24 : vector<256x128xf32> to vector<256x128xbf16>
      %c2 = arith.constant 2 : index
      %c0_19 = arith.constant 0 : index
      %c0_20 = arith.constant 0 : index
      %26 = vector.load %arg4[%c2, %c0_19, %c0_20] : memref<27x128x128xbf16, #tpu.memory_space<vmem>>, vector<1x128x128xbf16>
      %27 = vector.shape_cast %26 : vector<1x128x128xbf16> to vector<128x128xbf16>
      %cst_21 = arith.constant dense<0.000000e+00> : vector<256x128xf32>
      %28 = tpu.matmul %25, %27, %cst_21 {dimension_numbers = #tpu.dot_dimension_numbers<[1], [0], [0], [1], [0, 0, 1, 1], [], []>} : vector<256x128xbf16>, vector<128x128xbf16>, vector<256x128xf32> -> vector<256x128xf32>
      %29 = arith.addf %21, %28 : vector<256x128xf32>
      %c10_i32 = arith.constant 10 : i32
      %30 = arith.addi %4, %c10_i32 : i32
      %31 = arith.index_cast %30 : i32 to index
      %c0_22 = arith.constant 0 : index
      %32 = vector.load %arg8[%31, %c0_22] : memref<1248x128xf32, #tpu.memory_space<vmem>>, vector<256x128xf32>
      %33 = arith.truncf %32 : vector<256x128xf32> to vector<256x128xbf16>
      %c3 = arith.constant 3 : index
      %c0_23 = arith.constant 0 : index
      %c0_24 = arith.constant 0 : index
      %34 = vector.load %arg4[%c3, %c0_23, %c0_24] : memref<27x128x128xbf16, #tpu.memory_space<vmem>>, vector<1x128x128xbf16>
      %35 = vector.shape_cast %34 : vector<1x128x128xbf16> to vector<128x128xbf16>
      %cst_25 = arith.constant dense<0.000000e+00> : vector<256x128xf32>
      %36 = tpu.matmul %33, %35, %cst_25 {dimension_numbers = #tpu.dot_dimension_numbers<[1], [0], [0], [1], [0, 0, 1, 1], [], []>} : vector<256x128xbf16>, vector<128x128xbf16>, vector<256x128xf32> -> vector<256x128xf32>
      %37 = arith.addf %29, %36 : vector<256x128xf32>
      %c11_i32 = arith.constant 11 : i32
      %38 = arith.addi %4, %c11_i32 : i32
      %39 = arith.index_cast %38 : i32 to index
      %c0_26 = arith.constant 0 : index
      %40 = vector.load %arg8[%39, %c0_26] : memref<1248x128xf32, #tpu.memory_space<vmem>>, vector<256x128xf32>
      %41 = arith.truncf %40 : vector<256x128xf32> to vector<256x128xbf16>
      %c4 = arith.constant 4 : index
      %c0_27 = arith.constant 0 : index
      %c0_28 = arith.constant 0 : index
      %42 = vector.load %arg4[%c4, %c0_27, %c0_28] : memref<27x128x128xbf16, #tpu.memory_space<vmem>>, vector<1x128x128xbf16>
      %43 = vector.shape_cast %42 : vector<1x128x128xbf16> to vector<128x128xbf16>
      %cst_29 = arith.constant dense<0.000000e+00> : vector<256x128xf32>
      %44 = tpu.matmul %41, %43, %cst_29 {dimension_numbers = #tpu.dot_dimension_numbers<[1], [0], [0], [1], [0, 0, 1, 1], [], []>} : vector<256x128xbf16>, vector<128x128xbf16>, vector<256x128xf32> -> vector<256x128xf32>
      %45 = arith.addf %37, %44 : vector<256x128xf32>
      %c12_i32 = arith.constant 12 : i32
      %46 = arith.addi %4, %c12_i32 : i32
      %47 = arith.index_cast %46 : i32 to index
      %c0_30 = arith.constant 0 : index
      %48 = vector.load %arg8[%47, %c0_30] : memref<1248x128xf32, #tpu.memory_space<vmem>>, vector<256x128xf32>
      %49 = arith.truncf %48 : vector<256x128xf32> to vector<256x128xbf16>
      %c5 = arith.constant 5 : index
      %c0_31 = arith.constant 0 : index
      %c0_32 = arith.constant 0 : index
      %50 = vector.load %arg4[%c5, %c0_31, %c0_32] : memref<27x128x128xbf16, #tpu.memory_space<vmem>>, vector<1x128x128xbf16>
      %51 = vector.shape_cast %50 : vector<1x128x128xbf16> to vector<128x128xbf16>
      %cst_33 = arith.constant dense<0.000000e+00> : vector<256x128xf32>
      %52 = tpu.matmul %49, %51, %cst_33 {dimension_numbers = #tpu.dot_dimension_numbers<[1], [0], [0], [1], [0, 0, 1, 1], [], []>} : vector<256x128xbf16>, vector<128x128xbf16>, vector<256x128xf32> -> vector<256x128xf32>
      %53 = arith.addf %45, %52 : vector<256x128xf32>
      %c20_i32 = arith.constant 20 : i32
      %54 = arith.addi %4, %c20_i32 : i32
      %55 = arith.index_cast %54 : i32 to index
      %c0_34 = arith.constant 0 : index
      %56 = vector.load %arg8[%55, %c0_34] : memref<1248x128xf32, #tpu.memory_space<vmem>>, vector<256x128xf32>
      %57 = arith.truncf %56 : vector<256x128xf32> to vector<256x128xbf16>
      %c6 = arith.constant 6 : index
      %c0_35 = arith.constant 0 : index
      %c0_36 = arith.constant 0 : index
      %58 = vector.load %arg4[%c6, %c0_35, %c0_36] : memref<27x128x128xbf16, #tpu.memory_space<vmem>>, vector<1x128x128xbf16>
      %59 = vector.shape_cast %58 : vector<1x128x128xbf16> to vector<128x128xbf16>
      %cst_37 = arith.constant dense<0.000000e+00> : vector<256x128xf32>
      %60 = tpu.matmul %57, %59, %cst_37 {dimension_numbers = #tpu.dot_dimension_numbers<[1], [0], [0], [1], [0, 0, 1, 1], [], []>} : vector<256x128xbf16>, vector<128x128xbf16>, vector<256x128xf32> -> vector<256x128xf32>
      %61 = arith.addf %53, %60 : vector<256x128xf32>
      %c21_i32 = arith.constant 21 : i32
      %62 = arith.addi %4, %c21_i32 : i32
      %63 = arith.index_cast %62 : i32 to index
      %c0_38 = arith.constant 0 : index
      %64 = vector.load %arg8[%63, %c0_38] : memref<1248x128xf32, #tpu.memory_space<vmem>>, vector<256x128xf32>
      %65 = arith.truncf %64 : vector<256x128xf32> to vector<256x128xbf16>
      %c7 = arith.constant 7 : index
      %c0_39 = arith.constant 0 : index
      %c0_40 = arith.constant 0 : index
      %66 = vector.load %arg4[%c7, %c0_39, %c0_40] : memref<27x128x128xbf16, #tpu.memory_space<vmem>>, vector<1x128x128xbf16>
      %67 = vector.shape_cast %66 : vector<1x128x128xbf16> to vector<128x128xbf16>
      %cst_41 = arith.constant dense<0.000000e+00> : vector<256x128xf32>
      %68 = tpu.matmul %65, %67, %cst_41 {dimension_numbers = #tpu.dot_dimension_numbers<[1], [0], [0], [1], [0, 0, 1, 1], [], []>} : vector<256x128xbf16>, vector<128x128xbf16>, vector<256x128xf32> -> vector<256x128xf32>
      %69 = arith.addf %61, %68 : vector<256x128xf32>
      %c22_i32 = arith.constant 22 : i32
      %70 = arith.addi %4, %c22_i32 : i32
      %71 = arith.index_cast %70 : i32 to index
      %c0_42 = arith.constant 0 : index
      %72 = vector.load %arg8[%71, %c0_42] : memref<1248x128xf32, #tpu.memory_space<vmem>>, vector<256x128xf32>
      %73 = arith.truncf %72 : vector<256x128xf32> to vector<256x128xbf16>
      %c8 = arith.constant 8 : index
      %c0_43 = arith.constant 0 : index
      %c0_44 = arith.constant 0 : index
      %74 = vector.load %arg4[%c8, %c0_43, %c0_44] : memref<27x128x128xbf16, #tpu.memory_space<vmem>>, vector<1x128x128xbf16>
      %75 = vector.shape_cast %74 : vector<1x128x128xbf16> to vector<128x128xbf16>
      %cst_45 = arith.constant dense<0.000000e+00> : vector<256x128xf32>
      %76 = tpu.matmul %73, %75, %cst_45 {dimension_numbers = #tpu.dot_dimension_numbers<[1], [0], [0], [1], [0, 0, 1, 1], [], []>} : vector<256x128xbf16>, vector<128x128xbf16>, vector<256x128xf32> -> vector<256x128xf32>
      %77 = arith.addf %69, %76 : vector<256x128xf32>
      %c100_i32 = arith.constant 100 : i32
      %78 = arith.addi %4, %c100_i32 : i32
      %79 = arith.index_cast %78 : i32 to index
      %c0_46 = arith.constant 0 : index
      %80 = vector.load %arg8[%79, %c0_46] : memref<1248x128xf32, #tpu.memory_space<vmem>>, vector<256x128xf32>
      %81 = arith.truncf %80 : vector<256x128xf32> to vector<256x128xbf16>
      %c9 = arith.constant 9 : index
      %c0_47 = arith.constant 0 : index
      %c0_48 = arith.constant 0 : index
      %82 = vector.load %arg4[%c9, %c0_47, %c0_48] : memref<27x128x128xbf16, #tpu.memory_space<vmem>>, vector<1x128x128xbf16>
      %83 = vector.shape_cast %82 : vector<1x128x128xbf16> to vector<128x128xbf16>
      %cst_49 = arith.constant dense<0.000000e+00> : vector<256x128xf32>
      %84 = tpu.matmul %81, %83, %cst_49 {dimension_numbers = #tpu.dot_dimension_numbers<[1], [0], [0], [1], [0, 0, 1, 1], [], []>} : vector<256x128xbf16>, vector<128x128xbf16>, vector<256x128xf32> -> vector<256x128xf32>
      %85 = arith.addf %77, %84 : vector<256x128xf32>
      %c101_i32 = arith.constant 101 : i32
      %86 = arith.addi %4, %c101_i32 : i32
      %87 = arith.index_cast %86 : i32 to index
      %c0_50 = arith.constant 0 : index
      %88 = vector.load %arg8[%87, %c0_50] : memref<1248x128xf32, #tpu.memory_space<vmem>>, vector<256x128xf32>
      %89 = arith.truncf %88 : vector<256x128xf32> to vector<256x128xbf16>
      %c10 = arith.constant 10 : index
      %c0_51 = arith.constant 0 : index
      %c0_52 = arith.constant 0 : index
      %90 = vector.load %arg4[%c10, %c0_51, %c0_52] : memref<27x128x128xbf16, #tpu.memory_space<vmem>>, vector<1x128x128xbf16>
      %91 = vector.shape_cast %90 : vector<1x128x128xbf16> to vector<128x128xbf16>
      %cst_53 = arith.constant dense<0.000000e+00> : vector<256x128xf32>
      %92 = tpu.matmul %89, %91, %cst_53 {dimension_numbers = #tpu.dot_dimension_numbers<[1], [0], [0], [1], [0, 0, 1, 1], [], []>} : vector<256x128xbf16>, vector<128x128xbf16>, vector<256x128xf32> -> vector<256x128xf32>
      %93 = arith.addf %85, %92 : vector<256x128xf32>
      %c102_i32 = arith.constant 102 : i32
      %94 = arith.addi %4, %c102_i32 : i32
      %95 = arith.index_cast %94 : i32 to index
      %c0_54 = arith.constant 0 : index
      %96 = vector.load %arg8[%95, %c0_54] : memref<1248x128xf32, #tpu.memory_space<vmem>>, vector<256x128xf32>
      %97 = arith.truncf %96 : vector<256x128xf32> to vector<256x128xbf16>
      %c11 = arith.constant 11 : index
      %c0_55 = arith.constant 0 : index
      %c0_56 = arith.constant 0 : index
      %98 = vector.load %arg4[%c11, %c0_55, %c0_56] : memref<27x128x128xbf16, #tpu.memory_space<vmem>>, vector<1x128x128xbf16>
      %99 = vector.shape_cast %98 : vector<1x128x128xbf16> to vector<128x128xbf16>
      %cst_57 = arith.constant dense<0.000000e+00> : vector<256x128xf32>
      %100 = tpu.matmul %97, %99, %cst_57 {dimension_numbers = #tpu.dot_dimension_numbers<[1], [0], [0], [1], [0, 0, 1, 1], [], []>} : vector<256x128xbf16>, vector<128x128xbf16>, vector<256x128xf32> -> vector<256x128xf32>
      %101 = arith.addf %93, %100 : vector<256x128xf32>
      %c110_i32 = arith.constant 110 : i32
      %102 = arith.addi %4, %c110_i32 : i32
      %103 = arith.index_cast %102 : i32 to index
      %c0_58 = arith.constant 0 : index
      %104 = vector.load %arg8[%103, %c0_58] : memref<1248x128xf32, #tpu.memory_space<vmem>>, vector<256x128xf32>
      %105 = arith.truncf %104 : vector<256x128xf32> to vector<256x128xbf16>
      %c12 = arith.constant 12 : index
      %c0_59 = arith.constant 0 : index
      %c0_60 = arith.constant 0 : index
      %106 = vector.load %arg4[%c12, %c0_59, %c0_60] : memref<27x128x128xbf16, #tpu.memory_space<vmem>>, vector<1x128x128xbf16>
      %107 = vector.shape_cast %106 : vector<1x128x128xbf16> to vector<128x128xbf16>
      %cst_61 = arith.constant dense<0.000000e+00> : vector<256x128xf32>
      %108 = tpu.matmul %105, %107, %cst_61 {dimension_numbers = #tpu.dot_dimension_numbers<[1], [0], [0], [1], [0, 0, 1, 1], [], []>} : vector<256x128xbf16>, vector<128x128xbf16>, vector<256x128xf32> -> vector<256x128xf32>
      %109 = arith.addf %101, %108 : vector<256x128xf32>
      %c111_i32 = arith.constant 111 : i32
      %110 = arith.addi %4, %c111_i32 : i32
      %111 = arith.index_cast %110 : i32 to index
      %c0_62 = arith.constant 0 : index
      %112 = vector.load %arg8[%111, %c0_62] : memref<1248x128xf32, #tpu.memory_space<vmem>>, vector<256x128xf32>
      %113 = arith.truncf %112 : vector<256x128xf32> to vector<256x128xbf16>
      %c13 = arith.constant 13 : index
      %c0_63 = arith.constant 0 : index
      %c0_64 = arith.constant 0 : index
      %114 = vector.load %arg4[%c13, %c0_63, %c0_64] : memref<27x128x128xbf16, #tpu.memory_space<vmem>>, vector<1x128x128xbf16>
      %115 = vector.shape_cast %114 : vector<1x128x128xbf16> to vector<128x128xbf16>
      %cst_65 = arith.constant dense<0.000000e+00> : vector<256x128xf32>
      %116 = tpu.matmul %113, %115, %cst_65 {dimension_numbers = #tpu.dot_dimension_numbers<[1], [0], [0], [1], [0, 0, 1, 1], [], []>} : vector<256x128xbf16>, vector<128x128xbf16>, vector<256x128xf32> -> vector<256x128xf32>
      %117 = arith.addf %109, %116 : vector<256x128xf32>
      %c112_i32 = arith.constant 112 : i32
      %118 = arith.addi %4, %c112_i32 : i32
      %119 = arith.index_cast %118 : i32 to index
      %c0_66 = arith.constant 0 : index
      %120 = vector.load %arg8[%119, %c0_66] : memref<1248x128xf32, #tpu.memory_space<vmem>>, vector<256x128xf32>
      %121 = arith.truncf %120 : vector<256x128xf32> to vector<256x128xbf16>
      %c14 = arith.constant 14 : index
      %c0_67 = arith.constant 0 : index
      %c0_68 = arith.constant 0 : index
      %122 = vector.load %arg4[%c14, %c0_67, %c0_68] : memref<27x128x128xbf16, #tpu.memory_space<vmem>>, vector<1x128x128xbf16>
      %123 = vector.shape_cast %122 : vector<1x128x128xbf16> to vector<128x128xbf16>
      %cst_69 = arith.constant dense<0.000000e+00> : vector<256x128xf32>
      %124 = tpu.matmul %121, %123, %cst_69 {dimension_numbers = #tpu.dot_dimension_numbers<[1], [0], [0], [1], [0, 0, 1, 1], [], []>} : vector<256x128xbf16>, vector<128x128xbf16>, vector<256x128xf32> -> vector<256x128xf32>
      %125 = arith.addf %117, %124 : vector<256x128xf32>
      %c120_i32 = arith.constant 120 : i32
      %126 = arith.addi %4, %c120_i32 : i32
      %127 = arith.index_cast %126 : i32 to index
      %c0_70 = arith.constant 0 : index
      %128 = vector.load %arg8[%127, %c0_70] : memref<1248x128xf32, #tpu.memory_space<vmem>>, vector<256x128xf32>
      %129 = arith.truncf %128 : vector<256x128xf32> to vector<256x128xbf16>
      %c15 = arith.constant 15 : index
      %c0_71 = arith.constant 0 : index
      %c0_72 = arith.constant 0 : index
      %130 = vector.load %arg4[%c15, %c0_71, %c0_72] : memref<27x128x128xbf16, #tpu.memory_space<vmem>>, vector<1x128x128xbf16>
      %131 = vector.shape_cast %130 : vector<1x128x128xbf16> to vector<128x128xbf16>
      %cst_73 = arith.constant dense<0.000000e+00> : vector<256x128xf32>
      %132 = tpu.matmul %129, %131, %cst_73 {dimension_numbers = #tpu.dot_dimension_numbers<[1], [0], [0], [1], [0, 0, 1, 1], [], []>} : vector<256x128xbf16>, vector<128x128xbf16>, vector<256x128xf32> -> vector<256x128xf32>
      %133 = arith.addf %125, %132 : vector<256x128xf32>
      %c121_i32 = arith.constant 121 : i32
      %134 = arith.addi %4, %c121_i32 : i32
      %135 = arith.index_cast %134 : i32 to index
      %c0_74 = arith.constant 0 : index
      %136 = vector.load %arg8[%135, %c0_74] : memref<1248x128xf32, #tpu.memory_space<vmem>>, vector<256x128xf32>
      %137 = arith.truncf %136 : vector<256x128xf32> to vector<256x128xbf16>
      %c16 = arith.constant 16 : index
      %c0_75 = arith.constant 0 : index
      %c0_76 = arith.constant 0 : index
      %138 = vector.load %arg4[%c16, %c0_75, %c0_76] : memref<27x128x128xbf16, #tpu.memory_space<vmem>>, vector<1x128x128xbf16>
      %139 = vector.shape_cast %138 : vector<1x128x128xbf16> to vector<128x128xbf16>
      %cst_77 = arith.constant dense<0.000000e+00> : vector<256x128xf32>
      %140 = tpu.matmul %137, %139, %cst_77 {dimension_numbers = #tpu.dot_dimension_numbers<[1], [0], [0], [1], [0, 0, 1, 1], [], []>} : vector<256x128xbf16>, vector<128x128xbf16>, vector<256x128xf32> -> vector<256x128xf32>
      %141 = arith.addf %133, %140 : vector<256x128xf32>
      %c122_i32 = arith.constant 122 : i32
      %142 = arith.addi %4, %c122_i32 : i32
      %143 = arith.index_cast %142 : i32 to index
      %c0_78 = arith.constant 0 : index
      %144 = vector.load %arg8[%143, %c0_78] : memref<1248x128xf32, #tpu.memory_space<vmem>>, vector<256x128xf32>
      %145 = arith.truncf %144 : vector<256x128xf32> to vector<256x128xbf16>
      %c17 = arith.constant 17 : index
      %c0_79 = arith.constant 0 : index
      %c0_80 = arith.constant 0 : index
      %146 = vector.load %arg4[%c17, %c0_79, %c0_80] : memref<27x128x128xbf16, #tpu.memory_space<vmem>>, vector<1x128x128xbf16>
      %147 = vector.shape_cast %146 : vector<1x128x128xbf16> to vector<128x128xbf16>
      %cst_81 = arith.constant dense<0.000000e+00> : vector<256x128xf32>
      %148 = tpu.matmul %145, %147, %cst_81 {dimension_numbers = #tpu.dot_dimension_numbers<[1], [0], [0], [1], [0, 0, 1, 1], [], []>} : vector<256x128xbf16>, vector<128x128xbf16>, vector<256x128xf32> -> vector<256x128xf32>
      %149 = arith.addf %141, %148 : vector<256x128xf32>
      %c200_i32 = arith.constant 200 : i32
      %150 = arith.addi %4, %c200_i32 : i32
      %151 = arith.index_cast %150 : i32 to index
      %c0_82 = arith.constant 0 : index
      %152 = vector.load %arg8[%151, %c0_82] : memref<1248x128xf32, #tpu.memory_space<vmem>>, vector<256x128xf32>
      %153 = arith.truncf %152 : vector<256x128xf32> to vector<256x128xbf16>
      %c18 = arith.constant 18 : index
      %c0_83 = arith.constant 0 : index
      %c0_84 = arith.constant 0 : index
      %154 = vector.load %arg4[%c18, %c0_83, %c0_84] : memref<27x128x128xbf16, #tpu.memory_space<vmem>>, vector<1x128x128xbf16>
      %155 = vector.shape_cast %154 : vector<1x128x128xbf16> to vector<128x128xbf16>
      %cst_85 = arith.constant dense<0.000000e+00> : vector<256x128xf32>
      %156 = tpu.matmul %153, %155, %cst_85 {dimension_numbers = #tpu.dot_dimension_numbers<[1], [0], [0], [1], [0, 0, 1, 1], [], []>} : vector<256x128xbf16>, vector<128x128xbf16>, vector<256x128xf32> -> vector<256x128xf32>
      %157 = arith.addf %149, %156 : vector<256x128xf32>
      %c201_i32 = arith.constant 201 : i32
      %158 = arith.addi %4, %c201_i32 : i32
      %159 = arith.index_cast %158 : i32 to index
      %c0_86 = arith.constant 0 : index
      %160 = vector.load %arg8[%159, %c0_86] : memref<1248x128xf32, #tpu.memory_space<vmem>>, vector<256x128xf32>
      %161 = arith.truncf %160 : vector<256x128xf32> to vector<256x128xbf16>
      %c19 = arith.constant 19 : index
      %c0_87 = arith.constant 0 : index
      %c0_88 = arith.constant 0 : index
      %162 = vector.load %arg4[%c19, %c0_87, %c0_88] : memref<27x128x128xbf16, #tpu.memory_space<vmem>>, vector<1x128x128xbf16>
      %163 = vector.shape_cast %162 : vector<1x128x128xbf16> to vector<128x128xbf16>
      %cst_89 = arith.constant dense<0.000000e+00> : vector<256x128xf32>
      %164 = tpu.matmul %161, %163, %cst_89 {dimension_numbers = #tpu.dot_dimension_numbers<[1], [0], [0], [1], [0, 0, 1, 1], [], []>} : vector<256x128xbf16>, vector<128x128xbf16>, vector<256x128xf32> -> vector<256x128xf32>
      %165 = arith.addf %157, %164 : vector<256x128xf32>
      %c202_i32 = arith.constant 202 : i32
      %166 = arith.addi %4, %c202_i32 : i32
      %167 = arith.index_cast %166 : i32 to index
      %c0_90 = arith.constant 0 : index
      %168 = vector.load %arg8[%167, %c0_90] : memref<1248x128xf32, #tpu.memory_space<vmem>>, vector<256x128xf32>
      %169 = arith.truncf %168 : vector<256x128xf32> to vector<256x128xbf16>
      %c20 = arith.constant 20 : index
      %c0_91 = arith.constant 0 : index
      %c0_92 = arith.constant 0 : index
      %170 = vector.load %arg4[%c20, %c0_91, %c0_92] : memref<27x128x128xbf16, #tpu.memory_space<vmem>>, vector<1x128x128xbf16>
      %171 = vector.shape_cast %170 : vector<1x128x128xbf16> to vector<128x128xbf16>
      %cst_93 = arith.constant dense<0.000000e+00> : vector<256x128xf32>
      %172 = tpu.matmul %169, %171, %cst_93 {dimension_numbers = #tpu.dot_dimension_numbers<[1], [0], [0], [1], [0, 0, 1, 1], [], []>} : vector<256x128xbf16>, vector<128x128xbf16>, vector<256x128xf32> -> vector<256x128xf32>
      %173 = arith.addf %165, %172 : vector<256x128xf32>
      %c210_i32 = arith.constant 210 : i32
      %174 = arith.addi %4, %c210_i32 : i32
      %175 = arith.index_cast %174 : i32 to index
      %c0_94 = arith.constant 0 : index
      %176 = vector.load %arg8[%175, %c0_94] : memref<1248x128xf32, #tpu.memory_space<vmem>>, vector<256x128xf32>
      %177 = arith.truncf %176 : vector<256x128xf32> to vector<256x128xbf16>
      %c21 = arith.constant 21 : index
      %c0_95 = arith.constant 0 : index
      %c0_96 = arith.constant 0 : index
      %178 = vector.load %arg4[%c21, %c0_95, %c0_96] : memref<27x128x128xbf16, #tpu.memory_space<vmem>>, vector<1x128x128xbf16>
      %179 = vector.shape_cast %178 : vector<1x128x128xbf16> to vector<128x128xbf16>
      %cst_97 = arith.constant dense<0.000000e+00> : vector<256x128xf32>
      %180 = tpu.matmul %177, %179, %cst_97 {dimension_numbers = #tpu.dot_dimension_numbers<[1], [0], [0], [1], [0, 0, 1, 1], [], []>} : vector<256x128xbf16>, vector<128x128xbf16>, vector<256x128xf32> -> vector<256x128xf32>
      %181 = arith.addf %173, %180 : vector<256x128xf32>
      %c211_i32 = arith.constant 211 : i32
      %182 = arith.addi %4, %c211_i32 : i32
      %183 = arith.index_cast %182 : i32 to index
      %c0_98 = arith.constant 0 : index
      %184 = vector.load %arg8[%183, %c0_98] : memref<1248x128xf32, #tpu.memory_space<vmem>>, vector<256x128xf32>
      %185 = arith.truncf %184 : vector<256x128xf32> to vector<256x128xbf16>
      %c22 = arith.constant 22 : index
      %c0_99 = arith.constant 0 : index
      %c0_100 = arith.constant 0 : index
      %186 = vector.load %arg4[%c22, %c0_99, %c0_100] : memref<27x128x128xbf16, #tpu.memory_space<vmem>>, vector<1x128x128xbf16>
      %187 = vector.shape_cast %186 : vector<1x128x128xbf16> to vector<128x128xbf16>
      %cst_101 = arith.constant dense<0.000000e+00> : vector<256x128xf32>
      %188 = tpu.matmul %185, %187, %cst_101 {dimension_numbers = #tpu.dot_dimension_numbers<[1], [0], [0], [1], [0, 0, 1, 1], [], []>} : vector<256x128xbf16>, vector<128x128xbf16>, vector<256x128xf32> -> vector<256x128xf32>
      %189 = arith.addf %181, %188 : vector<256x128xf32>
      %c212_i32 = arith.constant 212 : i32
      %190 = arith.addi %4, %c212_i32 : i32
      %191 = arith.index_cast %190 : i32 to index
      %c0_102 = arith.constant 0 : index
      %192 = vector.load %arg8[%191, %c0_102] : memref<1248x128xf32, #tpu.memory_space<vmem>>, vector<256x128xf32>
      %193 = arith.truncf %192 : vector<256x128xf32> to vector<256x128xbf16>
      %c23 = arith.constant 23 : index
      %c0_103 = arith.constant 0 : index
      %c0_104 = arith.constant 0 : index
      %194 = vector.load %arg4[%c23, %c0_103, %c0_104] : memref<27x128x128xbf16, #tpu.memory_space<vmem>>, vector<1x128x128xbf16>
      %195 = vector.shape_cast %194 : vector<1x128x128xbf16> to vector<128x128xbf16>
      %cst_105 = arith.constant dense<0.000000e+00> : vector<256x128xf32>
      %196 = tpu.matmul %193, %195, %cst_105 {dimension_numbers = #tpu.dot_dimension_numbers<[1], [0], [0], [1], [0, 0, 1, 1], [], []>} : vector<256x128xbf16>, vector<128x128xbf16>, vector<256x128xf32> -> vector<256x128xf32>
      %197 = arith.addf %189, %196 : vector<256x128xf32>
      %c220_i32 = arith.constant 220 : i32
      %198 = arith.addi %4, %c220_i32 : i32
      %199 = arith.index_cast %198 : i32 to index
      %c0_106 = arith.constant 0 : index
      %200 = vector.load %arg8[%199, %c0_106] : memref<1248x128xf32, #tpu.memory_space<vmem>>, vector<256x128xf32>
      %201 = arith.truncf %200 : vector<256x128xf32> to vector<256x128xbf16>
      %c24 = arith.constant 24 : index
      %c0_107 = arith.constant 0 : index
      %c0_108 = arith.constant 0 : index
      %202 = vector.load %arg4[%c24, %c0_107, %c0_108] : memref<27x128x128xbf16, #tpu.memory_space<vmem>>, vector<1x128x128xbf16>
      %203 = vector.shape_cast %202 : vector<1x128x128xbf16> to vector<128x128xbf16>
      %cst_109 = arith.constant dense<0.000000e+00> : vector<256x128xf32>
      %204 = tpu.matmul %201, %203, %cst_109 {dimension_numbers = #tpu.dot_dimension_numbers<[1], [0], [0], [1], [0, 0, 1, 1], [], []>} : vector<256x128xbf16>, vector<128x128xbf16>, vector<256x128xf32> -> vector<256x128xf32>
      %205 = arith.addf %197, %204 : vector<256x128xf32>
      %c221_i32 = arith.constant 221 : i32
      %206 = arith.addi %4, %c221_i32 : i32
      %207 = arith.index_cast %206 : i32 to index
      %c0_110 = arith.constant 0 : index
      %208 = vector.load %arg8[%207, %c0_110] : memref<1248x128xf32, #tpu.memory_space<vmem>>, vector<256x128xf32>
      %209 = arith.truncf %208 : vector<256x128xf32> to vector<256x128xbf16>
      %c25 = arith.constant 25 : index
      %c0_111 = arith.constant 0 : index
      %c0_112 = arith.constant 0 : index
      %210 = vector.load %arg4[%c25, %c0_111, %c0_112] : memref<27x128x128xbf16, #tpu.memory_space<vmem>>, vector<1x128x128xbf16>
      %211 = vector.shape_cast %210 : vector<1x128x128xbf16> to vector<128x128xbf16>
      %cst_113 = arith.constant dense<0.000000e+00> : vector<256x128xf32>
      %212 = tpu.matmul %209, %211, %cst_113 {dimension_numbers = #tpu.dot_dimension_numbers<[1], [0], [0], [1], [0, 0, 1, 1], [], []>} : vector<256x128xbf16>, vector<128x128xbf16>, vector<256x128xf32> -> vector<256x128xf32>
      %213 = arith.addf %205, %212 : vector<256x128xf32>
      %c222_i32 = arith.constant 222 : i32
      %214 = arith.addi %4, %c222_i32 : i32
      %215 = arith.index_cast %214 : i32 to index
      %c0_114 = arith.constant 0 : index
      %216 = vector.load %arg8[%215, %c0_114] : memref<1248x128xf32, #tpu.memory_space<vmem>>, vector<256x128xf32>
      %217 = arith.truncf %216 : vector<256x128xf32> to vector<256x128xbf16>
      %c26 = arith.constant 26 : index
      %c0_115 = arith.constant 0 : index
      %c0_116 = arith.constant 0 : index
      %218 = vector.load %arg4[%c26, %c0_115, %c0_116] : memref<27x128x128xbf16, #tpu.memory_space<vmem>>, vector<1x128x128xbf16>
      %219 = vector.shape_cast %218 : vector<1x128x128xbf16> to vector<128x128xbf16>
      %cst_117 = arith.constant dense<0.000000e+00> : vector<256x128xf32>
      %220 = tpu.matmul %217, %219, %cst_117 {dimension_numbers = #tpu.dot_dimension_numbers<[1], [0], [0], [1], [0, 0, 1, 1], [], []>} : vector<256x128xbf16>, vector<128x128xbf16>, vector<256x128xf32> -> vector<256x128xf32>
      %221 = arith.addf %213, %220 : vector<256x128xf32>
      %c0_118 = arith.constant 0 : index
      %c0_119 = arith.constant 0 : index
      %222 = vector.load %arg5[%c0_118, %c0_119] : memref<1x128xf32, #tpu.memory_space<vmem>>, vector<1x128xf32>
      %223 = vector.broadcast %222 : vector<1x128xf32> to vector<256x128xf32>
      %224 = arith.addf %221, %223 : vector<256x128xf32>
      %cst_120 = arith.constant 0.000000e+00 : f32
      %225 = vector.broadcast %cst_120 : f32 to vector<256x128xf32>
      %226 = arith.maximumf %224, %225 : vector<256x128xf32>
      %c0_121 = arith.constant 0 : index
      %227 = arith.index_cast %4 : i32 to index
      %c0_122 = arith.constant 0 : index
      %228 = vector.load %arg7[%c0_121, %227, %c0_122] : memref<1x1024x128xf32, #tpu.memory_space<vmem>>, vector<1x256x128xf32>
      %229 = vector.shape_cast %228 : vector<1x256x128xf32> to vector<256x128xf32>
      %230 = vector.shape_cast %226 : vector<256x128xf32> to vector<1x256x128xf32>
      tpu.vector_store %arg7[%c0_121, %227, %c0_122], %230 {strides = array<i32>} : memref<1x1024x128xf32, #tpu.memory_space<vmem>>, vector<1x256x128xf32>,
    }
    %c4_i32_5 = arith.constant 4 : i32
    return
  }
  func.func @transform_0(%arg0: i32) -> (i32, i32, i32) {
    %c0_i32 = arith.constant 0 : i32
    %c0_i32_0 = arith.constant 0 : i32
    %c0_i32_1 = arith.constant 0 : i32
    return %arg0, %c0_i32, %c0_i32_0 : i32, i32, i32
  }
  func.func @transform_1(%arg0: i32) -> (i32, i32, i32) {
    %c0_i32 = arith.constant 0 : i32
    %c0_i32_0 = arith.constant 0 : i32
    %c0_i32_1 = arith.constant 0 : i32
    %c0_i32_2 = arith.constant 0 : i32
    return %c0_i32, %c0_i32_0, %c0_i32_1 : i32, i32, i32
  }
  func.func @transform_2(%arg0: i32) -> (i32, i32) {
    %c0_i32 = arith.constant 0 : i32
    %c0_i32_0 = arith.constant 0 : i32
    %c0_i32_1 = arith.constant 0 : i32
    return %c0_i32, %c0_i32_0 : i32, i32
  }
  func.func @transform_3(%arg0: i32) -> (i32, i32, i32) {
    %c0_i32 = arith.constant 0 : i32
    %c0_i32_0 = arith.constant 0 : i32
    %c0_i32_1 = arith.constant 0 : i32
    %c0_i32_2 = arith.constant 0 : i32
    return %c0_i32, %c0_i32_0, %c0_i32_1 : i32, i32, i32
  }
  func.func @transform_4(%arg0: i32) -> (i32, i32) {
    %c0_i32 = arith.constant 0 : i32
    %c0_i32_0 = arith.constant 0 : i32
    %c0_i32_1 = arith.constant 0 : i32
    return %c0_i32, %c0_i32_0 : i32, i32
  }
  func.func @transform_5(%arg0: i32) -> (i32, i32) {
    %c0_i32 = arith.constant 0 : i32
    %c0_i32_0 = arith.constant 0 : i32
    %c0_i32_1 = arith.constant 0 : i32
    return %c0_i32, %c0_i32_0 : i32, i32
  }
  func.func @transform_6(%arg0: i32) -> (i32, i32, i32) {
    %c0_i32 = arith.constant 0 : i32
    %c0_i32_0 = arith.constant 0 : i32
    %c0_i32_1 = arith.constant 0 : i32
    return %arg0, %c0_i32, %c0_i32_0 : i32, i32, i32
  }
}

</mosaic_0001>

<bundles_post_ra>
// kernel: double_conv_forward.1
= control target key start
LH: loop header
LB: loop body
LE: loop exit
PB: predicated region body
PF: predicated region fallthrough
CT: control target
= control target key end

     0   :  { %s25467_s21 = smov 0   ;;  %s30528_s0 = inlined_call_operand.vmem [shape: f32[2,1248,4], index: 0, kind: input, shape index: {}]   ;;  %s30529_s1 = inlined_call_operand.vmem [shape: bf16[27,4,128], index: 1, kind: input, shape index: {}]   ;;  %s30530_s2 = inlined_call_operand.vmem [shape: f32[1,128], index: 2, kind: input, shape index: {}]   ;;  %s30531_s3 = inlined_call_operand.vmem [shape: bf16[27,128,128], index: 3, kind: input, shape index: {}]   ;;  %s30532_s4 = inlined_call_operand.vmem [shape: f32[1,128], index: 4, kind: input, shape index: {}]   ;;  %s30533_s5 = inlined_call_operand.vmem [shape: f32[1024,1], index: 5, kind: input, shape index: {}]   ;;  %s30534_s6 = inlined_call_operand.vmem [shape: f32[2,1024,128], index: 6, kind: output, shape index: {}]  }
   0x1 LB: > { %s17266_s22 = sadd.s32 4294967295, %s25420_s21   ;;  %p17270_p0 = scmp.ge.s32.totalorder %s25420_s21, 1  ;;  %s25420_s21 = sphi %s25467_s21, %s16_s21  }
   0x2   : > { %p212_p1 = scmp.lt.s32.totalorder %s25420_s21, 3 }
   0x4   : > { %p213_p2 = pnand %p17270_p0, %p212_p1 }
   0x5   : > { %p25477_p3 = scmp.lt.s32.totalorder (!%p213_p2), %s17266_s22, 1  ;;  %v25430_v0 = vmov (!%p213_p2), 0.0   ;;  %s25651_s8 = smov (!%p213_p2), 0  }
   0x6   : > { %216 = sbr.rel (%p213_p2) target bundleno = 2283 (0x8eb), region = 44  ;;  %253 = vst [vmem:[#allocation2] sm:$0xff] (!%p213_p2), %v25430_v0  ;;  %254 = vst [vmem:[#allocation2 + $0x8] sm:$0xff] (!%p213_p2), %v25430_v0 }
   0x7   : > { %255 = vst [vmem:[#allocation2 + $0x10] sm:$0xff] (!%p213_p2), %v25430_v0  ;;  %256 = vst [vmem:[#allocation2 + $0x18] sm:$0xff] (!%p213_p2), %v25430_v0 }
   0x8   : > { %257 = vst [vmem:[#allocation2 + $0x20] sm:$0xff] (!%p213_p2), %v25430_v0  ;;  %258 = vst [vmem:[#allocation2 + $0x28] sm:$0xff] (!%p213_p2), %v25430_v0 }
   0x9   : > { %259 = vst [vmem:[#allocation2 + $0x30] sm:$0xff] (!%p213_p2), %v25430_v0  ;;  %260 = vst [vmem:[#allocation2 + $0x38] sm:$0xff] (!%p213_p2), %v25430_v0 }
   0xa   : > { %261 = vst [vmem:[#allocation2 + $0x40] sm:$0xff] (!%p213_p2), %v25430_v0  ;;  %262 = vst [vmem:[#allocation2 + $0x48] sm:$0xff] (!%p213_p2), %v25430_v0 }
   0xb   : > { %263 = vst [vmem:[#allocation2 + $0x50] sm:$0xff] (!%p213_p2), %v25430_v0  ;;  %264 = vst [vmem:[#allocation2 + $0x58] sm:$0xff] (!%p213_p2), %v25430_v0 }
   0xc   : > { %265 = vst [vmem:[#allocation2 + $0x60] sm:$0xff] (!%p213_p2), %v25430_v0  ;;  %266 = vst [vmem:[#allocation2 + $0x68] sm:$0xff] (!%p213_p2), %v25430_v0 }
   0xd   : > { %267 = vst [vmem:[#allocation2 + $0x70] sm:$0xff] %v25430_v0  ;;  %268 = vst [vmem:[#allocation2 + $0x78] sm:$0xff] %v25430_v0  ;;  %s30631_s22 = smov (!%p25477_p3, %s17266_s22), 1 }
   0xe   : > { %269 = vst [vmem:[#allocation2 + $0x80] sm:$0xff] %v25430_v0  ;;  %270 = vst [vmem:[#allocation2 + $0x88] sm:$0xff] %v25430_v0  ;;  %s25151_s24 = smul.u32 1248, %s30631_s22  ;;  %s20119_s25 = sshll.u32 %s30631_s22, 10 }
   0xf   : > { %271 = vst [vmem:[#allocation2 + $0x90] sm:$0xff] %v25430_v0  ;;  %272 = vst [vmem:[#allocation2 + $0x98] sm:$0xff] %v25430_v0  ;;  %s25644_s28 = scalar_lea.vmem %s30534_s6, %s20119_s25 }
  0x10   : > { %273 = vst [vmem:[#allocation2 + $0xa0] sm:$0xff] %v25430_v0  ;;  %274 = vst [vmem:[#allocation2 + $0xa8] sm:$0xff] %v25430_v0  ;;  %s25649_s7 = scalar_lea.vmem %s30528_s0, %s25151_s24 }
  0x11   : > { %275 = vst [vmem:[#allocation2 + $0xb0] sm:$0xff] %v25430_v0  ;;  %276 = vst [vmem:[#allocation2 + $0xb8] sm:$0xff] %v25430_v0 }
  0x12   : > { %277 = vst [vmem:[#allocation2 + $0xc0] sm:$0xff] %v25430_v0  ;;  %278 = vst [vmem:[#allocation2 + $0xc8] sm:$0xff] %v25430_v0 }
  0x13   : > { %279 = vst [vmem:[#allocation2 + $0xd0] sm:$0xff] %v25430_v0  ;;  %280 = vst [vmem:[#allocation2 + $0xd8] sm:$0xff] %v25430_v0 }
  0x14   : > { %281 = vst [vmem:[#allocation2 + $0xe0] sm:$0xff] %v25430_v0  ;;  %282 = vst [vmem:[#allocation2 + $0xe8] sm:$0xff] %v25430_v0 }
  0x15   : > { %283 = vst [vmem:[#allocation2 + $0xf0] sm:$0xff] %v25430_v0  ;;  %284 = vst [vmem:[#allocation2 + $0xf8] sm:$0xff] %v25430_v0 }
  0x16   : > { %285 = vst [vmem:[#allocation2 + $0x100] sm:$0xff] %v25430_v0  ;;  %286 = vst [vmem:[#allocation2 + $0x108] sm:$0xff] %v25430_v0 }
  0x17   : > { %287 = vst [vmem:[#allocation2 + $0x110] sm:$0xff] %v25430_v0  ;;  %288 = vst [vmem:[#allocation2 + $0x118] sm:$0xff] %v25430_v0 }
  0x18   : > { %289 = vst [vmem:[#allocation2 + $0x120] sm:$0xff] %v25430_v0  ;;  %290 = vst [vmem:[#allocation2 + $0x128] sm:$0xff] %v25430_v0 }
  0x19   : > { %291 = vst [vmem:[#allocation2 + $0x130] sm:$0xff] %v25430_v0  ;;  %292 = vst [vmem:[#allocation2 + $0x138] sm:$0xff] %v25430_v0 }
  0x1a   : > { %293 = vst [vmem:[#allocation2 + $0x140] sm:$0xff] %v25430_v0  ;;  %294 = vst [vmem:[#allocation2 + $0x148] sm:$0xff] %v25430_v0 }
  0x1b   : > { %295 = vst [vmem:[#allocation2 + $0x150] sm:$0xff] %v25430_v0  ;;  %296 = vst [vmem:[#allocation2 + $0x158] sm:$0xff] %v25430_v0 }
  0x1c   : > { %297 = vst [vmem:[#allocation2 + $0x160] sm:$0xff] %v25430_v0  ;;  %298 = vst [vmem:[#allocation2 + $0x168] sm:$0xff] %v25430_v0 }
  0x1d   : > { %299 = vst [vmem:[#allocation2 + $0x170] sm:$0xff] %v25430_v0  ;;  %300 = vst [vmem:[#allocation2 + $0x178] sm:$0xff] %v25430_v0 }
  0x1e   : > { %301 = vst [vmem:[#allocation2 + $0x180] sm:$0xff] %v25430_v0  ;;  %302 = vst [vmem:[#allocation2 + $0x188] sm:$0xff] %v25430_v0 }
  0x1f   : > { %303 = vst [vmem:[#allocation2 + $0x190] sm:$0xff] %v25430_v0  ;;  %304 = vst [vmem:[#allocation2 + $0x198] sm:$0xff] %v25430_v0 }
  0x20   : > { %305 = vst [vmem:[#allocation2 + $0x1a0] sm:$0xff] %v25430_v0  ;;  %306 = vst [vmem:[#allocation2 + $0x1a8] sm:$0xff] %v25430_v0 }
  0x21   : > { %307 = vst [vmem:[#allocation2 + $0x1b0] sm:$0xff] %v25430_v0  ;;  %308 = vst [vmem:[#allocation2 + $0x1b8] sm:$0xff] %v25430_v0 }
  0x22   : > { %309 = vst [vmem:[#allocation2 + $0x1c0] sm:$0xff] %v25430_v0  ;;  %310 = vst [vmem:[#allocation2 + $0x1c8] sm:$0xff] %v25430_v0 }
  0x23   : > { %311 = vst [vmem:[#allocation2 + $0x1d0] sm:$0xff] %v25430_v0  ;;  %312 = vst [vmem:[#allocation2 + $0x1d8] sm:$0xff] %v25430_v0 }
  0x24   : > { %313 = vst [vmem:[#allocation2 + $0x1e0] sm:$0xff] %v25430_v0  ;;  %314 = vst [vmem:[#allocation2 + $0x1e8] sm:$0xff] %v25430_v0 }
  0x25   : > { %315 = vst [vmem:[#allocation2 + $0x1f0] sm:$0xff] %v25430_v0  ;;  %316 = vst [vmem:[#allocation2 + $0x1f8] sm:$0xff] %v25430_v0 }
  0x26   : > { %317 = vst [vmem:[#allocation2 + $0x200] sm:$0xff] %v25430_v0  ;;  %318 = vst [vmem:[#allocation2 + $0x208] sm:$0xff] %v25430_v0 }
  0x27   : > { %319 = vst [vmem:[#allocation2 + $0x210] sm:$0xff] %v25430_v0  ;;  %320 = vst [vmem:[#allocation2 + $0x218] sm:$0xff] %v25430_v0 }
  0x28   : > { %321 = vst [vmem:[#allocation2 + $0x220] sm:$0xff] %v25430_v0  ;;  %322 = vst [vmem:[#allocation2 + $0x228] sm:$0xff] %v25430_v0 }
  0x29   : > { %323 = vst [vmem:[#allocation2 + $0x230] sm:$0xff] %v25430_v0  ;;  %324 = vst [vmem:[#allocation2 + $0x238] sm:$0xff] %v25430_v0 }
  0x2a   : > { %325 = vst [vmem:[#allocation2 + $0x240] sm:$0xff] %v25430_v0  ;;  %326 = vst [vmem:[#allocation2 + $0x248] sm:$0xff] %v25430_v0 }
  0x2b   : > { %327 = vst [vmem:[#allocation2 + $0x250] sm:$0xff] %v25430_v0  ;;  %328 = vst [vmem:[#allocation2 + $0x258] sm:$0xff] %v25430_v0 }
  0x2c   : > { %329 = vst [vmem:[#allocation2 + $0x260] sm:$0xff] %v25430_v0  ;;  %330 = vst [vmem:[#allocation2 + $0x268] sm:$0xff] %v25430_v0 }
  0x2d   : > { %331 = vst [vmem:[#allocation2 + $0x270] sm:$0xff] %v25430_v0  ;;  %332 = vst [vmem:[#allocation2 + $0x278] sm:$0xff] %v25430_v0 }
  0x2e   : > { %333 = vst [vmem:[#allocation2 + $0x280] sm:$0xff] %v25430_v0  ;;  %334 = vst [vmem:[#allocation2 + $0x288] sm:$0xff] %v25430_v0 }
  0x2f   : > { %335 = vst [vmem:[#allocation2 + $0x290] sm:$0xff] %v25430_v0  ;;  %336 = vst [vmem:[#allocation2 + $0x298] sm:$0xff] %v25430_v0 }
  0x30   : > { %337 = vst [vmem:[#allocation2 + $0x2a0] sm:$0xff] %v25430_v0  ;;  %338 = vst [vmem:[#allocation2 + $0x2a8] sm:$0xff] %v25430_v0 }
  0x31   : > { %339 = vst [vmem:[#allocation2 + $0x2b0] sm:$0xff] %v25430_v0  ;;  %340 = vst [vmem:[#allocation2 + $0x2b8] sm:$0xff] %v25430_v0 }
  0x32   : > { %341 = vst [vmem:[#allocation2 + $0x2c0] sm:$0xff] %v25430_v0  ;;  %342 = vst [vmem:[#allocation2 + $0x2c8] sm:$0xff] %v25430_v0 }
  0x33   : > { %343 = vst [vmem:[#allocation2 + $0x2d0] sm:$0xff] %v25430_v0  ;;  %344 = vst [vmem:[#allocation2 + $0x2d8] sm:$0xff] %v25430_v0 }
  0x34   : > { %345 = vst [vmem:[#allocation2 + $0x2e0] sm:$0xff] %v25430_v0  ;;  %346 = vst [vmem:[#allocation2 + $0x2e8] sm:$0xff] %v25430_v0 }
  0x35   : > { %347 = vst [vmem:[#allocation2 + $0x2f0] sm:$0xff] %v25430_v0  ;;  %348 = vst [vmem:[#allocation2 + $0x2f8] sm:$0xff] %v25430_v0 }
  0x36   : > { %349 = vst [vmem:[#allocation2 + $0x300] sm:$0xff] %v25430_v0  ;;  %350 = vst [vmem:[#allocation2 + $0x308] sm:$0xff] %v25430_v0 }
  0x37   : > { %351 = vst [vmem:[#allocation2 + $0x310] sm:$0xff] %v25430_v0  ;;  %352 = vst [vmem:[#allocation2 + $0x318] sm:$0xff] %v25430_v0 }
  0x38   : > { %353 = vst [vmem:[#allocation2 + $0x320] sm:$0xff] %v25430_v0  ;;  %354 = vst [vmem:[#allocation2 + $0x328] sm:$0xff] %v25430_v0 }
  0x39   : > { %355 = vst [vmem:[#allocation2 + $0x330] sm:$0xff] %v25430_v0  ;;  %356 = vst [vmem:[#allocation2 + $0x338] sm:$0xff] %v25430_v0 }
  0x3a   : > { %357 = vst [vmem:[#allocation2 + $0x340] sm:$0xff] %v25430_v0  ;;  %358 = vst [vmem:[#allocation2 + $0x348] sm:$0xff] %v25430_v0 }
  0x3b   : > { %359 = vst [vmem:[#allocation2 + $0x350] sm:$0xff] %v25430_v0  ;;  %360 = vst [vmem:[#allocation2 + $0x358] sm:$0xff] %v25430_v0 }
  0x3c   : > { %361 = vst [vmem:[#allocation2 + $0x360] sm:$0xff] %v25430_v0  ;;  %362 = vst [vmem:[#allocation2 + $0x368] sm:$0xff] %v25430_v0 }
  0x3d   : > { %363 = vst [vmem:[#allocation2 + $0x370] sm:$0xff] %v25430_v0  ;;  %364 = vst [vmem:[#allocation2 + $0x378] sm:$0xff] %v25430_v0 }
  0x3e   : > { %365 = vst [vmem:[#allocation2 + $0x380] sm:$0xff] %v25430_v0  ;;  %366 = vst [vmem:[#allocation2 + $0x388] sm:$0xff] %v25430_v0 }
  0x3f   : > { %367 = vst [vmem:[#allocation2 + $0x390] sm:$0xff] %v25430_v0  ;;  %368 = vst [vmem:[#allocation2 + $0x398] sm:$0xff] %v25430_v0 }
  0x40   : > { %369 = vst [vmem:[#allocation2 + $0x3a0] sm:$0xff] %v25430_v0  ;;  %370 = vst [vmem:[#allocation2 + $0x3a8] sm:$0xff] %v25430_v0 }
  0x41   : > { %371 = vst [vmem:[#allocation2 + $0x3b0] sm:$0xff] %v25430_v0  ;;  %372 = vst [vmem:[#allocation2 + $0x3b8] sm:$0xff] %v25430_v0 }
  0x42   : > { %373 = vst [vmem:[#allocation2 + $0x3c0] sm:$0xff] %v25430_v0  ;;  %374 = vst [vmem:[#allocation2 + $0x3c8] sm:$0xff] %v25430_v0 }
  0x43   : > { %375 = vst [vmem:[#allocation2 + $0x3d0] sm:$0xff] %v25430_v0  ;;  %376 = vst [vmem:[#allocation2 + $0x3d8] sm:$0xff] %v25430_v0 }
  0x44   : > { %377 = vst [vmem:[#allocation2 + $0x3e0] sm:$0xff] %v25430_v0  ;;  %378 = vst [vmem:[#allocation2 + $0x3e8] sm:$0xff] %v25430_v0 }
  0x45   : > { %379 = vst [vmem:[#allocation2 + $0x3f0] sm:$0xff] %v25430_v0  ;;  %380 = vst [vmem:[#allocation2 + $0x3f8] sm:$0xff] %v25430_v0 }
  0x46   : > { %381 = vst [vmem:[#allocation2 + $0x400] sm:$0xff] %v25430_v0  ;;  %382 = vst [vmem:[#allocation2 + $0x408] sm:$0xff] %v25430_v0 }
  0x47   : > { %383 = vst [vmem:[#allocation2 + $0x410] sm:$0xff] %v25430_v0  ;;  %384 = vst [vmem:[#allocation2 + $0x418] sm:$0xff] %v25430_v0 }
  0x48   : > { %385 = vst [vmem:[#allocation2 + $0x420] sm:$0xff] %v25430_v0  ;;  %386 = vst [vmem:[#allocation2 + $0x428] sm:$0xff] %v25430_v0 }
  0x49   : > { %387 = vst [vmem:[#allocation2 + $0x430] sm:$0xff] %v25430_v0  ;;  %388 = vst [vmem:[#allocation2 + $0x438] sm:$0xff] %v25430_v0 }
  0x4a   : > { %389 = vst [vmem:[#allocation2 + $0x440] sm:$0xff] %v25430_v0  ;;  %390 = vst [vmem:[#allocation2 + $0x448] sm:$0xff] %v25430_v0 }
  0x4b   : > { %391 = vst [vmem:[#allocation2 + $0x450] sm:$0xff] %v25430_v0  ;;  %392 = vst [vmem:[#allocation2 + $0x458] sm:$0xff] %v25430_v0 }
  0x4c   : > { %393 = vst [vmem:[#allocation2 + $0x460] sm:$0xff] %v25430_v0  ;;  %394 = vst [vmem:[#allocation2 + $0x468] sm:$0xff] %v25430_v0 }
  0x4d   : > { %395 = vst [vmem:[#allocation2 + $0x470] sm:$0xff] %v25430_v0  ;;  %396 = vst [vmem:[#allocation2 + $0x478] sm:$0xff] %v25430_v0 }
  0x4e   : > { %397 = vst [vmem:[#allocation2 + $0x480] sm:$0xff] %v25430_v0  ;;  %398 = vst [vmem:[#allocation2 + $0x488] sm:$0xff] %v25430_v0 }
  0x4f   : > { %399 = vst [vmem:[#allocation2 + $0x490] sm:$0xff] %v25430_v0  ;;  %400 = vst [vmem:[#allocation2 + $0x498] sm:$0xff] %v25430_v0 }
  0x50   : > { %401 = vst [vmem:[#allocation2 + $0x4a0] sm:$0xff] %v25430_v0  ;;  %402 = vst [vmem:[#allocation2 + $0x4a8] sm:$0xff] %v25430_v0 }
  0x51   : > { %403 = vst [vmem:[#allocation2 + $0x4b0] sm:$0xff] %v25430_v0  ;;  %404 = vst [vmem:[#allocation2 + $0x4b8] sm:$0xff] %v25430_v0 }
  0x52   : > { %405 = vst [vmem:[#allocation2 + $0x4c0] sm:$0xff] %v25430_v0  ;;  %406 = vst [vmem:[#allocation2 + $0x4c8] sm:$0xff] %v25430_v0 }
  0x53   : > { %407 = vst [vmem:[#allocation2 + $0x4d0] sm:$0xff] %v25430_v0  ;;  %408 = vst [vmem:[#allocation2 + $0x4d8] sm:$0xff] %v25430_v0 }
  0x54 LB: >> { %v17308_v1 = vld [vmem:[%s30529_s1 + $0x2] sm:$0x3]  ;;  %vm567_vm0 = vcmask 1041408   ;;  %v17924_v2 = vld [vmem:[%s30529_s1 + $0x1a] sm:$0x3]  ;;  %s25676_s17 = sshll.u32 %s25424_s8, 8  ;;  %s25424_s8 = sphi %s25651_s8, %s414_s8  }
  0x55   : >> { %25123 = vmatprep.subr.msk.bf16.mxu1 %vm567_vm0, %v17308_v1  ;;  %25136 = vmatprep.subr.msk.bf16.mxu0 %vm567_vm0, %v17924_v2  ;;  %v569_v3 = vsel %vm567_vm0, %v17308_v1, 0  ;;  %v25666_v4 = vsel %vm567_vm0, %v17924_v2, 0  ;;  %v465_v5 = vld [vmem:[%s30529_s1] sm:$0x3]  ;;  %v17974_v6 = vld [vmem:[%s30529_s1 + $0x1c] sm:$0x3]  ;;  %s25680_s18 = scalar_lea.vmem %s25649_s7, %s25676_s17  ;;  %s27714_s11 = scalar_lea.vmem %s30533_s5, %s25676_s17 }
  0x56   : >> { %30562 = vst [vmem:[#allocation3_spill] sm:$0xff] %v25666_v4  ;;  %21228 = vmatpush3.bf16.msra.mxu1 %v569_v3  ;;  %21670 = vmatpush3.bf16.msra.mxu0 %v25666_v4  ;;  %v17276_v7 = vld [vmem:[%s25680_s18 + $0x1] sm:$0xff]  ;;  %v17277_v8 = vld [vmem:[%s25680_s18 + $0x9] sm:$0xff]  ;;  %vm518_vm1 = vcmask 31744   ;;  %v17893_v11 = vld [vmem:[%s25680_s18 + $0x77] sm:$0xff]  ;;  %v781_v16 = vsel %vm567_vm0, %v465_v5, 0 }
  0x57   : >> { %25124 = vmatprep.subr.msk.bf16.mxu1 %vm567_vm0, %v465_v5  ;;  %25138 = vmatprep.subr.msk.bf16.mxu0 %vm567_vm0, %v17974_v6  ;;  %v17892_v9 = vld [vmem:[%s25680_s18 + $0x6f] sm:$0xff]  ;;  %v500_v10 = vpack.c.bf16 %v17277_v8, %v17276_v7  ;;  %v17279_v13 = vld [vmem:[%s25680_s18 + $0x19] sm:$0xff]  ;;  %v17895_v18 = vld [vmem:[%s25680_s18 + $0x87] sm:$0xff]  ;;  %v4597_v21 = vsel %vm567_vm0, %v17974_v6, 0  ;;  %s28042_s15 = scalar_lea.vmem [#allocation2], %s25676_s17  ;;  %s414_s8 = sadd.s32 1, %s25424_s8  }
  0x58   : >> { %v17278_v12 = vld [vmem:[%s25680_s18 + $0x11] sm:$0xff]  ;;  %v4234_v14 = vpack.c.bf16 %v17893_v11, %v17892_v9  ;;  %v17894_v17 = vld [vmem:[%s25680_s18 + $0x7f] sm:$0xff]  ;;  %v17281_v22 = vld [vmem:[%s25680_s18 + $0x29] sm:$0xff]  ;;  %p411_p4 = scmp.ge.s32.totalorder %s414_s8, 4  }
  0x59   : >> { %v501_v15 = vpack.c.bf16 %v17279_v13, %v17278_v12  ;;  %v17280_v19 = vld [vmem:[%s25680_s18 + $0x21] sm:$0xff]  ;;  %21229 = vmatprep.mubr.msk.bf16.mxu1 %vm518_vm1, %v500_v10  ;;  %v4235_v20 = vpack.c.bf16 %v17895_v18, %v17894_v17  ;;  %v17896_v23 = vld [vmem:[%s25680_s18 + $0x8f] sm:$0xff]  ;;  %v17897_v24 = vld [vmem:[%s25680_s18 + $0x97] sm:$0xff]  ;;  %s28153_s17 = smov (%p411_p4), 0  }
  0x5a   : >> { %21671 = vmatprep.mubr.msk.bf16.mxu0 %vm518_vm1, %v4234_v14  ;;  %v502_v25 = vpack.c.bf16 %v17281_v22, %v17280_v19  ;;  %v4236_v26 = vpack.c.bf16 %v17897_v24, %v17896_v23  ;;  %v25704_v27 = vld [vmem:[%s30529_s1 + $0x1e] sm:$0x3]  ;;  %v25709_v28 = vld [vmem:[%s30529_s1 + $0x4] sm:$0x3]  ;;  %v17282_v29 = vld [vmem:[%s25680_s18 + $0x31] sm:$0xff] }
  0x5b   : >> { %21230 = vmatmul.mubr.msk.bf16.vlgmr.msra.gmra.mrb[0].mxu1 %vm518_vm1, %v501_v15  ;;  %21672 = vmatmul.mubr.msk.bf16.vlgmr.msra.gmra.mrb[0].mxu0 %vm518_vm1, %v4235_v20  ;;  %v17283_v30 = vld [vmem:[%s25680_s18 + $0x39] sm:$0xff]  ;;  %v17899_v32 = vld [vmem:[%s25680_s18 + $0xa7] sm:$0xff]  ;;  %v17900_v35 = vld [vmem:[%s25680_s18 + $0xaf] sm:$0xff]  ;;  %v4893_v15 = vsel %vm567_vm0, %v25704_v27, 0 }
  0x5c   : >> { %21262 = vmatpush3.bf16.msra.mxu1 %v781_v16  ;;  %v17898_v31 = vld [vmem:[%s25680_s18 + $0x9f] sm:$0xff]  ;;  %21704 = vmatpush3.bf16.msra.mxu0 %v4597_v21  ;;  %v17285_v34 = vld [vmem:[%s25680_s18 + $0x49] sm:$0xff]  ;;  %v17901_v36 = vld [vmem:[%s25680_s18 + $0xb7] sm:$0xff]  ;;  %v503_v37 = vpack.c.bf16 %v17283_v30, %v17282_v29 }
  0x5d   : >> { %21233 = vmatprep.mubr.msk.bf16.mxu1 %vm518_vm1, %v502_v25  ;;  %v17284_v33 = vld [vmem:[%s25680_s18 + $0x41] sm:$0xff]  ;;  %21675 = vmatprep.mubr.msk.bf16.mxu0 %vm518_vm1, %v4236_v26  ;;  %v4237_v38 = vpack.c.bf16 %v17899_v32, %v17898_v31  ;;  %v4238_v40 = vpack.c.bf16 %v17901_v36, %v17900_v35  ;;  %v17286_v41 = vld [vmem:[%s25680_s18 + $0x51] sm:$0xff]  ;;  %v17287_v42 = vld [vmem:[%s25680_s18 + $0x59] sm:$0xff] }
  0x5e   : >> { %25139 = vmatprep.subr.msk.bf16.mxu0 %vm567_vm0, %v25704_v27  ;;  %25125 = vmatprep.subr.msk.bf16.mxu1 %vm567_vm0, %v25709_v28  ;;  %v504_v39 = vpack.c.bf16 %v17285_v34, %v17284_v33  ;;  %v17902_v43 = vld [vmem:[%s25680_s18 + $0xbf] sm:$0xff]  ;;  %v17903_v44 = vld [vmem:[%s25680_s18 + $0xc7] sm:$0xff]  ;;  %v17904_v47 = vld [vmem:[%s25680_s18 + $0xcf] sm:$0xff]  ;;  %v505_v49 = vpack.c.bf16 %v17287_v42, %v17286_v41 }
  0x5f   : >> { %v17288_v45 = vld [vmem:[%s25680_s18 + $0x61] sm:$0xff]  ;;  %v17289_v46 = vld [vmem:[%s25680_s18 + $0x69] sm:$0xff]  ;;  %v17905_v48 = vld [vmem:[%s25680_s18 + $0xd7] sm:$0xff]  ;;  %v4239_v50 = vpack.c.bf16 %v17903_v44, %v17902_v43 }
  0x60   : >> { %v506_v51 = vpack.c.bf16 %v17289_v46, %v17288_v45  ;;  %v4240_v52 = vpack.c.bf16 %v17905_v48, %v17904_v47  ;;  %v17290_v53 = vld [vmem:[%s25680_s18 + $0x71] sm:$0xff]  ;;  %v25743_v54 = vld [vmem:[%s25680_s18 + $0x79] sm:$0xff]  ;;  %v17907_v56 = vld [vmem:[%s25680_s18 + $0xe7] sm:$0xff] }
  0x61   : >> { %v17906_v55 = vld [vmem:[%s25680_s18 + $0xdf] sm:$0xff]  ;;  %v25752_v58 = vld [vmem:[%s25680_s18 + $0x89] sm:$0xff]  ;;  %v507_v61 = vpack.c.bf16 %v25743_v54, %v17290_v53  ;;  %v25768_v1 = vld [vmem:[%s25680_s18 + $0x91] sm:$0xff] }
  0x62   : >> { %v25749_v57 = vld [vmem:[%s25680_s18 + $0x81] sm:$0xff]  ;;  %v17942_v59 = vld [vmem:[%s25680_s18 + $0x70] sm:$0xff]  ;;  %v25756_v60 = vld [vmem:[%s25680_s18 + $0x78] sm:$0xff]  ;;  %v4241_v62 = vpack.c.bf16 %v17907_v56, %v17906_v55 }
  0x63   : >> { %21234 = vmatmul.mubr.msk.bf16.gmra.mrb[4].mxu1 %vm518_vm1, %v503_v37  ;;  %21676 = vmatmul.mubr.msk.bf16.gmra.mrb[4].mxu0 %vm518_vm1, %v4237_v38  ;;  %v508_v63 = vpack.c.bf16 %v25752_v58, %v25749_v57  ;;  %v25762_v0 = vpack.c.bf16 %v25756_v60, %v17942_v59  ;;  %v25771_v2 = vld [vmem:[%s25680_s18 + $0x99] sm:$0xff]  ;;  %v25781_v6 = vld [vmem:[%s25680_s18 + $0x88] sm:$0xff]  ;;  %v25790_v9 = vld [vmem:[%s25680_s18 + $0x90] sm:$0xff] }
  0x64   : >> { %21237 = vmatprep.mubr.msk.bf16.mxu1 %vm518_vm1, %v504_v39  ;;  %21679 = vmatprep.mubr.msk.bf16.mxu0 %vm518_vm1, %v4238_v40  ;;  %v25774_v3 = vld [vmem:[%s25680_s18 + $0x80] sm:$0xff]  ;;  %v25787_v8 = vld [vmem:[%s25680_s18 + $0xa9] sm:$0xff]  ;;  %v25793_v10 = vld [vmem:[%s25680_s18 + $0x98] sm:$0xff]  ;;  %v509_v11 = vpack.c.bf16 %v25771_v2, %v25768_v1 }
  0x65   : >> { %v25784_v7 = vld [vmem:[%s25680_s18 + $0xa1] sm:$0xff]  ;;  %v25799_v12 = vpack.c.bf16 %v25781_v6, %v25774_v3  ;;  %v25805_v14 = vpack.c.bf16 %v25793_v10, %v25790_v9  ;;  %v25821_v18 = vld [vmem:[%s25680_s18 + $0xb1] sm:$0xff]  ;;  %v25824_v19 = vld [vmem:[%s25680_s18 + $0xb9] sm:$0xff] }
  0x66   : >> { %v510_v13 = vpack.c.bf16 %v25787_v8, %v25784_v7  ;;  %v25815_v17 = vld [vmem:[%s30529_s1 + $0x20] sm:$0x3]  ;;  %v25832_v21 = vld [vmem:[%s25680_s18 + $0xa8] sm:$0xff]  ;;  %v25843_v25 = vld [vmem:[%s25680_s18 + $0xb0] sm:$0xff]  ;;  %v511_v27 = vpack.c.bf16 %v25824_v19, %v25821_v18 }
  0x67   : >> { %v25827_v20 = vld [vmem:[%s25680_s18 + $0xa0] sm:$0xff]  ;;  %v25838_v23 = vld [vmem:[%s25680_s18 + $0xc9] sm:$0xff]  ;;  %v25846_v26 = vld [vmem:[%s25680_s18 + $0xb8] sm:$0xff] }
  0x68   : >> { %v25835_v22 = vld [vmem:[%s25680_s18 + $0xc1] sm:$0xff]  ;;  %v25854_v29 = vpack.c.bf16 %v25832_v21, %v25827_v20  ;;  %v25860_v31 = vpack.c.bf16 %v25846_v26, %v25843_v25  ;;  %v25869_v33 = vld [vmem:[%s25680_s18 + $0xd1] sm:$0xff]  ;;  %v25872_v34 = vld [vmem:[%s25680_s18 + $0xd9] sm:$0xff] }
  0x69   : >> { %v512_v30 = vpack.c.bf16 %v25838_v23, %v25835_v22  ;;  %v25875_v35 = vld [vmem:[%s25680_s18 + $0xc0] sm:$0xff]  ;;  %v25882_v37 = vld [vmem:[%s25680_s18 + $0xc8] sm:$0xff]  ;;  %v25891_v40 = vld [vmem:[%s25680_s18 + $0xd0] sm:$0xff]  ;;  %v513_v42 = vpack.c.bf16 %v25872_v34, %v25869_v33 }
  0x6a   : >> { %v25885_v38 = vld [vmem:[%s25680_s18 + $0xe1] sm:$0xff]  ;;  %v25888_v39 = vld [vmem:[%s25680_s18 + $0xe9] sm:$0xff]  ;;  %v25894_v41 = vld [vmem:[%s25680_s18 + $0xd8] sm:$0xff]  ;;  %v25900_v43 = vpack.c.bf16 %v25882_v37, %v25875_v35 }
  0x6b   : >> { %21238 = vmatmul.mubr.msk.bf16.gmra.mrb[8].mxu1 %vm518_vm1, %v505_v49  ;;  %21680 = vmatmul.mubr.msk.bf16.gmra.mrb[8].mxu0 %vm518_vm1, %v4239_v50  ;;  %30563 = vst [vmem:[#allocation4_spill] sm:$0xff] %v25888_v39  ;;  %v514_v44 = vpack.c.bf16 %v25888_v39, %v25885_v38  ;;  %v25906_v45 = vpack.c.bf16 %v25894_v41, %v25891_v40  ;;  %v25915_v47 = vld [vmem:[%s25680_s18 + $0xf1] sm:$0xff]  ;;  %v25918_v48 = vld [vmem:[%s25680_s18 + $0xf9] sm:$0xff]  ;;  %v418_v53 = vld [vmem:[%s25680_s18 + $0x8] sm:$0xff] }
  0x6c   : >> { %21241 = vmatprep.mubr.msk.bf16.mxu1 %vm518_vm1, %v506_v51  ;;  %21683 = vmatprep.mubr.msk.bf16.mxu0 %vm518_vm1, %v4240_v52  ;;  %30564 = vst [vmem:[#allocation5_spill] sm:$0xff] %v25915_v47  ;;  %30565 = vst [vmem:[#allocation6_spill] sm:$0xff] %v25918_v48  ;;  %v25921_v49 = vld [vmem:[%s25680_s18 + $0xe0] sm:$0xff]  ;;  %v25928_v51 = vld [vmem:[%s25680_s18 + $0xe8] sm:$0xff]  ;;  %v515_v59 = vpack.c.bf16 %v25918_v48, %v25915_v47 }
  0x6d   : >> { %v417_v52 = vld [vmem:[%s25680_s18] sm:$0xff]  ;;  %v25933_v55 = vld [vmem:[%s25680_s18 + $0xf0] sm:$0xff]  ;;  %v25936_v56 = vld [vmem:[%s25680_s18 + $0xf8] sm:$0xff] }
  0x6e   : >> { %v25982_v36 = vld [vmem:[%s30529_s1 + $0x6] sm:$0x3]  ;;  %v427_v16 = vld [vmem:[%s25680_s18 + $0x50] sm:$0xff]  ;;  %v428_v5 = vld [vmem:[%s25680_s18 + $0x58] sm:$0xff] }
  0x6f   : >> { %v25988_v32 = vld [vmem:[%s25680_s18 + $0x120] sm:$0xff]  ;;  %v26027_v39 = vld [vmem:[%s25680_s18 + $0x158] sm:$0xff]  ;;  %v26041_v48 = vld [vmem:[%s25680_s18 + $0x168] sm:$0xff] }
  0x70   : >> { %v26015_v4 = vld [vmem:[%s25680_s18 + $0x140] sm:$0xff] }
  0x73   : >> { %21242 = vmatmul.mubr.msk.bf16.gmra.mrb[12].mxu1 %vm518_vm1, %v507_v61  ;;  %21684 = vmatmul.mubr.msk.bf16.gmra.mrb[12].mxu0 %vm518_vm1, %v4241_v62  ;;  %v25942_v61 = vpack.c.bf16 %v25928_v51, %v25921_v49  ;;  %v449_v62 = vpack.c.bf16 %v418_v53, %v417_v52  ;;  %v25967_v52 = vld [vmem:[%s25680_s18 + $0x110] sm:$0xff]  ;;  %v25970_v53 = vld [vmem:[%s25680_s18 + $0x118] sm:$0xff] }
  0x74   : >> { %21245 = vmatprep.mubr.msk.bf16.mxu1 %vm518_vm1, %v508_v63  ;;  %21705 = vmatprep.mubr.msk.bf16.mxu0 %vm518_vm1, %v25762_v0  ;;  %v25946_v63 = vpack.c.bf16 %v25936_v56, %v25933_v55  ;;  %v4540_v46 = vpack.c.bf16 %v25970_v53, %v25967_v52 }
  0x7b   : >> { %21246 = vmatmul.mubr.msk.bf16.gmra.mrb[16].mxu1 %vm518_vm1, %v509_v11  ;;  %21706 = vmatmul.mubr.msk.bf16.vlgmr.msra.gmra.mrb[0].mxu0 %vm518_vm1, %v25799_v12  ;;  %v1045_v11 = vsel %vm567_vm0, %v25709_v28, 0  ;;  %v25993_v28 = vld [vmem:[%s25680_s18 + $0x128] sm:$0xff] }
  0x7c   : >> { %21249 = vmatprep.mubr.msk.bf16.mxu1 %vm518_vm1, %v510_v13  ;;  %21738 = vmatpush3.bf16.msra.mxu0 %v4893_v15  ;;  %v419_v13 = vld [vmem:[%s25680_s18 + $0x10] sm:$0xff]  ;;  %v420_v15 = vld [vmem:[%s25680_s18 + $0x18] sm:$0xff] }
  0x7d   : >> { %21709 = vmatprep.mubr.msk.bf16.mxu0 %vm518_vm1, %v25805_v14  ;;  %25140 = vmatprep.subr.msk.bf16.mxu0 %vm567_vm0, %v25815_v17 }
  0x83   : >> { %21250 = vmatmul.mubr.msk.bf16.gmra.mrb[20].mxu1 %vm518_vm1, %v511_v27  ;;  %21710 = vmatmul.mubr.msk.bf16.gmra.mrb[4].mxu0 %vm518_vm1, %v25854_v29  ;;  %v25959_v27 = vld [vmem:[%s25680_s18 + $0x100] sm:$0xff] }
  0x84   : >> { %21253 = vmatprep.mubr.msk.bf16.mxu1 %vm518_vm1, %v512_v30  ;;  %21713 = vmatprep.mubr.msk.bf16.mxu0 %vm518_vm1, %v25860_v31  ;;  %v25962_v30 = vld [vmem:[%s25680_s18 + $0x108] sm:$0xff] }
  0x8b   : >> { %21254 = vmatmul.mubr.msk.bf16.gmra.mrb[24].mxu1 %vm518_vm1, %v513_v42  ;;  %21714 = vmatmul.mubr.msk.bf16.gmra.mrb[8].mxu0 %vm518_vm1, %v25900_v43  ;;  %v421_v42 = vld [vmem:[%s25680_s18 + $0x20] sm:$0xff] }
  0x8c   : >> { %21257 = vmatprep.mubr.msk.bf16.mxu1 %vm518_vm1, %v514_v44  ;;  %21717 = vmatprep.mubr.msk.bf16.mxu0 %vm518_vm1, %v25906_v45  ;;  %v422_v44 = vld [vmem:[%s25680_s18 + $0x28] sm:$0xff] }
  0x8d   : >> { %v451_v50 = vpack.c.bf16 %v422_v44, %v421_v42  ;;  %v425_v42 = vld [vmem:[%s25680_s18 + $0x40] sm:$0xff]  ;;  %v426_v44 = vld [vmem:[%s25680_s18 + $0x48] sm:$0xff] }
  0x93   : >> { %21258 = vmatmul.mubr.msk.bf16.gmra.mrb[28].mxu1 %vm518_vm1, %v515_v59  ;;  %21718 = vmatmul.mubr.msk.bf16.gmra.mrb[12].mxu0 %vm518_vm1, %v25942_v61  ;;  %v450_v59 = vpack.c.bf16 %v420_v15, %v419_v13  ;;  %v423_v13 = vld [vmem:[%s25680_s18 + $0x30] sm:$0xff]  ;;  %v424_v15 = vld [vmem:[%s25680_s18 + $0x38] sm:$0xff] }
  0x94   : >> { %21263 = vmatprep.mubr.msk.bf16.mxu1 %vm518_vm1, %v449_v62  ;;  %21721 = vmatprep.mubr.msk.bf16.mxu0 %vm518_vm1, %v25946_v63  ;;  %v4539_v62 = vpack.c.bf16 %v25962_v30, %v25959_v27 }
  0x9b   : >> { %21264 = vmatmul.mubr.msk.bf16.vlgmr.msra.gmra.mrb[0].mxu1 %vm518_vm1, %v450_v59  ;;  %21722 = vmatmul.mubr.msk.bf16.gmra.mrb[16].mxu0 %vm518_vm1, %v4539_v62  ;;  %v26001_v59 = vld [vmem:[%s25680_s18 + $0x138] sm:$0xff]  ;;  %v453_v62 = vpack.c.bf16 %v426_v44, %v425_v42  ;;  %v430_v42 = vld [vmem:[%s25680_s18 + $0x68] sm:$0xff]  ;;  %v26024_v44 = vld [vmem:[%s25680_s18 + $0x150] sm:$0xff] }
  0x9c   : >> { %21296 = vmatpush3.bf16.msra.mxu1 %v1045_v11  ;;  %21267 = vmatprep.mubr.msk.bf16.mxu1 %vm518_vm1, %v451_v50  ;;  %v25998_v11 = vld [vmem:[%s25680_s18 + $0x130] sm:$0xff]  ;;  %v452_v50 = vpack.c.bf16 %v424_v15, %v423_v13  ;;  %v26019_v13 = vld [vmem:[%s25680_s18 + $0x148] sm:$0xff]  ;;  %v429_v15 = vld [vmem:[%s25680_s18 + $0x60] sm:$0xff]  ;;  %v4544_v47 = vpack.c.bf16 %v26027_v39, %v26024_v44 }
  0x9d   : >> { %21725 = vmatprep.mubr.msk.bf16.mxu0 %vm518_vm1, %v4540_v46  ;;  %25126 = vmatprep.subr.msk.bf16.mxu1 %vm567_vm0, %v25982_v36  ;;  %v4541_v46 = vpack.c.bf16 %v25993_v28, %v25988_v32  ;;  %v4542_v24 = vpack.c.bf16 %v26001_v59, %v25998_v11 }
  0xa3   : >> { %21268 = vmatmul.mubr.msk.bf16.gmra.mrb[4].mxu1 %vm518_vm1, %v452_v50  ;;  %21726 = vmatmul.mubr.msk.bf16.gmra.mrb[20].mxu0 %vm518_vm1, %v4541_v46  ;;  %v454_v50 = vpack.c.bf16 %v428_v5, %v427_v16  ;;  %v4543_v46 = vpack.c.bf16 %v26019_v13, %v26015_v4  ;;  %v4826_v16 = vpack.c.bf16 %v25774_v3, %v25756_v60  ;;  %v26064_v60 = vld [vmem:[%s30529_s1 + $0x22] sm:$0x3] }
  0xa4   : >> { %21271 = vmatprep.mubr.msk.bf16.mxu1 %vm518_vm1, %v453_v62  ;;  %21729 = vmatprep.mubr.msk.bf16.mxu0 %vm518_vm1, %v4542_v24  ;;  %v455_v62 = vpack.c.bf16 %v430_v42, %v429_v15  ;;  %v26038_v24 = vld [vmem:[%s25680_s18 + $0x160] sm:$0xff]  ;;  %v4828_v15 = vpack.c.bf16 %v25827_v20, %v25793_v10  ;;  %v5189_v42 = vsel %vm567_vm0, %v25815_v17, 0  ;;  %v4830_v3 = vpack.c.bf16 %v25875_v35, %v25846_v26 }
  0xa5   : >> { %v4545_v5 = vpack.c.bf16 %v26041_v48, %v26038_v24  ;;  %v17342_v10 = vld [vmem:[%s25680_s18 + $0x2] sm:$0xff]  ;;  %v26109_v20 = vpack.c.bf16 %v25959_v27, %v25936_v56  ;;  %v26134_v35 = vpack.c.bf16 %v25967_v52, %v25962_v30  ;;  %v26189_v27 = vld [vmem:[%s25680_s18 + $0x5a] sm:$0xff]  ;;  %v26197_v30 = vld [vmem:[%s25680_s18 + $0x6a] sm:$0xff] }
  0xa6   : >> { %v26125_v26 = vld [vmem:[%s25680_s18 + $0x22] sm:$0xff] }
  0xab   : >> { %21272 = vmatmul.mubr.msk.bf16.gmra.mrb[8].mxu1 %vm518_vm1, %v454_v50  ;;  %21730 = vmatmul.mubr.msk.bf16.gmra.mrb[24].mxu0 %vm518_vm1, %v4543_v46  ;;  %v26228_v50 = vld [vmem:[%s25680_s18 + $0x8a] sm:$0xff] }
  0xac   : >> { %21275 = vmatprep.mubr.msk.bf16.mxu1 %vm518_vm1, %v455_v62  ;;  %21733 = vmatprep.mubr.msk.bf16.mxu0 %vm518_vm1, %v4544_v47  ;;  %v4827_v47 = vpack.c.bf16 %v25790_v9, %v25781_v6  ;;  %v26084_v6 = vpack.c.bf16 %v25891_v40, %v25882_v37  ;;  %v26088_v9 = vpack.c.bf16 %v25921_v49, %v25894_v41  ;;  %v1341_v37 = vsel %vm567_vm0, %v25982_v36, 0  ;;  %v26153_v36 = vld [vmem:[%s25680_s18 + $0x32] sm:$0xff]  ;;  %v26165_v49 = vld [vmem:[%s25680_s18 + $0x4a] sm:$0xff] }
  0xad   : >> { %v26142_v41 = vpack.c.bf16 %v25988_v32, %v25970_v53  ;;  %v26162_v32 = vld [vmem:[%s25680_s18 + $0x42] sm:$0xff]  ;;  %v26203_v53 = vpack.c.bf16 %v26024_v44, %v26019_v13  ;;  %v26219_v13 = vld [vmem:[%s25680_s18 + $0x7a] sm:$0xff] }
  0xae   : >> { %v982_v56 = vpack.c.bf16 %v26165_v49, %v26162_v32  ;;  %v26225_v44 = vld [vmem:[%s25680_s18 + $0x82] sm:$0xff] }
  0xb3   : >> { %21276 = vmatmul.mubr.msk.bf16.gmra.mrb[12].mxu1 %vm518_vm1, %v25762_v0  ;;  %21734 = vmatmul.mubr.msk.bf16.gmra.mrb[28].mxu0 %vm518_vm1, %v4545_v5  ;;  %v4829_v0 = vpack.c.bf16 %v25843_v25, %v25832_v21  ;;  %v26117_v21 = vld [vmem:[%s25680_s18 + $0x12] sm:$0xff]  ;;  %v26120_v25 = vld [vmem:[%s25680_s18 + $0x1a] sm:$0xff] }
  0xb4   : >> { %21279 = vmatprep.mubr.msk.bf16.mxu1 %vm518_vm1, %v25799_v12  ;;  %21739 = vmatprep.mubr.msk.bf16.mxu0 %vm518_vm1, %v4826_v16  ;;  %v26100_v12 = vld [vmem:[%s25680_s18 + $0xa] sm:$0xff]  ;;  %v26242_v5 = vld [vmem:[%s25680_s18 + $0x92] sm:$0xff]  ;;  %v26245_v16 = vld [vmem:[%s25680_s18 + $0x9a] sm:$0xff] }
  0xb5   : >> { %v978_v17 = vpack.c.bf16 %v26100_v12, %v17342_v10  ;;  %v26275_v10 = vld [vmem:[%s25680_s18 + $0xb2] sm:$0xff] }
  0xbb   : >> { %21280 = vmatmul.mubr.msk.bf16.gmra.mrb[16].mxu1 %vm518_vm1, %v25805_v14  ;;  %21740 = vmatmul.mubr.msk.bf16.vlgmr.msra.gmra.mrb[0].mxu0 %vm518_vm1, %v4827_v47  ;;  %v26104_v14 = vpack.c.bf16 %v25933_v55, %v25928_v51  ;;  %v26173_v55 = vpack.c.bf16 %v25998_v11, %v25993_v28  ;;  %v26209_v11 = vpack.c.bf16 %v26038_v24, %v26027_v39  ;;  %v18023_v39 = vld [vmem:[%s25680_s18 + $0x170] sm:$0xff]  ;;  %v26252_v47 = vld [vmem:[%s25680_s18 + $0xa2] sm:$0xff] }
  0xbc   : >> { %21283 = vmatprep.mubr.msk.bf16.mxu1 %vm518_vm1, %v25854_v29  ;;  %21772 = vmatpush3.bf16.msra.mxu0 %v5189_v42  ;;  %v26128_v29 = vld [vmem:[%s25680_s18 + $0x2a] sm:$0xff]  ;;  %v26233_v62 = vpack.c.bf16 %v18023_v39, %v26041_v48  ;;  %v986_v24 = vpack.c.bf16 %v26228_v50, %v26225_v44  ;;  %v30566_v48 = vpack.c.bf16 %v25749_v57, %v25743_v54  ;;  %v26267_v54 = vld [vmem:[%s30529_s1 + $0x24] sm:$0x3] }
  0xbd   : >> { %21743 = vmatprep.mubr.msk.bf16.mxu0 %vm518_vm1, %v4828_v15  ;;  %25141 = vmatprep.subr.msk.bf16.mxu0 %vm567_vm0, %v26064_v60  ;;  %v980_v40 = vpack.c.bf16 %v26128_v29, %v26125_v26  ;;  %v26255_v15 = vld [vmem:[%s25680_s18 + $0xaa] sm:$0xff]  ;;  %v987_v42 = vpack.c.bf16 %v26245_v16, %v26242_v5  ;;  %v30567_v57 = vpack.c.bf16 %v25768_v1, %v25752_v58 }
  0xbe   : >> { %v26288_v58 = vld [vmem:[%s25680_s18 + $0xca] sm:$0xff]  ;;  %v30572_v39 = vpack.c.bf16 %v25885_v38, %v25872_v34 }
  0xbf   : >> { %v18060_v34 = vld [vmem:[%s25680_s18 + $0x109] sm:$0xff]  ;;  %v18061_v38 = vld [vmem:[%s25680_s18 + $0x111] sm:$0xff] }
  0xc3   : >> { %21284 = vmatmul.mubr.msk.bf16.gmra.mrb[20].mxu1 %vm518_vm1, %v25860_v31  ;;  %21744 = vmatmul.mubr.msk.bf16.gmra.mrb[4].mxu0 %vm518_vm1, %v4829_v0  ;;  %v979_v31 = vpack.c.bf16 %v26120_v25, %v26117_v21  ;;  %v988_v0 = vpack.c.bf16 %v26255_v15, %v26252_v47 }
  0xc4   : >> { %21287 = vmatprep.mubr.msk.bf16.mxu1 %vm518_vm1, %v25900_v43  ;;  %21747 = vmatprep.mubr.msk.bf16.mxu0 %vm518_vm1, %v4830_v3  ;;  %v26148_v43 = vld [vmem:[%s30529_s1 + $0x8] sm:$0x3]  ;;  %v5485_v3 = vsel %vm567_vm0, %v26064_v60, 0  ;;  %v26278_v60 = vld [vmem:[%s25680_s18 + $0xba] sm:$0xff] }
  0xc5   : >> { %v989_v1 = vpack.c.bf16 %v26278_v60, %v26275_v10 }
  0xcb   : >> { %21288 = vmatmul.mubr.msk.bf16.gmra.mrb[24].mxu1 %vm518_vm1, %v25906_v45  ;;  %21748 = vmatmul.mubr.msk.bf16.gmra.mrb[8].mxu0 %vm518_vm1, %v26084_v6  ;;  %v26156_v45 = vld [vmem:[%s25680_s18 + $0x3a] sm:$0xff] }
  0xcc   : >> { %21291 = vmatprep.mubr.msk.bf16.mxu1 %vm518_vm1, %v25942_v61  ;;  %21751 = vmatprep.mubr.msk.bf16.mxu0 %vm518_vm1, %v26088_v9  ;;  %v981_v51 = vpack.c.bf16 %v26156_v45, %v26153_v36  ;;  %v26179_v61 = vpack.c.bf16 %v26015_v4, %v26001_v59  ;;  %v26194_v4 = vld [vmem:[%s25680_s18 + $0x62] sm:$0xff]  ;;  %v26216_v59 = vld [vmem:[%s25680_s18 + $0x72] sm:$0xff] }
  0xcd   : >> { %v984_v28 = vpack.c.bf16 %v26197_v30, %v26194_v4  ;;  %v985_v46 = vpack.c.bf16 %v26219_v13, %v26216_v59 }
  0xd3   : >> { %21292 = vmatmul.mubr.msk.bf16.gmra.mrb[28].mxu1 %vm518_vm1, %v25946_v63  ;;  %21752 = vmatmul.mubr.msk.bf16.gmra.mrb[12].mxu0 %vm518_vm1, %v26104_v14  ;;  %v26186_v63 = vld [vmem:[%s25680_s18 + $0x52] sm:$0xff] }
  0xd4   : >> { %21297 = vmatprep.mubr.msk.bf16.mxu1 %vm518_vm1, %v978_v17  ;;  %21755 = vmatprep.mubr.msk.bf16.mxu0 %vm518_vm1, %v26109_v20  ;;  %v983_v52 = vpack.c.bf16 %v26189_v27, %v26186_v63  ;;  %v30568_v17 = vpack.c.bf16 %v25784_v7, %v25771_v2  ;;  %v30569_v2 = vpack.c.bf16 %v25821_v18, %v25787_v8  ;;  %v26303_v7 = vld [vmem:[%s25680_s18 + $0xd2] sm:$0xff] }
  0xdb   : >> { %21298 = vmatmul.mubr.msk.bf16.vlgmr.msra.gmra.mrb[0].mxu1 %vm518_vm1, %v979_v31  ;;  %21756 = vmatmul.mubr.msk.bf16.gmra.mrb[16].mxu0 %vm518_vm1, %v26134_v35  ;;  %v26285_v31 = vld [vmem:[%s25680_s18 + $0xc2] sm:$0xff] }
  0xdc   : >> { %21330 = vmatpush3.bf16.msra.mxu1 %v1341_v37  ;;  %21301 = vmatprep.mubr.msk.bf16.mxu1 %vm518_vm1, %v980_v40  ;;  %v990_v37 = vpack.c.bf16 %v26288_v58, %v26285_v31  ;;  %v26306_v40 = vld [vmem:[%s25680_s18 + $0xda] sm:$0xff] }
  0xdd   : >> { %21759 = vmatprep.mubr.msk.bf16.mxu0 %vm518_vm1, %v26142_v41  ;;  %25127 = vmatprep.subr.msk.bf16.mxu1 %vm567_vm0, %v26148_v43  ;;  %v991_v8 = vpack.c.bf16 %v26306_v40, %v26303_v7 }
  0xe3   : >> { %21302 = vmatmul.mubr.msk.bf16.gmra.mrb[4].mxu1 %vm518_vm1, %v981_v51  ;;  %21760 = vmatmul.mubr.msk.bf16.gmra.mrb[20].mxu0 %vm518_vm1, %v26173_v55  ;;  %v30570_v51 = vpack.c.bf16 %v25835_v22, %v25824_v19  ;;  %v26329_v19 = vld [vmem:[%s25680_s18 + $0xf2] sm:$0xff]  ;;  %v26332_v22 = vld [vmem:[%s25680_s18 + $0xfa] sm:$0xff] }
  0xe4   : >> { %21305 = vmatprep.mubr.msk.bf16.mxu1 %vm518_vm1, %v982_v56  ;;  %21763 = vmatprep.mubr.msk.bf16.mxu0 %vm518_vm1, %v26179_v61  ;;  %v26313_v56 = vld [vmem:[%s25680_s18 + $0xe2] sm:$0xff] }
  0xeb   : >> { %21306 = vmatmul.mubr.msk.bf16.gmra.mrb[8].mxu1 %vm518_vm1, %v983_v52  ;;  %21764 = vmatmul.mubr.msk.bf16.gmra.mrb[24].mxu0 %vm518_vm1, %v26203_v53  ;;  %v26316_v52 = vld [vmem:[%s25680_s18 + $0xea] sm:$0xff] }
  0xec   : >> { %21309 = vmatprep.mubr.msk.bf16.mxu1 %vm518_vm1, %v984_v28  ;;  %21767 = vmatprep.mubr.msk.bf16.mxu0 %vm518_vm1, %v26209_v11  ;;  %v992_v18 = vpack.c.bf16 %v26316_v52, %v26313_v56  ;;  %v30571_v28 = vpack.c.bf16 %v25869_v33, %v25838_v23  ;;  %v993_v23 = vpack.c.bf16 %v26332_v22, %v26329_v19 }
  0xed   : >> { %v1274_v33 = vpack.c.bf16 %v26117_v21, %v26100_v12  ;;  %v18062_v12 = vld [vmem:[%s25680_s18 + $0x119] sm:$0xff]  ;;  %v18063_v21 = vld [vmem:[%s25680_s18 + $0x121] sm:$0xff] }
  0xf3   : >> { %21310 = vmatmul.mubr.msk.bf16.gmra.mrb[12].mxu1 %vm518_vm1, %v985_v46  ;;  %21768 = vmatmul.mubr.msk.bf16.gmra.mrb[28].mxu0 %vm518_vm1, %v26233_v62  ;;  %v26339_v46 = vld [vmem:[%s25680_s18 + $0x101] sm:$0xff] }
  0xf4   : >> { %21313 = vmatprep.mubr.msk.bf16.mxu1 %vm518_vm1, %v986_v24  ;;  %21773 = vmatprep.mubr.msk.bf16.mxu0 %vm518_vm1, %v30566_v48  ;;  %v30573_v24 = vld [vmem:[#allocation6_spill] sm:$0xff] }
  0xf5   : >> { %v5130_v48 = vpack.c.bf16 %v26339_v46, %v30573_v24 }
  0xfb   : >> { %21314 = vmatmul.mubr.msk.bf16.gmra.mrb[16].mxu1 %vm518_vm1, %v987_v42  ;;  %21774 = vmatmul.mubr.msk.bf16.vlgmr.msra.gmra.mrb[0].mxu0 %vm518_vm1, %v30567_v57  ;;  %v30574_v42 = vld [vmem:[#allocation5_spill] sm:$0xff]  ;;  %v1275_v57 = vpack.c.bf16 %v26125_v26, %v26120_v25 }
  0xfc   : >> { %21317 = vmatprep.mubr.msk.bf16.mxu1 %vm518_vm1, %v988_v0  ;;  %21806 = vmatpush3.bf16.msra.mxu0 %v5485_v3  ;;  %v30575_v0 = vld [vmem:[#allocation4_spill] sm:$0xff]  ;;  %v18065_v26 = vld [vmem:[%s25680_s18 + $0x131] sm:$0xff] }
  0xfd   : >> { %21777 = vmatprep.mubr.msk.bf16.mxu0 %vm518_vm1, %v30568_v17  ;;  %25142 = vmatprep.subr.msk.bf16.mxu0 %vm567_vm0, %v26267_v54  ;;  %v30576_v3 = vpack.c.bf16 %v30574_v42, %v30575_v0  ;;  %v26360_v17 = vpack.c.bf16 %v18061_v38, %v18060_v34  ;;  %v18064_v25 = vld [vmem:[%s25680_s18 + $0x129] sm:$0xff]  ;;  %v18073_v42 = vld [vmem:[%s25680_s18 + $0x171] sm:$0xff]  ;;  %v26489_v34 = vld [vmem:[%s25680_s18 + $0x11a] sm:$0xff] }
  0xfe   : >> { %v26484_v0 = vld [vmem:[%s25680_s18 + $0x112] sm:$0xff]  ;;  %v26492_v38 = vld [vmem:[%s25680_s18 + $0x122] sm:$0xff] }
 0x103   : >> { %21318 = vmatmul.mubr.msk.bf16.gmra.mrb[20].mxu1 %vm518_vm1, %v989_v1  ;;  %21778 = vmatmul.mubr.msk.bf16.gmra.mrb[4].mxu0 %vm518_vm1, %v30569_v2  ;;  %v1637_v1 = vsel %vm567_vm0, %v26148_v43, 0  ;;  %v26366_v2 = vpack.c.bf16 %v18063_v21, %v18062_v12  ;;  %v18067_v43 = vld [vmem:[%s25680_s18 + $0x141] sm:$0xff] }
 0x104   : >> { %21321 = vmatprep.mubr.msk.bf16.mxu1 %vm518_vm1, %v990_v37  ;;  %21781 = vmatprep.mubr.msk.bf16.mxu0 %vm518_vm1, %v30570_v51  ;;  %v1276_v37 = vpack.c.bf16 %v26153_v36, %v26128_v29  ;;  %v26372_v51 = vld [vmem:[%s30529_s1 + $0xa] sm:$0x3]  ;;  %v18066_v29 = vld [vmem:[%s25680_s18 + $0x139] sm:$0xff]  ;;  %v1277_v36 = vpack.c.bf16 %v26162_v32, %v26156_v45  ;;  %v18069_v32 = vld [vmem:[%s25680_s18 + $0x151] sm:$0xff] }
 0x105   : >> { %v18068_v45 = vld [vmem:[%s25680_s18 + $0x149] sm:$0xff] }
 0x10b   : >> { %21322 = vmatmul.mubr.msk.bf16.gmra.mrb[24].mxu1 %vm518_vm1, %v991_v8  ;;  %21782 = vmatmul.mubr.msk.bf16.gmra.mrb[8].mxu0 %vm518_vm1, %v30571_v28  ;;  %v26387_v8 = vpack.c.bf16 %v18065_v26, %v18064_v25  ;;  %v26391_v28 = vpack.c.bf16 %v18067_v43, %v18066_v29  ;;  %v26508_v25 = vld [vmem:[%s30529_s1 + $0xc] sm:$0x3]  ;;  %v17448_v26 = vld [vmem:[%s25680_s18 + $0x3b] sm:$0xff]  ;;  %v17449_v29 = vld [vmem:[%s25680_s18 + $0x43] sm:$0xff] }
 0x10c   : >> { %21325 = vmatprep.mubr.msk.bf16.mxu1 %vm518_vm1, %v992_v18  ;;  %21785 = vmatprep.mubr.msk.bf16.mxu0 %vm518_vm1, %v30572_v39  ;;  %v1278_v18 = vpack.c.bf16 %v26186_v63, %v26165_v49  ;;  %v18070_v39 = vld [vmem:[%s25680_s18 + $0x159] sm:$0xff]  ;;  %v1279_v49 = vpack.c.bf16 %v26194_v4, %v26189_v27  ;;  %v26405_v63 = vpack.c.bf16 %v18069_v32, %v18068_v45  ;;  %v26529_v32 = vld [vmem:[%s25680_s18 + $0x142] sm:$0xff] }
 0x10d   : >> { %v1281_v27 = vpack.c.bf16 %v26225_v44, %v26219_v13  ;;  %v1284_v13 = vpack.c.bf16 %v26275_v10, %v26255_v15  ;;  %v5781_v44 = vsel %vm567_vm0, %v26267_v54, 0  ;;  %v1288_v15 = vpack.c.bf16 %v26329_v19, %v26316_v52  ;;  %v26467_v54 = vld [vmem:[%s25680_s18 + $0x102] sm:$0xff]  ;;  %v17442_v10 = vld [vmem:[%s25680_s18 + $0xb] sm:$0xff]  ;;  %v26526_v45 = vld [vmem:[%s25680_s18 + $0x13a] sm:$0xff] }
 0x10e   : >> { %v26481_v52 = vld [vmem:[%s25680_s18 + $0x10a] sm:$0xff]  ;;  %v26521_v43 = vld [vmem:[%s25680_s18 + $0x132] sm:$0xff] }
 0x10f   : >> { %v26496_v21 = vpack.c.bf16 %v26484_v0, %v26481_v52 }
 0x113   : >> { %21326 = vmatmul.mubr.msk.bf16.gmra.mrb[28].mxu1 %vm518_vm1, %v993_v23  ;;  %21786 = vmatmul.mubr.msk.bf16.gmra.mrb[12].mxu0 %vm518_vm1, %v30576_v3  ;;  %v18071_v23 = vld [vmem:[%s25680_s18 + $0x161] sm:$0xff]  ;;  %v17446_v3 = vld [vmem:[%s25680_s18 + $0x2b] sm:$0xff] }
 0x114   : >> { %21331 = vmatprep.mubr.msk.bf16.mxu1 %vm518_vm1, %v1274_v33  ;;  %21789 = vmatprep.mubr.msk.bf16.mxu0 %vm518_vm1, %v5130_v48  ;;  %v1280_v33 = vpack.c.bf16 %v26216_v59, %v26197_v30  ;;  %v26409_v24 = vpack.c.bf16 %v18071_v23, %v18070_v39  ;;  %v18072_v48 = vld [vmem:[%s25680_s18 + $0x169] sm:$0xff]  ;;  %v1282_v30 = vpack.c.bf16 %v26242_v5, %v26228_v50  ;;  %v26440_v50 = vld [vmem:[%s30529_s1 + $0x26] sm:$0x3] }
 0x115   : >> { %v26421_v4 = vpack.c.bf16 %v18073_v42, %v18072_v48  ;;  %v1283_v59 = vpack.c.bf16 %v26252_v47, %v26245_v16  ;;  %v1285_v5 = vpack.c.bf16 %v26285_v31, %v26278_v60  ;;  %v26451_v16 = vpack.c.bf16 %v26303_v7, %v26288_v58  ;;  %v17443_v60 = vld [vmem:[%s25680_s18 + $0x13] sm:$0xff]  ;;  %v17444_v7 = vld [vmem:[%s25680_s18 + $0x1b] sm:$0xff]  ;;  %v17453_v42 = vld [vmem:[%s25680_s18 + $0x63] sm:$0xff] }
 0x116   : >> { %v1287_v47 = vpack.c.bf16 %v26313_v56, %v26306_v40  ;;  %v1289_v31 = vpack.c.bf16 %v26467_v54, %v26332_v22  ;;  %v1570_v58 = vpack.c.bf16 %v17443_v60, %v17442_v10  ;;  %v17445_v40 = vld [vmem:[%s25680_s18 + $0x23] sm:$0xff]  ;;  %v17447_v22 = vld [vmem:[%s25680_s18 + $0x33] sm:$0xff]  ;;  %v1573_v39 = vpack.c.bf16 %v17449_v29, %v17448_v26  ;;  %v17452_v48 = vld [vmem:[%s25680_s18 + $0x5b] sm:$0xff] }
 0x117   : >> { %v1571_v12 = vpack.c.bf16 %v17445_v40, %v17444_v7  ;;  %v26578_v7 = vld [vmem:[%s25680_s18 + $0x16a] sm:$0xff]  ;;  %v26583_v40 = vld [vmem:[%s25680_s18 + $0x172] sm:$0xff]  ;;  %v17460_v26 = vld [vmem:[%s25680_s18 + $0x9b] sm:$0xff] }
 0x118   : >> { %30578 = vst [vmem:[#allocation5_spill] sm:$0xff] %v26578_v7  ;;  %30579 = vst [vmem:[#allocation4_spill] sm:$0xff] %v26583_v40  ;;  %v17461_v29 = vld [vmem:[%s25680_s18 + $0xa3] sm:$0xff] }
 0x11b   : >> { %21332 = vmatmul.mubr.msk.bf16.vlgmr.msra.gmra.mrb[0].mxu1 %vm518_vm1, %v1275_v57  ;;  %21790 = vmatmul.mubr.msk.bf16.gmra.mrb[16].mxu0 %vm518_vm1, %v26360_v17  ;;  %v1933_v57 = vsel %vm567_vm0, %v26372_v51, 0 }
 0x11c   : >> { %21364 = vmatpush3.bf16.msra.mxu1 %v1637_v1  ;;  %21335 = vmatprep.mubr.msk.bf16.mxu1 %vm518_vm1, %v1276_v37  ;;  %v1572_v1 = vpack.c.bf16 %v17447_v22, %v17446_v3  ;;  %v26502_v37 = vpack.c.bf16 %v26492_v38, %v26489_v34  ;;  %v17458_v3 = vld [vmem:[%s25680_s18 + $0x8b] sm:$0xff]  ;;  %v17459_v22 = vld [vmem:[%s25680_s18 + $0x93] sm:$0xff] }
 0x11d   : >> { %21793 = vmatprep.mubr.msk.bf16.mxu0 %vm518_vm1, %v26366_v2  ;;  %25128 = vmatprep.subr.msk.bf16.mxu1 %vm567_vm0, %v26372_v51  ;;  %v26515_v51 = vld [vmem:[%s25680_s18 + $0x12a] sm:$0xff] }
 0x11e   : >> { %v26535_v23 = vpack.c.bf16 %v26521_v43, %v26515_v51 }
 0x123   : >> { %21336 = vmatmul.mubr.msk.bf16.gmra.mrb[4].mxu1 %vm518_vm1, %v1277_v36  ;;  %21794 = vmatmul.mubr.msk.bf16.gmra.mrb[20].mxu0 %vm518_vm1, %v26387_v8  ;;  %v17450_v36 = vld [vmem:[%s25680_s18 + $0x4b] sm:$0xff] }
 0x124   : >> { %21339 = vmatprep.mubr.msk.bf16.mxu1 %vm518_vm1, %v1278_v18  ;;  %21797 = vmatprep.mubr.msk.bf16.mxu0 %vm518_vm1, %v26391_v28  ;;  %v17451_v18 = vld [vmem:[%s25680_s18 + $0x53] sm:$0xff] }
 0x12b   : >> { %21340 = vmatmul.mubr.msk.bf16.gmra.mrb[8].mxu1 %vm518_vm1, %v1279_v49  ;;  %21798 = vmatmul.mubr.msk.bf16.gmra.mrb[24].mxu0 %vm518_vm1, %v26405_v63  ;;  %v1574_v49 = vpack.c.bf16 %v17451_v18, %v17450_v36  ;;  %v17462_v36 = vld [vmem:[%s25680_s18 + $0xab] sm:$0xff]  ;;  %v17463_v18 = vld [vmem:[%s25680_s18 + $0xb3] sm:$0xff] }
 0x12c   : >> { %21343 = vmatprep.mubr.msk.bf16.mxu1 %vm518_vm1, %v1280_v33  ;;  %21801 = vmatprep.mubr.msk.bf16.mxu0 %vm518_vm1, %v26409_v24  ;;  %v26539_v33 = vpack.c.bf16 %v26529_v32, %v26526_v45 }
 0x133   : >> { %21344 = vmatmul.mubr.msk.bf16.gmra.mrb[12].mxu1 %vm518_vm1, %v1281_v27  ;;  %21802 = vmatmul.mubr.msk.bf16.gmra.mrb[28].mxu0 %vm518_vm1, %v26421_v4 }
 0x134   : >> { %21347 = vmatprep.mubr.msk.bf16.mxu1 %vm518_vm1, %v1282_v30  ;;  %21807 = vmatprep.mubr.msk.bf16.mxu0 %vm518_vm1, %v1281_v27  ;;  %v26548_v27 = vld [vmem:[%s25680_s18 + $0x14a] sm:$0xff] }
 0x13b   : >> { %21348 = vmatmul.mubr.msk.bf16.gmra.mrb[16].mxu1 %vm518_vm1, %v1283_v59  ;;  %21808 = vmatmul.mubr.msk.bf16.vlgmr.msra.gmra.mrb[0].mxu0 %vm518_vm1, %v1282_v30  ;;  %v26553_v30 = vld [vmem:[%s25680_s18 + $0x152] sm:$0xff] }
 0x13c   : >> { %21351 = vmatprep.mubr.msk.bf16.mxu1 %vm518_vm1, %v1284_v13  ;;  %21840 = vmatpush3.bf16.msra.mxu0 %v5781_v44  ;;  %v26558_v44 = vld [vmem:[%s25680_s18 + $0x15a] sm:$0xff] }
 0x13d   : >> { %21811 = vmatprep.mubr.msk.bf16.mxu0 %vm518_vm1, %v1283_v59  ;;  %25143 = vmatprep.subr.msk.bf16.mxu0 %vm567_vm0, %v26440_v50  ;;  %v17454_v59 = vld [vmem:[%s25680_s18 + $0x6b] sm:$0xff] }
 0x143   : >> { %21352 = vmatmul.mubr.msk.bf16.gmra.mrb[20].mxu1 %vm518_vm1, %v1285_v5  ;;  %21812 = vmatmul.mubr.msk.bf16.gmra.mrb[4].mxu0 %vm518_vm1, %v1284_v13  ;;  %v17455_v13 = vld [vmem:[%s25680_s18 + $0x73] sm:$0xff] }
 0x144   : >> { %21355 = vmatprep.mubr.msk.bf16.mxu1 %vm518_vm1, %v26451_v16  ;;  %21815 = vmatprep.mubr.msk.bf16.mxu0 %vm518_vm1, %v1285_v5  ;;  %v26561_v5 = vld [vmem:[%s25680_s18 + $0x162] sm:$0xff]  ;;  %v1576_v10 = vpack.c.bf16 %v17455_v13, %v17454_v59  ;;  %v26618_v13 = vld [vmem:[%s25680_s18 + $0xd3] sm:$0xff] }
 0x145   : >> { %30577 = vst [vmem:[#allocation6_spill] sm:$0xff] %v26561_v5  ;;  %v26569_v60 = vpack.c.bf16 %v26561_v5, %v26558_v44  ;;  %v17465_v59 = vld [vmem:[%s25680_s18 + $0xc3] sm:$0xff]  ;;  %30580 = vst [vmem:[#allocation7_spill] sm:$0xff] %v26618_v13  ;;  %v26827_v5 = vld [vmem:[%s25680_s18 + $0xec] sm:$0xff] }
 0x14b   : >> { %21356 = vmatmul.mubr.msk.bf16.gmra.mrb[24].mxu1 %vm518_vm1, %v1287_v47  ;;  %21816 = vmatmul.mubr.msk.bf16.gmra.mrb[8].mxu0 %vm518_vm1, %v26451_v16 }
 0x14c   : >> { %21359 = vmatprep.mubr.msk.bf16.mxu1 %vm518_vm1, %v1288_v15  ;;  %21819 = vmatprep.mubr.msk.bf16.mxu0 %vm518_vm1, %v1287_v47  ;;  %v1575_v47 = vpack.c.bf16 %v17453_v42, %v17452_v48  ;;  %v6077_v48 = vsel %vm567_vm0, %v26440_v50, 0  ;;  %v26607_v42 = vld [vmem:[%s30529_s1 + $0x28] sm:$0x3]  ;;  %v17466_v50 = vld [vmem:[%s25680_s18 + $0xcb] sm:$0xff] }
 0x153   : >> { %21360 = vmatmul.mubr.msk.bf16.gmra.mrb[28].mxu1 %vm518_vm1, %v1289_v31  ;;  %21820 = vmatmul.mubr.msk.bf16.gmra.mrb[12].mxu0 %vm518_vm1, %v1288_v15  ;;  %v26565_v15 = vpack.c.bf16 %v26553_v30, %v26548_v27 }
 0x154   : >> { %21365 = vmatprep.mubr.msk.bf16.mxu1 %vm518_vm1, %v1570_v58  ;;  %21823 = vmatprep.mubr.msk.bf16.mxu0 %vm518_vm1, %v1289_v31  ;;  %v17456_v31 = vld [vmem:[%s25680_s18 + $0x7b] sm:$0xff]  ;;  %v17457_v58 = vld [vmem:[%s25680_s18 + $0x83] sm:$0xff] }
 0x15b   : >> { %21366 = vmatmul.mubr.msk.bf16.vlgmr.msra.gmra.mrb[0].mxu1 %vm518_vm1, %v1571_v12  ;;  %21824 = vmatmul.mubr.msk.bf16.gmra.mrb[16].mxu0 %vm518_vm1, %v26496_v21  ;;  %v1577_v12 = vpack.c.bf16 %v17457_v58, %v17456_v31  ;;  %v26634_v31 = vld [vmem:[%s25680_s18 + $0xeb] sm:$0xff]  ;;  %v17471_v58 = vld [vmem:[%s25680_s18 + $0xf3] sm:$0xff] }
 0x15c   : >> { %21398 = vmatpush3.bf16.msra.mxu1 %v1933_v57  ;;  %21369 = vmatprep.mubr.msk.bf16.mxu1 %vm518_vm1, %v1572_v1  ;;  %v26589_v57 = vpack.c.bf16 %v26583_v40, %v26578_v7  ;;  %v1578_v1 = vpack.c.bf16 %v17459_v22, %v17458_v3  ;;  %30582 = vst [vmem:[#allocation9_spill] sm:$0xff] %v26634_v31  ;;  %v26790_v7 = vld [vmem:[%s30529_s1 + $0x2a] sm:$0x3] }
 0x15d   : >> { %21827 = vmatprep.mubr.msk.bf16.mxu0 %vm518_vm1, %v26502_v37  ;;  %25129 = vmatprep.subr.msk.bf16.mxu1 %vm567_vm0, %v26508_v25  ;;  %v1584_v22 = vpack.c.bf16 %v17471_v58, %v26634_v31  ;;  %v26767_v31 = vld [vmem:[%s25680_s18 + $0xa4] sm:$0xff] }
 0x163   : >> { %21370 = vmatmul.mubr.msk.bf16.gmra.mrb[4].mxu1 %vm518_vm1, %v1573_v39  ;;  %21828 = vmatmul.mubr.msk.bf16.gmra.mrb[20].mxu0 %vm518_vm1, %v26535_v23  ;;  %v1579_v39 = vpack.c.bf16 %v17461_v29, %v17460_v26 }
 0x164   : >> { %21373 = vmatprep.mubr.msk.bf16.mxu1 %vm518_vm1, %v1574_v49  ;;  %21831 = vmatprep.mubr.msk.bf16.mxu0 %vm518_vm1, %v26539_v33  ;;  %v1580_v49 = vpack.c.bf16 %v17463_v18, %v17462_v36  ;;  %v26668_v36 = vld [vmem:[%s25680_s18 + $0x2c] sm:$0xff]  ;;  %v26671_v18 = vld [vmem:[%s25680_s18 + $0x34] sm:$0xff] }
 0x16b   : >> { %21374 = vmatmul.mubr.msk.bf16.gmra.mrb[8].mxu1 %vm518_vm1, %v1575_v47  ;;  %21832 = vmatmul.mubr.msk.bf16.gmra.mrb[24].mxu0 %vm518_vm1, %v26565_v15 }
 0x16c   : >> { %21377 = vmatprep.mubr.msk.bf16.mxu1 %vm518_vm1, %v1576_v10  ;;  %21835 = vmatprep.mubr.msk.bf16.mxu0 %vm518_vm1, %v26569_v60  ;;  %v17469_v10 = vld [vmem:[%s25680_s18 + $0xe3] sm:$0xff] }
 0x173   : >> { %21378 = vmatmul.mubr.msk.bf16.gmra.mrb[12].mxu1 %vm518_vm1, %v1577_v12  ;;  %21836 = vmatmul.mubr.msk.bf16.gmra.mrb[28].mxu0 %vm518_vm1, %v26589_v57  ;;  %v17492_v12 = vld [vmem:[%s25680_s18 + $0xc] sm:$0xff] }
 0x174   : >> { %21381 = vmatprep.mubr.msk.bf16.mxu1 %vm518_vm1, %v1578_v1  ;;  %21841 = vmatprep.mubr.msk.bf16.mxu0 %vm518_vm1, %v26084_v6  ;;  %v17464_v6 = vld [vmem:[%s25680_s18 + $0xbb] sm:$0xff] }
 0x175   : >> { %v1581_v47 = vpack.c.bf16 %v17465_v59, %v17464_v6  ;;  %v26651_v1 = vld [vmem:[%s25680_s18 + $0x14] sm:$0xff]  ;;  %v26691_v6 = vld [vmem:[%s25680_s18 + $0x44] sm:$0xff] }
 0x176   : >> { %v1866_v29 = vpack.c.bf16 %v26651_v1, %v17492_v12  ;;  %v18164_v59 = vld [vmem:[%s25680_s18 + $0x178] sm:$0xff] }
 0x177   : >> { %v18168_v12 = vld [vmem:[%s25680_s18 + $0x198] sm:$0xff] }
 0x17b   : >> { %21382 = vmatmul.mubr.msk.bf16.gmra.mrb[16].mxu1 %vm518_vm1, %v1579_v39  ;;  %21842 = vmatmul.mubr.msk.bf16.vlgmr.msra.gmra.mrb[0].mxu0 %vm518_vm1, %v26088_v9  ;;  %v1582_v9 = vpack.c.bf16 %v26618_v13, %v17466_v50  ;;  %v2229_v39 = vsel %vm567_vm0, %v26508_v25, 0  ;;  %v18165_v25 = vld [vmem:[%s25680_s18 + $0x180] sm:$0xff]  ;;  %v26699_v50 = vld [vmem:[%s25680_s18 + $0x4c] sm:$0xff]  ;;  %v26776_v13 = vld [vmem:[%s25680_s18 + $0xb4] sm:$0xff] }
 0x17c   : >> { %21385 = vmatprep.mubr.msk.bf16.mxu1 %vm518_vm1, %v1580_v49  ;;  %21874 = vmatpush3.bf16.msra.mxu0 %v6077_v48  ;;  %v1868_v49 = vpack.c.bf16 %v26671_v18, %v26668_v36  ;;  %v26688_v48 = vld [vmem:[%s25680_s18 + $0x3c] sm:$0xff] }
 0x17d   : >> { %21845 = vmatprep.mubr.msk.bf16.mxu0 %vm518_vm1, %v26104_v14  ;;  %25144 = vmatprep.subr.msk.bf16.mxu0 %vm567_vm0, %v26607_v42  ;;  %v26628_v14 = vld [vmem:[%s25680_s18 + $0xdb] sm:$0xff] }
 0x17e   : >> { %30581 = vst [vmem:[#allocation8_spill] sm:$0xff] %v26628_v14  ;;  %v1583_v3 = vpack.c.bf16 %v17469_v10, %v26628_v14  ;;  %v1869_v10 = vpack.c.bf16 %v26691_v6, %v26688_v48  ;;  %v18194_v14 = vld [vmem:[%s25680_s18 + $0xd9] sm:$0xff] }
 0x183   : >> { %21386 = vmatmul.mubr.msk.bf16.gmra.mrb[20].mxu1 %vm518_vm1, %v1581_v47  ;;  %21846 = vmatmul.mubr.msk.bf16.gmra.mrb[4].mxu0 %vm518_vm1, %v26109_v20  ;;  %v26644_v20 = vld [vmem:[%s25680_s18 + $0xfb] sm:$0xff] }
 0x184   : >> { %21389 = vmatprep.mubr.msk.bf16.mxu1 %vm518_vm1, %v1582_v9  ;;  %21849 = vmatprep.mubr.msk.bf16.mxu0 %vm518_vm1, %v26134_v35  ;;  %30583 = vst [vmem:[#allocation10_spill] sm:$0xff] %v26644_v20  ;;  %v17473_v35 = vld [vmem:[%s25680_s18 + $0x103] sm:$0xff]  ;;  %v26702_v47 = vld [vmem:[%s25680_s18 + $0x54] sm:$0xff] }
 0x185   : >> { %v1585_v26 = vpack.c.bf16 %v17473_v35, %v26644_v20  ;;  %v18167_v9 = vld [vmem:[%s25680_s18 + $0x190] sm:$0xff]  ;;  %v1870_v58 = vpack.c.bf16 %v26702_v47, %v26699_v50  ;;  %v26719_v35 = vld [vmem:[%s25680_s18 + $0x64] sm:$0xff]  ;;  %v26764_v20 = vld [vmem:[%s25680_s18 + $0x9c] sm:$0xff] }
 0x18b   : >> { %21390 = vmatmul.mubr.msk.bf16.gmra.mrb[24].mxu1 %vm518_vm1, %v1583_v3  ;;  %21850 = vmatmul.mubr.msk.bf16.gmra.mrb[8].mxu0 %vm518_vm1, %v26142_v41  ;;  %v26660_v41 = vld [vmem:[%s25680_s18 + $0x1c] sm:$0xff] }
 0x18c   : >> { %21393 = vmatprep.mubr.msk.bf16.mxu1 %vm518_vm1, %v1584_v22  ;;  %21853 = vmatprep.mubr.msk.bf16.mxu0 %vm518_vm1, %v26173_v55  ;;  %v26663_v55 = vld [vmem:[%s25680_s18 + $0x24] sm:$0xff]  ;;  %v26716_v22 = vld [vmem:[%s25680_s18 + $0x5c] sm:$0xff] }
 0x193   : >> { %21394 = vmatmul.mubr.msk.bf16.gmra.mrb[28].mxu1 %vm518_vm1, %v1585_v26  ;;  %21854 = vmatmul.mubr.msk.bf16.gmra.mrb[12].mxu0 %vm518_vm1, %v26179_v61  ;;  %v1867_v61 = vpack.c.bf16 %v26663_v55, %v26660_v41  ;;  %v18169_v26 = vld [vmem:[%s25680_s18 + $0x1a0] sm:$0xff] }
 0x194   : >> { %21399 = vmatprep.mubr.msk.bf16.mxu1 %vm518_vm1, %v1866_v29  ;;  %21857 = vmatprep.mubr.msk.bf16.mxu0 %vm518_vm1, %v26203_v53  ;;  %v26683_v53 = vld [vmem:[%s30529_s1 + $0xe] sm:$0x3] }
 0x195   : >> { %v26725_v29 = vld [vmem:[%s25680_s18 + $0x6c] sm:$0xff] }
 0x19b   : >> { %21400 = vmatmul.mubr.msk.bf16.vlgmr.msra.gmra.mrb[0].mxu1 %vm518_vm1, %v1867_v61  ;;  %21858 = vmatmul.mubr.msk.bf16.gmra.mrb[16].mxu0 %vm518_vm1, %v26209_v11  ;;  %v18166_v11 = vld [vmem:[%s25680_s18 + $0x188] sm:$0xff]  ;;  %v26728_v61 = vld [vmem:[%s25680_s18 + $0x74] sm:$0xff] }
 0x19c   : >> { %21432 = vmatpush3.bf16.msra.mxu1 %v2229_v39  ;;  %21403 = vmatprep.mubr.msk.bf16.mxu1 %vm518_vm1, %v1868_v49  ;;  %v5726_v3 = vpack.c.bf16 %v18167_v9, %v18166_v11  ;;  %v18170_v39 = vld [vmem:[%s25680_s18 + $0x1a8] sm:$0xff]  ;;  %v18171_v49 = vld [vmem:[%s25680_s18 + $0x1b0] sm:$0xff]  ;;  %v1872_v11 = vpack.c.bf16 %v26728_v61, %v26725_v29 }
 0x19d   : >> { %21861 = vmatprep.mubr.msk.bf16.mxu0 %vm518_vm1, %v26233_v62  ;;  %25130 = vmatprep.subr.msk.bf16.mxu1 %vm567_vm0, %v26683_v53  ;;  %v5725_v62 = vpack.c.bf16 %v18165_v25, %v18164_v59  ;;  %v1871_v59 = vpack.c.bf16 %v26719_v35, %v26716_v22  ;;  %v5727_v25 = vpack.c.bf16 %v18169_v26, %v18168_v12  ;;  %v26749_v12 = vld [vmem:[%s25680_s18 + $0x8c] sm:$0xff]  ;;  %v26752_v26 = vld [vmem:[%s25680_s18 + $0x94] sm:$0xff] }
 0x19e   : >> { %v5728_v9 = vpack.c.bf16 %v18171_v49, %v18170_v39  ;;  %v18192_v39 = vld [vmem:[%s25680_s18 + $0xc9] sm:$0xff]  ;;  %v18193_v49 = vld [vmem:[%s25680_s18 + $0xd1] sm:$0xff] }
 0x1a3   : >> { %21404 = vmatmul.mubr.msk.bf16.gmra.mrb[4].mxu1 %vm518_vm1, %v1869_v10  ;;  %21862 = vmatmul.mubr.msk.bf16.gmra.mrb[20].mxu0 %vm518_vm1, %v5725_v62  ;;  %v26740_v10 = vld [vmem:[%s25680_s18 + $0x7c] sm:$0xff]  ;;  %v26743_v62 = vld [vmem:[%s25680_s18 + $0x84] sm:$0xff] }
 0x1a4   : >> { %21407 = vmatprep.mubr.msk.bf16.mxu1 %vm518_vm1, %v1870_v58  ;;  %21865 = vmatprep.mubr.msk.bf16.mxu0 %vm518_vm1, %v5726_v3  ;;  %v18172_v58 = vld [vmem:[%s25680_s18 + $0x1b8] sm:$0xff]  ;;  %v18173_v3 = vld [vmem:[%s25680_s18 + $0x1c0] sm:$0xff] }
 0x1ab   : >> { %21408 = vmatmul.mubr.msk.bf16.gmra.mrb[8].mxu1 %vm518_vm1, %v1871_v59  ;;  %21866 = vmatmul.mubr.msk.bf16.gmra.mrb[24].mxu0 %vm518_vm1, %v5727_v25  ;;  %v1873_v59 = vpack.c.bf16 %v26743_v62, %v26740_v10  ;;  %v5729_v25 = vpack.c.bf16 %v18173_v3, %v18172_v58  ;;  %v18195_v58 = vld [vmem:[%s25680_s18 + $0xe1] sm:$0xff]  ;;  %v26773_v3 = vld [vmem:[%s25680_s18 + $0xac] sm:$0xff] }
 0x1ac   : >> { %21411 = vmatprep.mubr.msk.bf16.mxu1 %vm518_vm1, %v1872_v11  ;;  %21869 = vmatprep.mubr.msk.bf16.mxu0 %vm518_vm1, %v5728_v9  ;;  %v1874_v11 = vpack.c.bf16 %v26752_v26, %v26749_v12  ;;  %v6010_v9 = vpack.c.bf16 %v18193_v49, %v18192_v39  ;;  %v18196_v39 = vld [vmem:[%s25680_s18 + $0xe9] sm:$0xff]  ;;  %v18197_v49 = vld [vmem:[%s25680_s18 + $0xf1] sm:$0xff] }
 0x1ad   : >> { %v6012_v40 = vpack.c.bf16 %v18197_v49, %v18196_v39  ;;  %v26803_v39 = vld [vmem:[%s25680_s18 + $0xcc] sm:$0xff]  ;;  %v26806_v49 = vld [vmem:[%s25680_s18 + $0xd4] sm:$0xff] }
 0x1b3   : >> { %21412 = vmatmul.mubr.msk.bf16.gmra.mrb[12].mxu1 %vm518_vm1, %v1873_v59  ;;  %21870 = vmatmul.mubr.msk.bf16.gmra.mrb[28].mxu0 %vm518_vm1, %v5729_v25  ;;  %v1875_v59 = vpack.c.bf16 %v26767_v31, %v26764_v20  ;;  %v6011_v25 = vpack.c.bf16 %v18195_v58, %v18194_v14  ;;  %v26795_v14 = vld [vmem:[%s25680_s18 + $0xbc] sm:$0xff]  ;;  %v26798_v58 = vld [vmem:[%s25680_s18 + $0xc4] sm:$0xff] }
 0x1b4   : >> { %21415 = vmatprep.mubr.msk.bf16.mxu1 %vm518_vm1, %v1874_v11  ;;  %21875 = vmatprep.mubr.msk.bf16.mxu0 %vm518_vm1, %v6010_v9  ;;  %v1876_v11 = vpack.c.bf16 %v26776_v13, %v26773_v3  ;;  %v6373_v9 = vsel %vm567_vm0, %v26607_v42, 0  ;;  %v18198_v42 = vld [vmem:[%s25680_s18 + $0xf9] sm:$0xff] }
 0x1bb   : >> { %21416 = vmatmul.mubr.msk.bf16.gmra.mrb[16].mxu1 %vm518_vm1, %v1875_v59  ;;  %21876 = vmatmul.mubr.msk.bf16.vlgmr.msra.gmra.mrb[0].mxu0 %vm518_vm1, %v6011_v25  ;;  %v1877_v59 = vpack.c.bf16 %v26798_v58, %v26795_v14  ;;  %v6013_v25 = vpack.c.bf16 %v26339_v46, %v18198_v42  ;;  %v26830_v46 = vld [vmem:[%s25680_s18 + $0xf4] sm:$0xff] }
 0x1bc   : >> { %21419 = vmatprep.mubr.msk.bf16.mxu1 %vm518_vm1, %v1876_v11  ;;  %21908 = vmatpush3.bf16.msra.mxu0 %v6373_v9  ;;  %v1878_v11 = vpack.c.bf16 %v26806_v49, %v26803_v39  ;;  %v26822_v9 = vld [vmem:[%s25680_s18 + $0xe4] sm:$0xff] }
 0x1bd   : >> { %21879 = vmatprep.mubr.msk.bf16.mxu0 %vm518_vm1, %v6012_v40  ;;  %25145 = vmatprep.subr.msk.bf16.mxu0 %vm567_vm0, %v26790_v7  ;;  %v26819_v40 = vld [vmem:[%s25680_s18 + $0xdc] sm:$0xff] }
 0x1be   : >> { %v1879_v42 = vpack.c.bf16 %v26822_v9, %v26819_v40 }
 0x1c3   : >> { %21420 = vmatmul.mubr.msk.bf16.gmra.mrb[20].mxu1 %vm518_vm1, %v1877_v59  ;;  %21880 = vmatmul.mubr.msk.bf16.gmra.mrb[4].mxu0 %vm518_vm1, %v6013_v25  ;;  %v1880_v59 = vpack.c.bf16 %v26830_v46, %v26827_v5  ;;  %v26841_v25 = vld [vmem:[%s25680_s18 + $0xfc] sm:$0xff] }
 0x1c4   : >> { %21423 = vmatprep.mubr.msk.bf16.mxu1 %vm518_vm1, %v1878_v11  ;;  %21883 = vmatprep.mubr.msk.bf16.mxu0 %vm518_vm1, %v26360_v17  ;;  %v26844_v17 = vld [vmem:[%s25680_s18 + $0x104] sm:$0xff] }
 0x1c5   : >> { %v1881_v11 = vpack.c.bf16 %v26844_v17, %v26841_v25 }
 0x1cb   : >> { %21424 = vmatmul.mubr.msk.bf16.gmra.mrb[24].mxu1 %vm518_vm1, %v1879_v42  ;;  %21884 = vmatmul.mubr.msk.bf16.gmra.mrb[8].mxu0 %vm518_vm1, %v26366_v2  ;;  %v2162_v42 = vpack.c.bf16 %v26660_v41, %v26651_v1  ;;  %v2163_v2 = vpack.c.bf16 %v26668_v36, %v26663_v55  ;;  %v2164_v1 = vpack.c.bf16 %v26688_v48, %v26671_v18  ;;  %v18215_v41 = vld [vmem:[%s25680_s18 + $0x181] sm:$0xff]  ;;  %v18216_v55 = vld [vmem:[%s25680_s18 + $0x189] sm:$0xff]  ;;  %v18217_v36 = vld [vmem:[%s25680_s18 + $0x191] sm:$0xff] }
 0x1cc   : >> { %21427 = vmatprep.mubr.msk.bf16.mxu1 %vm518_vm1, %v1880_v59  ;;  %21887 = vmatprep.mubr.msk.bf16.mxu0 %vm518_vm1, %v26387_v8  ;;  %v2525_v8 = vsel %vm567_vm0, %v26683_v53, 0  ;;  %v2165_v18 = vpack.c.bf16 %v26699_v50, %v26691_v6  ;;  %v2166_v53 = vpack.c.bf16 %v26716_v22, %v26702_v47  ;;  %v6022_v48 = vpack.c.bf16 %v18217_v36, %v18216_v55  ;;  %v18219_v59 = vld [vmem:[%s25680_s18 + $0x1a1] sm:$0xff]  ;;  %v17600_v36 = vld [vmem:[%s25680_s18 + $0x55] sm:$0xff] }
 0x1cd   : >> { %v26895_v6 = vpack.c.bf16 %v26725_v29, %v26719_v35  ;;  %v26899_v47 = vpack.c.bf16 %v26740_v10, %v26728_v61  ;;  %v18222_v35 = vld [vmem:[%s25680_s18 + $0x1b9] sm:$0xff]  ;;  %v18223_v29 = vld [vmem:[%s25680_s18 + $0x1c1] sm:$0xff]  ;;  %v26915_v10 = vpack.c.bf16 %v26764_v20, %v26752_v26  ;;  %v26932_v20 = vpack.c.bf16 %v26773_v3, %v26767_v31  ;;  %v26949_v31 = vld [vmem:[%s30529_s1 + $0x2c] sm:$0x3] }
 0x1ce   : >> { %v6025_v61 = vpack.c.bf16 %v18223_v29, %v18222_v35  ;;  %v26938_v26 = vpack.c.bf16 %v26795_v14, %v26776_v13  ;;  %v26968_v13 = vpack.c.bf16 %v26819_v40, %v26806_v49  ;;  %v26983_v3 = vpack.c.bf16 %v26841_v25, %v26830_v46  ;;  %v17592_v14 = vld [vmem:[%s25680_s18 + $0x15] sm:$0xff]  ;;  %v17605_v35 = vld [vmem:[%s25680_s18 + $0x7d] sm:$0xff]  ;;  %v27063_v29 = vld [vmem:[%s25680_s18 + $0x1aa] sm:$0xff] }
 0x1cf   : >> { %v17596_v40 = vld [vmem:[%s25680_s18 + $0x35] sm:$0xff] }
 0x1d0   : >> { %v27026_v55 = vld [vmem:[%s25680_s18 + $0x17a] sm:$0xff] }
 0x1d3   : >> { %21428 = vmatmul.mubr.msk.bf16.gmra.mrb[28].mxu1 %vm518_vm1, %v1881_v11  ;;  %21888 = vmatmul.mubr.msk.bf16.gmra.mrb[12].mxu0 %vm518_vm1, %v26391_v28  ;;  %v26868_v28 = vld [vmem:[%s30529_s1 + $0x10] sm:$0x3] }
 0x1d4   : >> { %21433 = vmatprep.mubr.msk.bf16.mxu1 %vm518_vm1, %v2162_v42  ;;  %21891 = vmatprep.mubr.msk.bf16.mxu0 %vm518_vm1, %v26405_v63  ;;  %v18214_v63 = vld [vmem:[%s25680_s18 + $0x179] sm:$0xff]  ;;  %v18220_v11 = vld [vmem:[%s25680_s18 + $0x1a9] sm:$0xff]  ;;  %v18221_v42 = vld [vmem:[%s25680_s18 + $0x1b1] sm:$0xff] }
 0x1d5   : >> { %v6024_v22 = vpack.c.bf16 %v18221_v42, %v18220_v11  ;;  %v17603_v11 = vld [vmem:[%s25680_s18 + $0x6d] sm:$0xff]  ;;  %v27054_v42 = vld [vmem:[%s25680_s18 + $0x19a] sm:$0xff] }
 0x1db   : >> { %21434 = vmatmul.mubr.msk.bf16.vlgmr.msra.gmra.mrb[0].mxu1 %vm518_vm1, %v2163_v2  ;;  %21892 = vmatmul.mubr.msk.bf16.gmra.mrb[16].mxu0 %vm518_vm1, %v26409_v24  ;;  %v6021_v24 = vpack.c.bf16 %v18215_v41, %v18214_v63  ;;  %v26911_v2 = vpack.c.bf16 %v26749_v12, %v26743_v62  ;;  %v26928_v62 = vld [vmem:[%s25680_s18 + $0xea] sm:$0xff]  ;;  %v27019_v63 = vld [vmem:[%s30529_s1 + $0x12] sm:$0x3] }
 0x1dc   : >> { %21466 = vmatpush3.bf16.msra.mxu1 %v2525_v8  ;;  %21437 = vmatprep.mubr.msk.bf16.mxu1 %vm518_vm1, %v2164_v1  ;;  %v26925_v8 = vld [vmem:[%s25680_s18 + $0xda] sm:$0xff]  ;;  %v6308_v1 = vpack.c.bf16 %v26329_v19, %v26928_v62  ;;  %v26962_v19 = vpack.c.bf16 %v26803_v39, %v26798_v58  ;;  %v17599_v41 = vld [vmem:[%s25680_s18 + $0x4d] sm:$0xff] }
 0x1dd   : >> { %21895 = vmatprep.mubr.msk.bf16.mxu0 %vm518_vm1, %v26421_v4  ;;  %25131 = vmatprep.subr.msk.bf16.mxu1 %vm567_vm0, %v26868_v28  ;;  %v18218_v4 = vld [vmem:[%s25680_s18 + $0x199] sm:$0xff]  ;;  %v6307_v12 = vpack.c.bf16 %v26313_v56, %v26925_v8 }
 0x1de   : >> { %v6023_v50 = vpack.c.bf16 %v18219_v59, %v18218_v4  ;;  %v26956_v56 = vld [vmem:[%s25680_s18 + $0xfa] sm:$0xff]  ;;  %v17602_v59 = vld [vmem:[%s25680_s18 + $0x65] sm:$0xff] }
 0x1df   : >> { %v17593_v58 = vld [vmem:[%s25680_s18 + $0x1d] sm:$0xff] }
 0x1e0   : >> { %v2458_v49 = vpack.c.bf16 %v17593_v58, %v17592_v14  ;;  %v17606_v14 = vld [vmem:[%s25680_s18 + $0x85] sm:$0xff]  ;;  %v17607_v58 = vld [vmem:[%s25680_s18 + $0x8d] sm:$0xff] }
 0x1e3   : >> { %21438 = vmatmul.mubr.msk.bf16.gmra.mrb[4].mxu1 %vm518_vm1, %v2165_v18  ;;  %21896 = vmatmul.mubr.msk.bf16.gmra.mrb[20].mxu0 %vm518_vm1, %v6021_v24  ;;  %v17601_v18 = vld [vmem:[%s25680_s18 + $0x5d] sm:$0xff]  ;;  %v27037_v24 = vld [vmem:[%s25680_s18 + $0x18a] sm:$0xff] }
 0x1e4   : >> { %21441 = vmatprep.mubr.msk.bf16.mxu1 %vm518_vm1, %v2166_v53  ;;  %21899 = vmatprep.mubr.msk.bf16.mxu0 %vm518_vm1, %v6022_v48  ;;  %v2462_v48 = vpack.c.bf16 %v17601_v18, %v17600_v36  ;;  %v17611_v36 = vld [vmem:[%s25680_s18 + $0xad] sm:$0xff]  ;;  %v18294_v18 = vld [vmem:[%s25680_s18 + $0xe2] sm:$0xff] }
 0x1eb   : >> { %21442 = vmatmul.mubr.msk.bf16.gmra.mrb[8].mxu1 %vm518_vm1, %v26895_v6  ;;  %21900 = vmatmul.mubr.msk.bf16.gmra.mrb[24].mxu0 %vm518_vm1, %v6023_v50  ;;  %v27058_v50 = vld [vmem:[%s25680_s18 + $0x1a2] sm:$0xff] }
 0x1ec   : >> { %21445 = vmatprep.mubr.msk.bf16.mxu1 %vm518_vm1, %v26899_v47  ;;  %21903 = vmatprep.mubr.msk.bf16.mxu0 %vm518_vm1, %v6024_v22  ;;  %v17604_v22 = vld [vmem:[%s25680_s18 + $0x75] sm:$0xff] }
 0x1f3   : >> { %21446 = vmatmul.mubr.msk.bf16.gmra.mrb[12].mxu1 %vm518_vm1, %v26911_v2  ;;  %21904 = vmatmul.mubr.msk.bf16.gmra.mrb[28].mxu0 %vm518_vm1, %v6025_v61  ;;  %v27066_v61 = vld [vmem:[%s25680_s18 + $0x1b2] sm:$0xff] }
 0x1f4   : >> { %21449 = vmatprep.mubr.msk.bf16.mxu1 %vm518_vm1, %v26915_v10  ;;  %21909 = vmatprep.mubr.msk.bf16.mxu0 %vm518_vm1, %v26451_v16  ;;  %v6669_v16 = vsel %vm567_vm0, %v26790_v7, 0  ;;  %v6309_v7 = vpack.c.bf16 %v26467_v54, %v26956_v56  ;;  %v26979_v54 = vpack.c.bf16 %v26827_v5, %v26822_v9  ;;  %v17597_v9 = vld [vmem:[%s25680_s18 + $0x3d] sm:$0xff] }
 0x1fb   : >> { %21450 = vmatmul.mubr.msk.bf16.gmra.mrb[16].mxu1 %vm518_vm1, %v26932_v20  ;;  %21910 = vmatmul.mubr.msk.bf16.vlgmr.msra.gmra.mrb[0].mxu0 %vm518_vm1, %v6307_v12  ;;  %v27068_v12 = vpack.c.bf16 %v17603_v11, %v17602_v59 }
 0x1fc   : >> { %21453 = vmatprep.mubr.msk.bf16.mxu1 %vm518_vm1, %v26938_v26  ;;  %21942 = vmatpush3.bf16.msra.mxu0 %v6669_v16  ;;  %v27072_v16 = vpack.c.bf16 %v17605_v35, %v17604_v22  ;;  %v6965_v22 = vsel %vm567_vm0, %v26949_v31, 0  ;;  %v27125_v35 = vld [vmem:[%s30529_s1 + $0x2e] sm:$0x3] }
 0x1fd   : >> { %21913 = vmatprep.mubr.msk.bf16.mxu0 %vm518_vm1, %v6308_v1  ;;  %25146 = vmatprep.subr.msk.bf16.mxu0 %vm567_vm0, %v26949_v31  ;;  %v6319_v1 = vpack.c.bf16 %v27058_v50, %v27054_v42  ;;  %v18298_v31 = vld [vmem:[%s25680_s18 + $0x102] sm:$0xff] }
 0x203   : >> { %21454 = vmatmul.mubr.msk.bf16.gmra.mrb[20].mxu1 %vm518_vm1, %v26962_v19  ;;  %21914 = vmatmul.mubr.msk.bf16.gmra.mrb[4].mxu0 %vm518_vm1, %v6309_v7  ;;  %v6320_v7 = vpack.c.bf16 %v27066_v61, %v27063_v29 }
 0x204   : >> { %21457 = vmatprep.mubr.msk.bf16.mxu1 %vm518_vm1, %v26968_v13  ;;  %21917 = vmatprep.mubr.msk.bf16.mxu0 %vm518_vm1, %v26496_v21  ;;  %v26992_v21 = vld [vmem:[%s25680_s18 + $0x10c] sm:$0xff] }
 0x205   : >> { %v27000_v39 = vpack.c.bf16 %v26992_v21, %v26844_v17  ;;  %v2821_v17 = vsel %vm567_vm0, %v26868_v28, 0  ;;  %v27032_v28 = vld [vmem:[%s25680_s18 + $0x182] sm:$0xff] }
 0x20b   : >> { %21458 = vmatmul.mubr.msk.bf16.gmra.mrb[24].mxu1 %vm518_vm1, %v26979_v54  ;;  %21918 = vmatmul.mubr.msk.bf16.gmra.mrb[8].mxu0 %vm518_vm1, %v26502_v37  ;;  %v17594_v37 = vld [vmem:[%s25680_s18 + $0x25] sm:$0xff] }
 0x20c   : >> { %21461 = vmatprep.mubr.msk.bf16.mxu1 %vm518_vm1, %v26983_v3  ;;  %21921 = vmatprep.mubr.msk.bf16.mxu0 %vm518_vm1, %v26535_v23  ;;  %v17595_v23 = vld [vmem:[%s25680_s18 + $0x2d] sm:$0xff] }
 0x20d   : >> { %v2459_v46 = vpack.c.bf16 %v17595_v23, %v17594_v37  ;;  %v27088_v37 = vld [vmem:[%s25680_s18 + $0x1c2] sm:$0xff]  ;;  %v17608_v23 = vld [vmem:[%s25680_s18 + $0x95] sm:$0xff] }
 0x213   : >> { %21462 = vmatmul.mubr.msk.bf16.gmra.mrb[28].mxu1 %vm518_vm1, %v27000_v39  ;;  %21922 = vmatmul.mubr.msk.bf16.gmra.mrb[12].mxu0 %vm518_vm1, %v26539_v33  ;;  %v2460_v33 = vpack.c.bf16 %v17597_v9, %v17596_v40  ;;  %v17609_v40 = vld [vmem:[%s25680_s18 + $0x9d] sm:$0xff]  ;;  %v18292_v9 = vld [vmem:[%s25680_s18 + $0xd2] sm:$0xff] }
 0x214   : >> { %21467 = vmatprep.mubr.msk.bf16.mxu1 %vm518_vm1, %v2458_v49  ;;  %21925 = vmatprep.mubr.msk.bf16.mxu0 %vm518_vm1, %v26565_v15  ;;  %v17598_v15 = vld [vmem:[%s25680_s18 + $0x45] sm:$0xff]  ;;  %v27084_v49 = vld [vmem:[%s25680_s18 + $0x1ba] sm:$0xff] }
 0x215   : >> { %v2461_v53 = vpack.c.bf16 %v17599_v41, %v17598_v15  ;;  %v6602_v15 = vpack.c.bf16 %v26925_v8, %v18292_v9  ;;  %v17610_v41 = vld [vmem:[%s25680_s18 + $0xa5] sm:$0xff]  ;;  %v18296_v8 = vld [vmem:[%s25680_s18 + $0xf2] sm:$0xff] }
 0x216   : >> { %v6604_v11 = vpack.c.bf16 %v26956_v56, %v18296_v8  ;;  %v17615_v56 = vld [vmem:[%s25680_s18 + $0xcd] sm:$0xff]  ;;  %v27154_v9 = vld [vmem:[%s25680_s18 + $0xe5] sm:$0xff]  ;;  %v6610_v8 = vpack.c.bf16 %v26558_v44, %v26553_v30 }
 0x217   : >> { %v30585_v30 = vld [vmem:[#allocation5_spill] sm:$0xff] }
 0x21b   : >> { %21468 = vmatmul.mubr.msk.bf16.vlgmr.msra.gmra.mrb[0].mxu1 %vm518_vm1, %v2459_v46  ;;  %21926 = vmatmul.mubr.msk.bf16.gmra.mrb[16].mxu0 %vm518_vm1, %v26569_v60  ;;  %v27040_v60 = vld [vmem:[%s25680_s18 + $0x192] sm:$0xff]  ;;  %v27093_v46 = vpack.c.bf16 %v17607_v58, %v17606_v14  ;;  %v6605_v58 = vpack.c.bf16 %v26481_v52, %v18298_v31 }
 0x21c   : >> { %21500 = vmatpush3.bf16.msra.mxu1 %v2821_v17  ;;  %21471 = vmatprep.mubr.msk.bf16.mxu1 %vm518_vm1, %v2460_v33  ;;  %v6318_v4 = vpack.c.bf16 %v27040_v60, %v27037_v24  ;;  %v6321_v17 = vpack.c.bf16 %v27088_v37, %v27084_v49  ;;  %v27097_v33 = vpack.c.bf16 %v17609_v40, %v17608_v23  ;;  %v17619_v52 = vld [vmem:[%s25680_s18 + $0xed] sm:$0xff] }
 0x21d   : >> { %21929 = vmatprep.mubr.msk.bf16.mxu0 %vm518_vm1, %v26589_v57  ;;  %25132 = vmatprep.subr.msk.bf16.mxu1 %vm567_vm0, %v27019_v63  ;;  %v6317_v57 = vpack.c.bf16 %v27032_v28, %v27026_v55  ;;  %v6606_v40 = vpack.c.bf16 %v26489_v34, %v26484_v0  ;;  %v17621_v0 = vld [vmem:[%s25680_s18 + $0xfd] sm:$0xff]  ;;  %v27163_v34 = vpack.c.bf16 %v17619_v52, %v27154_v9  ;;  %v17648_v52 = vld [vmem:[%s25680_s18 + $0x46] sm:$0xff] }
 0x223   : >> { %21472 = vmatmul.mubr.msk.bf16.gmra.mrb[4].mxu1 %vm518_vm1, %v2461_v53  ;;  %21930 = vmatmul.mubr.msk.bf16.gmra.mrb[20].mxu0 %vm518_vm1, %v6317_v57  ;;  %v17612_v53 = vld [vmem:[%s25680_s18 + $0xb5] sm:$0xff]  ;;  %v17613_v57 = vld [vmem:[%s25680_s18 + $0xbd] sm:$0xff] }
 0x224   : >> { %21475 = vmatprep.mubr.msk.bf16.mxu1 %vm518_vm1, %v2462_v48  ;;  %21933 = vmatprep.mubr.msk.bf16.mxu0 %vm518_vm1, %v6318_v4  ;;  %v27112_v48 = vpack.c.bf16 %v17611_v36, %v17610_v41  ;;  %v6603_v4 = vpack.c.bf16 %v26928_v62, %v18294_v18  ;;  %v27115_v59 = vpack.c.bf16 %v17613_v57, %v17612_v53  ;;  %v17614_v62 = vld [vmem:[%s25680_s18 + $0xc5] sm:$0xff] }
 0x225   : >> { %v27140_v14 = vpack.c.bf16 %v17615_v56, %v17614_v62  ;;  %v6608_v36 = vpack.c.bf16 %v26526_v45, %v26521_v43  ;;  %v27178_v18 = vld [vmem:[%s25680_s18 + $0x105] sm:$0xff]  ;;  %v6609_v45 = vpack.c.bf16 %v26548_v27, %v26529_v32  ;;  %v30584_v62 = vld [vmem:[#allocation6_spill] sm:$0xff]  ;;  %v3117_v56 = vsel %vm567_vm0, %v27019_v63, 0 }
 0x226   : >> { %v17643_v53 = vld [vmem:[%s25680_s18 + $0x1e] sm:$0xff]  ;;  %v6611_v44 = vpack.c.bf16 %v30585_v30, %v30584_v62  ;;  %v17650_v63 = vld [vmem:[%s25680_s18 + $0x56] sm:$0xff]  ;;  %v30588_v62 = vld [vmem:[#allocation8_spill] sm:$0xff] }
 0x227   : >> { %v17647_v32 = vld [vmem:[%s25680_s18 + $0x3e] sm:$0xff] }
 0x22b   : >> { %21476 = vmatmul.mubr.msk.bf16.gmra.mrb[8].mxu1 %vm518_vm1, %v27068_v12  ;;  %21934 = vmatmul.mubr.msk.bf16.gmra.mrb[24].mxu0 %vm518_vm1, %v6319_v1  ;;  %v17616_v1 = vld [vmem:[%s25680_s18 + $0xd5] sm:$0xff] }
 0x22c   : >> { %21479 = vmatprep.mubr.msk.bf16.mxu1 %vm518_vm1, %v27072_v16  ;;  %21937 = vmatprep.mubr.msk.bf16.mxu0 %vm518_vm1, %v6320_v7  ;;  %v27136_v7 = vld [vmem:[%s25680_s18 + $0xdd] sm:$0xff] }
 0x22d   : >> { %v27144_v23 = vpack.c.bf16 %v27136_v7, %v17616_v1  ;;  %v30586_v1 = vld [vmem:[#allocation4_spill] sm:$0xff] }
 0x233   : >> { %21480 = vmatmul.mubr.msk.bf16.gmra.mrb[12].mxu1 %vm518_vm1, %v27093_v46  ;;  %21938 = vmatmul.mubr.msk.bf16.gmra.mrb[28].mxu0 %vm518_vm1, %v6321_v17  ;;  %v27159_v17 = vld [vmem:[%s25680_s18 + $0xf5] sm:$0xff] }
 0x234   : >> { %21483 = vmatprep.mubr.msk.bf16.mxu1 %vm518_vm1, %v27097_v33  ;;  %21943 = vmatprep.mubr.msk.bf16.mxu0 %vm518_vm1, %v6602_v15  ;;  %v6607_v15 = vpack.c.bf16 %v26515_v51, %v26492_v38  ;;  %v27168_v41 = vpack.c.bf16 %v17621_v0, %v27159_v17  ;;  %v17623_v38 = vld [vmem:[%s25680_s18 + $0x10d] sm:$0xff]  ;;  %v17642_v51 = vld [vmem:[%s25680_s18 + $0x16] sm:$0xff] }
 0x235   : >> { %v27185_v43 = vpack.c.bf16 %v17623_v38, %v27178_v18  ;;  %v2754_v57 = vpack.c.bf16 %v17643_v53, %v17642_v51  ;;  %v17649_v0 = vld [vmem:[%s25680_s18 + $0x4e] sm:$0xff]  ;;  %v6614_v51 = vpack.c.bf16 %v27054_v42, %v27040_v60  ;;  %v17652_v53 = vld [vmem:[%s25680_s18 + $0x66] sm:$0xff]  ;;  %v6615_v42 = vpack.c.bf16 %v27063_v29, %v27058_v50 }
 0x236   : >> { %v27259_v50 = vld [vmem:[%s25680_s18 + $0x8e] sm:$0xff] }
 0x237   : >> { %v18323_v29 = vld [vmem:[%s25680_s18 + $0x1ca] sm:$0xff] }
 0x23b   : >> { %21484 = vmatmul.mubr.msk.bf16.gmra.mrb[16].mxu1 %vm518_vm1, %v27112_v48  ;;  %21944 = vmatmul.mubr.msk.bf16.vlgmr.msra.gmra.mrb[0].mxu0 %vm518_vm1, %v6603_v4  ;;  %v17644_v4 = vld [vmem:[%s25680_s18 + $0x26] sm:$0xff] }
 0x23c   : >> { %21487 = vmatprep.mubr.msk.bf16.mxu1 %vm518_vm1, %v27115_v59  ;;  %21976 = vmatpush3.bf16.msra.mxu0 %v6965_v22  ;;  %v17646_v22 = vld [vmem:[%s25680_s18 + $0x36] sm:$0xff] }
 0x23d   : >> { %21947 = vmatprep.mubr.msk.bf16.mxu0 %vm518_vm1, %v6604_v11  ;;  %25147 = vmatprep.subr.msk.bf16.mxu0 %vm567_vm0, %v27125_v35  ;;  %v17645_v11 = vld [vmem:[%s25680_s18 + $0x2e] sm:$0xff]  ;;  %v2756_v31 = vpack.c.bf16 %v17647_v32, %v17646_v22  ;;  %v6617_v22 = vpack.c.bf16 %v18323_v29, %v27088_v37  ;;  %v18344_v37 = vld [vmem:[%s25680_s18 + $0xe3] sm:$0xff]  ;;  %v27332_v29 = vld [vmem:[%s25680_s18 + $0xd6] sm:$0xff] }
 0x23e   : >> { %v2755_v27 = vpack.c.bf16 %v17645_v11, %v17644_v4  ;;  %v27256_v4 = vld [vmem:[%s25680_s18 + $0x86] sm:$0xff]  ;;  %30595 = vst [vmem:[#allocation8_spill] sm:$0xff] %v27332_v29 }
 0x23f   : >> { %v27271_v11 = vpack.c.bf16 %v27259_v50, %v27256_v4 }
 0x243   : >> { %21488 = vmatmul.mubr.msk.bf16.gmra.mrb[20].mxu1 %vm518_vm1, %v27140_v14  ;;  %21948 = vmatmul.mubr.msk.bf16.gmra.mrb[4].mxu0 %vm518_vm1, %v6605_v58  ;;  %v6612_v58 = vpack.c.bf16 %v27026_v55, %v30586_v1  ;;  %v17651_v55 = vld [vmem:[%s25680_s18 + $0x5e] sm:$0xff] }
 0x244   : >> { %21491 = vmatprep.mubr.msk.bf16.mxu1 %vm518_vm1, %v27144_v23  ;;  %21951 = vmatprep.mubr.msk.bf16.mxu0 %vm518_vm1, %v6606_v40  ;;  %v27210_v40 = vld [vmem:[%s30529_s1 + $0x14] sm:$0x3]  ;;  %v2758_v38 = vpack.c.bf16 %v17651_v55, %v17650_v63  ;;  %v27297_v1 = vld [vmem:[%s25680_s18 + $0xbe] sm:$0xff] }
 0x245   : >> { %30590 = vst [vmem:[#allocation5_spill] sm:$0xff] %v27297_v1 }
 0x24b   : >> { %21492 = vmatmul.mubr.msk.bf16.gmra.mrb[24].mxu1 %vm518_vm1, %v27163_v34  ;;  %21952 = vmatmul.mubr.msk.bf16.gmra.mrb[8].mxu0 %vm518_vm1, %v6607_v15  ;;  %v2757_v15 = vpack.c.bf16 %v17649_v0, %v17648_v52  ;;  %v30591_v0 = vld [vmem:[#allocation9_spill] sm:$0xff] }
 0x24c   : >> { %21495 = vmatprep.mubr.msk.bf16.mxu1 %vm518_vm1, %v27168_v41  ;;  %21955 = vmatprep.mubr.msk.bf16.mxu0 %vm518_vm1, %v6608_v36  ;;  %v6613_v36 = vpack.c.bf16 %v27037_v24, %v27032_v28  ;;  %v27234_v28 = vld [vmem:[%s25680_s18 + $0x76] sm:$0xff]  ;;  %v27237_v24 = vld [vmem:[%s25680_s18 + $0x7e] sm:$0xff]  ;;  %v6899_v63 = vpack.c.bf16 %v30591_v0, %v18344_v37 }
 0x253   : >> { %21496 = vmatmul.mubr.msk.bf16.gmra.mrb[28].mxu1 %vm518_vm1, %v27185_v43  ;;  %21956 = vmatmul.mubr.msk.bf16.gmra.mrb[12].mxu0 %vm518_vm1, %v6609_v45  ;;  %v27230_v45 = vld [vmem:[%s25680_s18 + $0x6e] sm:$0xff] }
 0x254   : >> { %21501 = vmatprep.mubr.msk.bf16.mxu1 %vm518_vm1, %v2754_v57  ;;  %21959 = vmatprep.mubr.msk.bf16.mxu0 %vm518_vm1, %v6610_v8  ;;  %v27240_v60 = vpack.c.bf16 %v27230_v45, %v17652_v53  ;;  %v27246_v57 = vpack.c.bf16 %v27237_v24, %v27234_v28  ;;  %v6616_v8 = vpack.c.bf16 %v27084_v49, %v27066_v61  ;;  %v27264_v61 = vld [vmem:[%s25680_s18 + $0x96] sm:$0xff]  ;;  %v27267_v49 = vld [vmem:[%s25680_s18 + $0x9e] sm:$0xff]  ;;  %v27323_v53 = vld [vmem:[%s25680_s18 + $0xc6] sm:$0xff] }
 0x255   : >> { %v27276_v32 = vpack.c.bf16 %v27267_v49, %v27264_v61  ;;  %30593 = vst [vmem:[#allocation4_spill] sm:$0xff] %v27323_v53 }
 0x25b   : >> { %21502 = vmatmul.mubr.msk.bf16.vlgmr.msra.gmra.mrb[0].mxu1 %vm518_vm1, %v2755_v27  ;;  %21960 = vmatmul.mubr.msk.bf16.gmra.mrb[16].mxu0 %vm518_vm1, %v6611_v44  ;;  %v30587_v27 = vld [vmem:[#allocation7_spill] sm:$0xff] }
 0x25c   : >> { %21534 = vmatpush3.bf16.msra.mxu1 %v3117_v56  ;;  %21505 = vmatprep.mubr.msk.bf16.mxu1 %vm518_vm1, %v2756_v31  ;;  %v6898_v30 = vpack.c.bf16 %v30588_v62, %v30587_v27  ;;  %v27286_v44 = vld [vmem:[%s25680_s18 + $0xa6] sm:$0xff]  ;;  %v27289_v56 = vld [vmem:[%s25680_s18 + $0xae] sm:$0xff]  ;;  %v27294_v31 = vld [vmem:[%s25680_s18 + $0xb6] sm:$0xff] }
 0x25d   : >> { %21963 = vmatprep.mubr.msk.bf16.mxu0 %vm518_vm1, %v6612_v58  ;;  %25133 = vmatprep.subr.msk.bf16.mxu1 %vm567_vm0, %v27210_v40  ;;  %30589 = vst [vmem:[#allocation6_spill] sm:$0xff] %v27294_v31  ;;  %v18346_v58 = vld [vmem:[%s25680_s18 + $0xf3] sm:$0xff]  ;;  %v27302_v52 = vpack.c.bf16 %v27289_v56, %v27286_v44  ;;  %v27307_v55 = vpack.c.bf16 %v27297_v1, %v27294_v31  ;;  %v18351_v62 = vld [vmem:[%s25680_s18 + $0x11b] sm:$0xff] }
 0x25e   : >> { %v18350_v27 = vld [vmem:[%s25680_s18 + $0x113] sm:$0xff] }
 0x25f   : >> { %v6902_v0 = vpack.c.bf16 %v18351_v62, %v18350_v27  ;;  %v18354_v27 = vld [vmem:[%s25680_s18 + $0x133] sm:$0xff]  ;;  %v18355_v62 = vld [vmem:[%s25680_s18 + $0x13b] sm:$0xff] }
 0x263   : >> { %21506 = vmatmul.mubr.msk.bf16.gmra.mrb[4].mxu1 %vm518_vm1, %v2757_v15  ;;  %21964 = vmatmul.mubr.msk.bf16.gmra.mrb[20].mxu0 %vm518_vm1, %v6613_v36  ;;  %v30592_v15 = vld [vmem:[#allocation10_spill] sm:$0xff] }
 0x264   : >> { %21509 = vmatprep.mubr.msk.bf16.mxu1 %vm518_vm1, %v2758_v38  ;;  %21967 = vmatprep.mubr.msk.bf16.mxu0 %vm518_vm1, %v6614_v51  ;;  %v6900_v36 = vpack.c.bf16 %v30592_v15, %v18346_v58  ;;  %v7261_v38 = vsel %vm567_vm0, %v27125_v35, 0  ;;  %v27317_v51 = vld [vmem:[%s30529_s1 + $0x30] sm:$0x3] }
 0x265   : >> { %v18349_v35 = vld [vmem:[%s25680_s18 + $0x10b] sm:$0xff] }
 0x266   : >> { %v27358_v15 = vld [vmem:[%s25680_s18 + $0xee] sm:$0xff] }
 0x267   : >> { %30598 = vst [vmem:[#allocation11_spill] sm:$0xff] %v27358_v15 }
 0x26b   : >> { %21510 = vmatmul.mubr.msk.bf16.gmra.mrb[8].mxu1 %vm518_vm1, %v27240_v60  ;;  %21968 = vmatmul.mubr.msk.bf16.gmra.mrb[24].mxu0 %vm518_vm1, %v6615_v42  ;;  %v27326_v42 = vld [vmem:[%s25680_s18 + $0xce] sm:$0xff] }
 0x26c   : >> { %21513 = vmatprep.mubr.msk.bf16.mxu1 %vm518_vm1, %v27246_v57  ;;  %21971 = vmatprep.mubr.msk.bf16.mxu0 %vm518_vm1, %v6616_v8  ;;  %30594 = vst [vmem:[#allocation7_spill] sm:$0xff] %v27326_v42  ;;  %v18348_v8 = vld [vmem:[%s25680_s18 + $0x103] sm:$0xff] }
 0x26d   : >> { %v6901_v37 = vpack.c.bf16 %v18349_v35, %v18348_v8  ;;  %v27364_v8 = vld [vmem:[%s25680_s18 + $0xf6] sm:$0xff]  ;;  %v27367_v35 = vld [vmem:[%s25680_s18 + $0xfe] sm:$0xff] }
 0x26e   : >> { %30599 = vst [vmem:[#allocation12_spill] sm:$0xff] %v27364_v8  ;;  %30600 = vst [vmem:[#allocation13_spill] sm:$0xff] %v27367_v35 }
 0x273   : >> { %21514 = vmatmul.mubr.msk.bf16.gmra.mrb[12].mxu1 %vm518_vm1, %v27271_v11  ;;  %21972 = vmatmul.mubr.msk.bf16.gmra.mrb[28].mxu0 %vm518_vm1, %v6617_v22  ;;  %v27335_v22 = vld [vmem:[%s25680_s18 + $0xde] sm:$0xff] }
 0x274   : >> { %21517 = vmatprep.mubr.msk.bf16.mxu1 %vm518_vm1, %v27276_v32  ;;  %21977 = vmatprep.mubr.msk.bf16.mxu0 %vm518_vm1, %v6898_v30  ;;  %30596 = vst [vmem:[#allocation9_spill] sm:$0xff] %v27335_v22  ;;  %v27343_v30 = vpack.c.bf16 %v27326_v42, %v27323_v53  ;;  %v27347_v58 = vpack.c.bf16 %v27335_v22, %v27332_v29  ;;  %v27385_v42 = vld [vmem:[%s25680_s18 + $0x106] sm:$0xff]  ;;  %v18442_v53 = vld [vmem:[%s25680_s18 + $0xdc] sm:$0xff] }
 0x275   : >> { %v27377_v29 = vpack.c.bf16 %v27367_v35, %v27364_v8  ;;  %30601 = vst [vmem:[#allocation14_spill] sm:$0xff] %v27385_v42 }
 0x27b   : >> { %21518 = vmatmul.mubr.msk.bf16.gmra.mrb[16].mxu1 %vm518_vm1, %v27302_v52  ;;  %21978 = vmatmul.mubr.msk.bf16.vlgmr.msra.gmra.mrb[0].mxu0 %vm518_vm1, %v6899_v63  ;;  %v27355_v63 = vld [vmem:[%s25680_s18 + $0xe6] sm:$0xff] }
 0x27c   : >> { %21521 = vmatprep.mubr.msk.bf16.mxu1 %vm518_vm1, %v27307_v55  ;;  %22010 = vmatpush3.bf16.msra.mxu0 %v7261_v38  ;;  %30597 = vst [vmem:[#allocation10_spill] sm:$0xff] %v27355_v63  ;;  %v18353_v38 = vld [vmem:[%s25680_s18 + $0x12b] sm:$0xff] }
 0x27d   : >> { %21981 = vmatprep.mubr.msk.bf16.mxu0 %vm518_vm1, %v6900_v36  ;;  %25148 = vmatprep.subr.msk.bf16.mxu0 %vm567_vm0, %v27317_v51  ;;  %v18352_v36 = vld [vmem:[%s25680_s18 + $0x123] sm:$0xff] }
 0x27e   : >> { %v6903_v22 = vpack.c.bf16 %v18353_v38, %v18352_v36  ;;  %v18356_v36 = vld [vmem:[%s25680_s18 + $0x143] sm:$0xff]  ;;  %v18357_v38 = vld [vmem:[%s25680_s18 + $0x14b] sm:$0xff] }
 0x27f   : >> { %v6905_v35 = vpack.c.bf16 %v18357_v38, %v18356_v36  ;;  %v3413_v38 = vsel %vm567_vm0, %v27210_v40, 0  ;;  %v18364_v40 = vld [vmem:[%s25680_s18 + $0x183] sm:$0xff] }
 0x283   : >> { %21522 = vmatmul.mubr.msk.bf16.gmra.mrb[20].mxu1 %vm518_vm1, %v27343_v30  ;;  %21982 = vmatmul.mubr.msk.bf16.gmra.mrb[4].mxu0 %vm518_vm1, %v6901_v37  ;;  %v27373_v37 = vpack.c.bf16 %v27358_v15, %v27355_v63  ;;  %v27388_v15 = vld [vmem:[%s25680_s18 + $0x10e] sm:$0xff] }
 0x284   : >> { %21525 = vmatprep.mubr.msk.bf16.mxu1 %vm518_vm1, %v27347_v58  ;;  %21985 = vmatprep.mubr.msk.bf16.mxu0 %vm518_vm1, %v6902_v0  ;;  %v6904_v0 = vpack.c.bf16 %v18355_v62, %v18354_v27  ;;  %30602 = vst [vmem:[#allocation15_spill] sm:$0xff] %v27388_v15  ;;  %v18358_v27 = vld [vmem:[%s25680_s18 + $0x153] sm:$0xff]  ;;  %v18359_v62 = vld [vmem:[%s25680_s18 + $0x15b] sm:$0xff]  ;;  %v18361_v63 = vld [vmem:[%s25680_s18 + $0x16b] sm:$0xff] }
 0x285   : >> { %v6906_v8 = vpack.c.bf16 %v18359_v62, %v18358_v27  ;;  %v18370_v62 = vld [vmem:[%s25680_s18 + $0x1b3] sm:$0xff] }
 0x28b   : >> { %21526 = vmatmul.mubr.msk.bf16.gmra.mrb[24].mxu1 %vm518_vm1, %v27373_v37  ;;  %21986 = vmatmul.mubr.msk.bf16.gmra.mrb[8].mxu0 %vm518_vm1, %v6903_v22  ;;  %v27397_v22 = vpack.c.bf16 %v27388_v15, %v27385_v42  ;;  %v18362_v15 = vld [vmem:[%s25680_s18 + $0x173] sm:$0xff]  ;;  %v18363_v42 = vld [vmem:[%s25680_s18 + $0x17b] sm:$0xff] }
 0x28c   : >> { %21529 = vmatprep.mubr.msk.bf16.mxu1 %vm518_vm1, %v27377_v29  ;;  %21989 = vmatprep.mubr.msk.bf16.mxu0 %vm518_vm1, %v6904_v0  ;;  %v18360_v0 = vld [vmem:[%s25680_s18 + $0x163] sm:$0xff]  ;;  %v6908_v27 = vpack.c.bf16 %v18363_v42, %v18362_v15  ;;  %v18365_v42 = vld [vmem:[%s25680_s18 + $0x18b] sm:$0xff] }
 0x28d   : >> { %v6907_v36 = vpack.c.bf16 %v18361_v63, %v18360_v0  ;;  %v18367_v63 = vld [vmem:[%s25680_s18 + $0x19b] sm:$0xff]  ;;  %v6909_v15 = vpack.c.bf16 %v18365_v42, %v18364_v40 }
 0x28e   : >> { %v18371_v0 = vld [vmem:[%s25680_s18 + $0x1bb] sm:$0xff] }
 0x293   : >> { %21530 = vmatmul.mubr.msk.bf16.gmra.mrb[28].mxu1 %vm518_vm1, %v27397_v22  ;;  %21990 = vmatmul.mubr.msk.bf16.gmra.mrb[12].mxu0 %vm518_vm1, %v6905_v35  ;;  %v18369_v35 = vld [vmem:[%s25680_s18 + $0x1ab] sm:$0xff] }
 0x294   : >> { %21535 = vmatprep.mubr.msk.bf16.mxu1 %vm518_vm1, %v26895_v6  ;;  %21993 = vmatprep.mubr.msk.bf16.mxu0 %vm518_vm1, %v6906_v8  ;;  %v27416_v6 = vld [vmem:[%s30529_s1 + $0x16] sm:$0x3] }
 0x29b   : >> { %21536 = vmatmul.mubr.msk.bf16.vlgmr.msra.gmra.mrb[0].mxu1 %vm518_vm1, %v26899_v47  ;;  %21994 = vmatmul.mubr.msk.bf16.gmra.mrb[16].mxu0 %vm518_vm1, %v6907_v36  ;;  %v18366_v47 = vld [vmem:[%s25680_s18 + $0x193] sm:$0xff] }
 0x29c   : >> { %21568 = vmatpush3.bf16.msra.mxu1 %v3413_v38  ;;  %21539 = vmatprep.mubr.msk.bf16.mxu1 %vm518_vm1, %v26911_v2  ;;  %v6910_v8 = vpack.c.bf16 %v18367_v63, %v18366_v47  ;;  %v18368_v2 = vld [vmem:[%s25680_s18 + $0x1a3] sm:$0xff]  ;;  %v6912_v38 = vpack.c.bf16 %v18371_v0, %v18370_v62  ;;  %v7557_v47 = vsel %vm567_vm0, %v27317_v51, 0  ;;  %v27489_v51 = vld [vmem:[%s25680_s18 + $0x12c] sm:$0xff] }
 0x29d   : >> { %21997 = vmatprep.mubr.msk.bf16.mxu0 %vm518_vm1, %v6908_v27  ;;  %25134 = vmatprep.subr.msk.bf16.mxu1 %vm567_vm0, %v27416_v6  ;;  %v6911_v36 = vpack.c.bf16 %v18369_v35, %v18368_v2  ;;  %v27506_v2 = vld [vmem:[%s25680_s18 + $0x13c] sm:$0xff]  ;;  %v27510_v35 = vld [vmem:[%s25680_s18 + $0x144] sm:$0xff] }
 0x2a3   : >> { %21540 = vmatmul.mubr.msk.bf16.gmra.mrb[4].mxu1 %vm518_vm1, %v26915_v10  ;;  %21998 = vmatmul.mubr.msk.bf16.gmra.mrb[20].mxu0 %vm518_vm1, %v6909_v15  ;;  %v18372_v10 = vld [vmem:[%s25680_s18 + $0x1c3] sm:$0xff] }
 0x2a4   : >> { %21543 = vmatprep.mubr.msk.bf16.mxu1 %vm518_vm1, %v26932_v20  ;;  %22001 = vmatprep.mubr.msk.bf16.mxu0 %vm518_vm1, %v6910_v8  ;;  %v18373_v20 = vld [vmem:[%s25680_s18 + $0x1cb] sm:$0xff]  ;;  %v27503_v8 = vld [vmem:[%s25680_s18 + $0x134] sm:$0xff] }
 0x2a5   : >> { %v6913_v27 = vpack.c.bf16 %v18373_v20, %v18372_v10  ;;  %v3063_v62 = vpack.c.bf16 %v27506_v2, %v27503_v8  ;;  %v27537_v20 = vld [vmem:[%s25680_s18 + $0x164] sm:$0xff] }
 0x2ab   : >> { %21544 = vmatmul.mubr.msk.bf16.gmra.mrb[8].mxu1 %vm518_vm1, %v26938_v26  ;;  %22002 = vmatmul.mubr.msk.bf16.gmra.mrb[24].mxu0 %vm518_vm1, %v6911_v36  ;;  %v27454_v26 = vld [vmem:[%s25680_s18 + $0xe4] sm:$0xff]  ;;  %v27523_v36 = vld [vmem:[%s25680_s18 + $0x154] sm:$0xff] }
 0x2ac   : >> { %21547 = vmatprep.mubr.msk.bf16.mxu1 %vm518_vm1, %v26962_v19  ;;  %22005 = vmatprep.mubr.msk.bf16.mxu0 %vm518_vm1, %v6912_v38  ;;  %v27457_v19 = vld [vmem:[%s25680_s18 + $0xf4] sm:$0xff]  ;;  %v7195_v40 = vpack.c.bf16 %v26827_v5, %v27454_v26  ;;  %v27526_v38 = vld [vmem:[%s25680_s18 + $0x15c] sm:$0xff]  ;;  %v7490_v31 = vpack.c.bf16 %v27454_v26, %v18442_v53 }
 0x2ad   : >> { %v7196_v42 = vpack.c.bf16 %v26841_v25, %v27457_v19  ;;  %v27476_v5 = vld [vmem:[%s25680_s18 + $0x114] sm:$0xff]  ;;  %v27479_v25 = vld [vmem:[%s25680_s18 + $0x11c] sm:$0xff]  ;;  %v3065_v10 = vpack.c.bf16 %v27526_v38, %v27523_v36 }
 0x2ae   : >> { %v27655_v26 = vld [vmem:[%s25680_s18 + $0x12d] sm:$0xff] }
 0x2b3   : >> { %21548 = vmatmul.mubr.msk.bf16.gmra.mrb[12].mxu1 %vm518_vm1, %v26968_v13  ;;  %22006 = vmatmul.mubr.msk.bf16.gmra.mrb[28].mxu0 %vm518_vm1, %v6913_v27  ;;  %v27540_v27 = vld [vmem:[%s25680_s18 + $0x16c] sm:$0xff] }
 0x2b4   : >> { %21551 = vmatprep.mubr.msk.bf16.mxu1 %vm518_vm1, %v26979_v54  ;;  %22011 = vmatprep.mubr.msk.bf16.mxu0 %vm518_vm1, %v26968_v13  ;;  %v27470_v13 = vld [vmem:[%s30529_s1 + $0x32] sm:$0x3]  ;;  %v27483_v54 = vld [vmem:[%s25680_s18 + $0x104] sm:$0xff] }
 0x2b5   : >> { %v7197_v63 = vpack.c.bf16 %v26992_v21, %v27483_v54  ;;  %v27513_v21 = vld [vmem:[%s25680_s18 + $0x14c] sm:$0xff]  ;;  %v7853_v53 = vsel %vm567_vm0, %v27470_v13, 0 }
 0x2b6   : >> { %v3064_v0 = vpack.c.bf16 %v27513_v21, %v27510_v35 }
 0x2bb   : >> { %21552 = vmatmul.mubr.msk.bf16.gmra.mrb[16].mxu1 %vm518_vm1, %v26983_v3  ;;  %22012 = vmatmul.mubr.msk.bf16.vlgmr.msra.gmra.mrb[0].mxu0 %vm518_vm1, %v7195_v40  ;;  %v27486_v3 = vld [vmem:[%s25680_s18 + $0x124] sm:$0xff]  ;;  %v27543_v40 = vld [vmem:[%s25680_s18 + $0x174] sm:$0xff] }
 0x2bc   : >> { %21555 = vmatprep.mubr.msk.bf16.mxu1 %vm518_vm1, %v27000_v39  ;;  %22044 = vmatpush3.bf16.msra.mxu0 %v7557_v47  ;;  %v3061_v39 = vpack.c.bf16 %v27479_v25, %v27476_v5  ;;  %v3062_v15 = vpack.c.bf16 %v27489_v51, %v27486_v3  ;;  %v7203_v47 = vpack.c.bf16 %v27540_v27, %v27537_v20 }
 0x2bd   : >> { %22015 = vmatprep.mubr.msk.bf16.mxu0 %vm518_vm1, %v7196_v42  ;;  %25149 = vmatprep.subr.msk.bf16.mxu0 %vm567_vm0, %v27470_v13  ;;  %v27546_v42 = vld [vmem:[%s25680_s18 + $0x17c] sm:$0xff] }
 0x2c3   : >> { %21556 = vmatmul.mubr.msk.bf16.gmra.mrb[20].mxu1 %vm518_vm1, %v3061_v39  ;;  %22016 = vmatmul.mubr.msk.bf16.gmra.mrb[4].mxu0 %vm518_vm1, %v7197_v63  ;;  %v27559_v63 = vld [vmem:[%s30529_s1 + $0x18] sm:$0x3] }
 0x2c4   : >> { %21559 = vmatprep.mubr.msk.bf16.mxu1 %vm518_vm1, %v3062_v15  ;;  %22019 = vmatprep.mubr.msk.bf16.mxu0 %vm518_vm1, %v3061_v39  ;;  %v3709_v39 = vsel %vm567_vm0, %v27416_v6, 0  ;;  %v27566_v6 = vld [vmem:[%s25680_s18 + $0x184] sm:$0xff] }
 0x2cb   : >> { %21560 = vmatmul.mubr.msk.bf16.gmra.mrb[24].mxu1 %vm518_vm1, %v3063_v62  ;;  %22020 = vmatmul.mubr.msk.bf16.gmra.mrb[8].mxu0 %vm518_vm1, %v3062_v15  ;;  %v27572_v15 = vld [vmem:[%s25680_s18 + $0x194] sm:$0xff] }
 0x2cc   : >> { %21563 = vmatprep.mubr.msk.bf16.mxu1 %vm518_vm1, %v3064_v0  ;;  %22023 = vmatprep.mubr.msk.bf16.mxu0 %vm518_vm1, %v3063_v62  ;;  %v27575_v62 = vld [vmem:[%s25680_s18 + $0x19c] sm:$0xff] }
 0x2d3   : >> { %21564 = vmatmul.mubr.msk.bf16.gmra.mrb[28].mxu1 %vm518_vm1, %v3065_v10  ;;  %22024 = vmatmul.mubr.msk.bf16.gmra.mrb[12].mxu0 %vm518_vm1, %v3064_v0 }
 0x2d4   : >> { %21569 = vmatprep.mubr.msk.bf16.mxu1 %vm518_vm1, %v27068_v12  ;;  %22027 = vmatprep.mubr.msk.bf16.mxu0 %vm518_vm1, %v3065_v10  ;;  %v7204_v12 = vpack.c.bf16 %v27546_v42, %v27543_v40  ;;  %v27590_v10 = vld [vmem:[%s25680_s18 + $0x1a4] sm:$0xff] }
 0x2db   : >> { %21570 = vmatmul.mubr.msk.bf16.vlgmr.msra.gmra.mrb[0].mxu1 %vm518_vm1, %v27072_v16  ;;  %22028 = vmatmul.mubr.msk.bf16.gmra.mrb[16].mxu0 %vm518_vm1, %v7203_v47  ;;  %v27569_v16 = vld [vmem:[%s25680_s18 + $0x18c] sm:$0xff] }
 0x2dc   : >> { %21602 = vmatpush3.bf16.msra.mxu1 %v3709_v39  ;;  %21573 = vmatprep.mubr.msk.bf16.mxu1 %vm518_vm1, %v27093_v46  ;;  %v7205_v0 = vpack.c.bf16 %v27569_v16, %v27566_v6  ;;  %v7206_v46 = vpack.c.bf16 %v27575_v62, %v27572_v15  ;;  %v27593_v47 = vld [vmem:[%s25680_s18 + $0x1ac] sm:$0xff]  ;;  %v27596_v39 = vld [vmem:[%s25680_s18 + $0x1b4] sm:$0xff] }
 0x2dd   : >> { %22031 = vmatprep.mubr.msk.bf16.mxu0 %vm518_vm1, %v7204_v12  ;;  %25135 = vmatprep.subr.msk.bf16.mxu1 %vm567_vm0, %v27559_v63  ;;  %v27599_v12 = vld [vmem:[%s25680_s18 + $0x1bc] sm:$0xff] }
 0x2e3   : >> { %21574 = vmatmul.mubr.msk.bf16.gmra.mrb[4].mxu1 %vm518_vm1, %v27097_v33  ;;  %22032 = vmatmul.mubr.msk.bf16.gmra.mrb[20].mxu0 %vm518_vm1, %v7205_v0  ;;  %v7207_v33 = vpack.c.bf16 %v27593_v47, %v27590_v10  ;;  %v7208_v0 = vpack.c.bf16 %v27599_v12, %v27596_v39 }
 0x2e4   : >> { %21577 = vmatprep.mubr.msk.bf16.mxu1 %vm518_vm1, %v27112_v48  ;;  %22035 = vmatprep.mubr.msk.bf16.mxu0 %vm518_vm1, %v7206_v46  ;;  %v27612_v48 = vld [vmem:[%s25680_s18 + $0x1c4] sm:$0xff]  ;;  %v27615_v46 = vld [vmem:[%s25680_s18 + $0x1cc] sm:$0xff] }
 0x2e5   : >> { %v7209_v1 = vpack.c.bf16 %v27615_v46, %v27612_v48 }
 0x2eb   : >> { %21578 = vmatmul.mubr.msk.bf16.gmra.mrb[8].mxu1 %vm518_vm1, %v27115_v59  ;;  %22036 = vmatmul.mubr.msk.bf16.gmra.mrb[24].mxu0 %vm518_vm1, %v7207_v33  ;;  %v18444_v59 = vld [vmem:[%s25680_s18 + $0xec] sm:$0xff] }
 0x2ec   : >> { %21581 = vmatprep.mubr.msk.bf16.mxu1 %vm518_vm1, %v27140_v14  ;;  %22039 = vmatprep.mubr.msk.bf16.mxu0 %vm518_vm1, %v7208_v0  ;;  %v18446_v14 = vld [vmem:[%s25680_s18 + $0xfc] sm:$0xff]  ;;  %v7491_v33 = vpack.c.bf16 %v27457_v19, %v18444_v59 }
 0x2ed   : >> { %v7492_v0 = vpack.c.bf16 %v27483_v54, %v18446_v14  ;;  %v7494_v54 = vpack.c.bf16 %v27486_v3, %v27479_v25  ;;  %v27670_v59 = vld [vmem:[%s25680_s18 + $0x135] sm:$0xff]  ;;  %v27673_v14 = vld [vmem:[%s25680_s18 + $0x13d] sm:$0xff]  ;;  %v7495_v3 = vpack.c.bf16 %v27503_v8, %v27489_v51  ;;  %v7497_v8 = vpack.c.bf16 %v27523_v36, %v27513_v21 }
 0x2ee   : >> { %v3359_v25 = vpack.c.bf16 %v27673_v14, %v27670_v59  ;;  %v8418_v21 = vld [vmem:[%s27714_s11 + $0x10] sm:$0xff]  ;;  %v8416_v36 = vld [vmem:[%s27714_s11] sm:$0xff] }
 0x2f3   : >> { %21582 = vmatmul.mubr.msk.bf16.gmra.mrb[12].mxu1 %vm518_vm1, %v27144_v23  ;;  %22040 = vmatmul.mubr.msk.bf16.gmra.mrb[28].mxu0 %vm518_vm1, %v7209_v1  ;;  %v27638_v23 = vld [vmem:[%s30529_s1 + $0x34] sm:$0x3]  ;;  %v27652_v1 = vld [vmem:[%s25680_s18 + $0x125] sm:$0xff] }
 0x2f4   : >> { %21585 = vmatprep.mubr.msk.bf16.mxu1 %vm518_vm1, %v27163_v34  ;;  %22045 = vmatprep.mubr.msk.bf16.mxu0 %vm518_vm1, %v7490_v31  ;;  %v27644_v34 = vld [vmem:[%s25680_s18 + $0x115] sm:$0xff]  ;;  %v27647_v31 = vld [vmem:[%s25680_s18 + $0x11d] sm:$0xff]  ;;  %v3358_v13 = vpack.c.bf16 %v27655_v26, %v27652_v1 }
 0x2fb   : >> { %21586 = vmatmul.mubr.msk.bf16.gmra.mrb[16].mxu1 %vm518_vm1, %v27168_v41  ;;  %22046 = vmatmul.mubr.msk.bf16.vlgmr.msra.gmra.mrb[0].mxu0 %vm518_vm1, %v7491_v33  ;;  %v18448_v41 = vld [vmem:[%s25680_s18 + $0x10c] sm:$0xff] }
 0x2fc   : >> { %21589 = vmatprep.mubr.msk.bf16.mxu1 %vm518_vm1, %v27185_v43  ;;  %22078 = vmatpush3.bf16.msra.mxu0 %v7853_v53  ;;  %v3357_v43 = vpack.c.bf16 %v27647_v31, %v27644_v34  ;;  %v7493_v19 = vpack.c.bf16 %v27476_v5, %v18448_v41  ;;  %v27677_v5 = vld [vmem:[%s25680_s18 + $0x145] sm:$0xff]  ;;  %v27680_v33 = vld [vmem:[%s25680_s18 + $0x14d] sm:$0xff]  ;;  %v7496_v53 = vpack.c.bf16 %v27510_v35, %v27506_v2  ;;  %v27694_v41 = vld [vmem:[%s25680_s18 + $0x155] sm:$0xff]  ;;  %v25431_v35 = vmov 0  }
 0x2fd   : >> { %22049 = vmatprep.mubr.msk.bf16.mxu0 %vm518_vm1, %v7492_v0  ;;  %25150 = vmatprep.subr.msk.bf16.mxu0 %vm567_vm0, %v27638_v23  ;;  %v3360_v0 = vpack.c.bf16 %v27680_v33, %v27677_v5  ;;  %v7498_v2 = vpack.c.bf16 %v27537_v20, %v27526_v38  ;;  %v4005_v38 = vsel %vm567_vm0, %v27559_v63, 0  ;;  %v7500_v20 = vpack.c.bf16 %v27566_v6, %v27546_v42  ;;  %v8420_v42 = vld [vmem:[%s27714_s11 + $0x20] sm:$0xff]  ;;  %v8423_v63 = vld [vmem:[%s27714_s11 + $0x38] sm:$0xff]  ;;  %v8422_v6 = vld [vmem:[%s27714_s11 + $0x30] sm:$0xff] }
 0x2fe   : >> { %25179 = vset.pattern.permute.xlu1 %v25431_v35  ;;  %25178 = vset.pattern.permute.xlu0 %v25431_v35 }
 0x2ff   : >> { %8460 = vperm.xlu1 %25179, %v8418_v21   ;;  %8450 = vperm.xlu0 %25178, %v8416_v36   ;;  %v8436_v21 = vld [vmem:[%s27714_s11 + $0xa0] sm:$0xff]  ;;  %v7790_v36 = vpack.c.bf16 %v27652_v1, %v27647_v31  ;;  %v27833_v1 = vld [vmem:[%s25680_s18 + $0x14e] sm:$0xff] }
 0x300   : >> { %v27830_v31 = vld [vmem:[%s25680_s18 + $0x146] sm:$0xff] }
 0x303   : >> { %21590 = vmatmul.mubr.msk.bf16.gmra.mrb[20].mxu1 %vm518_vm1, %v3357_v43  ;;  %22050 = vmatmul.mubr.msk.bf16.gmra.mrb[4].mxu0 %vm518_vm1, %v7493_v19  ;;  %v27697_v43 = vld [vmem:[%s25680_s18 + $0x15d] sm:$0xff] }
 0x304   : >> { %21593 = vmatprep.mubr.msk.bf16.mxu1 %vm518_vm1, %v3358_v13  ;;  %22053 = vmatprep.mubr.msk.bf16.mxu0 %vm518_vm1, %v7494_v54  ;;  %v3361_v51 = vpack.c.bf16 %v27697_v43, %v27694_v41  ;;  %v8419_v19 = vld [vmem:[%s27714_s11 + $0x18] sm:$0xff]  ;;  %v8417_v13 = vld [vmem:[%s27714_s11 + $0x8] sm:$0xff]  ;;  %v8430_v54 = vld [vmem:[%s27714_s11 + $0x70] sm:$0xff] }
 0x305   : >> { %8465 = vperm.xlu1 %25179, %v8419_v19   ;;  %8455 = vperm.xlu0 %25178, %v8417_v13   ;;  %v8441_v13 = vld [vmem:[%s27714_s11 + $0xc8] sm:$0xff] }
 0x309   : >> { %8470 = vperm.xlu0 %25178, %v8420_v42   ;;  %v7792_v42 = vpack.c.bf16 %v27677_v5, %v27673_v14  ;;  %v18509_v14 = vld [vmem:[%s25680_s18 + $0x165] sm:$0xff] }
 0x30b   : >> { %21594 = vmatmul.mubr.msk.bf16.gmra.mrb[24].mxu1 %vm518_vm1, %v3359_v25  ;;  %22054 = vmatmul.mubr.msk.bf16.gmra.mrb[8].mxu0 %vm518_vm1, %v7495_v3  ;;  %v18496_v25 = vld [vmem:[%s25680_s18 + $0xfd] sm:$0xff]  ;;  %v8149_v3 = vsel %vm567_vm0, %v27638_v23, 0  ;;  %v18498_v23 = vld [vmem:[%s25680_s18 + $0x10d] sm:$0xff] }
 0x30c   : >> { %21597 = vmatprep.mubr.msk.bf16.mxu1 %vm518_vm1, %v3360_v0  ;;  %22057 = vmatprep.mubr.msk.bf16.mxu0 %vm518_vm1, %v7496_v53  ;;  %v8435_v0 = vld [vmem:[%s27714_s11 + $0x98] sm:$0xff] }
 0x30d   : >> { %8480 = vperm.xlu0 %25178, %v8422_v6   ;;  %v27797_v53 = vld [vmem:[%s25680_s18 + $0x11e] sm:$0xff]  ;;  %v8445_v6 = vld [vmem:[%s27714_s11 + $0xe8] sm:$0xff] }
 0x313   : >> { %21598 = vmatmul.mubr.msk.bf16.gmra.mrb[28].mxu1 %vm518_vm1, %v3361_v51  ;;  %22058 = vmatmul.mubr.msk.bf16.gmra.mrb[12].mxu0 %vm518_vm1, %v7497_v8  ;;  %v27806_v51 = vld [vmem:[%s25680_s18 + $0x12e] sm:$0xff] }
 0x314   : >> { %21603 = vmatprep.mubr.msk.bf16.mxu1 %vm518_vm1, %v27240_v60  ;;  %22061 = vmatprep.mubr.msk.bf16.mxu0 %vm518_vm1, %v7498_v2  ;;  %v7499_v60 = vpack.c.bf16 %v27543_v40, %v27540_v27  ;;  %v25180_v27 = vld [vmem:[%s30529_s1 + $0x1a] sm:$0x3]  ;;  %v7501_v40 = vpack.c.bf16 %v27572_v15, %v27569_v16  ;;  %v8425_v16 = vld [vmem:[%s27714_s11 + $0x48] sm:$0xff]  ;;  %v8424_v15 = vld [vmem:[%s27714_s11 + $0x40] sm:$0xff]  ;;  %v7789_v2 = vpack.c.bf16 %v27644_v34, %v18498_v23 }
 0x315   : >> { %8490 = vperm.xlu0 %25178, %v8424_v15   ;;  %v8437_v8 = vld [vmem:[%s27714_s11 + $0xa8] sm:$0xff]  ;;  %v27825_v34 = vld [vmem:[%s25680_s18 + $0x13e] sm:$0xff] }
 0x316   : >> { %v8444_v15 = vld [vmem:[%s27714_s11 + $0xe0] sm:$0xff] }
 0x31b   : >> { %21604 = vmatmul.mubr.msk.bf16.vlgmr.msra.gmra.mrb[0].mxu1 %vm518_vm1, %v27246_v57  ;;  %22062 = vmatmul.mubr.msk.bf16.gmra.mrb[16].mxu0 %vm518_vm1, %v7499_v60  ;;  %v8421_v57 = vld [vmem:[%s27714_s11 + $0x28] sm:$0xff]  ;;  %v8439_v60 = vld [vmem:[%s27714_s11 + $0xb8] sm:$0xff] }
 0x31c   : >> { %21636 = vmatpush3.bf16.msra.mxu1 %v4005_v38  ;;  %21607 = vmatprep.mubr.msk.bf16.mxu1 %vm518_vm1, %v27271_v11  ;;  %v7502_v11 = vpack.c.bf16 %v27590_v10, %v27575_v62  ;;  %v7504_v62 = vpack.c.bf16 %v27612_v48, %v27599_v12  ;;  %v8426_v10 = vld [vmem:[%s27714_s11 + $0x50] sm:$0xff]  ;;  %v8428_v12 = vld [vmem:[%s27714_s11 + $0x60] sm:$0xff]  ;;  %v8431_v48 = vld [vmem:[%s27714_s11 + $0x78] sm:$0xff] }
 0x31d   : >> { %22065 = vmatprep.mubr.msk.bf16.mxu0 %vm518_vm1, %v7500_v20  ;;  %25137 = vmatprep.subr.msk.bf16.mxu1 %vm567_vm0, %v25180_v27  ;;  %v27822_v38 = vld [vmem:[%s25680_s18 + $0x136] sm:$0xff]  ;;  %v7791_v27 = vpack.c.bf16 %v27670_v59, %v27655_v26  ;;  %v27853_v26 = vld [vmem:[%s25680_s18 + $0x15e] sm:$0xff] }
 0x31e   : >> { %8475 = vperm.xlu1 %25179, %v8421_v57   ;;  %8500 = vperm.xlu0 %25178, %v8426_v10   ;;  %v8438_v20 = vld [vmem:[%s27714_s11 + $0xb0] sm:$0xff]  ;;  %v3655_v19 = vpack.c.bf16 %v27825_v34, %v27822_v38  ;;  %v3656_v57 = vpack.c.bf16 %v27833_v1, %v27830_v31 }
 0x31f   : >> { %v8442_v59 = vld [vmem:[%s27714_s11 + $0xd0] sm:$0xff] }
 0x320   : >> { %v8446_v10 = vld [vmem:[%s27714_s11 + $0xf0] sm:$0xff] }
 0x322   : >> { %8485 = vperm.xlu1 %25179, %v8423_v63   ;;  %8510 = vperm.xlu0 %25178, %v8428_v12   ;;  %v27850_v63 = vld [vmem:[%s25680_s18 + $0x156] sm:$0xff]  ;;  %v30603_v12 = vld [vmem:[#allocation3_spill] sm:$0xff] }
 0x323   : >> { %21608 = vmatmul.mubr.msk.bf16.gmra.mrb[4].mxu1 %vm518_vm1, %v27276_v32  ;;  %22066 = vmatmul.mubr.msk.bf16.gmra.mrb[20].mxu0 %vm518_vm1, %v7501_v40  ;;  %v7503_v32 = vpack.c.bf16 %v27596_v39, %v27593_v47  ;;  %v18473_v47 = vld [vmem:[%s25680_s18 + $0x1d4] sm:$0xff]  ;;  %v8429_v39 = vld [vmem:[%s27714_s11 + $0x68] sm:$0xff]  ;;  %v8440_v40 = vld [vmem:[%s27714_s11 + $0xc0] sm:$0xff]  ;;  %v3657_v5 = vpack.c.bf16 %v27853_v26, %v27850_v63 }
 0x324   : >> { %21611 = vmatprep.mubr.msk.bf16.mxu1 %vm518_vm1, %v27302_v52  ;;  %22069 = vmatprep.mubr.msk.bf16.mxu0 %vm518_vm1, %v7502_v11  ;;  %v8427_v52 = vld [vmem:[%s27714_s11 + $0x58] sm:$0xff] }
 0x325   : >> { %v8443_v11 = vld [vmem:[%s27714_s11 + $0xd8] sm:$0xff] }
 0x326   : >> { %8495 = vperm.xlu1 %25179, %v8425_v16   ;;  %8520 = vperm.xlu0 %25178, %v8430_v54   ;;  %v7793_v16 = vpack.c.bf16 %v27694_v41, %v27680_v33  ;;  %v18510_v33 = vld [vmem:[%s25680_s18 + $0x16d] sm:$0xff]  ;;  %v18511_v41 = vld [vmem:[%s25680_s18 + $0x175] sm:$0xff] }
 0x327   : >> { %v30604_v54 = vld [vmem:[#allocation6_spill] sm:$0xff] }
 0x32a   : >> { %8505 = vperm.xlu1 %25179, %v8427_v52   ;;  %v8447_v52 = vld [vmem:[%s27714_s11 + $0xf8] sm:$0xff] }
 0x32b   : >> { %21612 = vmatmul.mubr.msk.bf16.gmra.mrb[8].mxu1 %vm518_vm1, %v27307_v55  ;;  %22070 = vmatmul.mubr.msk.bf16.gmra.mrb[24].mxu0 %vm518_vm1, %v7503_v32  ;;  %v7505_v55 = vpack.c.bf16 %v18473_v47, %v27615_v46  ;;  %v18494_v46 = vld [vmem:[%s25680_s18 + $0xed] sm:$0xff]  ;;  %v3938_v32 = vpack.c.bf16 %v27234_v28, %v27230_v45  ;;  %v18512_v45 = vld [vmem:[%s25680_s18 + $0x17d] sm:$0xff]  ;;  %v18513_v28 = vld [vmem:[%s25680_s18 + $0x185] sm:$0xff]  ;;  %v7795_v47 = vpack.c.bf16 %v18511_v41, %v18510_v33 }
 0x32c   : >> { %21615 = vmatprep.mubr.msk.bf16.mxu1 %vm518_vm1, %v27343_v30  ;;  %22073 = vmatprep.mubr.msk.bf16.mxu0 %vm518_vm1, %v7504_v62  ;;  %v7786_v30 = vpack.c.bf16 %v27154_v9, %v27136_v7  ;;  %v8433_v7 = vld [vmem:[%s27714_s11 + $0x88] sm:$0xff]  ;;  %v7787_v9 = vpack.c.bf16 %v27159_v17, %v18494_v46  ;;  %v27794_v17 = vld [vmem:[%s25680_s18 + $0x116] sm:$0xff]  ;;  %v7794_v62 = vpack.c.bf16 %v18509_v14, %v27697_v43  ;;  %v17914_v41 = vld [vmem:[%s25680_s18 + $0x11f] sm:$0xff] }
 0x32d   : >> { %v3939_v43 = vpack.c.bf16 %v27256_v4, %v27237_v24  ;;  %v18514_v24 = vld [vmem:[%s25680_s18 + $0x18d] sm:$0xff]  ;;  %v18515_v4 = vld [vmem:[%s25680_s18 + $0x195] sm:$0xff]  ;;  %v3942_v46 = vpack.c.bf16 %v30604_v54, %v27289_v56  ;;  %v30607_v56 = vld [vmem:[#allocation7_spill] sm:$0xff]  ;;  %v3950_v14 = vpack.c.bf16 %v27822_v38, %v27806_v51 }
 0x32e   : >> { %8515 = vperm.xlu1 %25179, %v8429_v39   ;;  %v3940_v39 = vpack.c.bf16 %v27264_v61, %v27259_v50  ;;  %v3941_v50 = vpack.c.bf16 %v27286_v44, %v27267_v49  ;;  %v7797_v61 = vpack.c.bf16 %v18515_v4, %v18514_v24  ;;  %v30605_v49 = vld [vmem:[#allocation5_spill] sm:$0xff]  ;;  %v30606_v44 = vld [vmem:[#allocation4_spill] sm:$0xff] }
 0x32f   : >> { %v17909_v38 = vld [vmem:[%s25680_s18 + $0xf7] sm:$0xff]  ;;  %v18568_v54 = vld [vmem:[%s25680_s18 + $0x1ae] sm:$0xff] }
 0x332   : >> { %8525 = vperm.xlu1 %25179, %v8431_v48   ;;  %v18517_v48 = vld [vmem:[%s25680_s18 + $0x1a5] sm:$0xff] }
 0x333   : >> { %21616 = vmatmul.mubr.msk.bf16.gmra.mrb[12].mxu1 %vm518_vm1, %v27347_v58  ;;  %22074 = vmatmul.mubr.msk.bf16.gmra.mrb[28].mxu0 %vm518_vm1, %v7505_v55  ;;  %v8432_v58 = vld [vmem:[%s27714_s11 + $0x80] sm:$0xff]  ;;  %v7796_v55 = vpack.c.bf16 %v18513_v28, %v18512_v45  ;;  %v18564_v28 = vld [vmem:[%s25680_s18 + $0x18e] sm:$0xff] }
 0x334   : >> { %21619 = vmatprep.mubr.msk.bf16.mxu1 %vm518_vm1, %v27373_v37  ;;  %22079 = vmatprep.mubr.msk.bf16.mxu0 %vm518_vm1, %v7786_v30  ;;  %v7788_v37 = vpack.c.bf16 %v27178_v18, %v18496_v25  ;;  %v8434_v18 = vld [vmem:[%s27714_s11 + $0x90] sm:$0xff]  ;;  %v18516_v30 = vld [vmem:[%s25680_s18 + $0x19d] sm:$0xff]  ;;  %v17915_v45 = vld [vmem:[%s25680_s18 + $0x127] sm:$0xff] }
 0x335   : >> { %8530 = vperm.xlu0 %25178, %v8432_v58   ;;  %v7798_v25 = vpack.c.bf16 %v18517_v48, %v18516_v30  ;;  %v18520_v58 = vld [vmem:[%s25680_s18 + $0x1bd] sm:$0xff]  ;;  %v4245_v24 = vpack.c.bf16 %v17915_v45, %v17914_v41 }
 0x336   : >> { %8535 = vperm.xlu1 %25179, %v8433_v7   ;;  %v18518_v7 = vld [vmem:[%s25680_s18 + $0x1ad] sm:$0xff] }
 0x339   : >> { %8540 = vperm.xlu0 %25178, %v8434_v18   ;;  %v30608_v18 = vld [vmem:[#allocation8_spill] sm:$0xff] }
 0x33a   : >> { %8545 = vperm.xlu1 %25179, %v8435_v0   ;;  %v3944_v23 = vpack.c.bf16 %v30608_v18, %v30607_v56  ;;  %v17923_v56 = vld [vmem:[%s25680_s18 + $0x167] sm:$0xff] }
 0x33b   : >> { %21620 = vmatmul.mubr.msk.bf16.gmra.mrb[16].mxu1 %vm518_vm1, %v27377_v29  ;;  %22080 = vmatmul.mubr.msk.bf16.vlgmr.msra.gmra.mrb[0].mxu0 %vm518_vm1, %v7787_v9  ;;  %v27803_v29 = vld [vmem:[%s25680_s18 + $0x126] sm:$0xff]  ;;  %v18519_v9 = vld [vmem:[%s25680_s18 + $0x1b5] sm:$0xff] }
 0x33c   : >> { %21623 = vmatprep.mubr.msk.bf16.mxu1 %vm518_vm1, %v27397_v22  ;;  %22112 = vmatpush3.bf16.msra.mxu0 %v8149_v3  ;;  %v3653_v22 = vpack.c.bf16 %v27797_v53, %v27794_v17  ;;  %v3654_v35 = vpack.c.bf16 %v27806_v51, %v27803_v29  ;;  %v3943_v3 = vpack.c.bf16 %v30606_v44, %v30605_v49  ;;  %v17908_v51 = vld [vmem:[%s25680_s18 + $0xef] sm:$0xff] }
 0x33d   : >> { %22083 = vmatprep.mubr.msk.bf16.mxu0 %vm518_vm1, %v7788_v37  ;;  %8550 = vperm.xlu0 %25178, %v8436_v21   ;;  %v18521_v37 = vld [vmem:[%s25680_s18 + $0x1c5] sm:$0xff]  ;;  %v7799_v0 = vpack.c.bf16 %v18519_v9, %v18518_v7  ;;  %v30610_v21 = vld [vmem:[#allocation10_spill] sm:$0xff]  ;;  %v18572_v18 = vld [vmem:[%s25680_s18 + $0x1ce] sm:$0xff] }
 0x33e   : >> { %8555 = vperm.xlu1 %25179, %v8437_v8   ;;  %v18522_v8 = vld [vmem:[%s25680_s18 + $0x1cd] sm:$0xff]  ;;  %v17921_v7 = vld [vmem:[%s25680_s18 + $0x157] sm:$0xff] }
 0x33f   : >> { %v18570_v9 = vld [vmem:[%s25680_s18 + $0x1be] sm:$0xff] }
 0x341   : >> { %8560 = vperm.xlu0 %25178, %v8438_v20   ;;  %v30611_v20 = vld [vmem:[#allocation11_spill] sm:$0xff] }
 0x342   : >> { %8565 = vperm.xlu1 %25179, %v8439_v60  }
 0x343   : >> { %21624 = vmatmul.mubr.msk.bf16.gmra.mrb[20].mxu1 %vm518_vm1, %v3653_v22  ;;  %22084 = vmatmul.mubr.msk.bf16.gmra.mrb[4].mxu0 %vm518_vm1, %v7789_v2  ;;  %v7800_v22 = vpack.c.bf16 %v18521_v37, %v18520_v58  ;;  %v18523_v2 = vld [vmem:[%s25680_s18 + $0x1d5] sm:$0xff]  ;;  %v18571_v58 = vld [vmem:[%s25680_s18 + $0x1c6] sm:$0xff] }
 0x344   : >> { %21627 = vmatprep.mubr.msk.bf16.mxu1 %vm518_vm1, %v3654_v35  ;;  %22087 = vmatprep.mubr.msk.bf16.mxu0 %vm518_vm1, %v7790_v36  ;;  %v30609_v35 = vld [vmem:[#allocation9_spill] sm:$0xff]  ;;  %v7801_v60 = vpack.c.bf16 %v18523_v2, %v18522_v8 }
 0x345   : >> { %8570 = vperm.xlu0 %25178, %v8440_v40   ;;  %v3945_v36 = vpack.c.bf16 %v30610_v21, %v30609_v35 }
 0x346   : >> { %8575 = vperm.xlu1 %25179, %v8441_v13  }
 0x349   : >> { %8580 = vperm.xlu0 %25178, %v8442_v59   ;;  %v3949_v59 = vpack.c.bf16 %v27803_v29, %v27797_v53  ;;  %v3952_v53 = vpack.c.bf16 %v27850_v63, %v27833_v1  ;;  %v17873_v29 = vld [vmem:[%s25680_s18 + $0x166] sm:$0xff] }
 0x34a   : >> { %8585 = vperm.xlu1 %25179, %v8443_v11   ;;  %v17910_v1 = vld [vmem:[%s25680_s18 + $0xff] sm:$0xff]  ;;  %v17911_v63 = vld [vmem:[%s25680_s18 + $0x107] sm:$0xff] }
 0x34b   : >> { %21628 = vmatmul.mubr.msk.bf16.gmra.mrb[24].mxu1 %vm518_vm1, %v3655_v19  ;;  %22088 = vmatmul.mubr.msk.bf16.gmra.mrb[8].mxu0 %vm518_vm1, %v7791_v27  ;;  %v30612_v19 = vld [vmem:[#allocation12_spill] sm:$0xff]  ;;  %v30613_v27 = vld [vmem:[#allocation13_spill] sm:$0xff] }
 0x34c   : >> { %21631 = vmatprep.mubr.msk.bf16.mxu1 %vm518_vm1, %v3656_v57  ;;  %22091 = vmatprep.mubr.msk.bf16.mxu0 %vm518_vm1, %v7792_v42  ;;  %v3946_v13 = vpack.c.bf16 %v30612_v19, %v30611_v20  ;;  %v30614_v57 = vld [vmem:[#allocation14_spill] sm:$0xff]  ;;  %v30615_v42 = vld [vmem:[#allocation15_spill] sm:$0xff] }
 0x34d   : >> { %8590 = vperm.xlu0 %25178, %v8444_v15   ;;  %v3947_v40 = vpack.c.bf16 %v30614_v57, %v30613_v27  ;;  %v3948_v11 = vpack.c.bf16 %v27794_v17, %v30615_v42  ;;  %v3951_v17 = vpack.c.bf16 %v27830_v31, %v27825_v34  ;;  %v3953_v34 = vpack.c.bf16 %v17873_v29, %v27853_v26  ;;  %v17913_v26 = vld [vmem:[%s25680_s18 + $0x117] sm:$0xff]  ;;  %v18563_v15 = vld [vmem:[%s25680_s18 + $0x186] sm:$0xff] }
 0x34e   : >> { %8595 = vperm.xlu1 %25179, %v8445_v6   ;;  %v4242_v31 = vpack.c.bf16 %v17909_v38, %v17908_v51  ;;  %v18561_v6 = vld [vmem:[%s25680_s18 + $0x176] sm:$0xff] }
 0x351   : >> { %8600 = vperm.xlu0 %25178, %v8446_v10  }
 0x352   : >> { %8605 = vperm.xlu1 %25179, %v8447_v52  }
 0x353   : >> { %21632 = vmatmul.mubr.msk.bf16.gmra.mrb[28].mxu1 %vm518_vm1, %v3657_v5  ;;  %22092 = vmatmul.mubr.msk.bf16.gmra.mrb[12].mxu0 %vm518_vm1, %v7793_v16  ;;  %v18560_v5 = vld [vmem:[%s25680_s18 + $0x16e] sm:$0xff] }
 0x354   : >> { %21637 = vmatprep.mubr.msk.bf16.mxu1 %vm518_vm1, %v3938_v32  ;;  %22095 = vmatprep.mubr.msk.bf16.mxu0 %vm518_vm1, %v7794_v62  ;;  %v17912_v16 = vld [vmem:[%s25680_s18 + $0x10f] sm:$0xff]  ;;  %v18562_v32 = vld [vmem:[%s25680_s18 + $0x17e] sm:$0xff]  ;;  %v4243_v62 = vpack.c.bf16 %v17911_v63, %v17910_v1  ;;  %v8091_v52 = vpack.c.bf16 %v18561_v6, %v18560_v5 }
 0x355   : >> { %v4244_v10 = vpack.c.bf16 %v17913_v26, %v17912_v16  ;;  %v8092_v33 = vpack.c.bf16 %v18563_v15, %v18562_v32 }
 0x35b   : >> { %21638 = vmatmul.mubr.msk.bf16.vlgmr.msra.gmra.mrb[0].mxu1 %vm518_vm1, %v3939_v43  ;;  %22096 = vmatmul.mubr.msk.bf16.gmra.mrb[16].mxu0 %vm518_vm1, %v7795_v47  ;;  %v18565_v43 = vld [vmem:[%s25680_s18 + $0x196] sm:$0xff] }
 0x35c   : >> { %23442 = vmatpush3.bf16.msra.mxu1 %v30603_v12  ;;  %21641 = vmatprep.mubr.msk.bf16.mxu1 %vm518_vm1, %v3940_v39  ;;  %v17916_v47 = vld [vmem:[%s25680_s18 + $0x12f] sm:$0xff]  ;;  %v17917_v39 = vld [vmem:[%s25680_s18 + $0x137] sm:$0xff]  ;;  %v18567_v12 = vld [vmem:[%s25680_s18 + $0x1a6] sm:$0xff]  ;;  %v8093_v4 = vpack.c.bf16 %v18565_v43, %v18564_v28 }
 0x35d   : >> { %22099 = vmatprep.mubr.msk.bf16.mxu0 %vm518_vm1, %v7796_v55  ;;  %v18566_v55 = vld [vmem:[%s25680_s18 + $0x19e] sm:$0xff]  ;;  %v4246_v30 = vpack.c.bf16 %v17917_v39, %v17916_v47 }
 0x35e   : >> { %v8094_v48 = vpack.c.bf16 %v18567_v12, %v18566_v55 }
 0x363   : >> { %21642 = vmatmul.mubr.msk.bf16.gmra.mrb[4].mxu1 %vm518_vm1, %v3941_v50  ;;  %22100 = vmatmul.mubr.msk.bf16.gmra.mrb[20].mxu0 %vm518_vm1, %v7797_v61  ;;  %v17918_v50 = vld [vmem:[%s25680_s18 + $0x13f] sm:$0xff]  ;;  %v17919_v61 = vld [vmem:[%s25680_s18 + $0x147] sm:$0xff] }
 0x364   : >> { %21645 = vmatprep.mubr.msk.bf16.mxu1 %vm518_vm1, %v3942_v46  ;;  %22103 = vmatprep.mubr.msk.bf16.mxu0 %vm518_vm1, %v7798_v25  ;;  %v18569_v46 = vld [vmem:[%s25680_s18 + $0x1b6] sm:$0xff]  ;;  %v4247_v37 = vpack.c.bf16 %v17919_v61, %v17918_v50 }
 0x365   : >> { %v17920_v25 = vld [vmem:[%s25680_s18 + $0x14f] sm:$0xff]  ;;  %v8095_v49 = vpack.c.bf16 %v18569_v46, %v18568_v54 }
 0x366   : >> { %v4248_v44 = vpack.c.bf16 %v17921_v7, %v17920_v25 }
 0x36b   : >> { %21646 = vmatmul.mubr.msk.bf16.gmra.mrb[8].mxu1 %vm518_vm1, %v3943_v3  ;;  %22104 = vmatmul.mubr.msk.bf16.gmra.mrb[24].mxu0 %vm518_vm1, %v7799_v0  ;;  %v8096_v3 = vpack.c.bf16 %v18571_v58, %v18570_v9  ;;  %v17922_v0 = vld [vmem:[%s25680_s18 + $0x15f] sm:$0xff] }
 0x36c   : >> { %21649 = vmatprep.mubr.msk.bf16.mxu1 %vm518_vm1, %v3944_v23  ;;  %22107 = vmatprep.mubr.msk.bf16.mxu0 %vm518_vm1, %v7800_v22  ;;  %v18573_v23 = vld [vmem:[%s25680_s18 + $0x1d6] sm:$0xff]  ;;  %v4249_v22 = vpack.c.bf16 %v17923_v56, %v17922_v0 }
 0x36d   : >> { %v8097_v8 = vpack.c.bf16 %v18573_v23, %v18572_v18 }
 0x373   : >> { %21650 = vmatmul.mubr.msk.bf16.gmra.mrb[12].mxu1 %vm518_vm1, %v3945_v36  ;;  %22108 = vmatmul.mubr.msk.bf16.gmra.mrb[28].mxu0 %vm518_vm1, %v7801_v60 }
 0x374   : >> { %21653 = vmatprep.mubr.msk.bf16.mxu1 %vm518_vm1, %v3946_v13  ;;  %22113 = vmatprep.mubr.msk.bf16.mxu0 %vm518_vm1, %v3945_v36 }
 0x37b   : >> { %21654 = vmatmul.mubr.msk.bf16.gmra.mrb[16].mxu1 %vm518_vm1, %v3947_v40  ;;  %22114 = vmatmul.mubr.msk.bf16.vlgmr.msra.gmra.mrb[0].mxu0 %vm518_vm1, %v3946_v13 }
 0x37c   : >> { %21657 = vmatprep.mubr.msk.bf16.mxu1 %vm518_vm1, %v3948_v11  ;;  %22117 = vmatprep.mubr.msk.bf16.mxu0 %vm518_vm1, %v3947_v40 }
 0x37e   : >> { %v8461_v2 = vpop.permute.xlu1 %8460  ;;  %v8451_v35 = vpop.permute.xlu0 %8450 }
 0x383   : >> { %21658 = vmatmul.mubr.msk.bf16.gmra.mrb[20].mxu1 %vm518_vm1, %v3949_v59  ;;  %22118 = vmatmul.mubr.msk.bf16.gmra.mrb[4].mxu0 %vm518_vm1, %v3948_v11 }
 0x384   : >> { %21661 = vmatprep.mubr.msk.bf16.mxu1 %vm518_vm1, %v3950_v14  ;;  %22121 = vmatprep.mubr.msk.bf16.mxu0 %vm518_vm1, %v3949_v59  ;;  %v8466_v20 = vpop.permute.xlu1 %8465  ;;  %v8456_v13 = vpop.permute.xlu0 %8455 }
 0x388   : >> { %v27996_v42 = vpop.permute.xlu0 %8470 }
 0x38b   : >> { %21662 = vmatmul.mubr.msk.bf16.gmra.mrb[24].mxu1 %vm518_vm1, %v3951_v17  ;;  %22122 = vmatmul.mubr.msk.bf16.gmra.mrb[8].mxu0 %vm518_vm1, %v3950_v14 }
 0x38c   : >> { %21665 = vmatprep.mubr.msk.bf16.mxu1 %vm518_vm1, %v3952_v53  ;;  %22125 = vmatprep.mubr.msk.bf16.mxu0 %vm518_vm1, %v3951_v17  ;;  %v8481_v17 = vpop.permute.xlu0 %8480 }
 0x393   : >> { %21666 = vmatmul.mubr.msk.bf16.gmra.mrb[28].mxu1 %vm518_vm1, %v3953_v34  ;;  %22126 = vmatmul.mubr.msk.bf16.gmra.mrb[12].mxu0 %vm518_vm1, %v3952_v53 }
 0x394   : >> { %21687 = vmatprep.mubr.msk.bf16.mxu1 %vm518_vm1, %v4242_v31  ;;  %22129 = vmatprep.mubr.msk.bf16.mxu0 %vm518_vm1, %v3953_v34  ;;  %v28010_v31 = vpop.permute.xlu0 %8490 }
 0x39b   : >> { %21688 = vmatmul.mubr.msk.bf16.vlgmr.msra.gmra.mrb[16].mxu1 %vm518_vm1, %v4243_v62  ;;  %22130 = vmatmul.mubr.msk.bf16.gmra.mrb[16].mxu0 %vm518_vm1, %v8091_v52  ;;  %v28029_v62 = vld [vmem:[%s30530_s2] ss:$0 sm:$0xff] }
 0x39c   : >> { %21691 = vmatprep.mubr.msk.bf16.mxu1 %vm518_vm1, %v4244_v10  ;;  %22133 = vmatprep.mubr.msk.bf16.mxu0 %vm518_vm1, %v8092_v33 }
 0x39d   : >> { %v27994_v57 = vpop.permute.xlu1 %8475  ;;  %v28022_v26 = vpop.permute.xlu0 %8500 }
 0x3a1   : >> { %v27998_v14 = vpop.permute.xlu1 %8485  ;;  %v28031_v52 = vpop.permute.xlu0 %8510 }
 0x3a3   : >> { %21692 = vmatmul.mubr.msk.bf16.gmra.mrb[20].mxu1 %vm518_vm1, %v4245_v24  ;;  %22134 = vmatmul.mubr.msk.bf16.gmra.mrb[20].mxu0 %vm518_vm1, %v8093_v4 }
 0x3a4   : >> { %21695 = vmatprep.mubr.msk.bf16.mxu1 %vm518_vm1, %v4246_v30  ;;  %22137 = vmatprep.mubr.msk.bf16.mxu0 %vm518_vm1, %v8094_v48 }
 0x3a5   : >> { %v28008_v34 = vpop.permute.xlu1 %8495  ;;  %v28039_v50 = vpop.permute.xlu0 %8520 }
 0x3a9   : >> { %v28018_v6 = vpop.permute.xlu1 %8505 }
 0x3ab   : >> { %21696 = vmatmul.mubr.msk.bf16.gmra.mrb[24].mxu1 %vm518_vm1, %v4247_v37  ;;  %22138 = vmatmul.mubr.msk.bf16.gmra.mrb[24].mxu0 %vm518_vm1, %v8095_v49 }
 0x3ac   : >> { %21699 = vmatprep.mubr.msk.bf16.mxu1 %vm518_vm1, %v4248_v44  ;;  %22141 = vmatprep.mubr.msk.bf16.mxu0 %vm518_vm1, %v8096_v3 }
 0x3ad   : >> { %v28024_v32 = vpop.permute.xlu1 %8515 }
 0x3b1   : >> { %v28036_v4 = vpop.permute.xlu1 %8525 }
 0x3b3   : >> { %21700 = vmatmul.mubr.msk.bf16.gmra.mrb[28].mxu1 %vm518_vm1, %v4249_v22  ;;  %22142 = vmatmul.mubr.msk.bf16.gmra.mrb[28].mxu0 %vm518_vm1, %v8097_v8 }
 0x3b5   : >> { %v28048_v23 = vpop.permute.xlu1 %8535 }
 0x42e   : >> { %v21639_v21 = vpop.f32.mrb[0].mxu1 }
 0x42f   : >> { %v4041_v36 = vpop.f32.mrb[1].mxu1 }
 0x430   : >> { %v21640_v60 = vpop.f32.mrb[2].mxu1 }
 0x431   : >> { %v4044_v19 = vpop.f32.mrb[3].mxu1 }
 0x436   : >> { %v21643_v27 = vpop.f32.mrb[4].mxu1 }
 0x437   : >> { %v4057_v40 = vpop.f32.mrb[5].mxu1 }
 0x438   : >> { %v21644_v11 = vpop.f32.mrb[6].mxu1 }
 0x439   : >> { %v4060_v59 = vpop.f32.mrb[7].mxu1 }
 0x43e   : >> { %v28000_v53 = vpop.f32.mrb[8].mxu1 }
 0x43f   : >> { %v28002_v29 = vpop.f32.mrb[9].mxu1 }
 0x440   : >> { %v28004_v51 = vpop.f32.mrb[10].mxu1 }
 0x441   : >> { %v28006_v38 = vpop.f32.mrb[11].mxu1 }
 0x446   : >> { %v28012_v1 = vpop.f32.mrb[12].mxu1 }
 0x447   : >> { %v28014_v63 = vpop.f32.mrb[13].mxu1 }
 0x448   : >> { %v28016_v5 = vpop.f32.mrb[14].mxu1 }
 0x449   : >> { %v28020_v16 = vpop.f32.mrb[15].mxu1 }
 0x44e   : >> { %v22115_v15 = vpop.f32.mrb[0].mxu0 }
 0x44f   : >> { %v23443_v10 = vadd.f32 %v22115_v15, %v21639_v21  ;;  %v8185_v33 = vpop.f32.mrb[1].mxu0 }
 0x450   : >> { %v23444_v41 = vadd.f32 %v8185_v33, %v4041_v36  ;;  %v22116_v45 = vpop.f32.mrb[2].mxu0 }
 0x451   : >> { %v8353_v28 = vadd.f32 %v23443_v10, %v28029_v62  ;;  %v23445_v43 = vadd.f32 %v22116_v45, %v21640_v60  ;;  %v8188_v47 = vpop.f32.mrb[3].mxu0  ;;  %v28060_v10 = vpop.permute.xlu1 %8545 }
 0x452   : >> { %v8351_v39 = vadd.f32 %v23444_v41, %v28029_v62  ;;  %v23446_v55 = vadd.f32 %v8188_v47, %v4044_v19 }
 0x453   : >> { %v8385_v12 = vmax.f32 %v8353_v28, 0.0  ;;  %v8354_v24 = vadd.f32 %v23445_v43, %v28029_v62 }
 0x454   : >> { %v8383_v30 = vmax.f32 %v8351_v39, 0.0  ;;  %v8352_v48 = vadd.f32 %v23446_v55, %v28029_v62 }
 0x455   : >> { %v8610_v61 = vmul.f32 %v8461_v2, %v8385_v12  ;;  %v8386_v54 = vmax.f32 %v8354_v24, 0.0  ;;  %v28052_v2 = vpop.permute.xlu0 %8530  ;;  %v28076_v24 = vpop.permute.xlu1 %8555 }
 0x456   : >> { %v8608_v46 = vmul.f32 %v8451_v35, %v8383_v30  ;;  %v8384_v25 = vmax.f32 %v8352_v48, 0.0  ;;  %v22119_v7 = vpop.f32.mrb[4].mxu0 }
 0x457   : >> { %18595 = vst [vmem:[%s28042_s15 + $0x7f] sm:$0xff] %v8610_v61  ;;  %v8611_v9 = vmul.f32 %v8466_v20, %v8386_v54  ;;  %v23447_v58 = vadd.f32 %v22119_v7, %v21643_v27  ;;  %v8201_v37 = vpop.f32.mrb[5].mxu0 }
 0x458   : >> { %18593 = vst [vmem:[%s28042_s15 + $0x6f] sm:$0xff] %v8608_v46  ;;  %v8609_v49 = vmul.f32 %v8456_v13, %v8384_v25  ;;  %v23448_v44 = vadd.f32 %v8201_v37, %v4057_v40  ;;  %v22120_v3 = vpop.f32.mrb[6].mxu0 }
 0x459   : >> { %18596 = vst [vmem:[%s28042_s15 + $0x87] sm:$0xff] %v8611_v9  ;;  %v8357_v0 = vadd.f32 %v23447_v58, %v28029_v62  ;;  %v23449_v56 = vadd.f32 %v22120_v3, %v21644_v11  ;;  %v8204_v18 = vpop.f32.mrb[7].mxu0  ;;  %v28065_v45 = vpop.permute.xlu0 %8540 }
 0x45a   : >> { %18594 = vst [vmem:[%s28042_s15 + $0x77] sm:$0xff] %v8609_v49  ;;  %v8355_v22 = vadd.f32 %v23448_v44, %v28029_v62  ;;  %v23450_v8 = vadd.f32 %v8204_v18, %v4060_v59  ;;  %v28094_v44 = vpop.permute.xlu1 %8565 }
 0x45b   : >> { %v8389_v35 = vmax.f32 %v8357_v0, 0.0  ;;  %v8358_v21 = vadd.f32 %v23449_v56, %v28029_v62 }
 0x45c   : >> { %v8387_v36 = vmax.f32 %v8355_v22, 0.0  ;;  %v8356_v60 = vadd.f32 %v23450_v8, %v28029_v62 }
 0x45d   : >> { %v8614_v20 = vmul.f32 %v8481_v17, %v8389_v35  ;;  %v8390_v19 = vmax.f32 %v8358_v21, 0.0  ;;  %v28079_v61 = vpop.permute.xlu0 %8550 }
 0x45e   : >> { %v8612_v13 = vmul.f32 %v27996_v42, %v8387_v36  ;;  %v8388_v27 = vmax.f32 %v8356_v60, 0.0  ;;  %v22123_v40 = vpop.f32.mrb[8].mxu0 }
 0x45f   : >> { %18599 = vst [vmem:[%s28042_s15 + $0x9f] sm:$0xff] %v8614_v20  ;;  %v8615_v11 = vmul.f32 %v27998_v14, %v8390_v19  ;;  %v23451_v59 = vadd.f32 %v22123_v40, %v28000_v53  ;;  %v8217_v15 = vpop.f32.mrb[9].mxu0 }
 0x460   : >> { %18597 = vst [vmem:[%s28042_s15 + $0x8f] sm:$0xff] %v8612_v13  ;;  %v8613_v33 = vmul.f32 %v27994_v57, %v8388_v27  ;;  %v23452_v41 = vadd.f32 %v8217_v15, %v28002_v29  ;;  %v22124_v17 = vpop.f32.mrb[10].mxu0 }
 0x461   : >> { %18600 = vst [vmem:[%s28042_s15 + $0xa7] sm:$0xff] %v8615_v11  ;;  %v8361_v42 = vadd.f32 %v23451_v59, %v28029_v62  ;;  %v23453_v28 = vadd.f32 %v22124_v17, %v28004_v51  ;;  %v8220_v14 = vpop.f32.mrb[11].mxu0  ;;  %v8561_v3 = vpop.permute.xlu0 %8560 }
 0x462   : >> { %18598 = vst [vmem:[%s28042_s15 + $0x97] sm:$0xff] %v8613_v33  ;;  %v8359_v53 = vadd.f32 %v23452_v41, %v28029_v62  ;;  %v23454_v43 = vadd.f32 %v8220_v14, %v28006_v38  ;;  %v28108_v33 = vpop.permute.xlu1 %8575 }
 0x463   : >> { %v8393_v47 = vmax.f32 %v8361_v42, 0.0  ;;  %v8362_v57 = vadd.f32 %v23453_v28, %v28029_v62 }
 0x464   : >> { %v8391_v29 = vmax.f32 %v8359_v53, 0.0  ;;  %v8360_v39 = vadd.f32 %v23454_v43, %v28029_v62 }
 0x465   : >> { %v8618_v55 = vmul.f32 %v28022_v26, %v8393_v47  ;;  %v8394_v12 = vmax.f32 %v8362_v57, 0.0  ;;  %v28111_v17 = vpop.permute.xlu0 %8570 }
 0x466   : >> { %v8616_v51 = vmul.f32 %v28010_v31, %v8391_v29  ;;  %v8392_v30 = vmax.f32 %v8360_v39, 0.0  ;;  %v22127_v48 = vpop.f32.mrb[12].mxu0 }
 0x467   : >> { %18603 = vst [vmem:[%s28042_s15 + $0xbf] sm:$0xff] %v8618_v55  ;;  %v8619_v38 = vmul.f32 %v28018_v6, %v8394_v12  ;;  %v23455_v54 = vadd.f32 %v22127_v48, %v28012_v1  ;;  %v8233_v46 = vpop.f32.mrb[13].mxu0 }
 0x468   : >> { %18601 = vst [vmem:[%s28042_s15 + $0xaf] sm:$0xff] %v8616_v51  ;;  %v8617_v25 = vmul.f32 %v28008_v34, %v8392_v30  ;;  %v23456_v26 = vadd.f32 %v8233_v46, %v28014_v63  ;;  %v22128_v7 = vpop.f32.mrb[14].mxu0 }
 0x469   : >> { %18604 = vst [vmem:[%s28042_s15 + $0xc7] sm:$0xff] %v8619_v38  ;;  %v8365_v31 = vadd.f32 %v23455_v54, %v28029_v62  ;;  %v23457_v9 = vadd.f32 %v22128_v7, %v28016_v5  ;;  %v8236_v58 = vpop.f32.mrb[15].mxu0  ;;  %v8586_v7 = vpop.permute.xlu1 %8585 }
 0x46a   : >> { %18602 = vst [vmem:[%s28042_s15 + $0xb7] sm:$0xff] %v8617_v25  ;;  %v8363_v37 = vadd.f32 %v23456_v26, %v28029_v62  ;;  %v23458_v6 = vadd.f32 %v8236_v58, %v28020_v16 }
 0x46b   : >> { %v8397_v1 = vmax.f32 %v8365_v31, 0.0  ;;  %v8366_v49 = vadd.f32 %v23457_v9, %v28029_v62  ;;  %v8581_v9 = vpop.permute.xlu0 %8580 }
 0x46c   : >> { %v8395_v34 = vmax.f32 %v8363_v37, 0.0  ;;  %v8364_v63 = vadd.f32 %v23458_v6, %v28029_v62 }
 0x46d   : >> { %v8622_v0 = vmul.f32 %v28039_v50, %v8397_v1  ;;  %v8398_v5 = vmax.f32 %v8366_v49, 0.0 }
 0x46e   : >> { %v21689_v56 = vpop.f32.mrb[16].mxu1  ;;  %v8620_v18 = vmul.f32 %v28031_v52, %v8395_v34  ;;  %v8396_v22 = vmax.f32 %v8364_v63, 0.0  ;;  %v22131_v8 = vpop.f32.mrb[16].mxu0 }
 0x46f   : >> { %v4401_v16 = vpop.f32.mrb[17].mxu1  ;;  %18607 = vst [vmem:[%s28042_s15 + $0xdf] sm:$0xff] %v8622_v0  ;;  %v8623_v35 = vmul.f32 %v28036_v4, %v8398_v5  ;;  %v23459_v21 = vadd.f32 %v22131_v8, %v21689_v56  ;;  %v8249_v36 = vpop.f32.mrb[17].mxu0 }
 0x470   : >> { %v21690_v60 = vpop.f32.mrb[18].mxu1  ;;  %18605 = vst [vmem:[%s28042_s15 + $0xcf] sm:$0xff] %v8620_v18  ;;  %v8621_v20 = vmul.f32 %v28024_v32, %v8396_v22  ;;  %v23460_v19 = vadd.f32 %v8249_v36, %v4401_v16  ;;  %v22132_v50 = vpop.f32.mrb[18].mxu0 }
 0x471   : >> { %v4404_v13 = vpop.f32.mrb[19].mxu1  ;;  %18608 = vst [vmem:[%s28042_s15 + $0xe7] sm:$0xff] %v8623_v35  ;;  %v8369_v27 = vadd.f32 %v23459_v21, %v28029_v62  ;;  %v23461_v52 = vadd.f32 %v22132_v50, %v21690_v60  ;;  %v8252_v40 = vpop.f32.mrb[19].mxu0 }
 0x472   : >> { %18606 = vst [vmem:[%s28042_s15 + $0xd7] sm:$0xff] %v8621_v20  ;;  %v8367_v11 = vadd.f32 %v23460_v19, %v28029_v62  ;;  %v23462_v59 = vadd.f32 %v8252_v40, %v4404_v13  ;;  %v8596_v19 = vpop.permute.xlu1 %8595  ;;  %v8591_v13 = vpop.permute.xlu0 %8590 }
 0x473   : >> { %v8401_v4 = vmax.f32 %v8369_v27, 0.0  ;;  %v8370_v15 = vadd.f32 %v23461_v52, %v28029_v62 }
 0x474   : >> { %v8399_v32 = vmax.f32 %v8367_v11, 0.0  ;;  %v8368_v41 = vadd.f32 %v23462_v59, %v28029_v62 }
 0x475   : >> { %v8626_v42 = vmul.f32 %v28065_v45, %v8401_v4  ;;  %v8402_v28 = vmax.f32 %v8370_v15, 0.0 }
 0x476   : >> { %v21693_v14 = vpop.f32.mrb[20].mxu1  ;;  %v8624_v53 = vmul.f32 %v28052_v2, %v8399_v32  ;;  %v8400_v43 = vmax.f32 %v8368_v41, 0.0  ;;  %v22135_v47 = vpop.f32.mrb[20].mxu0 }
 0x477   : >> { %v4417_v57 = vpop.f32.mrb[21].mxu1  ;;  %18611 = vst [vmem:[%s28042_s15 + $0xff] sm:$0xff] %v8626_v42  ;;  %v8627_v29 = vmul.f32 %v28060_v10, %v8402_v28  ;;  %v23463_v39 = vadd.f32 %v22135_v47, %v21693_v14  ;;  %v8265_v55 = vpop.f32.mrb[21].mxu0 }
 0x478   : >> { %v21694_v12 = vpop.f32.mrb[22].mxu1  ;;  %18609 = vst [vmem:[%s28042_s15 + $0xef] sm:$0xff] %v8624_v53  ;;  %v8625_v51 = vmul.f32 %v28048_v23, %v8400_v43  ;;  %v23464_v30 = vadd.f32 %v8265_v55, %v4417_v57  ;;  %v22136_v45 = vpop.f32.mrb[22].mxu0 }
 0x479   : >> { %v4420_v48 = vpop.f32.mrb[23].mxu1  ;;  %18612 = vst [vmem:[%s28042_s15 + $0x107] sm:$0xff] %v8627_v29  ;;  %v8373_v38 = vadd.f32 %v23463_v39, %v28029_v62  ;;  %v23465_v2 = vadd.f32 %v22136_v45, %v21694_v12  ;;  %v8268_v54 = vpop.f32.mrb[23].mxu0 }
 0x47a   : >> { %18610 = vst [vmem:[%s28042_s15 + $0xf7] sm:$0xff] %v8625_v51  ;;  %v8371_v46 = vadd.f32 %v23464_v30, %v28029_v62  ;;  %v23466_v25 = vadd.f32 %v8268_v54, %v4420_v48 }
 0x47b   : >> { %v8405_v10 = vmax.f32 %v8373_v38, 0.0  ;;  %v8374_v26 = vadd.f32 %v23465_v2, %v28029_v62  ;;  %v8606_v2 = vpop.permute.xlu1 %8605 }
 0x47c   : >> { %v8403_v31 = vmax.f32 %v8371_v46, 0.0  ;;  %v8372_v23 = vadd.f32 %v23466_v25, %v28029_v62 }
 0x47d   : >> { %v8630_v58 = vmul.f32 %v8561_v3, %v8405_v10  ;;  %v8406_v37 = vmax.f32 %v8374_v26, 0.0 }
 0x47e   : >> { %v21697_v6 = vpop.f32.mrb[24].mxu1  ;;  %v8628_v1 = vmul.f32 %v28079_v61, %v8403_v31  ;;  %v8404_v49 = vmax.f32 %v8372_v23, 0.0  ;;  %v22139_v34 = vpop.f32.mrb[24].mxu0 }
 0x47f   : >> { %v4433_v63 = vpop.f32.mrb[25].mxu1  ;;  %18615 = vst [vmem:[%s28042_s15 + $0x11f] sm:$0xff] %v8630_v58  ;;  %v8631_v0 = vmul.f32 %v28094_v44, %v8406_v37  ;;  %v23467_v5 = vadd.f32 %v22139_v34, %v21697_v6  ;;  %v8281_v56 = vpop.f32.mrb[25].mxu0 }
 0x480   : >> { %v21698_v18 = vpop.f32.mrb[26].mxu1  ;;  %18613 = vst [vmem:[%s28042_s15 + $0x10f] sm:$0xff] %v8628_v1  ;;  %v8629_v22 = vmul.f32 %v28076_v24, %v8404_v49  ;;  %v23468_v8 = vadd.f32 %v8281_v56, %v4433_v63  ;;  %v22140_v3 = vpop.f32.mrb[26].mxu0 }
 0x481   : >> { %v4436_v16 = vpop.f32.mrb[27].mxu1  ;;  %18616 = vst [vmem:[%s28042_s15 + $0x127] sm:$0xff] %v8631_v0  ;;  %v8377_v35 = vadd.f32 %v23467_v5, %v28029_v62  ;;  %v23469_v61 = vadd.f32 %v22140_v3, %v21698_v18  ;;  %v8284_v21 = vpop.f32.mrb[27].mxu0 }
 0x482   : >> { %18614 = vst [vmem:[%s28042_s15 + $0x117] sm:$0xff] %v8629_v22  ;;  %v8375_v36 = vadd.f32 %v23468_v8, %v28029_v62  ;;  %v23470_v60 = vadd.f32 %v8284_v21, %v4436_v16 }
 0x483   : >> { %v8409_v44 = vmax.f32 %v8377_v35, 0.0  ;;  %v8378_v20 = vadd.f32 %v23469_v61, %v28029_v62 }
 0x484   : >> { %v8407_v50 = vmax.f32 %v8375_v36, 0.0  ;;  %v8376_v24 = vadd.f32 %v23470_v60, %v28029_v62 }
 0x485   : >> { %v8634_v27 = vmul.f32 %v8581_v9, %v8409_v44  ;;  %v8410_v52 = vmax.f32 %v8378_v20, 0.0 }
 0x486   : >> { %v21701_v40 = vpop.f32.mrb[28].mxu1  ;;  %v8632_v11 = vmul.f32 %v28111_v17, %v8407_v50  ;;  %v8408_v59 = vmax.f32 %v8376_v24, 0.0  ;;  %v22143_v4 = vpop.f32.mrb[28].mxu0 }
 0x487   : >> { %v4449_v15 = vpop.f32.mrb[29].mxu1  ;;  %18619 = vst [vmem:[%s28042_s15 + $0x13f] sm:$0xff] %v8634_v27  ;;  %v8635_v32 = vmul.f32 %v8586_v7, %v8410_v52  ;;  %v23471_v41 = vadd.f32 %v22143_v4, %v21701_v40  ;;  %v8297_v42 = vpop.f32.mrb[29].mxu0 }
 0x488   : >> { %v21702_v28 = vpop.f32.mrb[30].mxu1  ;;  %18617 = vst [vmem:[%s28042_s15 + $0x12f] sm:$0xff] %v8632_v11  ;;  %v8633_v14 = vmul.f32 %v28108_v33, %v8408_v59  ;;  %v23472_v53 = vadd.f32 %v8297_v42, %v4449_v15  ;;  %v22144_v43 = vpop.f32.mrb[30].mxu0 }
 0x489   : >> { %v4452_v47 = vpop.f32.mrb[31].mxu1  ;;  %18620 = vst [vmem:[%s28042_s15 + $0x147] sm:$0xff] %v8635_v32  ;;  %v8381_v57 = vadd.f32 %v23471_v41, %v28029_v62  ;;  %v23473_v17 = vadd.f32 %v22144_v43, %v21702_v28  ;;  %v8300_v29 = vpop.f32.mrb[31].mxu0 }
 0x48a   : >> { %18618 = vst [vmem:[%s28042_s15 + $0x137] sm:$0xff] %v8633_v14  ;;  %v8379_v39 = vadd.f32 %v23472_v53, %v28029_v62  ;;  %v23474_v55 = vadd.f32 %v8300_v29, %v4452_v47  ;;  %v8601_v33 = vpop.permute.xlu0 %8600 }
 0x48b   : >> { %v8413_v12 = vmax.f32 %v8381_v57, 0.0  ;;  %v8382_v51 = vadd.f32 %v23473_v17, %v28029_v62 }
 0x48c   : >> { %v8411_v30 = vmax.f32 %v8379_v39, 0.0  ;;  %v8380_v45 = vadd.f32 %v23474_v55, %v28029_v62  ;;  %413 = sbr.rel (!%p411_p4) target bundleno = 84 (0x54), region = 197 }
 0x48d   : >> { %v8638_v48 = vmul.f32 %v8601_v33, %v8413_v12  ;;  %v8414_v38 = vmax.f32 %v8382_v51, 0.0 }
 0x48e   : >> { %v8636_v54 = vmul.f32 %v8591_v13, %v8411_v30  ;;  %v8412_v46 = vmax.f32 %v8380_v45, 0.0 }
 0x48f   : >> { %18623 = vst [vmem:[%s28042_s15 + $0x15f] sm:$0xff] %v8638_v48  ;;  %v8639_v25 = vmul.f32 %v8606_v2, %v8414_v38 }
 0x490   : >> { %18621 = vst [vmem:[%s28042_s15 + $0x14f] sm:$0xff] %v8636_v54  ;;  %v8637_v10 = vmul.f32 %v8596_v19, %v8412_v46 }
 0x491   : >> { %18624 = vst [vmem:[%s28042_s15 + $0x167] sm:$0xff] %v8639_v25 }
 0x492   : >> { %18622 = vst [vmem:[%s28042_s15 + $0x157] sm:$0xff] %v8637_v10 }
 0x493 LB: >> { %v25181_v62 = vld [vmem:[%s30531_s3 + $0x40] sm:$0xff]   ;;  %v25183_v7 = vld [vmem:[%s30531_s3 + $0x48] sm:$0xff]   ;;  %v25185_v23 = vld [vmem:[%s30531_s3 + $0x50] sm:$0xff]   ;;  %s18625_s12 = sshll.u32 %s25428_s17, 8  ;;  %s8678_s17 = sadd.s32 1, %s25428_s17   ;;  %s25428_s17 = sphi %s28153_s17, %s8678_s17  }
 0x494   : >> { %v25182_v26 = vld [vmem:[%s30531_s3 + $0x340] sm:$0xff]   ;;  %22145 = vmatprep.subr.bf16.mxu1 %v25181_v62  ;;  %v25184_v31 = vld [vmem:[%s30531_s3 + $0x348] sm:$0xff]   ;;  %v25186_v9 = vld [vmem:[%s30531_s3 + $0x350] sm:$0xff]   ;;  %s28194_s20 = scalar_lea.vmem [#allocation2], %s18625_s12  ;;  %s30453_s30 = scalar_lea.vmem %s25644_s28, %s18625_s12 }
 0x495   : >> { %22769 = vmatprep.subr.bf16.mxu0 %v25182_v26  ;;  %22146 = vmatpush3.bf16.msra.mxu1 %v25181_v62  ;;  %v25187_v58 = vld [vmem:[%s30531_s3 + $0x58] sm:$0xff]   ;;  %v25189_v6 = vld [vmem:[%s30531_s3 + $0x60] sm:$0xff]   ;;  %v25191_v49 = vld [vmem:[%s30531_s3 + $0x68] sm:$0xff]   ;;  %p8675_p5 = scmp.ge.s32.totalorder %s8678_s17, 4  }
 0x496   : >> { %22770 = vmatpush3.bf16.msra.mxu0 %v25182_v26  ;;  %22147 = vmatprep.subr.bf16.mxu1 %v25183_v7  ;;  %v25188_v37 = vld [vmem:[%s30531_s3 + $0x358] sm:$0xff]   ;;  %v25190_v1 = vld [vmem:[%s30531_s3 + $0x360] sm:$0xff]   ;;  %v25192_v5 = vld [vmem:[%s30531_s3 + $0x368] sm:$0xff]  }
 0x497   : >> { %22771 = vmatprep.subr.bf16.mxu0 %v25184_v31  ;;  %v25193_v8 = vld [vmem:[%s30531_s3 + $0x70] sm:$0xff]   ;;  %v25195_v16 = vld [vmem:[%s30531_s3 + $0x78] sm:$0xff]   ;;  %v25197_v36 = vld [vmem:[%s30531_s3] sm:$0xff]  }
 0x498   : >> { %v25194_v3 = vld [vmem:[%s30531_s3 + $0x370] sm:$0xff]   ;;  %v25196_v35 = vld [vmem:[%s30531_s3 + $0x378] sm:$0xff]   ;;  %v25198_v20 = vld [vmem:[%s30531_s3 + $0x380] sm:$0xff]  }
 0x499   : >> { %22148 = vmatpush3.bf16.msra.mxu1 %v25183_v7  ;;  %v18627_v34 = vld [vmem:[%s28194_s20 + $0x1] sm:$0xff]  ;;  %v18628_v63 = vld [vmem:[%s28194_s20 + $0x9] sm:$0xff]  ;;  %v19320_v18 = vld [vmem:[%s28194_s20 + $0x77] sm:$0xff] }
 0x49a   : >> { %22772 = vmatpush3.bf16.msra.mxu0 %v25184_v31  ;;  %22149 = vmatprep.subr.bf16.mxu1 %v25185_v23  ;;  %v19319_v0 = vld [vmem:[%s28194_s20 + $0x6f] sm:$0xff]  ;;  %v8779_v56 = vpack.c.bf16 %v18628_v63, %v18627_v34  ;;  %v18630_v21 = vld [vmem:[%s28194_s20 + $0x19] sm:$0xff]  ;;  %v19322_v44 = vld [vmem:[%s28194_s20 + $0x87] sm:$0xff] }
 0x49b   : >> { %22773 = vmatprep.subr.bf16.mxu0 %v25186_v9  ;;  %v12652_v22 = vpack.c.bf16 %v19320_v18, %v19319_v0  ;;  %v18629_v61 = vld [vmem:[%s28194_s20 + $0x11] sm:$0xff]  ;;  %v19321_v60 = vld [vmem:[%s28194_s20 + $0x7f] sm:$0xff]  ;;  %v18632_v50 = vld [vmem:[%s28194_s20 + $0x29] sm:$0xff] }
 0x49c   : >> { %22161 = vmatprep.mubr.bf16.mxu1 %v8779_v56  ;;  %v18631_v19 = vld [vmem:[%s28194_s20 + $0x21] sm:$0xff]  ;;  %v8780_v24 = vpack.c.bf16 %v18630_v21, %v18629_v61  ;;  %v19323_v13 = vld [vmem:[%s28194_s20 + $0x8f] sm:$0xff]  ;;  %v19324_v27 = vld [vmem:[%s28194_s20 + $0x97] sm:$0xff]  ;;  %v12653_v52 = vpack.c.bf16 %v19322_v44, %v19321_v60 }
 0x49d   : >> { %22150 = vmatpush3.bf16.msra.mxu1 %v25185_v23  ;;  %22785 = vmatprep.mubr.bf16.mxu0 %v12652_v22  ;;  %v25199_v40 = vld [vmem:[%s30531_s3 + $0x388] sm:$0xff]   ;;  %v8781_v11 = vpack.c.bf16 %v18632_v50, %v18631_v19  ;;  %v12654_v59 = vpack.c.bf16 %v19324_v27, %v19323_v13  ;;  %v18633_v4 = vld [vmem:[%s28194_s20 + $0x31] sm:$0xff]  ;;  %v18634_v15 = vld [vmem:[%s28194_s20 + $0x39] sm:$0xff] }
 0x49e   : >> { %22774 = vmatpush3.bf16.msra.mxu0 %v25186_v9  ;;  %22151 = vmatprep.subr.bf16.mxu1 %v25187_v58  ;;  %v25200_v32 = vld [vmem:[%s30531_s3 + $0x8] sm:$0xff]   ;;  %v19325_v41 = vld [vmem:[%s28194_s20 + $0x9f] sm:$0xff]  ;;  %v25201_v14 = vld [vmem:[%s30531_s3 + $0x390] sm:$0xff]   ;;  %v8782_v17 = vpack.c.bf16 %v18634_v15, %v18633_v4 }
 0x49f   : >> { %22775 = vmatprep.subr.bf16.mxu0 %v25188_v37  ;;  %v19326_v42 = vld [vmem:[%s28194_s20 + $0xa7] sm:$0xff]  ;;  %v19327_v43 = vld [vmem:[%s28194_s20 + $0xaf] sm:$0xff]  ;;  %v19328_v57 = vld [vmem:[%s28194_s20 + $0xb7] sm:$0xff] }
 0x4a0   : >> { %v18635_v28 = vld [vmem:[%s28194_s20 + $0x41] sm:$0xff]  ;;  %v18636_v53 = vld [vmem:[%s28194_s20 + $0x49] sm:$0xff]  ;;  %v12655_v29 = vpack.c.bf16 %v19326_v42, %v19325_v41  ;;  %v25202_v55 = vld [vmem:[%s30531_s3 + $0x398] sm:$0xff]   ;;  %v12656_v12 = vpack.c.bf16 %v19328_v57, %v19327_v43 }
 0x4a1   : >> { %22152 = vmatpush3.bf16.msra.mxu1 %v25187_v58  ;;  %v25203_v47 = vld [vmem:[%s30531_s3 + $0x10] sm:$0xff]   ;;  %v8783_v39 = vpack.c.bf16 %v18636_v53, %v18635_v28  ;;  %v18638_v33 = vld [vmem:[%s28194_s20 + $0x59] sm:$0xff]  ;;  %v19330_v48 = vld [vmem:[%s28194_s20 + $0xc7] sm:$0xff] }
 0x4a2   : >> { %22776 = vmatpush3.bf16.msra.mxu0 %v25188_v37  ;;  %22153 = vmatprep.subr.bf16.mxu1 %v25189_v6  ;;  %v18637_v51 = vld [vmem:[%s28194_s20 + $0x51] sm:$0xff]  ;;  %v19329_v45 = vld [vmem:[%s28194_s20 + $0xbf] sm:$0xff]  ;;  %v18640_v54 = vld [vmem:[%s28194_s20 + $0x69] sm:$0xff] }
 0x4a3   : >> { %22777 = vmatprep.subr.bf16.mxu0 %v25190_v1  ;;  %v25206_v30 = vld [vmem:[%s30531_s3 + $0x18] sm:$0xff]   ;;  %v25204_v38 = vld [vmem:[%s30531_s3 + $0x3a0] sm:$0xff]   ;;  %v19331_v46 = vld [vmem:[%s28194_s20 + $0xcf] sm:$0xff]  ;;  %v8784_v10 = vpack.c.bf16 %v18638_v33, %v18637_v51  ;;  %v12657_v26 = vpack.c.bf16 %v19330_v48, %v19329_v45 }
 0x4a4   : >> { %v18639_v2 = vld [vmem:[%s28194_s20 + $0x61] sm:$0xff]  ;;  %v19332_v25 = vld [vmem:[%s28194_s20 + $0xd7] sm:$0xff]  ;;  %v28285_v34 = vld [vmem:[%s28194_s20 + $0x89] sm:$0xff] }
 0x4a5   : >> { %22154 = vmatpush3.bf16.msra.mxu1 %v25189_v6  ;;  %v25209_v62 = vld [vmem:[%s30531_s3 + $0x20] sm:$0xff]   ;;  %v8785_v7 = vpack.c.bf16 %v18640_v54, %v18639_v2  ;;  %v12658_v31 = vpack.c.bf16 %v19332_v25, %v19331_v46  ;;  %v25205_v23 = vld [vmem:[%s30531_s3 + $0x3a8] sm:$0xff]   ;;  %v18641_v9 = vld [vmem:[%s28194_s20 + $0x71] sm:$0xff] }
 0x4a6   : >> { %22778 = vmatpush3.bf16.msra.mxu0 %v25190_v1  ;;  %22155 = vmatprep.subr.bf16.mxu1 %v25191_v49  ;;  %v28274_v58 = vld [vmem:[%s28194_s20 + $0x79] sm:$0xff]  ;;  %v25211_v37 = vld [vmem:[%s30531_s3 + $0x28] sm:$0xff]   ;;  %v25207_v63 = vld [vmem:[%s30531_s3 + $0x3b0] sm:$0xff]  }
 0x4a7   : >> { %22779 = vmatprep.subr.bf16.mxu0 %v25192_v5  ;;  %v19333_v6 = vld [vmem:[%s28194_s20 + $0xdf] sm:$0xff]  ;;  %v19334_v1 = vld [vmem:[%s28194_s20 + $0xe7] sm:$0xff]  ;;  %v19376_v0 = vld [vmem:[%s28194_s20 + $0x70] sm:$0xff]  ;;  %v8786_v56 = vpack.c.bf16 %v28274_v58, %v18641_v9 }
 0x4a8   : >> { %v25213_v18 = vld [vmem:[%s30531_s3 + $0x30] sm:$0xff]   ;;  %v12659_v22 = vpack.c.bf16 %v19334_v1, %v19333_v6  ;;  %v28310_v61 = vld [vmem:[%s28194_s20 + $0x99] sm:$0xff]  ;;  %v28328_v19 = vld [vmem:[%s28194_s20 + $0xa1] sm:$0xff] }
 0x4a9   : >> { %22156 = vmatpush3.bf16.msra.mxu1 %v25191_v49  ;;  %v28282_v49 = vld [vmem:[%s28194_s20 + $0x81] sm:$0xff]  ;;  %v25215_v60 = vld [vmem:[%s30531_s3 + $0x38] sm:$0xff]   ;;  %v28331_v50 = vld [vmem:[%s28194_s20 + $0xa9] sm:$0xff] }
 0x4aa   : >> { %22780 = vmatpush3.bf16.msra.mxu0 %v25192_v5  ;;  %22157 = vmatprep.subr.bf16.mxu1 %v25193_v8  ;;  %v28292_v5 = vld [vmem:[%s28194_s20 + $0x78] sm:$0xff]  ;;  %v28313_v21 = vld [vmem:[%s28194_s20 + $0x80] sm:$0xff]  ;;  %v25212_v4 = vld [vmem:[%s30531_s3 + $0x3c8] sm:$0xff]  }
 0x4ab   : >> { %22781 = vmatprep.subr.bf16.mxu0 %v25194_v3  ;;  %v25210_v44 = vld [vmem:[%s30531_s3 + $0x3c0] sm:$0xff]   ;;  %v28337_v13 = vld [vmem:[%s28194_s20 + $0x98] sm:$0xff]  ;;  %v28373_v28 = vld [vmem:[%s28194_s20 + $0xa8] sm:$0xff] }
 0x4ac   : >> { %v28365_v41 = vld [vmem:[%s28194_s20 + $0xb9] sm:$0xff]  ;;  %v28380_v53 = vld [vmem:[%s28194_s20 + $0xc9] sm:$0xff]  ;;  %v28406_v51 = vld [vmem:[%s28194_s20 + $0xd1] sm:$0xff] }
 0x4ad   : >> { %22158 = vmatpush3.bf16.msra.mxu1 %v25193_v8  ;;  %v8787_v8 = vpack.c.bf16 %v28285_v34, %v28282_v49  ;;  %v28370_v42 = vld [vmem:[%s28194_s20 + $0xa0] sm:$0xff]  ;;  %v28383_v43 = vld [vmem:[%s28194_s20 + $0xb0] sm:$0xff]  ;;  %v25220_v6 = vld [vmem:[%s30531_s3 + $0x3e8] sm:$0xff]  }
 0x4ae   : >> { %22782 = vmatpush3.bf16.msra.mxu0 %v25194_v3  ;;  %22159 = vmatprep.subr.bf16.mxu1 %v25195_v16  ;;  %v28301_v3 = vpack.c.bf16 %v28292_v5, %v19376_v0  ;;  %v25214_v57 = vld [vmem:[%s30531_s3 + $0x3d0] sm:$0xff]   ;;  %v28409_v33 = vld [vmem:[%s28194_s20 + $0xd9] sm:$0xff]  ;;  %v28423_v2 = vld [vmem:[%s28194_s20 + $0xe1] sm:$0xff] }
 0x4af   : >> { %22783 = vmatprep.subr.bf16.mxu0 %v25196_v35  ;;  %30616 = vst [vmem:[#allocation16_spill] sm:$0xff] %v28409_v33  ;;  %v28417_v48 = vld [vmem:[%s28194_s20 + $0xc0] sm:$0xff]  ;;  %v28426_v54 = vld [vmem:[%s28194_s20 + $0xe9] sm:$0xff]  ;;  %v28454_v9 = vld [vmem:[%s28194_s20 + $0xf1] sm:$0xff] }
 0x4b0   : >> { %30617 = vst [vmem:[#allocation17_spill] sm:$0xff] %v28426_v54  ;;  %v28430_v46 = vld [vmem:[%s28194_s20 + $0xd0] sm:$0xff]  ;;  %30618 = vst [vmem:[#allocation18_spill] sm:$0xff] %v28454_v9  ;;  %v28467_v0 = vld [vmem:[%s28194_s20 + $0xe8] sm:$0xff] }
 0x4b1   : >> { %22160 = vmatpush3.bf16.msra.mxu1 %v25195_v16  ;;  %v25208_v16 = vld [vmem:[%s30531_s3 + $0x3b8] sm:$0xff]   ;;  %v25219_v25 = vld [vmem:[%s30531_s3 + $0x88] sm:$0xff]  }
 0x4b2   : >> { %22784 = vmatpush3.bf16.msra.mxu0 %v25196_v35  ;;  %22193 = vmatprep.subr.bf16.mxu1 %v25197_v36  ;;  %v28307_v35 = vld [vmem:[%s28194_s20 + $0x91] sm:$0xff] }
 0x4b3   : >> { %22817 = vmatprep.subr.bf16.mxu0 %v25198_v20  ;;  %v8788_v27 = vpack.c.bf16 %v28310_v61, %v28307_v35  ;;  %v8688_v1 = vld [vmem:[%s28194_s20 + $0x38] sm:$0xff] }
 0x4b4   : >> { %22162 = vmatmul.mubr.bf16.vlgmr.msra.gmra.mrb[0].mxu1 %v8780_v24  ;;  %v28334_v24 = vld [vmem:[%s28194_s20 + $0x90] sm:$0xff]  ;;  %v8692_v15 = vld [vmem:[%s28194_s20 + $0x58] sm:$0xff] }
 0x4b5   : >> { %22786 = vmatmul.mubr.bf16.vlgmr.msra.gmra.mrb[0].mxu0 %v12653_v52  ;;  %22194 = vmatpush3.bf16.msra.mxu1 %v25197_v36  ;;  %v28316_v36 = vld [vmem:[%s28194_s20 + $0x88] sm:$0xff]  ;;  %v28344_v52 = vld [vmem:[%s30531_s3 + $0x80] sm:$0xff]  }
 0x4b6   : >> { %22818 = vmatpush3.bf16.msra.mxu0 %v25198_v20  ;;  %22165 = vmatprep.mubr.bf16.mxu1 %v8781_v11  ;;  %v8789_v11 = vpack.c.bf16 %v28331_v50, %v28328_v19  ;;  %v25223_v20 = vld [vmem:[%s30531_s3 + $0x98] sm:$0xff]  }
 0x4b7   : >> { %22819 = vmatprep.subr.bf16.mxu0 %v25199_v40  ;;  %22789 = vmatprep.mubr.bf16.mxu0 %v12654_v59  ;;  %v28354_v59 = vpack.c.bf16 %v28337_v13, %v28334_v24 }
 0x4b8   : >> { %22195 = vmatprep.subr.bf16.mxu1 %v25200_v32 }
 0x4b9   : >> { %22196 = vmatpush3.bf16.msra.mxu1 %v25200_v32  ;;  %v28362_v32 = vld [vmem:[%s28194_s20 + $0xb1] sm:$0xff] }
 0x4ba   : >> { %22820 = vmatpush3.bf16.msra.mxu0 %v25199_v40  ;;  %22197 = vmatprep.subr.bf16.mxu1 %v25203_v47  ;;  %v28348_v40 = vpack.c.bf16 %v28316_v36, %v28313_v21 }
 0x4bb   : >> { %22821 = vmatprep.subr.bf16.mxu0 %v25201_v14 }
 0x4bc   : >> { %22166 = vmatmul.mubr.bf16.gmra.mrb[4].mxu1 %v8782_v17  ;;  %v8691_v17 = vld [vmem:[%s28194_s20 + $0x50] sm:$0xff] }
 0x4bd   : >> { %22790 = vmatmul.mubr.bf16.gmra.mrb[4].mxu0 %v12655_v29  ;;  %22169 = vmatprep.mubr.bf16.mxu1 %v8783_v39  ;;  %v8790_v29 = vpack.c.bf16 %v28365_v41, %v28362_v32  ;;  %v28397_v39 = vpack.c.bf16 %v28373_v28, %v28370_v42 }
 0x4be   : >> { %22822 = vmatpush3.bf16.msra.mxu0 %v25201_v14  ;;  %22793 = vmatprep.mubr.bf16.mxu0 %v12656_v12  ;;  %v28376_v14 = vld [vmem:[%s28194_s20 + $0xc1] sm:$0xff] }
 0x4bf   : >> { %22823 = vmatprep.subr.bf16.mxu0 %v25202_v55  ;;  %22198 = vmatpush3.bf16.msra.mxu1 %v25203_v47  ;;  %v28386_v47 = vld [vmem:[%s28194_s20 + $0xb8] sm:$0xff] }
 0x4c0   : >> { %22199 = vmatprep.subr.bf16.mxu1 %v25206_v30  ;;  %v28403_v12 = vpack.c.bf16 %v28386_v47, %v28383_v43 }
 0x4c2   : >> { %22824 = vmatpush3.bf16.msra.mxu0 %v25202_v55  ;;  %v8791_v55 = vpack.c.bf16 %v28380_v53, %v28376_v14 }
 0x4c3   : >> { %22825 = vmatprep.subr.bf16.mxu0 %v25204_v38  ;;  %22200 = vmatpush3.bf16.msra.mxu1 %v25206_v30  ;;  %v25216_v30 = vld [vmem:[%s30531_s3 + $0x3d8] sm:$0xff]  }
 0x4c4   : >> { %22170 = vmatmul.mubr.bf16.gmra.mrb[8].mxu1 %v8784_v10  ;;  %22201 = vmatprep.subr.bf16.mxu1 %v25209_v62  ;;  %v28436_v10 = vld [vmem:[%s28194_s20 + $0xd8] sm:$0xff] }
 0x4c5   : >> { %22794 = vmatmul.mubr.bf16.gmra.mrb[8].mxu0 %v12657_v26  ;;  %22173 = vmatprep.mubr.bf16.mxu1 %v8785_v7  ;;  %v8792_v26 = vpack.c.bf16 %v28409_v33, %v28406_v51 }
 0x4c6   : >> { %22826 = vmatpush3.bf16.msra.mxu0 %v25204_v38  ;;  %22797 = vmatprep.mubr.bf16.mxu0 %v12658_v31  ;;  %v28420_v38 = vld [vmem:[%s28194_s20 + $0xc8] sm:$0xff]  ;;  %v8793_v31 = vpack.c.bf16 %v28426_v54, %v28423_v2  ;;  %v28558_v54 = vld [vmem:[%s28194_s20 + $0x140] sm:$0xff] }
 0x4c7   : >> { %22827 = vmatprep.subr.bf16.mxu0 %v25205_v23  ;;  %22202 = vmatpush3.bf16.msra.mxu1 %v25209_v62  ;;  %v25218_v62 = vld [vmem:[%s30531_s3 + $0x3e0] sm:$0xff]   ;;  %v28445_v7 = vpack.c.bf16 %v28420_v38, %v28417_v48 }
 0x4c8   : >> { %22203 = vmatprep.subr.bf16.mxu1 %v25211_v37 }
 0x4ca   : >> { %22828 = vmatpush3.bf16.msra.mxu0 %v25205_v23  ;;  %v28451_v23 = vpack.c.bf16 %v28436_v10, %v28430_v46 }
 0x4cb   : >> { %22829 = vmatprep.subr.bf16.mxu0 %v25207_v63  ;;  %22204 = vmatpush3.bf16.msra.mxu1 %v25211_v37  ;;  %v18658_v37 = vld [vmem:[%s28194_s20 + $0xf9] sm:$0xff] }
 0x4cc   : >> { %22174 = vmatmul.mubr.bf16.gmra.mrb[12].mxu1 %v8786_v56  ;;  %22205 = vmatprep.subr.bf16.mxu1 %v25213_v18  ;;  %v8681_v56 = vld [vmem:[%s28194_s20] sm:$0xff] }
 0x4cd   : >> { %22798 = vmatmul.mubr.bf16.gmra.mrb[12].mxu0 %v12659_v22  ;;  %22177 = vmatprep.mubr.bf16.mxu1 %v8787_v8  ;;  %v28475_v8 = vld [vmem:[%s28194_s20 + $0xf0] sm:$0xff] }
 0x4ce   : >> { %22830 = vmatpush3.bf16.msra.mxu0 %v25207_v63  ;;  %22833 = vmatprep.mubr.bf16.mxu0 %v28301_v3  ;;  %v28463_v63 = vld [vmem:[%s28194_s20 + $0xe0] sm:$0xff]  ;;  %v8687_v22 = vld [vmem:[%s28194_s20 + $0x30] sm:$0xff] }
 0x4cf   : >> { %22831 = vmatprep.subr.bf16.mxu0 %v25208_v16  ;;  %22206 = vmatpush3.bf16.msra.mxu1 %v25213_v18  ;;  %v8682_v18 = vld [vmem:[%s28194_s20 + $0x8] sm:$0xff] }
 0x4d0   : >> { %22207 = vmatprep.subr.bf16.mxu1 %v25215_v60 }
 0x4d2   : >> { %22832 = vmatpush3.bf16.msra.mxu0 %v25208_v16  ;;  %v28478_v16 = vld [vmem:[%s28194_s20 + $0xf8] sm:$0xff] }
 0x4d3   : >> { %22865 = vmatprep.subr.bf16.mxu0 %v25210_v44  ;;  %22208 = vmatpush3.bf16.msra.mxu1 %v25215_v60  ;;  %v25222_v60 = vld [vmem:[%s30531_s3 + $0x3f0] sm:$0xff]  }
 0x4d4   : >> { %22178 = vmatmul.mubr.bf16.gmra.mrb[16].mxu1 %v8788_v27  ;;  %22241 = vmatprep.subr.bf16.mxu1 %v28344_v52  ;;  %v28486_v27 = vpack.c.bf16 %v28467_v0, %v28463_v63 }
 0x4d5   : >> { %22834 = vmatmul.mubr.bf16.vlgmr.msra.gmra.mrb[0].mxu0 %v28348_v40  ;;  %22181 = vmatprep.mubr.bf16.mxu1 %v8789_v11  ;;  %v8713_v11 = vpack.c.bf16 %v8682_v18, %v8681_v56  ;;  %v28513_v56 = vld [vmem:[%s28194_s20 + $0x118] sm:$0xff]  ;;  %v28518_v18 = vld [vmem:[%s30531_s3 + $0x400] sm:$0xff]  }
 0x4d6   : >> { %22866 = vmatpush3.bf16.msra.mxu0 %v25210_v44  ;;  %22837 = vmatprep.mubr.bf16.mxu0 %v28354_v59  ;;  %v8794_v44 = vpack.c.bf16 %v18658_v37, %v28454_v9  ;;  %v8686_v37 = vld [vmem:[%s28194_s20 + $0x28] sm:$0xff]  ;;  %v8718_v9 = vpack.c.bf16 %v8692_v15, %v8691_v17  ;;  %v25229_v17 = vld [vmem:[%s30531_s3 + $0xb0] sm:$0xff]  }
 0x4d7   : >> { %22867 = vmatprep.subr.bf16.mxu0 %v25212_v4  ;;  %v28585_v15 = vld [vmem:[%s28194_s20 + $0x168] sm:$0xff] }
 0x4da   : >> { %22868 = vmatpush3.bf16.msra.mxu0 %v25212_v4  ;;  %v28490_v4 = vpack.c.bf16 %v28478_v16, %v28475_v8 }
 0x4db   : >> { %22869 = vmatprep.subr.bf16.mxu0 %v25214_v57 }
 0x4dc   : >> { %22182 = vmatmul.mubr.bf16.gmra.mrb[20].mxu1 %v8790_v29  ;;  %v25224_v29 = vld [vmem:[%s30531_s3 + $0x3f8] sm:$0xff]  }
 0x4dd   : >> { %22838 = vmatmul.mubr.bf16.gmra.mrb[4].mxu0 %v28397_v39  ;;  %22185 = vmatprep.mubr.bf16.mxu1 %v8791_v55 }
 0x4de   : >> { %22841 = vmatprep.mubr.bf16.mxu0 %v28403_v12  ;;  %22870 = vmatpush3.bf16.msra.mxu0 %v25214_v57  ;;  %v8683_v57 = vld [vmem:[%s28194_s20 + $0x10] sm:$0xff] }
 0x4df   : >> { %22871 = vmatprep.subr.bf16.mxu0 %v25216_v30 }
 0x4e2   : >> { %22872 = vmatpush3.bf16.msra.mxu0 %v25216_v30  ;;  %v8684_v30 = vld [vmem:[%s28194_s20 + $0x18] sm:$0xff] }
 0x4e3   : >> { %22873 = vmatprep.subr.bf16.mxu0 %v25218_v62 }
 0x4e4   : >> { %22186 = vmatmul.mubr.bf16.gmra.mrb[24].mxu1 %v8792_v26  ;;  %v28503_v26 = vld [vmem:[%s28194_s20 + $0x108] sm:$0xff] }
 0x4e5   : >> { %22842 = vmatmul.mubr.bf16.gmra.mrb[8].mxu0 %v28445_v7  ;;  %22189 = vmatprep.mubr.bf16.mxu1 %v8793_v31  ;;  %v8685_v31 = vld [vmem:[%s28194_s20 + $0x20] sm:$0xff] }
 0x4e6   : >> { %22845 = vmatprep.mubr.bf16.mxu0 %v28451_v23  ;;  %22874 = vmatpush3.bf16.msra.mxu0 %v25218_v62  ;;  %v28500_v62 = vld [vmem:[%s28194_s20 + $0x100] sm:$0xff]  ;;  %v8715_v55 = vpack.c.bf16 %v8686_v37, %v8685_v31  ;;  %v8690_v31 = vld [vmem:[%s28194_s20 + $0x48] sm:$0xff]  ;;  %v25221_v37 = vld [vmem:[%s30531_s3 + $0x90] sm:$0xff]  }
 0x4e7   : >> { %22875 = vmatprep.subr.bf16.mxu0 %v25220_v6 }
 0x4ea   : >> { %22876 = vmatpush3.bf16.msra.mxu0 %v25220_v6  ;;  %v28510_v6 = vld [vmem:[%s28194_s20 + $0x110] sm:$0xff] }
 0x4eb   : >> { %22877 = vmatprep.subr.bf16.mxu0 %v25222_v60 }
 0x4ec   : >> { %22190 = vmatmul.mubr.bf16.gmra.mrb[28].mxu1 %v8794_v44  ;;  %v8714_v44 = vpack.c.bf16 %v8684_v30, %v8683_v57  ;;  %v28531_v57 = vld [vmem:[%s28194_s20 + $0x120] sm:$0xff]  ;;  %v28535_v30 = vld [vmem:[%s28194_s20 + $0x128] sm:$0xff] }
 0x4ed   : >> { %22846 = vmatmul.mubr.bf16.gmra.mrb[12].mxu0 %v28486_v27  ;;  %22209 = vmatprep.mubr.bf16.mxu1 %v8713_v11  ;;  %v12969_v11 = vpack.c.bf16 %v28503_v26, %v28500_v62 }
 0x4ee   : >> { %22849 = vmatprep.mubr.bf16.mxu0 %v28490_v4  ;;  %22878 = vmatpush3.bf16.msra.mxu0 %v25222_v60  ;;  %v12970_v60 = vpack.c.bf16 %v28513_v56, %v28510_v6 }
 0x4ef   : >> { %22879 = vmatprep.subr.bf16.mxu0 %v25224_v29 }
 0x4f2   : >> { %22880 = vmatpush3.bf16.msra.mxu0 %v25224_v29  ;;  %v8689_v29 = vld [vmem:[%s28194_s20 + $0x40] sm:$0xff] }
 0x4f3   : >> { %22913 = vmatprep.subr.bf16.mxu0 %v28518_v18 }
 0x4f4   : >> { %22210 = vmatmul.mubr.bf16.vlgmr.msra.gmra.mrb[0].mxu1 %v8714_v44  ;;  %v28543_v44 = vld [vmem:[%s28194_s20 + $0x130] sm:$0xff] }
 0x4f5   : >> { %22850 = vmatmul.mubr.bf16.gmra.mrb[16].mxu0 %v12969_v11  ;;  %22242 = vmatpush3.bf16.msra.mxu1 %v28344_v52  ;;  %v28546_v11 = vld [vmem:[%s28194_s20 + $0x138] sm:$0xff]  ;;  %v8716_v52 = vpack.c.bf16 %v8688_v1, %v8687_v22  ;;  %v28561_v1 = vld [vmem:[%s28194_s20 + $0x148] sm:$0xff] }
 0x4f6   : >> { %22213 = vmatprep.mubr.bf16.mxu1 %v8715_v55  ;;  %22853 = vmatprep.mubr.bf16.mxu0 %v12970_v60  ;;  %v12971_v55 = vpack.c.bf16 %v28535_v30, %v28531_v57  ;;  %v8717_v60 = vpack.c.bf16 %v8690_v31, %v8689_v29  ;;  %v12972_v45 = vpack.c.bf16 %v28546_v11, %v28543_v44  ;;  %v8694_v22 = vld [vmem:[%s28194_s20 + $0x68] sm:$0xff]  ;;  %v28566_v29 = vld [vmem:[%s28194_s20 + $0x150] sm:$0xff]  ;;  %v28569_v31 = vld [vmem:[%s28194_s20 + $0x158] sm:$0xff] }
 0x4f7   : >> { %22243 = vmatprep.subr.bf16.mxu1 %v25219_v25  ;;  %v12974_v33 = vpack.c.bf16 %v28569_v31, %v28566_v29 }
 0x4f9   : >> { %22244 = vmatpush3.bf16.msra.mxu1 %v25219_v25  ;;  %v8693_v25 = vld [vmem:[%s28194_s20 + $0x60] sm:$0xff] }
 0x4fa   : >> { %22245 = vmatprep.subr.bf16.mxu1 %v25221_v37 }
 0x4fc   : >> { %22214 = vmatmul.mubr.bf16.gmra.mrb[4].mxu1 %v8716_v52  ;;  %v25225_v52 = vld [vmem:[%s30531_s3 + $0xa0] sm:$0xff]  }
 0x4fd   : >> { %22854 = vmatmul.mubr.bf16.gmra.mrb[20].mxu0 %v12971_v55  ;;  %22217 = vmatprep.mubr.bf16.mxu1 %v8717_v60  ;;  %v12973_v55 = vpack.c.bf16 %v28561_v1, %v28558_v54  ;;  %v8719_v60 = vpack.c.bf16 %v8694_v22, %v8693_v25  ;;  %v13268_v25 = vpack.c.bf16 %v28313_v21, %v28292_v5  ;;  %v25228_v21 = vld [vmem:[%s30531_s3 + $0x408] sm:$0xff]   ;;  %v28686_v22 = vld [vmem:[%s28194_s20 + $0x32] sm:$0xff] }
 0x4fe   : >> { %22857 = vmatprep.mubr.bf16.mxu0 %v12972_v45  ;;  %22246 = vmatpush3.bf16.msra.mxu1 %v25221_v37  ;;  %v25227_v45 = vld [vmem:[%s30531_s3 + $0xa8] sm:$0xff]   ;;  %v28582_v37 = vld [vmem:[%s28194_s20 + $0x160] sm:$0xff]  ;;  %v13269_v5 = vpack.c.bf16 %v28334_v24, %v28316_v36  ;;  %v13271_v36 = vpack.c.bf16 %v28383_v43, %v28373_v28  ;;  %v25232_v24 = vld [vmem:[%s30531_s3 + $0x418] sm:$0xff]   ;;  %v13274_v43 = vpack.c.bf16 %v28463_v63, %v28436_v10 }
 0x4ff   : >> { %22247 = vmatprep.subr.bf16.mxu1 %v25223_v20  ;;  %v25236_v28 = vld [vmem:[%s30531_s3 + $0x428] sm:$0xff]   ;;  %v13276_v10 = vpack.c.bf16 %v28500_v62, %v28478_v16  ;;  %v13278_v62 = vpack.c.bf16 %v28531_v57, %v28513_v56  ;;  %v25237_v57 = vld [vmem:[%s30531_s3 + $0xd0] sm:$0xff]  }
 0x500   : >> { %v28662_v63 = vld [vmem:[%s28194_s20 + $0x22] sm:$0xff]  ;;  %v28695_v56 = vld [vmem:[%s28194_s20 + $0x4a] sm:$0xff] }
 0x502   : >> { %22248 = vmatpush3.bf16.msra.mxu1 %v25223_v20  ;;  %v12975_v20 = vpack.c.bf16 %v28585_v15, %v28582_v37 }
 0x503   : >> { %22249 = vmatprep.subr.bf16.mxu1 %v25225_v52 }
 0x504   : >> { %22218 = vmatmul.mubr.bf16.gmra.mrb[8].mxu1 %v8718_v9  ;;  %v28602_v9 = vld [vmem:[%s30531_s3 + $0xc0] sm:$0xff]  }
 0x505   : >> { %22858 = vmatmul.mubr.bf16.gmra.mrb[24].mxu0 %v12973_v55  ;;  %22221 = vmatprep.mubr.bf16.mxu1 %v8719_v60  ;;  %v13279_v55 = vpack.c.bf16 %v28543_v44, %v28535_v30  ;;  %v28718_v30 = vld [vmem:[%s28194_s20 + $0x62] sm:$0xff]  ;;  %v28721_v44 = vld [vmem:[%s28194_s20 + $0x6a] sm:$0xff] }
 0x506   : >> { %22861 = vmatprep.mubr.bf16.mxu0 %v12974_v33  ;;  %22250 = vmatpush3.bf16.msra.mxu1 %v25225_v52  ;;  %v25231_v33 = vld [vmem:[%s30531_s3 + $0xb8] sm:$0xff]  }
 0x507   : >> { %22251 = vmatprep.subr.bf16.mxu1 %v25227_v45 }
 0x50a   : >> { %22252 = vmatpush3.bf16.msra.mxu1 %v25227_v45  ;;  %v13280_v45 = vpack.c.bf16 %v28558_v54, %v28546_v11  ;;  %v25241_v54 = vld [vmem:[%s30531_s3 + $0xe0] sm:$0xff]  }
 0x50b   : >> { %22253 = vmatprep.subr.bf16.mxu1 %v25229_v17 }
 0x50c   : >> { %22222 = vmatmul.mubr.bf16.gmra.mrb[12].mxu1 %v28301_v3  ;;  %v13270_v3 = vpack.c.bf16 %v28370_v42, %v28337_v13  ;;  %v13272_v13 = vpack.c.bf16 %v28417_v48, %v28386_v47  ;;  %v13273_v42 = vpack.c.bf16 %v28430_v46, %v28420_v38  ;;  %v18692_v47 = vld [vmem:[%s28194_s20 + $0x2] sm:$0xff]  ;;  %v13275_v48 = vpack.c.bf16 %v28475_v8, %v28467_v0  ;;  %v25240_v46 = vld [vmem:[%s30531_s3 + $0x438] sm:$0xff]   ;;  %v28665_v0 = vld [vmem:[%s28194_s20 + $0x2a] sm:$0xff] }
 0x50d   : >> { %22862 = vmatmul.mubr.bf16.gmra.mrb[28].mxu0 %v12975_v20  ;;  %22225 = vmatprep.mubr.bf16.mxu1 %v28348_v40  ;;  %v25230_v40 = vld [vmem:[%s30531_s3 + $0x410] sm:$0xff]   ;;  %v28670_v8 = vld [vmem:[%s30531_s3 + $0x440] sm:$0xff]  }
 0x50e   : >> { %22881 = vmatprep.mubr.bf16.mxu0 %v13268_v25  ;;  %22254 = vmatpush3.bf16.msra.mxu1 %v25229_v17  ;;  %v25239_v17 = vld [vmem:[%s30531_s3 + $0xd8] sm:$0xff]  }
 0x50f   : >> { %22255 = vmatprep.subr.bf16.mxu1 %v25231_v33  ;;  %v28712_v20 = vld [vmem:[%s28194_s20 + $0x52] sm:$0xff]  ;;  %v28715_v25 = vld [vmem:[%s28194_s20 + $0x5a] sm:$0xff] }
 0x510   : >> { %v9269_v11 = vpack.c.bf16 %v28715_v25, %v28712_v20 }
 0x512   : >> { %22256 = vmatpush3.bf16.msra.mxu1 %v25231_v33  ;;  %v13281_v33 = vpack.c.bf16 %v28566_v29, %v28561_v1  ;;  %v19464_v1 = vld [vmem:[%s28194_s20 + $0x170] sm:$0xff]  ;;  %v28745_v29 = vld [vmem:[%s28194_s20 + $0x82] sm:$0xff] }
 0x513   : >> { %22289 = vmatprep.subr.bf16.mxu1 %v28602_v9 }
 0x514   : >> { %22226 = vmatmul.mubr.bf16.gmra.mrb[16].mxu1 %v28354_v59  ;;  %v25234_v59 = vld [vmem:[%s30531_s3 + $0x420] sm:$0xff]  }
 0x515   : >> { %22882 = vmatmul.mubr.bf16.vlgmr.msra.gmra.mrb[0].mxu0 %v13269_v5  ;;  %22229 = vmatprep.mubr.bf16.mxu1 %v28397_v39  ;;  %v28641_v39 = vld [vmem:[%s28194_s20 + $0xa] sm:$0xff]  ;;  %v13282_v5 = vpack.c.bf16 %v28582_v37, %v28569_v31 }
 0x516   : >> { %22914 = vmatpush3.bf16.msra.mxu0 %v28518_v18  ;;  %22885 = vmatprep.mubr.bf16.mxu0 %v13270_v3  ;;  %v9264_v38 = vpack.c.bf16 %v28641_v39, %v18692_v47  ;;  %v25235_v18 = vld [vmem:[%s30531_s3 + $0xc8] sm:$0xff]   ;;  %v28738_v3 = vld [vmem:[%s28194_s20 + $0x72] sm:$0xff] }
 0x517   : >> { %22915 = vmatprep.subr.bf16.mxu0 %v25228_v21  ;;  %v28748_v31 = vld [vmem:[%s28194_s20 + $0x8a] sm:$0xff] }
 0x518   : >> { %v25245_v37 = vld [vmem:[%s30531_s3 + $0xf0] sm:$0xff]  }
 0x519   : >> { %v28774_v47 = vld [vmem:[%s28194_s20 + $0xaa] sm:$0xff] }
 0x51a   : >> { %22916 = vmatpush3.bf16.msra.mxu0 %v25228_v21  ;;  %v25243_v21 = vld [vmem:[%s30531_s3 + $0xe8] sm:$0xff]  }
 0x51b   : >> { %22917 = vmatprep.subr.bf16.mxu0 %v25230_v40 }
 0x51c   : >> { %22230 = vmatmul.mubr.bf16.gmra.mrb[20].mxu1 %v28403_v12  ;;  %v25238_v12 = vld [vmem:[%s30531_s3 + $0x430] sm:$0xff]  }
 0x51d   : >> { %22886 = vmatmul.mubr.bf16.gmra.mrb[4].mxu0 %v13271_v36  ;;  %22233 = vmatprep.mubr.bf16.mxu1 %v28445_v7  ;;  %v28656_v7 = vld [vmem:[%s28194_s20 + $0x12] sm:$0xff] }
 0x51e   : >> { %22889 = vmatprep.mubr.bf16.mxu0 %v13272_v13  ;;  %22918 = vmatpush3.bf16.msra.mxu0 %v25230_v40  ;;  %v28741_v40 = vld [vmem:[%s28194_s20 + $0x7a] sm:$0xff]  ;;  %v9272_v13 = vpack.c.bf16 %v28748_v31, %v28745_v29 }
 0x51f   : >> { %22919 = vmatprep.subr.bf16.mxu0 %v25232_v24  ;;  %v9271_v36 = vpack.c.bf16 %v28741_v40, %v28738_v3 }
 0x522   : >> { %22920 = vmatpush3.bf16.msra.mxu0 %v25232_v24  ;;  %v13283_v24 = vpack.c.bf16 %v19464_v1, %v28585_v15  ;;  %v30619_v15 = vpack.c.bf16 %v28282_v49, %v28274_v58  ;;  %v25244_v49 = vld [vmem:[%s30531_s3 + $0x448] sm:$0xff]   ;;  %v30627_v1 = vld [vmem:[#allocation18_spill] sm:$0xff] }
 0x523   : >> { %22921 = vmatprep.subr.bf16.mxu0 %v25234_v59 }
 0x524   : >> { %22234 = vmatmul.mubr.bf16.gmra.mrb[24].mxu1 %v28451_v23  ;;  %v28659_v23 = vld [vmem:[%s28194_s20 + $0x1a] sm:$0xff] }
 0x525   : >> { %22890 = vmatmul.mubr.bf16.gmra.mrb[8].mxu0 %v13273_v42  ;;  %22237 = vmatprep.mubr.bf16.mxu1 %v28486_v27  ;;  %v9265_v16 = vpack.c.bf16 %v28659_v23, %v28656_v7  ;;  %v13277_v27 = vpack.c.bf16 %v28510_v6, %v28503_v26  ;;  %v28689_v26 = vld [vmem:[%s28194_s20 + $0x3a] sm:$0xff]  ;;  %v28692_v6 = vld [vmem:[%s28194_s20 + $0x42] sm:$0xff]  ;;  %v28762_v42 = vld [vmem:[%s28194_s20 + $0x92] sm:$0xff] }
 0x526   : >> { %22893 = vmatprep.mubr.bf16.mxu0 %v13274_v43  ;;  %22922 = vmatpush3.bf16.msra.mxu0 %v25234_v59  ;;  %v9267_v52 = vpack.c.bf16 %v28689_v26, %v28686_v22  ;;  %v9268_v60 = vpack.c.bf16 %v28695_v56, %v28692_v6  ;;  %v25247_v59 = vld [vmem:[%s30531_s3 + $0xf8] sm:$0xff]   ;;  %v28771_v43 = vld [vmem:[%s28194_s20 + $0xa2] sm:$0xff] }
 0x527   : >> { %22923 = vmatprep.subr.bf16.mxu0 %v25236_v28  ;;  %v9274_v58 = vpack.c.bf16 %v28774_v47, %v28771_v43 }
 0x52a   : >> { %22924 = vmatpush3.bf16.msra.mxu0 %v25236_v28  ;;  %v28765_v28 = vld [vmem:[%s28194_s20 + $0x9a] sm:$0xff] }
 0x52b   : >> { %22925 = vmatprep.subr.bf16.mxu0 %v25238_v12 }
 0x52c   : >> { %22238 = vmatmul.mubr.bf16.gmra.mrb[28].mxu1 %v28490_v4  ;;  %v9266_v4 = vpack.c.bf16 %v28665_v0, %v28662_v63 }
 0x52d   : >> { %22894 = vmatmul.mubr.bf16.gmra.mrb[12].mxu0 %v13275_v48  ;;  %22257 = vmatprep.mubr.bf16.mxu1 %v9264_v38  ;;  %v9273_v48 = vpack.c.bf16 %v28765_v28, %v28762_v42  ;;  %v28790_v38 = vld [vmem:[%s28194_s20 + $0xb2] sm:$0xff] }
 0x52e   : >> { %22897 = vmatprep.mubr.bf16.mxu0 %v13276_v10  ;;  %22926 = vmatpush3.bf16.msra.mxu0 %v25238_v12  ;;  %v28779_v12 = vld [vmem:[%s30531_s3 + $0x100] sm:$0xff]  }
 0x52f   : >> { %22927 = vmatprep.subr.bf16.mxu0 %v25240_v46  ;;  %v28796_v10 = vld [vmem:[%s28194_s20 + $0xba] sm:$0xff] }
 0x532   : >> { %22928 = vmatpush3.bf16.msra.mxu0 %v25240_v46  ;;  %v30620_v46 = vpack.c.bf16 %v28307_v35, %v28285_v34  ;;  %v25246_v34 = vld [vmem:[%s30531_s3 + $0x450] sm:$0xff]   ;;  %v9275_v35 = vpack.c.bf16 %v28796_v10, %v28790_v38 }
 0x533   : >> { %22961 = vmatprep.subr.bf16.mxu0 %v28670_v8 }
 0x534   : >> { %22258 = vmatmul.mubr.bf16.vlgmr.msra.gmra.mrb[0].mxu1 %v9265_v16  ;;  %v30621_v16 = vpack.c.bf16 %v28328_v19, %v28310_v61  ;;  %v25248_v61 = vld [vmem:[%s30531_s3 + $0x458] sm:$0xff]   ;;  %v30622_v19 = vpack.c.bf16 %v28362_v32, %v28331_v50  ;;  %v25250_v50 = vld [vmem:[%s30531_s3 + $0x460] sm:$0xff]  }
 0x535   : >> { %22898 = vmatmul.mubr.bf16.gmra.mrb[16].mxu0 %v13277_v27  ;;  %22290 = vmatpush3.bf16.msra.mxu1 %v28602_v9  ;;  %v9270_v9 = vpack.c.bf16 %v28721_v44, %v28718_v30  ;;  %v28803_v27 = vld [vmem:[%s28194_s20 + $0xc2] sm:$0xff] }
 0x536   : >> { %22261 = vmatprep.mubr.bf16.mxu1 %v9266_v4  ;;  %22901 = vmatprep.mubr.bf16.mxu0 %v13278_v62  ;;  %v28806_v4 = vld [vmem:[%s28194_s20 + $0xca] sm:$0xff]  ;;  %v28822_v62 = vld [vmem:[%s28194_s20 + $0xd2] sm:$0xff] }
 0x537   : >> { %22291 = vmatprep.subr.bf16.mxu1 %v25235_v18 }
 0x539   : >> { %22292 = vmatpush3.bf16.msra.mxu1 %v25235_v18  ;;  %v28825_v18 = vld [vmem:[%s28194_s20 + $0xda] sm:$0xff] }
 0x53a   : >> { %22293 = vmatprep.subr.bf16.mxu1 %v25237_v57  ;;  %v9277_v32 = vpack.c.bf16 %v28825_v18, %v28822_v62 }
 0x53c   : >> { %22262 = vmatmul.mubr.bf16.gmra.mrb[4].mxu1 %v9267_v52  ;;  %v28831_v52 = vld [vmem:[%s28194_s20 + $0xe2] sm:$0xff] }
 0x53d   : >> { %22902 = vmatmul.mubr.bf16.gmra.mrb[20].mxu0 %v13279_v55  ;;  %22265 = vmatprep.mubr.bf16.mxu1 %v9268_v60  ;;  %v28834_v55 = vld [vmem:[%s28194_s20 + $0xea] sm:$0xff] }
 0x53e   : >> { %22905 = vmatprep.mubr.bf16.mxu0 %v13280_v45  ;;  %22294 = vmatpush3.bf16.msra.mxu1 %v25237_v57  ;;  %v30623_v57 = vpack.c.bf16 %v28376_v14, %v28365_v41  ;;  %v9278_v60 = vpack.c.bf16 %v28834_v55, %v28831_v52  ;;  %v25252_v41 = vld [vmem:[%s30531_s3 + $0x468] sm:$0xff]   ;;  %v30624_v14 = vpack.c.bf16 %v28406_v51, %v28380_v53  ;;  %v28850_v45 = vld [vmem:[%s28194_s20 + $0xf2] sm:$0xff] }
 0x53f   : >> { %22295 = vmatprep.subr.bf16.mxu1 %v25239_v17  ;;  %v25254_v53 = vld [vmem:[%s30531_s3 + $0x470] sm:$0xff]  }
 0x542   : >> { %22296 = vmatpush3.bf16.msra.mxu1 %v25239_v17  ;;  %v28853_v17 = vld [vmem:[%s28194_s20 + $0xfa] sm:$0xff] }
 0x543   : >> { %22297 = vmatprep.subr.bf16.mxu1 %v25241_v54  ;;  %v9279_v51 = vpack.c.bf16 %v28853_v17, %v28850_v45 }
 0x544   : >> { %22266 = vmatmul.mubr.bf16.gmra.mrb[8].mxu1 %v9269_v11 }
 0x545   : >> { %22906 = vmatmul.mubr.bf16.gmra.mrb[24].mxu0 %v13281_v33  ;;  %22269 = vmatprep.mubr.bf16.mxu1 %v9270_v9  ;;  %v19507_v33 = vld [vmem:[%s28194_s20 + $0x101] sm:$0xff]  ;;  %v9572_v9 = vpack.c.bf16 %v28656_v7, %v28641_v39 }
 0x546   : >> { %22909 = vmatprep.mubr.bf16.mxu0 %v13282_v5  ;;  %22298 = vmatpush3.bf16.msra.mxu1 %v25241_v54  ;;  %v30625_v54 = vld [vmem:[#allocation16_spill] sm:$0xff] }
 0x547   : >> { %22299 = vmatprep.subr.bf16.mxu1 %v25243_v21  ;;  %v30626_v11 = vpack.c.bf16 %v28423_v2, %v30625_v54  ;;  %v25397_v5 = vld [vmem:[%s28194_s20 + $0xf9] sm:$0xff]  ;;  %v19511_v39 = vld [vmem:[%s28194_s20 + $0x121] sm:$0xff]  ;;  %v19521_v54 = vld [vmem:[%s28194_s20 + $0x171] sm:$0xff] }
 0x548   : >> { %v13584_v2 = vpack.c.bf16 %v19507_v33, %v25397_v5  ;;  %v28880_v7 = vld [vmem:[%s30531_s3 + $0x480] sm:$0xff]  }
 0x549   : >> { %v18780_v33 = vld [vmem:[%s28194_s20 + $0x102] sm:$0xff] }
 0x54a   : >> { %22300 = vmatpush3.bf16.msra.mxu1 %v25243_v21  ;;  %v25256_v21 = vld [vmem:[%s30531_s3 + $0x478] sm:$0xff]   ;;  %v18809_v5 = vld [vmem:[%s28194_s20 + $0x23] sm:$0xff] }
 0x54b   : >> { %22301 = vmatprep.subr.bf16.mxu1 %v25245_v37 }
 0x54c   : >> { %22270 = vmatmul.mubr.bf16.gmra.mrb[12].mxu1 %v9271_v36 }
 0x54d   : >> { %22910 = vmatmul.mubr.bf16.gmra.mrb[28].mxu0 %v13283_v24  ;;  %22273 = vmatprep.mubr.bf16.mxu1 %v9272_v13  ;;  %v19508_v24 = vld [vmem:[%s28194_s20 + $0x109] sm:$0xff]  ;;  %v19509_v13 = vld [vmem:[%s28194_s20 + $0x111] sm:$0xff] }
 0x54e   : >> { %22929 = vmatprep.mubr.bf16.mxu0 %v30619_v15  ;;  %22302 = vmatpush3.bf16.msra.mxu1 %v25245_v37  ;;  %v30628_v37 = vld [vmem:[#allocation17_spill] sm:$0xff]  ;;  %v9573_v15 = vpack.c.bf16 %v28662_v63, %v28659_v23  ;;  %v19513_v23 = vld [vmem:[%s28194_s20 + $0x131] sm:$0xff]  ;;  %v19514_v63 = vld [vmem:[%s28194_s20 + $0x139] sm:$0xff] }
 0x54f   : >> { %22303 = vmatprep.subr.bf16.mxu1 %v25247_v59  ;;  %v30629_v36 = vpack.c.bf16 %v30627_v1, %v30628_v37  ;;  %v18810_v1 = vld [vmem:[%s28194_s20 + $0x2b] sm:$0xff]  ;;  %v19567_v37 = vld [vmem:[%s28194_s20 + $0x11a] sm:$0xff] }
 0x552   : >> { %22304 = vmatpush3.bf16.msra.mxu1 %v25247_v59  ;;  %v19510_v59 = vld [vmem:[%s28194_s20 + $0x119] sm:$0xff] }
 0x553   : >> { %22337 = vmatprep.subr.bf16.mxu1 %v28779_v12 }
 0x554   : >> { %22274 = vmatmul.mubr.bf16.gmra.mrb[16].mxu1 %v9273_v48  ;;  %v13585_v48 = vpack.c.bf16 %v19509_v13, %v19508_v24  ;;  %v28986_v24 = vld [vmem:[%s30531_s3 + $0x4c0] sm:$0xff]  }
 0x555   : >> { %22930 = vmatmul.mubr.bf16.vlgmr.msra.gmra.mrb[0].mxu0 %v30620_v46  ;;  %22277 = vmatprep.mubr.bf16.mxu1 %v9274_v58  ;;  %v9574_v58 = vpack.c.bf16 %v28686_v22, %v28665_v0  ;;  %v25251_v46 = vld [vmem:[%s30531_s3 + $0x108] sm:$0xff]   ;;  %v25253_v0 = vld [vmem:[%s30531_s3 + $0x110] sm:$0xff]  }
 0x556   : >> { %22962 = vmatpush3.bf16.msra.mxu0 %v28670_v8  ;;  %22933 = vmatprep.mubr.bf16.mxu0 %v30621_v16  ;;  %v9276_v8 = vpack.c.bf16 %v28806_v4, %v28803_v27  ;;  %v19512_v16 = vld [vmem:[%s28194_s20 + $0x129] sm:$0xff]  ;;  %v19515_v22 = vld [vmem:[%s28194_s20 + $0x141] sm:$0xff] }
 0x557   : >> { %22963 = vmatprep.subr.bf16.mxu0 %v25244_v49 }
 0x55a   : >> { %22964 = vmatpush3.bf16.msra.mxu0 %v25244_v49  ;;  %v13586_v49 = vpack.c.bf16 %v19511_v39, %v19510_v59 }
 0x55b   : >> { %22965 = vmatprep.subr.bf16.mxu0 %v25246_v34 }
 0x55c   : >> { %22278 = vmatmul.mubr.bf16.gmra.mrb[20].mxu1 %v9275_v35  ;;  %v13587_v35 = vpack.c.bf16 %v19513_v23, %v19512_v16  ;;  %v18814_v16 = vld [vmem:[%s28194_s20 + $0x4b] sm:$0xff]  ;;  %v18815_v23 = vld [vmem:[%s28194_s20 + $0x53] sm:$0xff] }
 0x55d   : >> { %22934 = vmatmul.mubr.bf16.gmra.mrb[4].mxu0 %v30622_v19  ;;  %22281 = vmatprep.mubr.bf16.mxu1 %v9276_v8  ;;  %v13588_v8 = vpack.c.bf16 %v19515_v22, %v19514_v63  ;;  %v19516_v19 = vld [vmem:[%s28194_s20 + $0x149] sm:$0xff] }
 0x55e   : >> { %22937 = vmatprep.mubr.bf16.mxu0 %v30623_v57  ;;  %22966 = vmatpush3.bf16.msra.mxu0 %v25246_v34  ;;  %v9575_v34 = vpack.c.bf16 %v28692_v6, %v28689_v26  ;;  %v19517_v57 = vld [vmem:[%s28194_s20 + $0x151] sm:$0xff]  ;;  %v19518_v26 = vld [vmem:[%s28194_s20 + $0x159] sm:$0xff]  ;;  %v19519_v6 = vld [vmem:[%s28194_s20 + $0x161] sm:$0xff] }
 0x55f   : >> { %22967 = vmatprep.subr.bf16.mxu0 %v25248_v61  ;;  %v25269_v63 = vld [vmem:[%s30531_s3 + $0x150] sm:$0xff]   ;;  %v19572_v22 = vld [vmem:[%s28194_s20 + $0x142] sm:$0xff] }
 0x562   : >> { %22968 = vmatpush3.bf16.msra.mxu0 %v25248_v61  ;;  %v25255_v61 = vld [vmem:[%s30531_s3 + $0x118] sm:$0xff]  }
 0x563   : >> { %22969 = vmatprep.subr.bf16.mxu0 %v25250_v50 }
 0x564   : >> { %22282 = vmatmul.mubr.bf16.gmra.mrb[24].mxu1 %v9277_v32  ;;  %v9578_v32 = vpack.c.bf16 %v28738_v3, %v28721_v44  ;;  %v9580_v3 = vpack.c.bf16 %v28762_v42, %v28748_v31  ;;  %v9582_v31 = vpack.c.bf16 %v28790_v38, %v28774_v47  ;;  %v25260_v42 = vld [vmem:[%s30531_s3 + $0x488] sm:$0xff]   ;;  %v9584_v47 = vpack.c.bf16 %v28822_v62, %v28806_v4  ;;  %v25264_v38 = vld [vmem:[%s30531_s3 + $0x498] sm:$0xff]  }
 0x565   : >> { %22938 = vmatmul.mubr.bf16.gmra.mrb[8].mxu0 %v30624_v14  ;;  %22285 = vmatprep.mubr.bf16.mxu1 %v9278_v60  ;;  %v13590_v60 = vpack.c.bf16 %v19519_v6, %v19518_v26  ;;  %v19520_v14 = vld [vmem:[%s28194_s20 + $0x169] sm:$0xff]  ;;  %v9586_v4 = vpack.c.bf16 %v28850_v45, %v28834_v55  ;;  %v25272_v45 = vld [vmem:[%s30531_s3 + $0x4b8] sm:$0xff]  }
 0x566   : >> { %22941 = vmatprep.mubr.bf16.mxu0 %v30626_v11  ;;  %22970 = vmatpush3.bf16.msra.mxu0 %v25250_v50  ;;  %v13589_v50 = vpack.c.bf16 %v19517_v57, %v19516_v19  ;;  %v13591_v44 = vpack.c.bf16 %v19521_v54, %v19520_v14  ;;  %v25263_v11 = vld [vmem:[%s30531_s3 + $0x138] sm:$0xff]   ;;  %v25268_v62 = vld [vmem:[%s30531_s3 + $0x4a8] sm:$0xff]  }
 0x567   : >> { %22971 = vmatprep.subr.bf16.mxu0 %v25252_v41  ;;  %v18816_v19 = vld [vmem:[%s28194_s20 + $0x5b] sm:$0xff]  ;;  %v18817_v57 = vld [vmem:[%s28194_s20 + $0x63] sm:$0xff]  ;;  %v19574_v6 = vld [vmem:[%s28194_s20 + $0x152] sm:$0xff] }
 0x568   : >> { %v19573_v26 = vld [vmem:[%s28194_s20 + $0x14a] sm:$0xff] }
 0x569   : >> { %v13897_v14 = vpack.c.bf16 %v19574_v6, %v19573_v26 }
 0x56a   : >> { %22972 = vmatpush3.bf16.msra.mxu0 %v25252_v41  ;;  %v25259_v41 = vld [vmem:[%s30531_s3 + $0x128] sm:$0xff]  }
 0x56b   : >> { %22973 = vmatprep.subr.bf16.mxu0 %v25254_v53 }
 0x56c   : >> { %22286 = vmatmul.mubr.bf16.gmra.mrb[28].mxu1 %v9279_v51  ;;  %v18807_v51 = vld [vmem:[%s28194_s20 + $0x13] sm:$0xff] }
 0x56d   : >> { %22942 = vmatmul.mubr.bf16.gmra.mrb[12].mxu0 %v30629_v36  ;;  %22305 = vmatprep.mubr.bf16.mxu1 %v9572_v9  ;;  %v18808_v9 = vld [vmem:[%s28194_s20 + $0x1b] sm:$0xff] }
 0x56e   : >> { %22945 = vmatprep.mubr.bf16.mxu0 %v13584_v2  ;;  %22974 = vmatpush3.bf16.msra.mxu0 %v25254_v53  ;;  %v18806_v53 = vld [vmem:[%s28194_s20 + $0xb] sm:$0xff]  ;;  %v19568_v36 = vld [vmem:[%s28194_s20 + $0x122] sm:$0xff]  ;;  %v9881_v13 = vpack.c.bf16 %v18809_v5, %v18808_v9 }
 0x56f   : >> { %22975 = vmatprep.subr.bf16.mxu0 %v25256_v21  ;;  %v9880_v55 = vpack.c.bf16 %v18807_v51, %v18806_v53  ;;  %v19565_v2 = vld [vmem:[%s28194_s20 + $0x10a] sm:$0xff]  ;;  %v19606_v53 = vld [vmem:[%s28194_s20 + $0xd8] sm:$0xff]  ;;  %v19607_v51 = vld [vmem:[%s28194_s20 + $0xe0] sm:$0xff] }
 0x570   : >> { %v29046_v9 = vld [vmem:[%s30531_s3 + $0x180] sm:$0xff]  }
 0x572   : >> { %22976 = vmatpush3.bf16.msra.mxu0 %v25256_v21  ;;  %v19566_v21 = vld [vmem:[%s28194_s20 + $0x112] sm:$0xff] }
 0x573   : >> { %23009 = vmatprep.subr.bf16.mxu0 %v28880_v7  ;;  %v13893_v59 = vpack.c.bf16 %v19566_v21, %v19565_v2  ;;  %v14193_v2 = vpack.c.bf16 %v19607_v51, %v19606_v53 }
 0x574   : >> { %22306 = vmatmul.mubr.bf16.vlgmr.msra.gmra.mrb[0].mxu1 %v9573_v15  ;;  %v25267_v15 = vld [vmem:[%s30531_s3 + $0x148] sm:$0xff]  }
 0x575   : >> { %22946 = vmatmul.mubr.bf16.gmra.mrb[16].mxu0 %v13585_v48  ;;  %22338 = vmatpush3.bf16.msra.mxu1 %v28779_v12  ;;  %v9576_v12 = vpack.c.bf16 %v28712_v20, %v28695_v56  ;;  %v25257_v56 = vld [vmem:[%s30531_s3 + $0x120] sm:$0xff]   ;;  %v9577_v20 = vpack.c.bf16 %v28718_v30, %v28715_v25  ;;  %v25261_v25 = vld [vmem:[%s30531_s3 + $0x130] sm:$0xff]   ;;  %v9579_v30 = vpack.c.bf16 %v28745_v29, %v28741_v40 }
 0x576   : >> { %22309 = vmatprep.mubr.bf16.mxu1 %v9574_v58  ;;  %22949 = vmatprep.mubr.bf16.mxu0 %v13586_v49  ;;  %v28934_v40 = vld [vmem:[%s30531_s3 + $0x140] sm:$0xff]   ;;  %v9581_v29 = vpack.c.bf16 %v28771_v43, %v28765_v28  ;;  %v25262_v28 = vld [vmem:[%s30531_s3 + $0x490] sm:$0xff]   ;;  %v9583_v43 = vpack.c.bf16 %v28803_v27, %v28796_v10  ;;  %v9585_v27 = vpack.c.bf16 %v28831_v52, %v28825_v18 }
 0x577   : >> { %22339 = vmatprep.subr.bf16.mxu1 %v25251_v46  ;;  %v25266_v10 = vld [vmem:[%s30531_s3 + $0x4a0] sm:$0xff]   ;;  %v25270_v18 = vld [vmem:[%s30531_s3 + $0x4b0] sm:$0xff]   ;;  %v9587_v52 = vpack.c.bf16 %v18780_v33, %v28853_v17 }
 0x578   : >> { %v18811_v17 = vld [vmem:[%s28194_s20 + $0x33] sm:$0xff]  ;;  %v18812_v48 = vld [vmem:[%s28194_s20 + $0x3b] sm:$0xff]  ;;  %v18813_v58 = vld [vmem:[%s28194_s20 + $0x43] sm:$0xff] }
 0x579   : >> { %22340 = vmatpush3.bf16.msra.mxu1 %v25251_v46  ;;  %v9882_v39 = vpack.c.bf16 %v18811_v17, %v18810_v1  ;;  %v19569_v49 = vld [vmem:[%s28194_s20 + $0x12a] sm:$0xff]  ;;  %v19570_v46 = vld [vmem:[%s28194_s20 + $0x132] sm:$0xff] }
 0x57a   : >> { %22341 = vmatprep.subr.bf16.mxu1 %v25253_v0  ;;  %v18825_v33 = vld [vmem:[%s28194_s20 + $0xa3] sm:$0xff] }
 0x57b   : >> { %v25276_v17 = vld [vmem:[%s30531_s3 + $0x4c8] sm:$0xff]  }
 0x57c   : >> { %22310 = vmatmul.mubr.bf16.gmra.mrb[4].mxu1 %v9575_v34  ;;  %v9883_v34 = vpack.c.bf16 %v18813_v58, %v18812_v48  ;;  %v19613_v48 = vld [vmem:[%s28194_s20 + $0x110] sm:$0xff] }
 0x57d   : >> { %22950 = vmatmul.mubr.bf16.gmra.mrb[20].mxu0 %v13587_v35  ;;  %22313 = vmatprep.mubr.bf16.mxu1 %v9576_v12  ;;  %v13895_v35 = vpack.c.bf16 %v19570_v46, %v19569_v49  ;;  %v9884_v12 = vpack.c.bf16 %v18815_v23, %v18814_v16  ;;  %v25278_v58 = vld [vmem:[%s30531_s3 + $0x4d0] sm:$0xff]   ;;  %v25280_v23 = vld [vmem:[%s30531_s3 + $0x4d8] sm:$0xff]  }
 0x57e   : >> { %22953 = vmatprep.mubr.bf16.mxu0 %v13588_v8  ;;  %22342 = vmatpush3.bf16.msra.mxu1 %v25253_v0  ;;  %v19571_v0 = vld [vmem:[%s28194_s20 + $0x13a] sm:$0xff] }
 0x57f   : >> { %22343 = vmatprep.subr.bf16.mxu1 %v25255_v61  ;;  %v13896_v8 = vpack.c.bf16 %v19572_v22, %v19571_v0  ;;  %v18833_v0 = vld [vmem:[%s28194_s20 + $0xe3] sm:$0xff]  ;;  %v19614_v22 = vld [vmem:[%s28194_s20 + $0x118] sm:$0xff] }
 0x582   : >> { %22344 = vmatpush3.bf16.msra.mxu1 %v25255_v61  ;;  %v25271_v61 = vld [vmem:[%s30531_s3 + $0x158] sm:$0xff]  }
 0x583   : >> { %22345 = vmatprep.subr.bf16.mxu1 %v25257_v56 }
 0x584   : >> { %22314 = vmatmul.mubr.bf16.gmra.mrb[8].mxu1 %v9577_v20  ;;  %v18819_v20 = vld [vmem:[%s28194_s20 + $0x73] sm:$0xff] }
 0x585   : >> { %22954 = vmatmul.mubr.bf16.gmra.mrb[24].mxu0 %v13589_v50  ;;  %22317 = vmatprep.mubr.bf16.mxu1 %v9578_v32  ;;  %v19575_v50 = vld [vmem:[%s28194_s20 + $0x15a] sm:$0xff]  ;;  %v19576_v32 = vld [vmem:[%s28194_s20 + $0x162] sm:$0xff] }
 0x586   : >> { %22957 = vmatprep.mubr.bf16.mxu0 %v13590_v60  ;;  %22346 = vmatpush3.bf16.msra.mxu1 %v25257_v56  ;;  %v18818_v56 = vld [vmem:[%s28194_s20 + $0x6b] sm:$0xff]  ;;  %v25273_v60 = vld [vmem:[%s30531_s3 + $0x160] sm:$0xff]  }
 0x587   : >> { %22347 = vmatprep.subr.bf16.mxu1 %v25259_v41  ;;  %v9886_v54 = vpack.c.bf16 %v18819_v20, %v18818_v56  ;;  %v25284_v20 = vld [vmem:[%s30531_s3 + $0x4e8] sm:$0xff]  }
 0x58a   : >> { %22348 = vmatpush3.bf16.msra.mxu1 %v25259_v41  ;;  %v9885_v41 = vpack.c.bf16 %v18817_v57, %v18816_v19  ;;  %v25282_v19 = vld [vmem:[%s30531_s3 + $0x4e0] sm:$0xff]  }
 0x58b   : >> { %22349 = vmatprep.subr.bf16.mxu1 %v25261_v25 }
 0x58c   : >> { %22318 = vmatmul.mubr.bf16.gmra.mrb[12].mxu1 %v9579_v30 }
 0x58d   : >> { %22958 = vmatmul.mubr.bf16.gmra.mrb[28].mxu0 %v13591_v44  ;;  %22321 = vmatprep.mubr.bf16.mxu1 %v9580_v3  ;;  %v18820_v44 = vld [vmem:[%s28194_s20 + $0x7b] sm:$0xff] }
 0x58e   : >> { %22977 = vmatprep.mubr.bf16.mxu0 %v9579_v30  ;;  %22350 = vmatpush3.bf16.msra.mxu1 %v25261_v25  ;;  %v13898_v25 = vpack.c.bf16 %v19576_v32, %v19575_v50  ;;  %v25275_v30 = vld [vmem:[%s30531_s3 + $0x168] sm:$0xff]   ;;  %v18836_v50 = vld [vmem:[%s28194_s20 + $0xfb] sm:$0xff] }
 0x58f   : >> { %22351 = vmatprep.subr.bf16.mxu1 %v25263_v11  ;;  %v18837_v32 = vld [vmem:[%s28194_s20 + $0x103] sm:$0xff] }
 0x592   : >> { %22352 = vmatpush3.bf16.msra.mxu1 %v25263_v11  ;;  %v19577_v11 = vld [vmem:[%s28194_s20 + $0x16a] sm:$0xff] }
 0x593   : >> { %22385 = vmatprep.subr.bf16.mxu1 %v28934_v40 }
 0x594   : >> { %22322 = vmatmul.mubr.bf16.gmra.mrb[16].mxu1 %v9581_v29 }
 0x595   : >> { %22978 = vmatmul.mubr.bf16.vlgmr.msra.gmra.mrb[0].mxu0 %v9580_v3  ;;  %22325 = vmatprep.mubr.bf16.mxu1 %v9582_v31  ;;  %v18821_v3 = vld [vmem:[%s28194_s20 + $0x83] sm:$0xff] }
 0x596   : >> { %23010 = vmatpush3.bf16.msra.mxu0 %v28880_v7  ;;  %22981 = vmatprep.mubr.bf16.mxu0 %v9581_v29  ;;  %v13894_v7 = vpack.c.bf16 %v19568_v36, %v19567_v37  ;;  %v18822_v29 = vld [vmem:[%s28194_s20 + $0x8b] sm:$0xff]  ;;  %v18828_v37 = vld [vmem:[%s28194_s20 + $0xbb] sm:$0xff]  ;;  %v18829_v36 = vld [vmem:[%s28194_s20 + $0xc3] sm:$0xff] }
 0x597   : >> { %23011 = vmatprep.subr.bf16.mxu0 %v25260_v42  ;;  %v9891_v49 = vpack.c.bf16 %v18829_v36, %v18828_v37  ;;  %v19628_v37 = vld [vmem:[%s28194_s20 + $0x188] sm:$0xff] }
 0x59a   : >> { %23012 = vmatpush3.bf16.msra.mxu0 %v25260_v42  ;;  %v19604_v42 = vld [vmem:[%s28194_s20 + $0xc8] sm:$0xff] }
 0x59b   : >> { %23013 = vmatprep.subr.bf16.mxu0 %v25262_v28 }
 0x59c   : >> { %22326 = vmatmul.mubr.bf16.gmra.mrb[20].mxu1 %v9583_v43 }
 0x59d   : >> { %22982 = vmatmul.mubr.bf16.gmra.mrb[4].mxu0 %v9582_v31  ;;  %22329 = vmatprep.mubr.bf16.mxu1 %v9584_v47  ;;  %v18823_v31 = vld [vmem:[%s28194_s20 + $0x93] sm:$0xff] }
 0x59e   : >> { %22985 = vmatprep.mubr.bf16.mxu0 %v9583_v43  ;;  %23014 = vmatpush3.bf16.msra.mxu0 %v25262_v28  ;;  %v19605_v28 = vld [vmem:[%s28194_s20 + $0xd0] sm:$0xff] }
 0x59f   : >> { %23015 = vmatprep.subr.bf16.mxu0 %v25264_v38  ;;  %v25277_v43 = vld [vmem:[%s30531_s3 + $0x170] sm:$0xff]  }
 0x5a2   : >> { %23016 = vmatpush3.bf16.msra.mxu0 %v25264_v38 }
 0x5a3   : >> { %23017 = vmatprep.subr.bf16.mxu0 %v25266_v10 }
 0x5a4   : >> { %22330 = vmatmul.mubr.bf16.gmra.mrb[24].mxu1 %v9585_v27 }
 0x5a5   : >> { %22986 = vmatmul.mubr.bf16.gmra.mrb[8].mxu0 %v9584_v47  ;;  %22333 = vmatprep.mubr.bf16.mxu1 %v9586_v4  ;;  %v9887_v47 = vpack.c.bf16 %v18821_v3, %v18820_v44  ;;  %v25286_v44 = vld [vmem:[%s30531_s3 + $0x4f0] sm:$0xff]   ;;  %v9895_v3 = vpack.c.bf16 %v18837_v32, %v18836_v50 }
 0x5a6   : >> { %22989 = vmatprep.mubr.bf16.mxu0 %v9585_v27  ;;  %23018 = vmatpush3.bf16.msra.mxu0 %v25266_v10  ;;  %v9888_v10 = vpack.c.bf16 %v18823_v31, %v18822_v29  ;;  %v14192_v27 = vpack.c.bf16 %v19605_v28, %v19604_v42  ;;  %v25288_v31 = vld [vmem:[%s30531_s3 + $0x4f8] sm:$0xff]   ;;  %v29102_v28 = vld [vmem:[%s28194_s20 + $0x24] sm:$0xff]  ;;  %v25293_v50 = vld [vmem:[%s30531_s3 + $0x1b0] sm:$0xff]  }
 0x5a7   : >> { %23019 = vmatprep.subr.bf16.mxu0 %v25268_v62  ;;  %v29099_v42 = vld [vmem:[%s28194_s20 + $0x1c] sm:$0xff] }
 0x5aa   : >> { %23020 = vmatpush3.bf16.msra.mxu0 %v25268_v62  ;;  %v18824_v62 = vld [vmem:[%s28194_s20 + $0x9b] sm:$0xff] }
 0x5ab   : >> { %23021 = vmatprep.subr.bf16.mxu0 %v25270_v18  ;;  %v9889_v5 = vpack.c.bf16 %v18825_v33, %v18824_v62  ;;  %v29117_v62 = vld [vmem:[%s30531_s3 + $0x500] sm:$0xff]   ;;  %v10189_v33 = vpack.c.bf16 %v29102_v28, %v29099_v42 }
 0x5ac   : >> { %22334 = vmatmul.mubr.bf16.gmra.mrb[28].mxu1 %v9587_v52 }
 0x5ad   : >> { %22990 = vmatmul.mubr.bf16.gmra.mrb[12].mxu0 %v9586_v4  ;;  %22353 = vmatprep.mubr.bf16.mxu1 %v9880_v55  ;;  %v25279_v4 = vld [vmem:[%s30531_s3 + $0x178] sm:$0xff]   ;;  %v19608_v55 = vld [vmem:[%s28194_s20 + $0xe8] sm:$0xff] }
 0x5ae   : >> { %22993 = vmatprep.mubr.bf16.mxu0 %v9587_v52  ;;  %23022 = vmatpush3.bf16.msra.mxu0 %v25270_v18  ;;  %v18826_v18 = vld [vmem:[%s28194_s20 + $0xab] sm:$0xff]  ;;  %v18827_v52 = vld [vmem:[%s28194_s20 + $0xb3] sm:$0xff] }
 0x5af   : >> { %23023 = vmatprep.subr.bf16.mxu0 %v25272_v45  ;;  %v9890_v21 = vpack.c.bf16 %v18827_v52, %v18826_v18  ;;  %v25283_v52 = vld [vmem:[%s30531_s3 + $0x188] sm:$0xff]  }
 0x5b2   : >> { %23024 = vmatpush3.bf16.msra.mxu0 %v25272_v45  ;;  %v19609_v45 = vld [vmem:[%s28194_s20 + $0xf0] sm:$0xff] }
 0x5b3   : >> { %23057 = vmatprep.subr.bf16.mxu0 %v28986_v24  ;;  %v14194_v1 = vpack.c.bf16 %v19609_v45, %v19608_v55  ;;  %v29128_v55 = vld [vmem:[%s28194_s20 + $0x3c] sm:$0xff]  ;;  %v29132_v45 = vld [vmem:[%s28194_s20 + $0x44] sm:$0xff] }
 0x5b4   : >> { %22354 = vmatmul.mubr.bf16.vlgmr.msra.gmra.mrb[0].mxu1 %v9881_v13  ;;  %v19610_v13 = vld [vmem:[%s28194_s20 + $0xf8] sm:$0xff]  ;;  %v10191_v36 = vpack.c.bf16 %v29132_v45, %v29128_v55 }
 0x5b5   : >> { %22994 = vmatmul.mubr.bf16.gmra.mrb[16].mxu0 %v13893_v59  ;;  %22386 = vmatpush3.bf16.msra.mxu1 %v28934_v40  ;;  %v19578_v40 = vld [vmem:[%s28194_s20 + $0x172] sm:$0xff]  ;;  %v19611_v59 = vld [vmem:[%s28194_s20 + $0x100] sm:$0xff] }
 0x5b6   : >> { %22357 = vmatprep.mubr.bf16.mxu1 %v9882_v39  ;;  %22997 = vmatprep.mubr.bf16.mxu0 %v13894_v7  ;;  %v13899_v38 = vpack.c.bf16 %v19578_v40, %v19577_v11  ;;  %v18830_v39 = vld [vmem:[%s28194_s20 + $0xcb] sm:$0xff]  ;;  %v18831_v7 = vld [vmem:[%s28194_s20 + $0xd3] sm:$0xff]  ;;  %v14195_v46 = vpack.c.bf16 %v19611_v59, %v19610_v13 }
 0x5b7   : >> { %22387 = vmatprep.subr.bf16.mxu1 %v25267_v15 }
 0x5b9   : >> { %22388 = vmatpush3.bf16.msra.mxu1 %v25267_v15  ;;  %v19612_v15 = vld [vmem:[%s28194_s20 + $0x108] sm:$0xff] }
 0x5ba   : >> { %22389 = vmatprep.subr.bf16.mxu1 %v25269_v63  ;;  %v14196_v16 = vpack.c.bf16 %v19613_v48, %v19612_v15  ;;  %v29155_v15 = vld [vmem:[%s28194_s20 + $0x5c] sm:$0xff]  ;;  %v29158_v48 = vld [vmem:[%s28194_s20 + $0x64] sm:$0xff] }
 0x5bc   : >> { %22358 = vmatmul.mubr.bf16.gmra.mrb[4].mxu1 %v9883_v34  ;;  %v19615_v34 = vld [vmem:[%s28194_s20 + $0x120] sm:$0xff] }
 0x5bd   : >> { %22998 = vmatmul.mubr.bf16.gmra.mrb[20].mxu0 %v13895_v35  ;;  %22361 = vmatprep.mubr.bf16.mxu1 %v9884_v12  ;;  %v18834_v35 = vld [vmem:[%s28194_s20 + $0xeb] sm:$0xff]  ;;  %v18835_v12 = vld [vmem:[%s28194_s20 + $0xf3] sm:$0xff]  ;;  %v14197_v26 = vpack.c.bf16 %v19615_v34, %v19614_v22 }
 0x5be   : >> { %23001 = vmatprep.mubr.bf16.mxu0 %v13896_v8  ;;  %22390 = vmatpush3.bf16.msra.mxu1 %v25269_v63  ;;  %v18832_v63 = vld [vmem:[%s28194_s20 + $0xdb] sm:$0xff]  ;;  %v19616_v8 = vld [vmem:[%s28194_s20 + $0x128] sm:$0xff]  ;;  %v9894_v6 = vpack.c.bf16 %v18835_v12, %v18834_v35 }
 0x5bf   : >> { %22391 = vmatprep.subr.bf16.mxu1 %v25271_v61  ;;  %v9893_v57 = vpack.c.bf16 %v18833_v0, %v18832_v63  ;;  %v25289_v63 = vld [vmem:[%s30531_s3 + $0x1a0] sm:$0xff]   ;;  %v10193_v0 = vpack.c.bf16 %v29158_v48, %v29155_v15  ;;  %v25291_v12 = vld [vmem:[%s30531_s3 + $0x1a8] sm:$0xff]  }
 0x5c2   : >> { %22392 = vmatpush3.bf16.msra.mxu1 %v25271_v61  ;;  %v19617_v61 = vld [vmem:[%s28194_s20 + $0x130] sm:$0xff] }
 0x5c3   : >> { %22393 = vmatprep.subr.bf16.mxu1 %v25273_v60  ;;  %v14198_v56 = vpack.c.bf16 %v19617_v61, %v19616_v8  ;;  %v29181_v8 = vld [vmem:[%s28194_s20 + $0x7c] sm:$0xff]  ;;  %v29184_v61 = vld [vmem:[%s28194_s20 + $0x84] sm:$0xff] }
 0x5c4   : >> { %22362 = vmatmul.mubr.bf16.gmra.mrb[8].mxu1 %v9885_v41  ;;  %v19619_v41 = vld [vmem:[%s28194_s20 + $0x140] sm:$0xff]  ;;  %v10195_v32 = vpack.c.bf16 %v29184_v61, %v29181_v8 }
 0x5c5   : >> { %23002 = vmatmul.mubr.bf16.gmra.mrb[24].mxu0 %v13897_v14  ;;  %22365 = vmatprep.mubr.bf16.mxu1 %v9886_v54  ;;  %v18863_v14 = vld [vmem:[%s28194_s20 + $0xc] sm:$0xff]  ;;  %v29087_v54 = vld [vmem:[%s28194_s20 + $0x14] sm:$0xff] }
 0x5c6   : >> { %23005 = vmatprep.mubr.bf16.mxu0 %v13898_v25  ;;  %22394 = vmatpush3.bf16.msra.mxu1 %v25273_v60  ;;  %v19618_v60 = vld [vmem:[%s28194_s20 + $0x138] sm:$0xff]  ;;  %v19620_v25 = vld [vmem:[%s28194_s20 + $0x148] sm:$0xff]  ;;  %v10188_v40 = vpack.c.bf16 %v29087_v54, %v18863_v14 }
 0x5c7   : >> { %22395 = vmatprep.subr.bf16.mxu1 %v25275_v30  ;;  %v14199_v11 = vpack.c.bf16 %v19619_v41, %v19618_v60 }
 0x5ca   : >> { %22396 = vmatpush3.bf16.msra.mxu1 %v25275_v30  ;;  %v19621_v30 = vld [vmem:[%s28194_s20 + $0x150] sm:$0xff] }
 0x5cb   : >> { %22397 = vmatprep.subr.bf16.mxu1 %v25277_v43  ;;  %v14200_v29 = vpack.c.bf16 %v19621_v30, %v19620_v25  ;;  %v25295_v25 = vld [vmem:[%s30531_s3 + $0x1b8] sm:$0xff]  }
 0x5cc   : >> { %22366 = vmatmul.mubr.bf16.gmra.mrb[12].mxu1 %v9887_v47  ;;  %v19623_v47 = vld [vmem:[%s28194_s20 + $0x160] sm:$0xff] }
 0x5cd   : >> { %23006 = vmatmul.mubr.bf16.gmra.mrb[28].mxu0 %v13899_v38  ;;  %22369 = vmatprep.mubr.bf16.mxu1 %v9888_v10  ;;  %v29107_v38 = vld [vmem:[%s28194_s20 + $0x2c] sm:$0xff]  ;;  %v29110_v10 = vld [vmem:[%s28194_s20 + $0x34] sm:$0xff]  ;;  %v29207_v30 = vld [vmem:[%s28194_s20 + $0x9c] sm:$0xff] }
 0x5ce   : >> { %23025 = vmatprep.mubr.bf16.mxu0 %v14192_v27  ;;  %22398 = vmatpush3.bf16.msra.mxu1 %v25277_v43  ;;  %v19622_v43 = vld [vmem:[%s28194_s20 + $0x158] sm:$0xff]  ;;  %v19624_v27 = vld [vmem:[%s28194_s20 + $0x168] sm:$0xff]  ;;  %v10190_v51 = vpack.c.bf16 %v29110_v10, %v29107_v38 }
 0x5cf   : >> { %22399 = vmatprep.subr.bf16.mxu1 %v25279_v4  ;;  %v14201_v53 = vpack.c.bf16 %v19623_v47, %v19622_v43  ;;  %v19666_v43 = vld [vmem:[%s28194_s20 + $0xf1] sm:$0xff]  ;;  %v29225_v47 = vld [vmem:[%s30531_s3 + $0x1c0] sm:$0xff]  }
 0x5d2   : >> { %22400 = vmatpush3.bf16.msra.mxu1 %v25279_v4  ;;  %v19625_v4 = vld [vmem:[%s28194_s20 + $0x170] sm:$0xff] }
 0x5d3   : >> { %22433 = vmatprep.subr.bf16.mxu1 %v29046_v9  ;;  %v14202_v18 = vpack.c.bf16 %v19625_v4, %v19624_v27 }
 0x5d4   : >> { %22370 = vmatmul.mubr.bf16.gmra.mrb[16].mxu1 %v9889_v5  ;;  %v19626_v5 = vld [vmem:[%s28194_s20 + $0x178] sm:$0xff] }
 0x5d5   : >> { %23026 = vmatmul.mubr.bf16.vlgmr.msra.gmra.mrb[0].mxu0 %v14193_v2  ;;  %22373 = vmatprep.mubr.bf16.mxu1 %v9890_v21  ;;  %v19627_v2 = vld [vmem:[%s28194_s20 + $0x180] sm:$0xff]  ;;  %v29137_v21 = vld [vmem:[%s28194_s20 + $0x4c] sm:$0xff] }
 0x5d6   : >> { %23058 = vmatpush3.bf16.msra.mxu0 %v28986_v24  ;;  %23029 = vmatprep.mubr.bf16.mxu0 %v14194_v1  ;;  %v9892_v24 = vpack.c.bf16 %v18831_v7, %v18830_v39  ;;  %v29140_v1 = vld [vmem:[%s28194_s20 + $0x54] sm:$0xff]  ;;  %v14203_v13 = vpack.c.bf16 %v19627_v2, %v19626_v5  ;;  %v19668_v2 = vld [vmem:[%s28194_s20 + $0x101] sm:$0xff] }
 0x5d7   : >> { %23059 = vmatprep.subr.bf16.mxu0 %v25276_v17  ;;  %v10192_v59 = vpack.c.bf16 %v29140_v1, %v29137_v21  ;;  %v25287_v7 = vld [vmem:[%s30531_s3 + $0x198] sm:$0xff]  }
 0x5d8   : >> { %v19667_v5 = vld [vmem:[%s28194_s20 + $0xf9] sm:$0xff] }
 0x5da   : >> { %23060 = vmatpush3.bf16.msra.mxu0 %v25276_v17  ;;  %v25285_v17 = vld [vmem:[%s30531_s3 + $0x190] sm:$0xff]  }
 0x5db   : >> { %23061 = vmatprep.subr.bf16.mxu0 %v25278_v58 }
 0x5dc   : >> { %22374 = vmatmul.mubr.bf16.gmra.mrb[20].mxu1 %v9891_v49  ;;  %v19631_v49 = vld [vmem:[%s28194_s20 + $0x1a0] sm:$0xff] }
 0x5dd   : >> { %23030 = vmatmul.mubr.bf16.gmra.mrb[4].mxu0 %v14195_v46  ;;  %22377 = vmatprep.mubr.bf16.mxu1 %v9892_v24  ;;  %v29163_v46 = vld [vmem:[%s28194_s20 + $0x6c] sm:$0xff]  ;;  %v29166_v24 = vld [vmem:[%s28194_s20 + $0x74] sm:$0xff] }
 0x5de   : >> { %23033 = vmatprep.mubr.bf16.mxu0 %v14196_v16  ;;  %23062 = vmatpush3.bf16.msra.mxu0 %v25278_v58  ;;  %v19630_v58 = vld [vmem:[%s28194_s20 + $0x198] sm:$0xff]  ;;  %v19632_v16 = vld [vmem:[%s28194_s20 + $0x1a8] sm:$0xff]  ;;  %v10194_v34 = vpack.c.bf16 %v29166_v24, %v29163_v46 }
 0x5df   : >> { %23063 = vmatprep.subr.bf16.mxu0 %v25280_v23  ;;  %v14205_v22 = vpack.c.bf16 %v19631_v49, %v19630_v58  ;;  %v25296_v58 = vld [vmem:[%s30531_s3 + $0x518] sm:$0xff]  }
 0x5e0   : >> { %v29263_v49 = vld [vmem:[%s28194_s20 + $0xdc] sm:$0xff] }
 0x5e2   : >> { %23064 = vmatpush3.bf16.msra.mxu0 %v25280_v23  ;;  %v19633_v23 = vld [vmem:[%s28194_s20 + $0x1b0] sm:$0xff] }
 0x5e3   : >> { %23065 = vmatprep.subr.bf16.mxu0 %v25282_v19  ;;  %v14206_v35 = vpack.c.bf16 %v19633_v23, %v19632_v16  ;;  %v29266_v16 = vld [vmem:[%s28194_s20 + $0xe4] sm:$0xff]  ;;  %v19671_v23 = vld [vmem:[%s28194_s20 + $0x119] sm:$0xff] }
 0x5e4   : >> { %22378 = vmatmul.mubr.bf16.gmra.mrb[24].mxu1 %v9893_v57  ;;  %v19635_v57 = vld [vmem:[%s28194_s20 + $0x1c0] sm:$0xff] }
 0x5e5   : >> { %23034 = vmatmul.mubr.bf16.gmra.mrb[8].mxu0 %v14197_v26  ;;  %22381 = vmatprep.mubr.bf16.mxu1 %v9894_v6  ;;  %v29189_v26 = vld [vmem:[%s28194_s20 + $0x8c] sm:$0xff]  ;;  %v29192_v6 = vld [vmem:[%s28194_s20 + $0x94] sm:$0xff] }
 0x5e6   : >> { %23037 = vmatprep.mubr.bf16.mxu0 %v14198_v56  ;;  %23066 = vmatpush3.bf16.msra.mxu0 %v25282_v19  ;;  %v19634_v19 = vld [vmem:[%s28194_s20 + $0x1b8] sm:$0xff]  ;;  %v19661_v56 = vld [vmem:[%s28194_s20 + $0xc9] sm:$0xff]  ;;  %v10196_v41 = vpack.c.bf16 %v29192_v6, %v29189_v26 }
 0x5e7   : >> { %23067 = vmatprep.subr.bf16.mxu0 %v25284_v20  ;;  %v14207_v60 = vpack.c.bf16 %v19635_v57, %v19634_v19  ;;  %v10201_v19 = vpack.c.bf16 %v29266_v16, %v29263_v49 }
 0x5ea   : >> { %23068 = vmatpush3.bf16.msra.mxu0 %v25284_v20  ;;  %v19662_v20 = vld [vmem:[%s28194_s20 + $0xd1] sm:$0xff] }
 0x5eb   : >> { %23069 = vmatprep.subr.bf16.mxu0 %v25286_v44  ;;  %v14500_v14 = vpack.c.bf16 %v19662_v20, %v19661_v56 }
 0x5ec   : >> { %22382 = vmatmul.mubr.bf16.gmra.mrb[28].mxu1 %v9895_v3  ;;  %v19663_v3 = vld [vmem:[%s28194_s20 + $0xd9] sm:$0xff] }
 0x5ed   : >> { %23038 = vmatmul.mubr.bf16.gmra.mrb[12].mxu0 %v14199_v11  ;;  %22401 = vmatprep.mubr.bf16.mxu1 %v10188_v40  ;;  %v19664_v11 = vld [vmem:[%s28194_s20 + $0xe1] sm:$0xff]  ;;  %v29215_v40 = vld [vmem:[%s28194_s20 + $0xac] sm:$0xff] }
 0x5ee   : >> { %23041 = vmatprep.mubr.bf16.mxu0 %v14200_v29  ;;  %23070 = vmatpush3.bf16.msra.mxu0 %v25286_v44  ;;  %v29210_v44 = vld [vmem:[%s28194_s20 + $0xa4] sm:$0xff]  ;;  %v29218_v29 = vld [vmem:[%s28194_s20 + $0xb4] sm:$0xff]  ;;  %v14501_v4 = vpack.c.bf16 %v19664_v11, %v19663_v3 }
 0x5ef   : >> { %23071 = vmatprep.subr.bf16.mxu0 %v25288_v31  ;;  %v10197_v27 = vpack.c.bf16 %v29210_v44, %v29207_v30  ;;  %v19678_v3 = vld [vmem:[%s28194_s20 + $0x151] sm:$0xff] }
 0x5f0   : >> { %v25302_v11 = vld [vmem:[%s30531_s3 + $0x530] sm:$0xff]  }
 0x5f2   : >> { %23072 = vmatpush3.bf16.msra.mxu0 %v25288_v31  ;;  %v19665_v31 = vld [vmem:[%s28194_s20 + $0xe9] sm:$0xff] }
 0x5f3   : >> { %23105 = vmatprep.subr.bf16.mxu0 %v29117_v62 }
 0x5f4   : >> { %22402 = vmatmul.mubr.bf16.vlgmr.msra.gmra.mrb[0].mxu1 %v10189_v33  ;;  %v10198_v33 = vpack.c.bf16 %v29218_v29, %v29215_v40 }
 0x5f5   : >> { %23042 = vmatmul.mubr.bf16.gmra.mrb[16].mxu0 %v14201_v53  ;;  %22434 = vmatpush3.bf16.msra.mxu1 %v29046_v9  ;;  %v19629_v9 = vld [vmem:[%s28194_s20 + $0x190] sm:$0xff]  ;;  %v14502_v53 = vpack.c.bf16 %v19666_v43, %v19665_v31 }
 0x5f6   : >> { %22405 = vmatprep.mubr.bf16.mxu1 %v10190_v51  ;;  %23045 = vmatprep.mubr.bf16.mxu0 %v14202_v18  ;;  %v14204_v39 = vpack.c.bf16 %v19629_v9, %v19628_v37  ;;  %v25292_v51 = vld [vmem:[%s30531_s3 + $0x508] sm:$0xff]   ;;  %v29236_v18 = vld [vmem:[%s28194_s20 + $0xbc] sm:$0xff]  ;;  %v29248_v37 = vld [vmem:[%s28194_s20 + $0xd4] sm:$0xff] }
 0x5f7   : >> { %22435 = vmatprep.subr.bf16.mxu1 %v25283_v52  ;;  %v19669_v9 = vld [vmem:[%s28194_s20 + $0x109] sm:$0xff] }
 0x5f9   : >> { %22436 = vmatpush3.bf16.msra.mxu1 %v25283_v52  ;;  %v29239_v52 = vld [vmem:[%s28194_s20 + $0xc4] sm:$0xff] }
 0x5fa   : >> { %22437 = vmatprep.subr.bf16.mxu1 %v25285_v17 }
 0x5fc   : >> { %22406 = vmatmul.mubr.bf16.gmra.mrb[4].mxu1 %v10191_v36  ;;  %v19670_v36 = vld [vmem:[%s28194_s20 + $0x111] sm:$0xff] }
 0x5fd   : >> { %23046 = vmatmul.mubr.bf16.gmra.mrb[20].mxu0 %v14203_v13  ;;  %22409 = vmatprep.mubr.bf16.mxu1 %v10192_v59  ;;  %v25294_v13 = vld [vmem:[%s30531_s3 + $0x510] sm:$0xff]   ;;  %v14503_v59 = vpack.c.bf16 %v19668_v2, %v19667_v5 }
 0x5fe   : >> { %23049 = vmatprep.mubr.bf16.mxu0 %v14204_v39  ;;  %22438 = vmatpush3.bf16.msra.mxu1 %v25285_v17  ;;  %v29245_v17 = vld [vmem:[%s28194_s20 + $0xcc] sm:$0xff] }
 0x5ff   : >> { %22439 = vmatprep.subr.bf16.mxu1 %v25287_v7  ;;  %v10200_v39 = vpack.c.bf16 %v29248_v37, %v29245_v17  ;;  %v19681_v5 = vld [vmem:[%s28194_s20 + $0x169] sm:$0xff]  ;;  %v19682_v2 = vld [vmem:[%s28194_s20 + $0x171] sm:$0xff] }
 0x602   : >> { %22440 = vmatpush3.bf16.msra.mxu1 %v25287_v7  ;;  %v14504_v7 = vpack.c.bf16 %v19670_v36, %v19669_v9  ;;  %v10498_v36 = vpack.c.bf16 %v29128_v55, %v29110_v10  ;;  %v25301_v10 = vld [vmem:[%s30531_s3 + $0x1d0] sm:$0xff]  }
 0x603   : >> { %22441 = vmatprep.subr.bf16.mxu1 %v25289_v63  ;;  %v19685_v55 = vld [vmem:[%s28194_s20 + $0x189] sm:$0xff] }
 0x604   : >> { %22410 = vmatmul.mubr.bf16.gmra.mrb[8].mxu1 %v10193_v0  ;;  %v29271_v0 = vld [vmem:[%s28194_s20 + $0xec] sm:$0xff] }
 0x605   : >> { %23050 = vmatmul.mubr.bf16.gmra.mrb[24].mxu0 %v14205_v22  ;;  %22413 = vmatprep.mubr.bf16.mxu1 %v10194_v34  ;;  %v29274_v22 = vld [vmem:[%s28194_s20 + $0xf4] sm:$0xff]  ;;  %v19673_v34 = vld [vmem:[%s28194_s20 + $0x129] sm:$0xff] }
 0x606   : >> { %23053 = vmatprep.mubr.bf16.mxu0 %v14206_v35  ;;  %22442 = vmatpush3.bf16.msra.mxu1 %v25289_v63  ;;  %v19672_v63 = vld [vmem:[%s28194_s20 + $0x121] sm:$0xff]  ;;  %v19674_v35 = vld [vmem:[%s28194_s20 + $0x131] sm:$0xff]  ;;  %v10202_v56 = vpack.c.bf16 %v29274_v22, %v29271_v0 }
 0x607   : >> { %22443 = vmatprep.subr.bf16.mxu1 %v25291_v12  ;;  %v14505_v57 = vpack.c.bf16 %v19672_v63, %v19671_v23  ;;  %v14506_v20 = vpack.c.bf16 %v19674_v35, %v19673_v34  ;;  %v25303_v23 = vld [vmem:[%s30531_s3 + $0x1d8] sm:$0xff]   ;;  %v19688_v34 = vld [vmem:[%s28194_s20 + $0x1a1] sm:$0xff] }
 0x608   : >> { %v19687_v63 = vld [vmem:[%s28194_s20 + $0x199] sm:$0xff] }
 0x609   : >> { %v14513_v35 = vpack.c.bf16 %v19688_v34, %v19687_v63  ;;  %v18980_v63 = vld [vmem:[%s28194_s20 + $0x2d] sm:$0xff]  ;;  %v29482_v34 = vld [vmem:[%s28194_s20 + $0x15a] sm:$0xff] }
 0x60a   : >> { %22444 = vmatpush3.bf16.msra.mxu1 %v25291_v12  ;;  %v25298_v12 = vld [vmem:[%s30531_s3 + $0x520] sm:$0xff]  }
 0x60b   : >> { %22445 = vmatprep.subr.bf16.mxu1 %v25293_v50 }
 0x60c   : >> { %22414 = vmatmul.mubr.bf16.gmra.mrb[12].mxu1 %v10195_v32  ;;  %v29289_v32 = vld [vmem:[%s28194_s20 + $0xfc] sm:$0xff] }
 0x60d   : >> { %23054 = vmatmul.mubr.bf16.gmra.mrb[28].mxu0 %v14207_v60  ;;  %22417 = vmatprep.mubr.bf16.mxu1 %v10196_v41  ;;  %v29292_v60 = vld [vmem:[%s28194_s20 + $0x104] sm:$0xff]  ;;  %v19675_v41 = vld [vmem:[%s28194_s20 + $0x139] sm:$0xff] }
 0x60e   : >> { %23073 = vmatprep.mubr.bf16.mxu0 %v14500_v14  ;;  %22446 = vmatpush3.bf16.msra.mxu1 %v25293_v50  ;;  %v25300_v50 = vld [vmem:[%s30531_s3 + $0x528] sm:$0xff]   ;;  %v10203_v31 = vpack.c.bf16 %v29292_v60, %v29289_v32 }
 0x60f   : >> { %22447 = vmatprep.subr.bf16.mxu1 %v25295_v25  ;;  %v19676_v14 = vld [vmem:[%s28194_s20 + $0x141] sm:$0xff] }
 0x610   : >> { %v14507_v43 = vpack.c.bf16 %v19676_v14, %v19675_v41  ;;  %v10504_v41 = vpack.c.bf16 %v29207_v30, %v29192_v6  ;;  %v29386_v6 = vld [vmem:[%s30531_s3 + $0x200] sm:$0xff]   ;;  %v10505_v30 = vpack.c.bf16 %v29215_v40, %v29210_v44 }
 0x611   : >> { %v29402_v44 = vld [vmem:[%s28194_s20 + $0xfa] sm:$0xff]  ;;  %v29405_v40 = vld [vmem:[%s28194_s20 + $0x102] sm:$0xff] }
 0x612   : >> { %22448 = vmatpush3.bf16.msra.mxu1 %v25295_v25  ;;  %v19677_v25 = vld [vmem:[%s28194_s20 + $0x149] sm:$0xff] }
 0x613   : >> { %22481 = vmatprep.subr.bf16.mxu1 %v29225_v47 }
 0x614   : >> { %22418 = vmatmul.mubr.bf16.gmra.mrb[16].mxu1 %v10197_v27  ;;  %v10496_v27 = vpack.c.bf16 %v29099_v42, %v29087_v54  ;;  %v29315_v54 = vld [vmem:[%s30531_s3 + $0x540] sm:$0xff]   ;;  %v10497_v42 = vpack.c.bf16 %v29107_v38, %v29102_v28 }
 0x615   : >> { %23074 = vmatmul.mubr.bf16.vlgmr.msra.gmra.mrb[0].mxu0 %v14501_v4  ;;  %22421 = vmatprep.mubr.bf16.mxu1 %v10198_v33  ;;  %v14508_v4 = vpack.c.bf16 %v19678_v3, %v19677_v25  ;;  %v25304_v33 = vld [vmem:[%s30531_s3 + $0x538] sm:$0xff]   ;;  %v19684_v38 = vld [vmem:[%s28194_s20 + $0x181] sm:$0xff] }
 0x616   : >> { %23106 = vmatpush3.bf16.msra.mxu0 %v29117_v62  ;;  %23077 = vmatprep.mubr.bf16.mxu0 %v14502_v53  ;;  %v10199_v62 = vpack.c.bf16 %v29239_v52, %v29236_v18  ;;  %v19679_v53 = vld [vmem:[%s28194_s20 + $0x159] sm:$0xff] }
 0x617   : >> { %23107 = vmatprep.subr.bf16.mxu0 %v25292_v51  ;;  %v19683_v28 = vld [vmem:[%s28194_s20 + $0x179] sm:$0xff] }
 0x618   : >> { %v25311_v25 = vld [vmem:[%s30531_s3 + $0x1f8] sm:$0xff]  }
 0x619   : >> { %v29372_v3 = vld [vmem:[%s28194_s20 + $0xda] sm:$0xff] }
 0x61a   : >> { %23108 = vmatpush3.bf16.msra.mxu0 %v25292_v51  ;;  %v19680_v51 = vld [vmem:[%s28194_s20 + $0x161] sm:$0xff] }
 0x61b   : >> { %23109 = vmatprep.subr.bf16.mxu0 %v25294_v13  ;;  %v14509_v9 = vpack.c.bf16 %v19680_v51, %v19679_v53  ;;  %v10507_v53 = vpack.c.bf16 %v29245_v17, %v29239_v52  ;;  %v14811_v51 = vpack.c.bf16 %v29405_v40, %v29402_v44  ;;  %v29428_v52 = vld [vmem:[%s28194_s20 + $0x11a] sm:$0xff]  ;;  %v29431_v17 = vld [vmem:[%s28194_s20 + $0x122] sm:$0xff] }
 0x61c   : >> { %22422 = vmatmul.mubr.bf16.gmra.mrb[20].mxu1 %v10199_v62  ;;  %v25299_v62 = vld [vmem:[%s30531_s3 + $0x1c8] sm:$0xff]  }
 0x61d   : >> { %23078 = vmatmul.mubr.bf16.gmra.mrb[4].mxu0 %v14503_v59  ;;  %22425 = vmatprep.mubr.bf16.mxu1 %v10200_v39  ;;  %v19686_v59 = vld [vmem:[%s28194_s20 + $0x191] sm:$0xff]  ;;  %v10499_v39 = vpack.c.bf16 %v29137_v21, %v29132_v45  ;;  %v19689_v45 = vld [vmem:[%s28194_s20 + $0x1a9] sm:$0xff] }
 0x61e   : >> { %23081 = vmatprep.mubr.bf16.mxu0 %v14504_v7  ;;  %23110 = vmatpush3.bf16.msra.mxu0 %v25294_v13  ;;  %v14510_v13 = vpack.c.bf16 %v19682_v2, %v19681_v5  ;;  %v14511_v7 = vpack.c.bf16 %v19684_v38, %v19683_v28  ;;  %v19690_v21 = vld [vmem:[%s28194_s20 + $0x1b1] sm:$0xff]  ;;  %v10508_v5 = vpack.c.bf16 %v29263_v49, %v29248_v37  ;;  %v25316_v28 = vld [vmem:[%s30531_s3 + $0x568] sm:$0xff]  }
 0x61f   : >> { %23111 = vmatprep.subr.bf16.mxu0 %v25296_v58  ;;  %v29434_v37 = vld [vmem:[%s28194_s20 + $0x12a] sm:$0xff]  ;;  %v29437_v49 = vld [vmem:[%s28194_s20 + $0x132] sm:$0xff]  ;;  %v29458_v38 = vld [vmem:[%s28194_s20 + $0x142] sm:$0xff] }
 0x622   : >> { %23112 = vmatpush3.bf16.msra.mxu0 %v25296_v58  ;;  %v14512_v58 = vpack.c.bf16 %v19686_v59, %v19685_v55  ;;  %v29466_v55 = vld [vmem:[%s28194_s20 + $0x152] sm:$0xff] }
 0x623   : >> { %23113 = vmatprep.subr.bf16.mxu0 %v25298_v12  ;;  %v25318_v59 = vld [vmem:[%s30531_s3 + $0x570] sm:$0xff]  }
 0x624   : >> { %22426 = vmatmul.mubr.bf16.gmra.mrb[24].mxu1 %v10201_v19  ;;  %v14514_v19 = vpack.c.bf16 %v19690_v21, %v19689_v45  ;;  %v29485_v45 = vld [vmem:[%s28194_s20 + $0x162] sm:$0xff]  ;;  %v18981_v21 = vld [vmem:[%s28194_s20 + $0x35] sm:$0xff] }
 0x625   : >> { %23082 = vmatmul.mubr.bf16.gmra.mrb[8].mxu0 %v14505_v57  ;;  %22429 = vmatprep.mubr.bf16.mxu1 %v10202_v56  ;;  %v25307_v57 = vld [vmem:[%s30531_s3 + $0x1e8] sm:$0xff]   ;;  %v19691_v56 = vld [vmem:[%s28194_s20 + $0x1b9] sm:$0xff] }
 0x626   : >> { %23085 = vmatprep.mubr.bf16.mxu0 %v14506_v20  ;;  %23114 = vmatpush3.bf16.msra.mxu0 %v25298_v12  ;;  %v10502_v12 = vpack.c.bf16 %v29181_v8, %v29166_v24  ;;  %v19692_v20 = vld [vmem:[%s28194_s20 + $0x1c1] sm:$0xff]  ;;  %v25309_v24 = vld [vmem:[%s30531_s3 + $0x1f0] sm:$0xff]   ;;  %v10503_v8 = vpack.c.bf16 %v29189_v26, %v29184_v61 }
 0x627   : >> { %23115 = vmatprep.subr.bf16.mxu0 %v25300_v50  ;;  %v29378_v61 = vld [vmem:[%s28194_s20 + $0xea] sm:$0xff]  ;;  %v29381_v26 = vld [vmem:[%s28194_s20 + $0xf2] sm:$0xff] }
 0x62a   : >> { %23116 = vmatpush3.bf16.msra.mxu0 %v25300_v50  ;;  %v14515_v50 = vpack.c.bf16 %v19692_v20, %v19691_v56 }
 0x62b   : >> { %23117 = vmatprep.subr.bf16.mxu0 %v25302_v11 }
 0x62c   : >> { %22430 = vmatmul.mubr.bf16.gmra.mrb[28].mxu1 %v10203_v31 }
 0x62d   : >> { %23086 = vmatmul.mubr.bf16.gmra.mrb[12].mxu0 %v14507_v43  ;;  %22449 = vmatprep.mubr.bf16.mxu1 %v10496_v27  ;;  %v10506_v43 = vpack.c.bf16 %v29236_v18, %v29218_v29  ;;  %v14810_v27 = vpack.c.bf16 %v29381_v26, %v29378_v61  ;;  %v29408_v29 = vld [vmem:[%s28194_s20 + $0x10a] sm:$0xff]  ;;  %v29411_v18 = vld [vmem:[%s28194_s20 + $0x112] sm:$0xff] }
 0x62e   : >> { %23089 = vmatprep.mubr.bf16.mxu0 %v14508_v4  ;;  %23118 = vmatpush3.bf16.msra.mxu0 %v25302_v11  ;;  %v29375_v11 = vld [vmem:[%s28194_s20 + $0xe2] sm:$0xff]  ;;  %v14812_v2 = vpack.c.bf16 %v29411_v18, %v29408_v29 }
 0x62f   : >> { %23119 = vmatprep.subr.bf16.mxu0 %v25304_v33  ;;  %v14809_v31 = vpack.c.bf16 %v29375_v11, %v29372_v3  ;;  %v25308_v4 = vld [vmem:[%s30531_s3 + $0x548] sm:$0xff]  }
 0x632   : >> { %23120 = vmatpush3.bf16.msra.mxu0 %v25304_v33  ;;  %v25310_v33 = vld [vmem:[%s30531_s3 + $0x550] sm:$0xff]  }
 0x633   : >> { %23153 = vmatprep.subr.bf16.mxu0 %v29315_v54 }
 0x634   : >> { %22450 = vmatmul.mubr.bf16.vlgmr.msra.gmra.mrb[0].mxu1 %v10497_v42  ;;  %v25314_v42 = vld [vmem:[%s30531_s3 + $0x560] sm:$0xff]  }
 0x635   : >> { %23090 = vmatmul.mubr.bf16.gmra.mrb[16].mxu0 %v14509_v9  ;;  %22482 = vmatpush3.bf16.msra.mxu1 %v29225_v47  ;;  %v10500_v47 = vpack.c.bf16 %v29155_v15, %v29140_v1  ;;  %v25305_v1 = vld [vmem:[%s30531_s3 + $0x1e0] sm:$0xff]   ;;  %v10501_v15 = vpack.c.bf16 %v29163_v46, %v29158_v48  ;;  %v19718_v48 = vld [vmem:[%s28194_s20 + $0xca] sm:$0xff]  ;;  %v29358_v46 = vld [vmem:[%s28194_s20 + $0xd2] sm:$0xff]  ;;  %v10509_v9 = vpack.c.bf16 %v29271_v0, %v29266_v16 }
 0x636   : >> { %22453 = vmatprep.mubr.bf16.mxu1 %v10498_v36  ;;  %23093 = vmatprep.mubr.bf16.mxu0 %v14510_v13  ;;  %v14808_v14 = vpack.c.bf16 %v29358_v46, %v19718_v48  ;;  %v14813_v36 = vpack.c.bf16 %v29431_v17, %v29428_v52  ;;  %v10510_v13 = vpack.c.bf16 %v29289_v32, %v29274_v22  ;;  %v18951_v16 = vld [vmem:[%s28194_s20 + $0x10c] sm:$0xff]  ;;  %v29455_v0 = vld [vmem:[%s28194_s20 + $0x13a] sm:$0xff] }
 0x637   : >> { %22483 = vmatprep.subr.bf16.mxu1 %v25299_v62  ;;  %v18977_v22 = vld [vmem:[%s28194_s20 + $0x15] sm:$0xff]  ;;  %v18978_v32 = vld [vmem:[%s28194_s20 + $0x1d] sm:$0xff]  ;;  %v25315_v48 = vld [vmem:[%s30531_s3 + $0x208] sm:$0xff]  }
 0x639   : >> { %22484 = vmatpush3.bf16.msra.mxu1 %v25299_v62  ;;  %v14814_v62 = vpack.c.bf16 %v29437_v49, %v29434_v37 }
 0x63a   : >> { %22485 = vmatprep.subr.bf16.mxu1 %v25301_v10 }
 0x63c   : >> { %22454 = vmatmul.mubr.bf16.gmra.mrb[4].mxu1 %v10499_v39  ;;  %v10511_v39 = vpack.c.bf16 %v18951_v16, %v29292_v60  ;;  %v18979_v60 = vld [vmem:[%s28194_s20 + $0x25] sm:$0xff] }
 0x63d   : >> { %23094 = vmatmul.mubr.bf16.gmra.mrb[20].mxu0 %v14511_v7  ;;  %22457 = vmatprep.mubr.bf16.mxu1 %v10500_v47  ;;  %v14815_v7 = vpack.c.bf16 %v29458_v38, %v29455_v0  ;;  %v10804_v47 = vpack.c.bf16 %v18978_v32, %v18977_v22 }
 0x63e   : >> { %23097 = vmatprep.mubr.bf16.mxu0 %v14512_v58  ;;  %22486 = vmatpush3.bf16.msra.mxu1 %v25301_v10  ;;  %v29463_v10 = vld [vmem:[%s28194_s20 + $0x14a] sm:$0xff] }
 0x63f   : >> { %22487 = vmatprep.subr.bf16.mxu1 %v25303_v23  ;;  %v14816_v58 = vpack.c.bf16 %v29466_v55, %v29463_v10 }
 0x642   : >> { %22488 = vmatpush3.bf16.msra.mxu1 %v25303_v23  ;;  %v25320_v23 = vld [vmem:[%s30531_s3 + $0x578] sm:$0xff]  }
 0x643   : >> { %22489 = vmatprep.subr.bf16.mxu1 %v25305_v1 }
 0x644   : >> { %22458 = vmatmul.mubr.bf16.gmra.mrb[8].mxu1 %v10501_v15  ;;  %v29490_v15 = vld [vmem:[%s28194_s20 + $0x16a] sm:$0xff] }
 0x645   : >> { %23098 = vmatmul.mubr.bf16.gmra.mrb[24].mxu0 %v14513_v35  ;;  %22461 = vmatprep.mubr.bf16.mxu1 %v10502_v12  ;;  %v29493_v35 = vld [vmem:[%s28194_s20 + $0x172] sm:$0xff]  ;;  %v29498_v12 = vld [vmem:[%s30531_s3 + $0x580] sm:$0xff]  }
 0x646   : >> { %23101 = vmatprep.mubr.bf16.mxu0 %v14514_v19  ;;  %22490 = vmatpush3.bf16.msra.mxu1 %v25305_v1  ;;  %v18982_v1 = vld [vmem:[%s28194_s20 + $0x3d] sm:$0xff]  ;;  %v10805_v19 = vpack.c.bf16 %v18980_v63, %v18979_v60  ;;  %v14818_v20 = vpack.c.bf16 %v29493_v35, %v29490_v15  ;;  %v25325_v63 = vld [vmem:[%s30531_s3 + $0x230] sm:$0xff]  }
 0x647   : >> { %22491 = vmatprep.subr.bf16.mxu1 %v25307_v57  ;;  %v10806_v56 = vpack.c.bf16 %v18982_v1, %v18981_v21  ;;  %v18994_v60 = vld [vmem:[%s28194_s20 + $0x9d] sm:$0xff] }
 0x64a   : >> { %22492 = vmatpush3.bf16.msra.mxu1 %v25307_v57  ;;  %v14817_v57 = vpack.c.bf16 %v29485_v45, %v29482_v34 }
 0x64b   : >> { %22493 = vmatprep.subr.bf16.mxu1 %v25309_v24 }
 0x64c   : >> { %22462 = vmatmul.mubr.bf16.gmra.mrb[12].mxu1 %v10503_v8  ;;  %v18984_v8 = vld [vmem:[%s28194_s20 + $0x4d] sm:$0xff] }
 0x64d   : >> { %23102 = vmatmul.mubr.bf16.gmra.mrb[28].mxu0 %v14515_v50  ;;  %22465 = vmatprep.mubr.bf16.mxu1 %v10504_v41  ;;  %v29512_v50 = vld [vmem:[%s28194_s20 + $0x17a] sm:$0xff]  ;;  %v29515_v41 = vld [vmem:[%s28194_s20 + $0x182] sm:$0xff] }
 0x64e   : >> { %23121 = vmatprep.mubr.bf16.mxu0 %v14808_v14  ;;  %22494 = vmatpush3.bf16.msra.mxu1 %v25309_v24  ;;  %v18983_v24 = vld [vmem:[%s28194_s20 + $0x45] sm:$0xff]  ;;  %v18985_v14 = vld [vmem:[%s28194_s20 + $0x55] sm:$0xff] }
 0x64f   : >> { %22495 = vmatprep.subr.bf16.mxu1 %v25311_v25 }
 0x652   : >> { %22496 = vmatpush3.bf16.msra.mxu1 %v25311_v25  ;;  %v18986_v25 = vld [vmem:[%s28194_s20 + $0x5d] sm:$0xff] }
 0x653   : >> { %22529 = vmatprep.subr.bf16.mxu1 %v29386_v6 }
 0x654   : >> { %22466 = vmatmul.mubr.bf16.gmra.mrb[16].mxu1 %v10505_v30  ;;  %v25317_v30 = vld [vmem:[%s30531_s3 + $0x210] sm:$0xff]  }
 0x655   : >> { %23122 = vmatmul.mubr.bf16.vlgmr.msra.gmra.mrb[0].mxu0 %v14809_v31  ;;  %22469 = vmatprep.mubr.bf16.mxu1 %v10506_v43  ;;  %v29523_v31 = vld [vmem:[%s28194_s20 + $0x18a] sm:$0xff]  ;;  %v10807_v43 = vpack.c.bf16 %v18984_v8, %v18983_v24  ;;  %v18997_v24 = vld [vmem:[%s28194_s20 + $0xb5] sm:$0xff]  ;;  %v18998_v8 = vld [vmem:[%s28194_s20 + $0xbd] sm:$0xff] }
 0x656   : >> { %23154 = vmatpush3.bf16.msra.mxu0 %v29315_v54  ;;  %23125 = vmatprep.mubr.bf16.mxu0 %v14810_v27  ;;  %v25312_v54 = vld [vmem:[%s30531_s3 + $0x558] sm:$0xff]   ;;  %v14819_v27 = vpack.c.bf16 %v29515_v41, %v29512_v50 }
 0x657   : >> { %23155 = vmatprep.subr.bf16.mxu0 %v25308_v4 }
 0x65a   : >> { %23156 = vmatpush3.bf16.msra.mxu0 %v25308_v4  ;;  %v10808_v4 = vpack.c.bf16 %v18986_v25, %v18985_v14  ;;  %v15117_v14 = vpack.c.bf16 %v29378_v61, %v29375_v11  ;;  %v10814_v25 = vpack.c.bf16 %v18998_v8, %v18997_v24  ;;  %v19001_v11 = vld [vmem:[%s28194_s20 + $0xd5] sm:$0xff]  ;;  %v19002_v61 = vld [vmem:[%s28194_s20 + $0xdd] sm:$0xff] }
 0x65b   : >> { %23157 = vmatprep.subr.bf16.mxu0 %v25310_v33 }
 0x65c   : >> { %22470 = vmatmul.mubr.bf16.gmra.mrb[20].mxu1 %v10507_v53  ;;  %v25319_v53 = vld [vmem:[%s30531_s3 + $0x218] sm:$0xff]  }
 0x65d   : >> { %23126 = vmatmul.mubr.bf16.gmra.mrb[4].mxu0 %v14811_v51  ;;  %22473 = vmatprep.mubr.bf16.mxu1 %v10508_v5  ;;  %v18987_v51 = vld [vmem:[%s28194_s20 + $0x65] sm:$0xff]  ;;  %v18988_v5 = vld [vmem:[%s28194_s20 + $0x6d] sm:$0xff] }
 0x65e   : >> { %23129 = vmatprep.mubr.bf16.mxu0 %v14812_v2  ;;  %23158 = vmatpush3.bf16.msra.mxu0 %v25310_v33  ;;  %v29538_v2 = vld [vmem:[%s28194_s20 + $0x19a] sm:$0xff] }
 0x65f   : >> { %23159 = vmatprep.subr.bf16.mxu0 %v25312_v54 }
 0x662   : >> { %23160 = vmatpush3.bf16.msra.mxu0 %v25312_v54  ;;  %v29541_v54 = vld [vmem:[%s28194_s20 + $0x1a2] sm:$0xff] }
 0x663   : >> { %23161 = vmatprep.subr.bf16.mxu0 %v25314_v42  ;;  %v14821_v16 = vpack.c.bf16 %v29541_v54, %v29538_v2 }
 0x664   : >> { %22474 = vmatmul.mubr.bf16.gmra.mrb[24].mxu1 %v10509_v9  ;;  %v18990_v9 = vld [vmem:[%s28194_s20 + $0x7d] sm:$0xff] }
 0x665   : >> { %23130 = vmatmul.mubr.bf16.gmra.mrb[8].mxu0 %v14813_v36  ;;  %22477 = vmatprep.mubr.bf16.mxu1 %v10510_v13  ;;  %v29546_v36 = vld [vmem:[%s28194_s20 + $0x1aa] sm:$0xff]  ;;  %v29549_v13 = vld [vmem:[%s28194_s20 + $0x1b2] sm:$0xff] }
 0x666   : >> { %23133 = vmatprep.mubr.bf16.mxu0 %v14814_v62  ;;  %23162 = vmatpush3.bf16.msra.mxu0 %v25314_v42  ;;  %v18989_v42 = vld [vmem:[%s28194_s20 + $0x75] sm:$0xff]  ;;  %v25321_v62 = vld [vmem:[%s30531_s3 + $0x220] sm:$0xff]   ;;  %v14822_v32 = vpack.c.bf16 %v29549_v13, %v29546_v36 }
 0x667   : >> { %23163 = vmatprep.subr.bf16.mxu0 %v25316_v28  ;;  %v10810_v22 = vpack.c.bf16 %v18990_v9, %v18989_v42  ;;  %v19004_v42 = vld [vmem:[%s28194_s20 + $0xed] sm:$0xff]  ;;  %v15121_v9 = vpack.c.bf16 %v29434_v37, %v29431_v17  ;;  %v19035_v17 = vld [vmem:[%s28194_s20 + $0x1e] sm:$0xff] }
 0x668   : >> { %v25334_v37 = vld [vmem:[%s30531_s3 + $0x5b0] sm:$0xff]  }
 0x66a   : >> { %23164 = vmatpush3.bf16.msra.mxu0 %v25316_v28  ;;  %v10809_v28 = vpack.c.bf16 %v18988_v5, %v18987_v51  ;;  %v25328_v51 = vld [vmem:[%s30531_s3 + $0x598] sm:$0xff]   ;;  %v19003_v5 = vld [vmem:[%s28194_s20 + $0xe5] sm:$0xff] }
 0x66b   : >> { %23165 = vmatprep.subr.bf16.mxu0 %v25318_v59 }
 0x66c   : >> { %22478 = vmatmul.mubr.bf16.gmra.mrb[28].mxu1 %v10511_v39  ;;  %v18991_v39 = vld [vmem:[%s28194_s20 + $0x85] sm:$0xff] }
 0x66d   : >> { %23134 = vmatmul.mubr.bf16.gmra.mrb[12].mxu0 %v14815_v7  ;;  %22497 = vmatprep.mubr.bf16.mxu1 %v10804_v47  ;;  %v18992_v7 = vld [vmem:[%s28194_s20 + $0x8d] sm:$0xff]  ;;  %v29564_v47 = vld [vmem:[%s28194_s20 + $0x1ba] sm:$0xff] }
 0x66e   : >> { %23137 = vmatprep.mubr.bf16.mxu0 %v14816_v58  ;;  %23166 = vmatpush3.bf16.msra.mxu0 %v25318_v59  ;;  %v25323_v59 = vld [vmem:[%s30531_s3 + $0x228] sm:$0xff]   ;;  %v10811_v21 = vpack.c.bf16 %v18992_v7, %v18991_v39  ;;  %v15124_v7 = vpack.c.bf16 %v29482_v34, %v29466_v55  ;;  %v29648_v55 = vld [vmem:[%s30531_s3 + $0x5c0] sm:$0xff]  }
 0x66f   : >> { %23167 = vmatprep.subr.bf16.mxu0 %v25320_v23  ;;  %v29567_v58 = vld [vmem:[%s28194_s20 + $0x1c2] sm:$0xff] }
 0x670   : >> { %v14823_v1 = vpack.c.bf16 %v29567_v58, %v29564_v47 }
 0x672   : >> { %23168 = vmatpush3.bf16.msra.mxu0 %v25320_v23  ;;  %v18993_v23 = vld [vmem:[%s28194_s20 + $0x95] sm:$0xff] }
 0x673   : >> { %23201 = vmatprep.subr.bf16.mxu0 %v29498_v12 }
 0x674   : >> { %22498 = vmatmul.mubr.bf16.vlgmr.msra.gmra.mrb[0].mxu1 %v10805_v19  ;;  %v10812_v19 = vpack.c.bf16 %v18994_v60, %v18993_v23  ;;  %v25336_v23 = vld [vmem:[%s30531_s3 + $0x5b8] sm:$0xff]   ;;  %v19036_v60 = vld [vmem:[%s28194_s20 + $0x26] sm:$0xff] }
 0x675   : >> { %23138 = vmatmul.mubr.bf16.gmra.mrb[16].mxu0 %v14817_v57  ;;  %22530 = vmatpush3.bf16.msra.mxu1 %v29386_v6  ;;  %v29526_v6 = vld [vmem:[%s28194_s20 + $0x192] sm:$0xff]  ;;  %v15116_v57 = vpack.c.bf16 %v29372_v3, %v29358_v46  ;;  %v29588_v46 = vld [vmem:[%s30531_s3 + $0x240] sm:$0xff]  }
 0x676   : >> { %22501 = vmatprep.mubr.bf16.mxu1 %v10806_v56  ;;  %23141 = vmatprep.mubr.bf16.mxu0 %v14818_v20  ;;  %v14820_v33 = vpack.c.bf16 %v29526_v6, %v29523_v31  ;;  %v25327_v56 = vld [vmem:[%s30531_s3 + $0x238] sm:$0xff]   ;;  %v18995_v20 = vld [vmem:[%s28194_s20 + $0xa5] sm:$0xff]  ;;  %v15128_v8 = vpack.c.bf16 %v29538_v2, %v29526_v6 }
 0x677   : >> { %22531 = vmatprep.subr.bf16.mxu1 %v25315_v48  ;;  %v25337_v6 = vld [vmem:[%s30531_s3 + $0x260] sm:$0xff]  }
 0x679   : >> { %22532 = vmatpush3.bf16.msra.mxu1 %v25315_v48  ;;  %v18996_v48 = vld [vmem:[%s28194_s20 + $0xad] sm:$0xff] }
 0x67a   : >> { %22533 = vmatprep.subr.bf16.mxu1 %v25317_v30  ;;  %v10813_v3 = vpack.c.bf16 %v18996_v48, %v18995_v20  ;;  %v19041_v20 = vld [vmem:[%s28194_s20 + $0x4e] sm:$0xff]  ;;  %v15127_v48 = vpack.c.bf16 %v29523_v31, %v29515_v41  ;;  %v19046_v41 = vld [vmem:[%s28194_s20 + $0x76] sm:$0xff]  ;;  %v19047_v31 = vld [vmem:[%s28194_s20 + $0x7e] sm:$0xff] }
 0x67c   : >> { %22502 = vmatmul.mubr.bf16.gmra.mrb[4].mxu1 %v10807_v43  ;;  %v25324_v43 = vld [vmem:[%s30531_s3 + $0x588] sm:$0xff]  }
 0x67d   : >> { %23142 = vmatmul.mubr.bf16.gmra.mrb[20].mxu0 %v14819_v27  ;;  %22505 = vmatprep.mubr.bf16.mxu1 %v10808_v4  ;;  %v18999_v27 = vld [vmem:[%s28194_s20 + $0xc5] sm:$0xff]  ;;  %v19000_v4 = vld [vmem:[%s28194_s20 + $0xcd] sm:$0xff] }
 0x67e   : >> { %23145 = vmatprep.mubr.bf16.mxu0 %v14820_v33  ;;  %22534 = vmatpush3.bf16.msra.mxu1 %v25317_v30  ;;  %v15118_v30 = vpack.c.bf16 %v29402_v44, %v29381_v26  ;;  %v25326_v26 = vld [vmem:[%s30531_s3 + $0x590] sm:$0xff]   ;;  %v10815_v44 = vpack.c.bf16 %v19000_v4, %v18999_v27  ;;  %v15119_v33 = vpack.c.bf16 %v29408_v29, %v29405_v40  ;;  %v19006_v29 = vld [vmem:[%s28194_s20 + $0xfd] sm:$0xff]  ;;  %v25339_v27 = vld [vmem:[%s30531_s3 + $0x268] sm:$0xff]  }
 0x67f   : >> { %22535 = vmatprep.subr.bf16.mxu1 %v25319_v53  ;;  %v19005_v40 = vld [vmem:[%s28194_s20 + $0xf5] sm:$0xff]  ;;  %v19048_v4 = vld [vmem:[%s28194_s20 + $0x86] sm:$0xff] }
 0x682   : >> { %22536 = vmatpush3.bf16.msra.mxu1 %v25319_v53  ;;  %v10816_v53 = vpack.c.bf16 %v19002_v61, %v19001_v11  ;;  %v19049_v11 = vld [vmem:[%s28194_s20 + $0x8e] sm:$0xff] }
 0x683   : >> { %22537 = vmatprep.subr.bf16.mxu1 %v25321_v62  ;;  %v19806_v61 = vld [vmem:[%s28194_s20 + $0x1ca] sm:$0xff] }
 0x684   : >> { %22506 = vmatmul.mubr.bf16.gmra.mrb[8].mxu1 %v10809_v28  ;;  %v15122_v28 = vpack.c.bf16 %v29455_v0, %v29437_v49  ;;  %v15123_v0 = vpack.c.bf16 %v29463_v10, %v29458_v38  ;;  %v19038_v38 = vld [vmem:[%s28194_s20 + $0x36] sm:$0xff]  ;;  %v19039_v10 = vld [vmem:[%s28194_s20 + $0x3e] sm:$0xff] }
 0x685   : >> { %23146 = vmatmul.mubr.bf16.gmra.mrb[24].mxu0 %v14821_v16  ;;  %22509 = vmatprep.mubr.bf16.mxu1 %v10810_v22  ;;  %v25332_v16 = vld [vmem:[%s30531_s3 + $0x5a8] sm:$0xff]  }
 0x686   : >> { %23149 = vmatprep.mubr.bf16.mxu0 %v14822_v32  ;;  %22538 = vmatpush3.bf16.msra.mxu1 %v25321_v62  ;;  %v10818_v62 = vpack.c.bf16 %v19006_v29, %v19005_v40  ;;  %v19007_v22 = vld [vmem:[%s28194_s20 + $0x105] sm:$0xff]  ;;  %v19008_v32 = vld [vmem:[%s28194_s20 + $0x10d] sm:$0xff] }
 0x687   : >> { %22539 = vmatprep.subr.bf16.mxu1 %v25323_v59  ;;  %v10819_v49 = vpack.c.bf16 %v19008_v32, %v19007_v22  ;;  %v19834_v40 = vld [vmem:[%s28194_s20 + $0xe3] sm:$0xff]  ;;  %v19835_v29 = vld [vmem:[%s28194_s20 + $0xeb] sm:$0xff] }
 0x68a   : >> { %22540 = vmatpush3.bf16.msra.mxu1 %v25323_v59  ;;  %v19034_v59 = vld [vmem:[%s28194_s20 + $0x16] sm:$0xff] }
 0x68b   : >> { %22541 = vmatprep.subr.bf16.mxu1 %v25325_v63  ;;  %v11112_v39 = vpack.c.bf16 %v19035_v17, %v19034_v59  ;;  %v25340_v59 = vld [vmem:[%s30531_s3 + $0x5c8] sm:$0xff]  }
 0x68c   : >> { %22510 = vmatmul.mubr.bf16.gmra.mrb[12].mxu1 %v10811_v21  ;;  %v15125_v21 = vpack.c.bf16 %v29490_v15, %v29485_v45  ;;  %v19042_v45 = vld [vmem:[%s28194_s20 + $0x56] sm:$0xff]  ;;  %v19043_v15 = vld [vmem:[%s28194_s20 + $0x5e] sm:$0xff]  ;;  %v19056_v17 = vld [vmem:[%s28194_s20 + $0xc6] sm:$0xff] }
 0x68d   : >> { %23150 = vmatmul.mubr.bf16.gmra.mrb[28].mxu0 %v14823_v1  ;;  %22513 = vmatprep.mubr.bf16.mxu1 %v10812_v19  ;;  %v11114_v1 = vpack.c.bf16 %v19039_v10, %v19038_v38  ;;  %v15126_v19 = vpack.c.bf16 %v29512_v50, %v29493_v35  ;;  %v25333_v35 = vld [vmem:[%s30531_s3 + $0x250] sm:$0xff]   ;;  %v11116_v24 = vpack.c.bf16 %v19043_v15, %v19042_v45  ;;  %v19063_v45 = vld [vmem:[%s28194_s20 + $0xfe] sm:$0xff] }
 0x68e   : >> { %23169 = vmatprep.mubr.bf16.mxu0 %v15116_v57  ;;  %22542 = vmatpush3.bf16.msra.mxu1 %v25325_v63  ;;  %v19037_v63 = vld [vmem:[%s28194_s20 + $0x2e] sm:$0xff] }
 0x68f   : >> { %22543 = vmatprep.subr.bf16.mxu1 %v25327_v56  ;;  %v11113_v34 = vpack.c.bf16 %v19037_v63, %v19036_v60  ;;  %v25331_v57 = vld [vmem:[%s30531_s3 + $0x248] sm:$0xff]   ;;  %v19841_v60 = vld [vmem:[%s28194_s20 + $0x11b] sm:$0xff]  ;;  %v25342_v63 = vld [vmem:[%s30531_s3 + $0x5d0] sm:$0xff]  }
 0x690   : >> { %v19844_v15 = vld [vmem:[%s28194_s20 + $0x133] sm:$0xff] }
 0x692   : >> { %22544 = vmatpush3.bf16.msra.mxu1 %v25327_v56  ;;  %v19040_v56 = vld [vmem:[%s28194_s20 + $0x46] sm:$0xff] }
 0x693   : >> { %22577 = vmatprep.subr.bf16.mxu1 %v29588_v46  ;;  %v11115_v50 = vpack.c.bf16 %v19041_v20, %v19040_v56  ;;  %v19843_v56 = vld [vmem:[%s28194_s20 + $0x12b] sm:$0xff]  ;;  %v19062_v20 = vld [vmem:[%s28194_s20 + $0xf6] sm:$0xff] }
 0x694   : >> { %22514 = vmatmul.mubr.bf16.gmra.mrb[16].mxu1 %v10813_v3  ;;  %v19044_v3 = vld [vmem:[%s28194_s20 + $0x66] sm:$0xff] }
 0x695   : >> { %23170 = vmatmul.mubr.bf16.vlgmr.msra.gmra.mrb[0].mxu0 %v15117_v14  ;;  %22517 = vmatprep.mubr.bf16.mxu1 %v10814_v25  ;;  %v19045_v14 = vld [vmem:[%s28194_s20 + $0x6e] sm:$0xff]  ;;  %v15129_v25 = vpack.c.bf16 %v29546_v36, %v29541_v54  ;;  %v19050_v54 = vld [vmem:[%s28194_s20 + $0x96] sm:$0xff]  ;;  %v19051_v36 = vld [vmem:[%s28194_s20 + $0x9e] sm:$0xff] }
 0x696   : >> { %23202 = vmatpush3.bf16.msra.mxu0 %v29498_v12  ;;  %23173 = vmatprep.mubr.bf16.mxu0 %v15118_v30  ;;  %v15120_v12 = vpack.c.bf16 %v29428_v52, %v29411_v18  ;;  %v25330_v18 = vld [vmem:[%s30531_s3 + $0x5a0] sm:$0xff]   ;;  %v10817_v52 = vpack.c.bf16 %v19004_v42, %v19003_v5  ;;  %v11117_v2 = vpack.c.bf16 %v19045_v14, %v19044_v3  ;;  %v19053_v42 = vld [vmem:[%s28194_s20 + $0xae] sm:$0xff] }
 0x697   : >> { %23203 = vmatprep.subr.bf16.mxu0 %v25324_v43  ;;  %v11118_v30 = vpack.c.bf16 %v19047_v31, %v19046_v41  ;;  %v19052_v5 = vld [vmem:[%s28194_s20 + $0xa6] sm:$0xff]  ;;  %v19065_v41 = vld [vmem:[%s28194_s20 + $0x10e] sm:$0xff] }
 0x698   : >> { %v25348_v3 = vld [vmem:[%s30531_s3 + $0x5e8] sm:$0xff]  }
 0x699   : >> { %v19064_v14 = vld [vmem:[%s28194_s20 + $0x106] sm:$0xff] }
 0x69a   : >> { %23204 = vmatpush3.bf16.msra.mxu0 %v25324_v43  ;;  %v15130_v43 = vpack.c.bf16 %v29564_v47, %v29549_v13  ;;  %v19833_v13 = vld [vmem:[%s28194_s20 + $0xdb] sm:$0xff]  ;;  %v25341_v47 = vld [vmem:[%s30531_s3 + $0x270] sm:$0xff]   ;;  %v19846_v31 = vld [vmem:[%s28194_s20 + $0x143] sm:$0xff] }
 0x69b   : >> { %23205 = vmatprep.subr.bf16.mxu0 %v25326_v26 }
 0x69c   : >> { %22518 = vmatmul.mubr.bf16.gmra.mrb[20].mxu1 %v10815_v44  ;;  %v11119_v44 = vpack.c.bf16 %v19049_v11, %v19048_v4  ;;  %v11127_v4 = vpack.c.bf16 %v19065_v41, %v19064_v14 }
 0x69d   : >> { %23174 = vmatmul.mubr.bf16.gmra.mrb[4].mxu0 %v15119_v33  ;;  %22521 = vmatprep.mubr.bf16.mxu1 %v10816_v53  ;;  %v15131_v33 = vpack.c.bf16 %v19806_v61, %v29567_v58  ;;  %v11120_v53 = vpack.c.bf16 %v19051_v36, %v19050_v54  ;;  %v19055_v58 = vld [vmem:[%s28194_s20 + $0xbe] sm:$0xff] }
 0x69e   : >> { %23177 = vmatprep.mubr.bf16.mxu0 %v15120_v12  ;;  %23206 = vmatpush3.bf16.msra.mxu0 %v25326_v26  ;;  %v19832_v26 = vld [vmem:[%s28194_s20 + $0xd3] sm:$0xff] }
 0x69f   : >> { %23207 = vmatprep.subr.bf16.mxu0 %v25328_v51  ;;  %v15424_v12 = vpack.c.bf16 %v19833_v13, %v19832_v26  ;;  %v25352_v36 = vld [vmem:[%s30531_s3 + $0x5f8] sm:$0xff]  }
 0x6a0   : >> { %v19093_v26 = vld [vmem:[%s28194_s20 + $0x74] sm:$0xff]  ;;  %v19094_v13 = vld [vmem:[%s28194_s20 + $0x7c] sm:$0xff] }
 0x6a2   : >> { %23208 = vmatpush3.bf16.msra.mxu0 %v25328_v51  ;;  %v25343_v51 = vld [vmem:[%s30531_s3 + $0x278] sm:$0xff]  }
 0x6a3   : >> { %23209 = vmatprep.subr.bf16.mxu0 %v25330_v18 }
 0x6a4   : >> { %22522 = vmatmul.mubr.bf16.gmra.mrb[24].mxu1 %v10817_v52  ;;  %v19836_v52 = vld [vmem:[%s28194_s20 + $0xf3] sm:$0xff] }
 0x6a5   : >> { %23178 = vmatmul.mubr.bf16.gmra.mrb[8].mxu0 %v15121_v9  ;;  %22525 = vmatprep.mubr.bf16.mxu1 %v10818_v62  ;;  %v19837_v9 = vld [vmem:[%s28194_s20 + $0xfb] sm:$0xff] }
 0x6a6   : >> { %23181 = vmatprep.mubr.bf16.mxu0 %v15122_v28  ;;  %23210 = vmatpush3.bf16.msra.mxu0 %v25330_v18  ;;  %v19054_v18 = vld [vmem:[%s28194_s20 + $0xb6] sm:$0xff]  ;;  %v29712_v62 = vld [vmem:[%s30531_s3 + $0x280] sm:$0xff]   ;;  %v11121_v28 = vpack.c.bf16 %v19053_v42, %v19052_v5  ;;  %v15426_v32 = vpack.c.bf16 %v19837_v9, %v19836_v52  ;;  %v11421_v42 = vpack.c.bf16 %v19094_v13, %v19093_v26  ;;  %v29864_v26 = vld [vmem:[%s28194_s20 + $0x12c] sm:$0xff] }
 0x6a7   : >> { %23211 = vmatprep.subr.bf16.mxu0 %v25332_v16  ;;  %v11122_v22 = vpack.c.bf16 %v19055_v58, %v19054_v18  ;;  %v29772_v5 = vld [vmem:[%s30531_s3 + $0x600] sm:$0xff]   ;;  %v25347_v58 = vld [vmem:[%s30531_s3 + $0x288] sm:$0xff]   ;;  %v19097_v52 = vld [vmem:[%s28194_s20 + $0x94] sm:$0xff] }
 0x6a8   : >> { %v19098_v9 = vld [vmem:[%s28194_s20 + $0x9c] sm:$0xff]  ;;  %v25358_v13 = vld [vmem:[%s30531_s3 + $0x610] sm:$0xff]  }
 0x6aa   : >> { %23212 = vmatpush3.bf16.msra.mxu0 %v25332_v16  ;;  %v15425_v16 = vpack.c.bf16 %v19835_v29, %v19834_v40 }
 0x6ab   : >> { %23213 = vmatprep.subr.bf16.mxu0 %v25334_v37 }
 0x6ac   : >> { %22526 = vmatmul.mubr.bf16.gmra.mrb[28].mxu1 %v10819_v49  ;;  %v19838_v49 = vld [vmem:[%s28194_s20 + $0x103] sm:$0xff] }
 0x6ad   : >> { %23182 = vmatmul.mubr.bf16.gmra.mrb[12].mxu0 %v15123_v0  ;;  %22545 = vmatprep.mubr.bf16.mxu1 %v11112_v39  ;;  %v19839_v0 = vld [vmem:[%s28194_s20 + $0x10b] sm:$0xff]  ;;  %v19058_v39 = vld [vmem:[%s28194_s20 + $0xd6] sm:$0xff] }
 0x6ae   : >> { %23185 = vmatprep.mubr.bf16.mxu0 %v15124_v7  ;;  %23214 = vmatpush3.bf16.msra.mxu0 %v25334_v37  ;;  %v19057_v37 = vld [vmem:[%s28194_s20 + $0xce] sm:$0xff]  ;;  %v19059_v7 = vld [vmem:[%s28194_s20 + $0xde] sm:$0xff]  ;;  %v15427_v10 = vpack.c.bf16 %v19839_v0, %v19838_v49  ;;  %v11423_v49 = vpack.c.bf16 %v19098_v9, %v19097_v52 }
 0x6af   : >> { %23215 = vmatprep.subr.bf16.mxu0 %v25336_v23  ;;  %v11123_v38 = vpack.c.bf16 %v19057_v37, %v19056_v17  ;;  %v19856_v17 = vld [vmem:[%s28194_s20 + $0x193] sm:$0xff]  ;;  %v19857_v37 = vld [vmem:[%s28194_s20 + $0x19b] sm:$0xff]  ;;  %v19148_v9 = vld [vmem:[%s28194_s20 + $0x65] sm:$0xff] }
 0x6b0   : >> { %v29902_v52 = vld [vmem:[%s28194_s20 + $0x15c] sm:$0xff] }
 0x6b2   : >> { %23216 = vmatpush3.bf16.msra.mxu0 %v25336_v23  ;;  %v19840_v23 = vld [vmem:[%s28194_s20 + $0x113] sm:$0xff] }
 0x6b3   : >> { %23249 = vmatprep.subr.bf16.mxu0 %v29648_v55 }
 0x6b4   : >> { %22546 = vmatmul.mubr.bf16.vlgmr.msra.gmra.mrb[0].mxu1 %v11113_v34  ;;  %v15428_v34 = vpack.c.bf16 %v19841_v60, %v19840_v23  ;;  %v19101_v23 = vld [vmem:[%s28194_s20 + $0xb4] sm:$0xff]  ;;  %v19102_v60 = vld [vmem:[%s28194_s20 + $0xbc] sm:$0xff] }
 0x6b5   : >> { %23186 = vmatmul.mubr.bf16.gmra.mrb[16].mxu0 %v15125_v21  ;;  %22578 = vmatpush3.bf16.msra.mxu1 %v29588_v46  ;;  %v25335_v46 = vld [vmem:[%s30531_s3 + $0x258] sm:$0xff]  }
 0x6b6   : >> { %22549 = vmatprep.mubr.bf16.mxu1 %v11114_v1  ;;  %23189 = vmatprep.mubr.bf16.mxu0 %v15126_v19  ;;  %v25344_v21 = vld [vmem:[%s30531_s3 + $0x5d8] sm:$0xff]   ;;  %v19060_v1 = vld [vmem:[%s28194_s20 + $0xe6] sm:$0xff]  ;;  %v19061_v19 = vld [vmem:[%s28194_s20 + $0xee] sm:$0xff] }
 0x6b7   : >> { %22579 = vmatprep.subr.bf16.mxu1 %v25331_v57 }
 0x6b9   : >> { %22580 = vmatpush3.bf16.msra.mxu1 %v25331_v57  ;;  %v19842_v57 = vld [vmem:[%s28194_s20 + $0x123] sm:$0xff] }
 0x6ba   : >> { %22581 = vmatprep.subr.bf16.mxu1 %v25333_v35 }
 0x6bc   : >> { %22550 = vmatmul.mubr.bf16.gmra.mrb[4].mxu1 %v11115_v50  ;;  %v25346_v50 = vld [vmem:[%s30531_s3 + $0x5e0] sm:$0xff]  }
 0x6bd   : >> { %23190 = vmatmul.mubr.bf16.gmra.mrb[20].mxu0 %v15127_v48  ;;  %22553 = vmatprep.mubr.bf16.mxu1 %v11116_v24  ;;  %v11125_v48 = vpack.c.bf16 %v19061_v19, %v19060_v1  ;;  %v15429_v24 = vpack.c.bf16 %v19843_v56, %v19842_v57  ;;  %v25353_v1 = vld [vmem:[%s30531_s3 + $0x2a0] sm:$0xff]   ;;  %v11425_v19 = vpack.c.bf16 %v19102_v60, %v19101_v23 }
 0x6be   : >> { %23193 = vmatprep.mubr.bf16.mxu0 %v15128_v8  ;;  %22582 = vmatpush3.bf16.msra.mxu1 %v25333_v35  ;;  %v19845_v35 = vld [vmem:[%s28194_s20 + $0x13b] sm:$0xff]  ;;  %v11126_v8 = vpack.c.bf16 %v19063_v45, %v19062_v20  ;;  %v25355_v45 = vld [vmem:[%s30531_s3 + $0x2a8] sm:$0xff]  }
 0x6bf   : >> { %22583 = vmatprep.subr.bf16.mxu1 %v25335_v46  ;;  %v29928_v23 = vld [vmem:[%s28194_s20 + $0x17c] sm:$0xff] }
 0x6c0   : >> { %v29933_v60 = vld [vmem:[%s30531_s3 + $0x640] sm:$0xff]  }
 0x6c2   : >> { %22584 = vmatpush3.bf16.msra.mxu1 %v25335_v46  ;;  %v15430_v46 = vpack.c.bf16 %v19845_v35, %v19844_v15  ;;  %v19105_v15 = vld [vmem:[%s28194_s20 + $0xd4] sm:$0xff]  ;;  %v29809_v35 = vld [vmem:[%s28194_s20 + $0xdc] sm:$0xff] }
 0x6c3   : >> { %22585 = vmatprep.subr.bf16.mxu1 %v25337_v6 }
 0x6c4   : >> { %22554 = vmatmul.mubr.bf16.gmra.mrb[8].mxu1 %v11117_v2  ;;  %v19091_v2 = vld [vmem:[%s28194_s20 + $0x64] sm:$0xff] }
 0x6c5   : >> { %23194 = vmatmul.mubr.bf16.gmra.mrb[24].mxu0 %v15129_v25  ;;  %22557 = vmatprep.mubr.bf16.mxu1 %v11118_v30  ;;  %v19092_v25 = vld [vmem:[%s28194_s20 + $0x6c] sm:$0xff] }
 0x6c6   : >> { %23197 = vmatprep.mubr.bf16.mxu0 %v15130_v43  ;;  %22586 = vmatpush3.bf16.msra.mxu1 %v25337_v6  ;;  %v19847_v6 = vld [vmem:[%s28194_s20 + $0x14b] sm:$0xff]  ;;  %v19848_v30 = vld [vmem:[%s28194_s20 + $0x153] sm:$0xff]  ;;  %v19849_v43 = vld [vmem:[%s28194_s20 + $0x15b] sm:$0xff]  ;;  %v11420_v61 = vpack.c.bf16 %v19092_v25, %v19091_v2 }
 0x6c7   : >> { %22587 = vmatprep.subr.bf16.mxu1 %v25339_v27  ;;  %v15431_v11 = vpack.c.bf16 %v19847_v6, %v19846_v31  ;;  %v15432_v54 = vpack.c.bf16 %v19849_v43, %v19848_v30  ;;  %v25359_v31 = vld [vmem:[%s30531_s3 + $0x2b8] sm:$0xff]   ;;  %v29835_v25 = vld [vmem:[%s28194_s20 + $0x104] sm:$0xff]  ;;  %v29838_v30 = vld [vmem:[%s28194_s20 + $0x10c] sm:$0xff] }
 0x6c8   : >> { %v29829_v6 = vld [vmem:[%s28194_s20 + $0xf4] sm:$0xff]  ;;  %v29832_v2 = vld [vmem:[%s28194_s20 + $0xfc] sm:$0xff] }
 0x6c9   : >> { %v29843_v43 = vld [vmem:[%s30531_s3 + $0x2c0] sm:$0xff]  }
 0x6ca   : >> { %22588 = vmatpush3.bf16.msra.mxu1 %v25339_v27  ;;  %v25350_v27 = vld [vmem:[%s30531_s3 + $0x5f0] sm:$0xff]  }
 0x6cb   : >> { %22589 = vmatprep.subr.bf16.mxu1 %v25341_v47 }
 0x6cc   : >> { %22558 = vmatmul.mubr.bf16.gmra.mrb[12].mxu1 %v11119_v44  ;;  %v19851_v44 = vld [vmem:[%s28194_s20 + $0x16b] sm:$0xff] }
 0x6cd   : >> { %23198 = vmatmul.mubr.bf16.gmra.mrb[28].mxu0 %v15131_v33  ;;  %22561 = vmatprep.mubr.bf16.mxu1 %v11120_v53  ;;  %v19095_v33 = vld [vmem:[%s28194_s20 + $0x84] sm:$0xff]  ;;  %v19096_v53 = vld [vmem:[%s28194_s20 + $0x8c] sm:$0xff] }
 0x6ce   : >> { %23217 = vmatprep.mubr.bf16.mxu0 %v15424_v12  ;;  %22590 = vmatpush3.bf16.msra.mxu1 %v25341_v47  ;;  %v19850_v47 = vld [vmem:[%s28194_s20 + $0x163] sm:$0xff]  ;;  %v19852_v12 = vld [vmem:[%s28194_s20 + $0x173] sm:$0xff]  ;;  %v11422_v29 = vpack.c.bf16 %v19096_v53, %v19095_v33 }
 0x6cf   : >> { %22591 = vmatprep.subr.bf16.mxu1 %v25343_v51  ;;  %v15433_v40 = vpack.c.bf16 %v19851_v44, %v19850_v47  ;;  %v25360_v33 = vld [vmem:[%s30531_s3 + $0x618] sm:$0xff]  }
 0x6d0   : >> { %v29877_v53 = vld [vmem:[%s28194_s20 + $0x134] sm:$0xff] }
 0x6d2   : >> { %22592 = vmatpush3.bf16.msra.mxu1 %v25343_v51  ;;  %v19853_v51 = vld [vmem:[%s28194_s20 + $0x17b] sm:$0xff] }
 0x6d3   : >> { %22625 = vmatprep.subr.bf16.mxu1 %v29712_v62  ;;  %v15434_v18 = vpack.c.bf16 %v19853_v51, %v19852_v12  ;;  %v29880_v12 = vld [vmem:[%s28194_s20 + $0x13c] sm:$0xff]  ;;  %v29883_v51 = vld [vmem:[%s28194_s20 + $0x144] sm:$0xff] }
 0x6d4   : >> { %22562 = vmatmul.mubr.bf16.gmra.mrb[16].mxu1 %v11121_v28  ;;  %v19854_v28 = vld [vmem:[%s28194_s20 + $0x183] sm:$0xff] }
 0x6d5   : >> { %23218 = vmatmul.mubr.bf16.vlgmr.msra.gmra.mrb[0].mxu0 %v15425_v16  ;;  %22565 = vmatprep.mubr.bf16.mxu1 %v11122_v22  ;;  %v19855_v16 = vld [vmem:[%s28194_s20 + $0x18b] sm:$0xff] }
 0x6d6   : >> { %23250 = vmatpush3.bf16.msra.mxu0 %v29648_v55  ;;  %23221 = vmatprep.mubr.bf16.mxu0 %v15426_v32  ;;  %v11124_v55 = vpack.c.bf16 %v19059_v7, %v19058_v39  ;;  %v19099_v22 = vld [vmem:[%s28194_s20 + $0xa4] sm:$0xff]  ;;  %v19100_v32 = vld [vmem:[%s28194_s20 + $0xac] sm:$0xff]  ;;  %v15436_v39 = vpack.c.bf16 %v19857_v37, %v19856_v17  ;;  %v25351_v7 = vld [vmem:[%s30531_s3 + $0x298] sm:$0xff]  }
 0x6d7   : >> { %23251 = vmatprep.subr.bf16.mxu0 %v25340_v59  ;;  %v11424_v0 = vpack.c.bf16 %v19100_v32, %v19099_v22  ;;  %v19150_v17 = vld [vmem:[%s28194_s20 + $0x75] sm:$0xff]  ;;  %v19151_v37 = vld [vmem:[%s28194_s20 + $0x7d] sm:$0xff] }
 0x6da   : >> { %23252 = vmatpush3.bf16.msra.mxu0 %v25340_v59  ;;  %v25349_v59 = vld [vmem:[%s30531_s3 + $0x290] sm:$0xff]  }
 0x6db   : >> { %23253 = vmatprep.subr.bf16.mxu0 %v25342_v63 }
 0x6dc   : >> { %22566 = vmatmul.mubr.bf16.gmra.mrb[20].mxu1 %v11123_v38  ;;  %v19859_v38 = vld [vmem:[%s28194_s20 + $0x1ab] sm:$0xff] }
 0x6dd   : >> { %23222 = vmatmul.mubr.bf16.gmra.mrb[4].mxu0 %v15427_v10  ;;  %22569 = vmatprep.mubr.bf16.mxu1 %v11124_v55  ;;  %v19103_v10 = vld [vmem:[%s28194_s20 + $0xc4] sm:$0xff]  ;;  %v19104_v55 = vld [vmem:[%s28194_s20 + $0xcc] sm:$0xff] }
 0x6de   : >> { %23225 = vmatprep.mubr.bf16.mxu0 %v15428_v34  ;;  %23254 = vmatpush3.bf16.msra.mxu0 %v25342_v63  ;;  %v19858_v63 = vld [vmem:[%s28194_s20 + $0x1a3] sm:$0xff]  ;;  %v19860_v34 = vld [vmem:[%s28194_s20 + $0x1b3] sm:$0xff]  ;;  %v11426_v56 = vpack.c.bf16 %v19104_v55, %v19103_v10 }
 0x6df   : >> { %23255 = vmatprep.subr.bf16.mxu0 %v25344_v21  ;;  %v15437_v57 = vpack.c.bf16 %v19859_v38, %v19858_v63  ;;  %v11729_v63 = vpack.c.bf16 %v19151_v37, %v19150_v17  ;;  %v30010_v17 = vld [vmem:[%s28194_s20 + $0xed] sm:$0xff] }
 0x6e0   : >> { %v25373_v37 = vld [vmem:[%s30531_s3 + $0x2f0] sm:$0xff]  }
 0x6e2   : >> { %23256 = vmatpush3.bf16.msra.mxu0 %v25344_v21  ;;  %v19861_v21 = vld [vmem:[%s28194_s20 + $0x1bb] sm:$0xff] }
 0x6e3   : >> { %23257 = vmatprep.subr.bf16.mxu0 %v25346_v50  ;;  %v15438_v20 = vpack.c.bf16 %v19861_v21, %v19860_v34  ;;  %v25363_v34 = vld [vmem:[%s30531_s3 + $0x2c8] sm:$0xff]   ;;  %v19154_v21 = vld [vmem:[%s28194_s20 + $0x95] sm:$0xff] }
 0x6e4   : >> { %22570 = vmatmul.mubr.bf16.gmra.mrb[24].mxu1 %v11125_v48  ;;  %v19863_v48 = vld [vmem:[%s28194_s20 + $0x1cb] sm:$0xff] }
 0x6e5   : >> { %23226 = vmatmul.mubr.bf16.gmra.mrb[8].mxu0 %v15429_v24  ;;  %22573 = vmatprep.mubr.bf16.mxu1 %v11126_v8  ;;  %v29814_v24 = vld [vmem:[%s28194_s20 + $0xe4] sm:$0xff]  ;;  %v29817_v8 = vld [vmem:[%s28194_s20 + $0xec] sm:$0xff] }
 0x6e6   : >> { %23229 = vmatprep.mubr.bf16.mxu0 %v15430_v46  ;;  %23258 = vmatpush3.bf16.msra.mxu0 %v25346_v50  ;;  %v19862_v50 = vld [vmem:[%s28194_s20 + $0x1c3] sm:$0xff]  ;;  %v25357_v46 = vld [vmem:[%s30531_s3 + $0x2b0] sm:$0xff]   ;;  %v11428_v41 = vpack.c.bf16 %v29817_v8, %v29814_v24 }
 0x6e7   : >> { %23259 = vmatprep.subr.bf16.mxu0 %v25348_v3  ;;  %v15439_v14 = vpack.c.bf16 %v19863_v48, %v19862_v50  ;;  %v29961_v50 = vld [vmem:[%s28194_s20 + $0x19c] sm:$0xff] }
 0x6ea   : >> { %23260 = vmatpush3.bf16.msra.mxu0 %v25348_v3  ;;  %v11427_v3 = vpack.c.bf16 %v29809_v35, %v19105_v15  ;;  %v29958_v15 = vld [vmem:[%s28194_s20 + $0x194] sm:$0xff] }
 0x6eb   : >> { %23261 = vmatprep.subr.bf16.mxu0 %v25350_v27 }
 0x6ec   : >> { %22574 = vmatmul.mubr.bf16.gmra.mrb[28].mxu1 %v11127_v4  ;;  %v11430_v4 = vpack.c.bf16 %v29838_v30, %v29835_v25 }
 0x6ed   : >> { %23230 = vmatmul.mubr.bf16.gmra.mrb[12].mxu0 %v15431_v11  ;;  %22593 = vmatprep.mubr.bf16.mxu1 %v11420_v61  ;;  %v25356_v11 = vld [vmem:[%s30531_s3 + $0x608] sm:$0xff]   ;;  %v29854_v61 = vld [vmem:[%s28194_s20 + $0x114] sm:$0xff] }
 0x6ee   : >> { %23233 = vmatprep.mubr.bf16.mxu0 %v15432_v54  ;;  %23262 = vmatpush3.bf16.msra.mxu0 %v25350_v27  ;;  %v11429_v27 = vpack.c.bf16 %v29832_v2, %v29829_v6  ;;  %v29857_v54 = vld [vmem:[%s28194_s20 + $0x11c] sm:$0xff] }
 0x6ef   : >> { %23263 = vmatprep.subr.bf16.mxu0 %v25352_v36  ;;  %v11431_v47 = vpack.c.bf16 %v29857_v54, %v29854_v61 }
 0x6f2   : >> { %23264 = vmatpush3.bf16.msra.mxu0 %v25352_v36  ;;  %v29861_v36 = vld [vmem:[%s28194_s20 + $0x124] sm:$0xff] }
 0x6f3   : >> { %23297 = vmatprep.subr.bf16.mxu0 %v29772_v5  ;;  %v11432_v44 = vpack.c.bf16 %v29864_v26, %v29861_v36 }
 0x6f4   : >> { %22594 = vmatmul.mubr.bf16.vlgmr.msra.gmra.mrb[0].mxu1 %v11421_v42  ;;  %v25362_v42 = vld [vmem:[%s30531_s3 + $0x620] sm:$0xff]  }
 0x6f5   : >> { %23234 = vmatmul.mubr.bf16.gmra.mrb[16].mxu0 %v15433_v40  ;;  %22626 = vmatpush3.bf16.msra.mxu1 %v29712_v62  ;;  %v15435_v62 = vpack.c.bf16 %v19855_v16, %v19854_v28  ;;  %v11433_v40 = vpack.c.bf16 %v29880_v12, %v29877_v53  ;;  %v19149_v28 = vld [vmem:[%s28194_s20 + $0x6d] sm:$0xff] }
 0x6f6   : >> { %22597 = vmatprep.mubr.bf16.mxu1 %v11422_v29  ;;  %23237 = vmatprep.mubr.bf16.mxu0 %v15434_v18  ;;  %v25364_v18 = vld [vmem:[%s30531_s3 + $0x628] sm:$0xff]   ;;  %v25366_v16 = vld [vmem:[%s30531_s3 + $0x630] sm:$0xff]   ;;  %v11728_v32 = vpack.c.bf16 %v19149_v28, %v19148_v9 }
 0x6f7   : >> { %22627 = vmatprep.subr.bf16.mxu1 %v25347_v58  ;;  %v25371_v9 = vld [vmem:[%s30531_s3 + $0x2e8] sm:$0xff]   ;;  %v19162_v28 = vld [vmem:[%s28194_s20 + $0xd5] sm:$0xff] }
 0x6f9   : >> { %22628 = vmatpush3.bf16.msra.mxu1 %v25347_v58  ;;  %v29899_v58 = vld [vmem:[%s28194_s20 + $0x154] sm:$0xff] }
 0x6fa   : >> { %22629 = vmatprep.subr.bf16.mxu1 %v25349_v59  ;;  %v11435_v22 = vpack.c.bf16 %v29902_v52, %v29899_v58 }
 0x6fc   : >> { %22598 = vmatmul.mubr.bf16.gmra.mrb[4].mxu1 %v11423_v49  ;;  %v29917_v49 = vld [vmem:[%s28194_s20 + $0x164] sm:$0xff] }
 0x6fd   : >> { %23238 = vmatmul.mubr.bf16.gmra.mrb[20].mxu0 %v15435_v62  ;;  %22601 = vmatprep.mubr.bf16.mxu1 %v11424_v0  ;;  %v29920_v62 = vld [vmem:[%s28194_s20 + $0x16c] sm:$0xff] }
 0x6fe   : >> { %23241 = vmatprep.mubr.bf16.mxu0 %v15436_v39  ;;  %22630 = vmatpush3.bf16.msra.mxu1 %v25349_v59  ;;  %v25368_v59 = vld [vmem:[%s30531_s3 + $0x638] sm:$0xff]   ;;  %v19152_v0 = vld [vmem:[%s28194_s20 + $0x85] sm:$0xff]  ;;  %v19153_v39 = vld [vmem:[%s28194_s20 + $0x8d] sm:$0xff]  ;;  %v15741_v38 = vpack.c.bf16 %v29920_v62, %v29917_v49 }
 0x6ff   : >> { %22631 = vmatprep.subr.bf16.mxu1 %v25351_v7  ;;  %v11730_v10 = vpack.c.bf16 %v19153_v39, %v19152_v0 }
 0x702   : >> { %22632 = vmatpush3.bf16.msra.mxu1 %v25351_v7  ;;  %v29925_v7 = vld [vmem:[%s28194_s20 + $0x174] sm:$0xff] }
 0x703   : >> { %22633 = vmatprep.subr.bf16.mxu1 %v25353_v1  ;;  %v15742_v55 = vpack.c.bf16 %v29928_v23, %v29925_v7 }
 0x704   : >> { %22602 = vmatmul.mubr.bf16.gmra.mrb[8].mxu1 %v11425_v19  ;;  %v29947_v19 = vld [vmem:[%s28194_s20 + $0x184] sm:$0xff] }
 0x705   : >> { %23242 = vmatmul.mubr.bf16.gmra.mrb[24].mxu0 %v15437_v57  ;;  %22605 = vmatprep.mubr.bf16.mxu1 %v11426_v56  ;;  %v29950_v57 = vld [vmem:[%s28194_s20 + $0x18c] sm:$0xff] }
 0x706   : >> { %23245 = vmatprep.mubr.bf16.mxu0 %v15438_v20  ;;  %22634 = vmatpush3.bf16.msra.mxu1 %v25353_v1  ;;  %v19155_v1 = vld [vmem:[%s28194_s20 + $0x9d] sm:$0xff]  ;;  %v19156_v56 = vld [vmem:[%s28194_s20 + $0xa5] sm:$0xff]  ;;  %v19157_v20 = vld [vmem:[%s28194_s20 + $0xad] sm:$0xff] }
 0x707   : >> { %22635 = vmatprep.subr.bf16.mxu1 %v25355_v45  ;;  %v11731_v48 = vpack.c.bf16 %v19155_v1, %v19154_v21  ;;  %v30032_v21 = vld [vmem:[%s28194_s20 + $0x105] sm:$0xff]  ;;  %v30035_v1 = vld [vmem:[%s28194_s20 + $0x10d] sm:$0xff] }
 0x70a   : >> { %22636 = vmatpush3.bf16.msra.mxu1 %v25355_v45  ;;  %v25365_v45 = vld [vmem:[%s30531_s3 + $0x2d0] sm:$0xff]  }
 0x70b   : >> { %22637 = vmatprep.subr.bf16.mxu1 %v25357_v46 }
 0x70c   : >> { %22606 = vmatmul.mubr.bf16.gmra.mrb[12].mxu1 %v11427_v3 }
 0x70d   : >> { %23246 = vmatmul.mubr.bf16.gmra.mrb[28].mxu0 %v15439_v14  ;;  %22609 = vmatprep.mubr.bf16.mxu1 %v11428_v41  ;;  %v15744_v14 = vpack.c.bf16 %v29961_v50, %v29958_v15 }
 0x70e   : >> { %23265 = vmatprep.mubr.bf16.mxu0 %v11427_v3  ;;  %22638 = vmatpush3.bf16.msra.mxu1 %v25357_v46  ;;  %v15743_v46 = vpack.c.bf16 %v29950_v57, %v29947_v19  ;;  %v11732_v3 = vpack.c.bf16 %v19157_v20, %v19156_v56  ;;  %v16041_v56 = vpack.c.bf16 %v29829_v6, %v29817_v8  ;;  %v30062_v8 = vld [vmem:[%s28194_s20 + $0x125] sm:$0xff]  ;;  %v30065_v6 = vld [vmem:[%s28194_s20 + $0x12d] sm:$0xff] }
 0x70f   : >> { %22639 = vmatprep.subr.bf16.mxu1 %v25359_v31  ;;  %v11738_v20 = vpack.c.bf16 %v30035_v1, %v30032_v21 }
 0x712   : >> { %22640 = vmatpush3.bf16.msra.mxu1 %v25359_v31  ;;  %v19158_v31 = vld [vmem:[%s28194_s20 + $0xb5] sm:$0xff] }
 0x713   : >> { %22673 = vmatprep.subr.bf16.mxu1 %v29843_v43 }
 0x714   : >> { %22610 = vmatmul.mubr.bf16.gmra.mrb[16].mxu1 %v11429_v27 }
 0x715   : >> { %23266 = vmatmul.mubr.bf16.vlgmr.msra.gmra.mrb[0].mxu0 %v11428_v41  ;;  %22613 = vmatprep.mubr.bf16.mxu1 %v11430_v4  ;;  %v25367_v41 = vld [vmem:[%s30531_s3 + $0x2d8] sm:$0xff]  }
 0x716   : >> { %23298 = vmatpush3.bf16.msra.mxu0 %v29772_v5  ;;  %23269 = vmatprep.mubr.bf16.mxu0 %v11429_v27  ;;  %v29886_v5 = vld [vmem:[%s28194_s20 + $0x14c] sm:$0xff]  ;;  %v29973_v27 = vld [vmem:[%s28194_s20 + $0x1a4] sm:$0xff] }
 0x717   : >> { %23299 = vmatprep.subr.bf16.mxu0 %v25356_v11  ;;  %v11434_v29 = vpack.c.bf16 %v29886_v5, %v29883_v51 }
 0x71a   : >> { %23300 = vmatpush3.bf16.msra.mxu0 %v25356_v11  ;;  %v19160_v11 = vld [vmem:[%s28194_s20 + $0xc5] sm:$0xff] }
 0x71b   : >> { %23301 = vmatprep.subr.bf16.mxu0 %v25358_v13 }
 0x71c   : >> { %22614 = vmatmul.mubr.bf16.gmra.mrb[20].mxu1 %v11431_v47 }
 0x71d   : >> { %23270 = vmatmul.mubr.bf16.gmra.mrb[4].mxu0 %v11430_v4  ;;  %22617 = vmatprep.mubr.bf16.mxu1 %v11432_v44  ;;  %v29976_v4 = vld [vmem:[%s28194_s20 + $0x1ac] sm:$0xff] }
 0x71e   : >> { %23273 = vmatprep.mubr.bf16.mxu0 %v11431_v47  ;;  %23302 = vmatpush3.bf16.msra.mxu0 %v25358_v13  ;;  %v19161_v13 = vld [vmem:[%s28194_s20 + $0xcd] sm:$0xff] }
 0x71f   : >> { %23303 = vmatprep.subr.bf16.mxu0 %v25360_v33  ;;  %v29981_v47 = vld [vmem:[%s28194_s20 + $0x1b4] sm:$0xff] }
 0x722   : >> { %23304 = vmatpush3.bf16.msra.mxu0 %v25360_v33  ;;  %v25369_v33 = vld [vmem:[%s30531_s3 + $0x2e0] sm:$0xff]  }
 0x723   : >> { %23305 = vmatprep.subr.bf16.mxu0 %v25362_v42 }
 0x724   : >> { %22618 = vmatmul.mubr.bf16.gmra.mrb[24].mxu1 %v11433_v40 }
 0x725   : >> { %23274 = vmatmul.mubr.bf16.gmra.mrb[8].mxu0 %v11432_v44  ;;  %22621 = vmatprep.mubr.bf16.mxu1 %v11434_v29  ;;  %v29984_v44 = vld [vmem:[%s28194_s20 + $0x1bc] sm:$0xff] }
 0x726   : >> { %23277 = vmatprep.mubr.bf16.mxu0 %v11433_v40  ;;  %23306 = vmatpush3.bf16.msra.mxu0 %v25362_v42  ;;  %v15745_v40 = vpack.c.bf16 %v29976_v4, %v29973_v27 }
 0x727   : >> { %23307 = vmatprep.subr.bf16.mxu0 %v25364_v18 }
 0x72a   : >> { %23308 = vmatpush3.bf16.msra.mxu0 %v25364_v18  ;;  %v15746_v18 = vpack.c.bf16 %v29984_v44, %v29981_v47 }
 0x72b   : >> { %23309 = vmatprep.subr.bf16.mxu0 %v25366_v16 }
 0x72c   : >> { %22622 = vmatmul.mubr.bf16.gmra.mrb[28].mxu1 %v11435_v22 }
 0x72d   : >> { %23278 = vmatmul.mubr.bf16.gmra.mrb[12].mxu0 %v11434_v29  ;;  %22641 = vmatprep.mubr.bf16.mxu1 %v11728_v32  ;;  %v11734_v29 = vpack.c.bf16 %v19161_v13, %v19160_v11  ;;  %v30004_v32 = vld [vmem:[%s28194_s20 + $0x1cc] sm:$0xff]  ;;  %v30085_v11 = vld [vmem:[%s28194_s20 + $0x13d] sm:$0xff]  ;;  %v16045_v13 = vpack.c.bf16 %v29877_v53, %v29864_v26 }
 0x72e   : >> { %23281 = vmatprep.mubr.bf16.mxu0 %v11435_v22  ;;  %23310 = vmatpush3.bf16.msra.mxu0 %v25366_v16  ;;  %v29998_v16 = vld [vmem:[%s28194_s20 + $0xdd] sm:$0xff]  ;;  %v19205_v26 = vld [vmem:[%s28194_s20 + $0x66] sm:$0xff]  ;;  %v30115_v53 = vld [vmem:[%s28194_s20 + $0x6e] sm:$0xff] }
 0x72f   : >> { %23311 = vmatprep.subr.bf16.mxu0 %v25368_v59  ;;  %v30001_v22 = vld [vmem:[%s28194_s20 + $0x1c4] sm:$0xff]  ;;  %v11735_v0 = vpack.c.bf16 %v29998_v16, %v19162_v28  ;;  %v12036_v28 = vpack.c.bf16 %v30115_v53, %v19205_v26 }
 0x730   : >> { %v15747_v39 = vpack.c.bf16 %v30004_v32, %v30001_v22 }
 0x732   : >> { %23312 = vmatpush3.bf16.msra.mxu0 %v25368_v59  ;;  %v30007_v59 = vld [vmem:[%s28194_s20 + $0xe5] sm:$0xff] }
 0x733   : >> { %23345 = vmatprep.subr.bf16.mxu0 %v29933_v60 }
 0x734   : >> { %22642 = vmatmul.mubr.bf16.vlgmr.msra.gmra.mrb[0].mxu1 %v11729_v63  ;;  %v11736_v63 = vpack.c.bf16 %v30010_v17, %v30007_v59 }
 0x735   : >> { %23282 = vmatmul.mubr.bf16.gmra.mrb[16].mxu0 %v15741_v38  ;;  %22674 = vmatpush3.bf16.msra.mxu1 %v29843_v43  ;;  %v19159_v43 = vld [vmem:[%s28194_s20 + $0xbd] sm:$0xff]  ;;  %v16040_v38 = vpack.c.bf16 %v29814_v24, %v29809_v35 }
 0x736   : >> { %22645 = vmatprep.mubr.bf16.mxu1 %v11730_v10  ;;  %23285 = vmatprep.mubr.bf16.mxu0 %v15742_v55  ;;  %v11733_v42 = vpack.c.bf16 %v19159_v43, %v19158_v31  ;;  %v25375_v10 = vld [vmem:[%s30531_s3 + $0x2f8] sm:$0xff]   ;;  %v30040_v35 = vld [vmem:[%s30531_s3 + $0x300] sm:$0xff]  }
 0x737   : >> { %22675 = vmatprep.subr.bf16.mxu1 %v25363_v34  ;;  %v30026_v55 = vld [vmem:[%s28194_s20 + $0xf5] sm:$0xff] }
 0x738   : >> { %v25376_v31 = vld [vmem:[%s30531_s3 + $0x658] sm:$0xff]  }
 0x739   : >> { %22676 = vmatpush3.bf16.msra.mxu1 %v25363_v34  ;;  %v30029_v34 = vld [vmem:[%s28194_s20 + $0xfd] sm:$0xff]  ;;  %v30082_v43 = vld [vmem:[%s28194_s20 + $0x135] sm:$0xff] }
 0x73a   : >> { %22677 = vmatprep.subr.bf16.mxu1 %v25365_v45  ;;  %v11737_v24 = vpack.c.bf16 %v30029_v34, %v30026_v55 }
 0x73c   : >> { %22646 = vmatmul.mubr.bf16.gmra.mrb[4].mxu1 %v11731_v48  ;;  %v25372_v48 = vld [vmem:[%s30531_s3 + $0x648] sm:$0xff]  }
 0x73d   : >> { %23286 = vmatmul.mubr.bf16.gmra.mrb[20].mxu0 %v15743_v46  ;;  %22649 = vmatprep.mubr.bf16.mxu1 %v11732_v3  ;;  %v30055_v46 = vld [vmem:[%s28194_s20 + $0x115] sm:$0xff]  ;;  %v30058_v3 = vld [vmem:[%s28194_s20 + $0x11d] sm:$0xff] }
 0x73e   : >> { %23289 = vmatprep.mubr.bf16.mxu0 %v15744_v14  ;;  %22678 = vmatpush3.bf16.msra.mxu1 %v25365_v45  ;;  %v16042_v45 = vpack.c.bf16 %v29835_v25, %v29832_v2  ;;  %v25374_v2 = vld [vmem:[%s30531_s3 + $0x650] sm:$0xff]   ;;  %v11739_v25 = vpack.c.bf16 %v30058_v3, %v30055_v46  ;;  %v11740_v14 = vpack.c.bf16 %v30065_v6, %v30062_v8 }
 0x73f   : >> { %22679 = vmatprep.subr.bf16.mxu1 %v25367_v41 }
 0x742   : >> { %22680 = vmatpush3.bf16.msra.mxu1 %v25367_v41  ;;  %v16044_v41 = vpack.c.bf16 %v29861_v36, %v29857_v54  ;;  %v25378_v54 = vld [vmem:[%s30531_s3 + $0x660] sm:$0xff]   ;;  %v11741_v36 = vpack.c.bf16 %v30085_v11, %v30082_v43 }
 0x743   : >> { %22681 = vmatprep.subr.bf16.mxu1 %v25369_v33 }
 0x744   : >> { %22650 = vmatmul.mubr.bf16.gmra.mrb[8].mxu1 %v11733_v42  ;;  %v16046_v42 = vpack.c.bf16 %v29883_v51, %v29880_v12  ;;  %v25382_v12 = vld [vmem:[%s30531_s3 + $0x670] sm:$0xff]  }
 0x745   : >> { %23290 = vmatmul.mubr.bf16.gmra.mrb[24].mxu0 %v15745_v40  ;;  %22653 = vmatprep.mubr.bf16.mxu1 %v11734_v29  ;;  %v25380_v40 = vld [vmem:[%s30531_s3 + $0x668] sm:$0xff]   ;;  %v30108_v29 = vld [vmem:[%s28194_s20 + $0x155] sm:$0xff] }
 0x746   : >> { %23293 = vmatprep.mubr.bf16.mxu0 %v15746_v18  ;;  %22682 = vmatpush3.bf16.msra.mxu1 %v25369_v33  ;;  %v30111_v18 = vld [vmem:[%s28194_s20 + $0x15d] sm:$0xff] }
 0x747   : >> { %22683 = vmatprep.subr.bf16.mxu1 %v25371_v9  ;;  %v11743_v51 = vpack.c.bf16 %v30111_v18, %v30108_v29 }
 0x74a   : >> { %22684 = vmatpush3.bf16.msra.mxu1 %v25371_v9  ;;  %v16047_v9 = vpack.c.bf16 %v29899_v58, %v29886_v5  ;;  %v30137_v5 = vld [vmem:[%s28194_s20 + $0x86] sm:$0xff]  ;;  %v30140_v58 = vld [vmem:[%s28194_s20 + $0x8e] sm:$0xff] }
 0x74b   : >> { %22685 = vmatprep.subr.bf16.mxu1 %v25373_v37 }
 0x74c   : >> { %22654 = vmatmul.mubr.bf16.gmra.mrb[12].mxu1 %v11735_v0  ;;  %v25384_v0 = vld [vmem:[%s30531_s3 + $0x678] sm:$0xff]  }
 0x74d   : >> { %23294 = vmatmul.mubr.bf16.gmra.mrb[28].mxu0 %v15747_v39  ;;  %22657 = vmatprep.mubr.bf16.mxu1 %v11736_v63  ;;  %v30131_v39 = vld [vmem:[%s28194_s20 + $0x76] sm:$0xff]  ;;  %v30134_v63 = vld [vmem:[%s28194_s20 + $0x7e] sm:$0xff] }
 0x74e   : >> { %23313 = vmatprep.mubr.bf16.mxu0 %v16040_v38  ;;  %22686 = vmatpush3.bf16.msra.mxu1 %v25373_v37  ;;  %v16048_v37 = vpack.c.bf16 %v29917_v49, %v29902_v52  ;;  %v30145_v52 = vld [vmem:[%s30531_s3 + $0x680] sm:$0xff]   ;;  %v12037_v49 = vpack.c.bf16 %v30134_v63, %v30131_v39  ;;  %v16049_v38 = vpack.c.bf16 %v29925_v7, %v29920_v62 }
 0x74f   : >> { %22687 = vmatprep.subr.bf16.mxu1 %v25375_v10  ;;  %v30164_v62 = vld [vmem:[%s28194_s20 + $0x9e] sm:$0xff]  ;;  %v30167_v7 = vld [vmem:[%s28194_s20 + $0xa6] sm:$0xff] }
 0x752   : >> { %22688 = vmatpush3.bf16.msra.mxu1 %v25375_v10  ;;  %v12038_v10 = vpack.c.bf16 %v30140_v58, %v30137_v5 }
 0x753   : >> { %22721 = vmatprep.subr.bf16.mxu1 %v30040_v35 }
 0x754   : >> { %22658 = vmatmul.mubr.bf16.gmra.mrb[16].mxu1 %v11737_v24  ;;  %v16050_v24 = vpack.c.bf16 %v29947_v19, %v29928_v23  ;;  %v30170_v23 = vld [vmem:[%s28194_s20 + $0xae] sm:$0xff] }
 0x755   : >> { %23314 = vmatmul.mubr.bf16.vlgmr.msra.gmra.mrb[0].mxu0 %v16041_v56  ;;  %22661 = vmatprep.mubr.bf16.mxu1 %v11738_v20  ;;  %v25379_v56 = vld [vmem:[%s30531_s3 + $0x308] sm:$0xff]   ;;  %v30161_v20 = vld [vmem:[%s28194_s20 + $0x96] sm:$0xff] }
 0x756   : >> { %23346 = vmatpush3.bf16.msra.mxu0 %v29933_v60  ;;  %23317 = vmatprep.mubr.bf16.mxu0 %v16042_v45  ;;  %v16043_v60 = vpack.c.bf16 %v29854_v61, %v29838_v30  ;;  %v30088_v30 = vld [vmem:[%s28194_s20 + $0x145] sm:$0xff]  ;;  %v30091_v61 = vld [vmem:[%s28194_s20 + $0x14d] sm:$0xff]  ;;  %v16051_v45 = vpack.c.bf16 %v29958_v15, %v29950_v57 }
 0x757   : >> { %23347 = vmatprep.subr.bf16.mxu0 %v25372_v48  ;;  %v11742_v33 = vpack.c.bf16 %v30091_v61, %v30088_v30  ;;  %v25381_v19 = vld [vmem:[%s30531_s3 + $0x310] sm:$0xff]   ;;  %v30193_v57 = vld [vmem:[%s28194_s20 + $0xc6] sm:$0xff] }
 0x758   : >> { %v30196_v15 = vld [vmem:[%s28194_s20 + $0xce] sm:$0xff] }
 0x75a   : >> { %23348 = vmatpush3.bf16.msra.mxu0 %v25372_v48  ;;  %v12040_v48 = vpack.c.bf16 %v30170_v23, %v30167_v7 }
 0x75b   : >> { %23349 = vmatprep.subr.bf16.mxu0 %v25374_v2 }
 0x75c   : >> { %22662 = vmatmul.mubr.bf16.gmra.mrb[20].mxu1 %v11739_v25  ;;  %v25383_v25 = vld [vmem:[%s30531_s3 + $0x318] sm:$0xff]  }
 0x75d   : >> { %23318 = vmatmul.mubr.bf16.gmra.mrb[4].mxu0 %v16043_v60  ;;  %22665 = vmatprep.mubr.bf16.mxu1 %v11740_v14  ;;  %v30187_v60 = vld [vmem:[%s28194_s20 + $0xb6] sm:$0xff]  ;;  %v30190_v14 = vld [vmem:[%s28194_s20 + $0xbe] sm:$0xff] }
 0x75e   : >> { %23321 = vmatprep.mubr.bf16.mxu0 %v16044_v41  ;;  %23350 = vmatpush3.bf16.msra.mxu0 %v25374_v2  ;;  %v16052_v2 = vpack.c.bf16 %v29973_v27, %v29961_v50  ;;  %v25385_v50 = vld [vmem:[%s30531_s3 + $0x320] sm:$0xff]   ;;  %v12041_v27 = vpack.c.bf16 %v30190_v14, %v30187_v60  ;;  %v16053_v41 = vpack.c.bf16 %v29981_v47, %v29976_v4  ;;  %v19977_v4 = vld [vmem:[%s28194_s20 + $0x1d4] sm:$0xff] }
 0x75f   : >> { %23351 = vmatprep.subr.bf16.mxu0 %v25376_v31  ;;  %v30220_v47 = vld [vmem:[%s28194_s20 + $0xe6] sm:$0xff] }
 0x762   : >> { %23352 = vmatpush3.bf16.msra.mxu0 %v25376_v31  ;;  %v12042_v31 = vpack.c.bf16 %v30196_v15, %v30193_v57 }
 0x763   : >> { %23353 = vmatprep.subr.bf16.mxu0 %v25378_v54 }
 0x764   : >> { %22666 = vmatmul.mubr.bf16.gmra.mrb[24].mxu1 %v11741_v36  ;;  %v25387_v36 = vld [vmem:[%s30531_s3 + $0x328] sm:$0xff]  }
 0x765   : >> { %23322 = vmatmul.mubr.bf16.gmra.mrb[8].mxu0 %v16045_v13  ;;  %22669 = vmatprep.mubr.bf16.mxu1 %v11742_v33  ;;  %v30213_v13 = vld [vmem:[%s28194_s20 + $0xd6] sm:$0xff]  ;;  %v30216_v33 = vld [vmem:[%s28194_s20 + $0xde] sm:$0xff] }
 0x766   : >> { %23325 = vmatprep.mubr.bf16.mxu0 %v16046_v42  ;;  %23354 = vmatpush3.bf16.msra.mxu0 %v25378_v54  ;;  %v16054_v54 = vpack.c.bf16 %v30001_v22, %v29984_v44  ;;  %v30223_v44 = vld [vmem:[%s28194_s20 + $0xee] sm:$0xff]  ;;  %v12043_v42 = vpack.c.bf16 %v30216_v33, %v30213_v13 }
 0x767   : >> { %23355 = vmatprep.subr.bf16.mxu0 %v25380_v40  ;;  %v25389_v22 = vld [vmem:[%s30531_s3 + $0x330] sm:$0xff]   ;;  %v12044_v26 = vpack.c.bf16 %v30223_v44, %v30220_v47 }
 0x76a   : >> { %23356 = vmatpush3.bf16.msra.mxu0 %v25380_v40  ;;  %v16055_v40 = vpack.c.bf16 %v19977_v4, %v30004_v32  ;;  %v30245_v32 = vld [vmem:[%s28194_s20 + $0x106] sm:$0xff] }
 0x76b   : >> { %23357 = vmatprep.subr.bf16.mxu0 %v25382_v12 }
 0x76c   : >> { %22670 = vmatmul.mubr.bf16.gmra.mrb[28].mxu1 %v11743_v51  ;;  %v25391_v51 = vld [vmem:[%s30531_s3 + $0x338] sm:$0xff]  }
 0x76d   : >> { %23326 = vmatmul.mubr.bf16.gmra.mrb[12].mxu0 %v16047_v9  ;;  %22689 = vmatprep.mubr.bf16.mxu1 %v12036_v28  ;;  %v30239_v9 = vld [vmem:[%s28194_s20 + $0xf6] sm:$0xff]  ;;  %v30242_v28 = vld [vmem:[%s28194_s20 + $0xfe] sm:$0xff] }
 0x76e   : >> { %23329 = vmatprep.mubr.bf16.mxu0 %v16048_v37  ;;  %23358 = vmatpush3.bf16.msra.mxu0 %v25382_v12  ;;  %v16348_v12 = vpack.c.bf16 %v30007_v59, %v29998_v16  ;;  %v30248_v37 = vld [vmem:[%s28194_s20 + $0x10e] sm:$0xff]  ;;  %v12045_v16 = vpack.c.bf16 %v30242_v28, %v30239_v9  ;;  %v16349_v59 = vpack.c.bf16 %v30026_v55, %v30010_v17  ;;  %v30268_v17 = vld [vmem:[%s28194_s20 + $0x116] sm:$0xff]  ;;  %v30271_v55 = vld [vmem:[%s28194_s20 + $0x11e] sm:$0xff] }
 0x76f   : >> { %23359 = vmatprep.subr.bf16.mxu0 %v25384_v0 }
 0x772   : >> { %23360 = vmatpush3.bf16.msra.mxu0 %v25384_v0  ;;  %v12046_v0 = vpack.c.bf16 %v30248_v37, %v30245_v32 }
 0x773   : >> { %23393 = vmatprep.subr.bf16.mxu0 %v30145_v52 }
 0x774   : >> { %22690 = vmatmul.mubr.bf16.vlgmr.msra.gmra.mrb[0].mxu1 %v12037_v49  ;;  %v16350_v49 = vpack.c.bf16 %v30032_v21, %v30029_v34  ;;  %v30275_v34 = vld [vmem:[%s28194_s20 + $0x126] sm:$0xff]  ;;  %v30278_v21 = vld [vmem:[%s28194_s20 + $0x12e] sm:$0xff] }
 0x775   : >> { %23330 = vmatmul.mubr.bf16.gmra.mrb[16].mxu0 %v16049_v38  ;;  %22722 = vmatpush3.bf16.msra.mxu1 %v30040_v35  ;;  %v12039_v35 = vpack.c.bf16 %v30164_v62, %v30161_v20  ;;  %v25388_v38 = vld [vmem:[%s30531_s3 + $0x688] sm:$0xff]  }
 0x776   : >> { %22693 = vmatprep.mubr.bf16.mxu1 %v12038_v10  ;;  %23333 = vmatprep.mubr.bf16.mxu0 %v16050_v24  ;;  %v30264_v10 = vld [vmem:[%s30531_s3 + $0x340] sm:$0xff]   ;;  %v25390_v24 = vld [vmem:[%s30531_s3 + $0x690] sm:$0xff]  }
 0x777   : >> { %22723 = vmatprep.subr.bf16.mxu1 %v25379_v56 }
 0x779   : >> { %22724 = vmatpush3.bf16.msra.mxu1 %v25379_v56  ;;  %v12047_v56 = vpack.c.bf16 %v30271_v55, %v30268_v17 }
 0x77a   : >> { %22725 = vmatprep.subr.bf16.mxu1 %v25381_v19 }
 0x77c   : >> { %22694 = vmatmul.mubr.bf16.gmra.mrb[4].mxu1 %v12039_v35  ;;  %v16352_v35 = vpack.c.bf16 %v30062_v8, %v30058_v3  ;;  %v25393_v3 = vld [vmem:[%s30531_s3 + $0x6a0] sm:$0xff]  }
 0x77d   : >> { %23334 = vmatmul.mubr.bf16.gmra.mrb[20].mxu0 %v16051_v45  ;;  %22697 = vmatprep.mubr.bf16.mxu1 %v12040_v48  ;;  %v25392_v45 = vld [vmem:[%s30531_s3 + $0x698] sm:$0xff]  }
 0x77e   : >> { %23337 = vmatprep.mubr.bf16.mxu0 %v16052_v2  ;;  %22726 = vmatpush3.bf16.msra.mxu1 %v25381_v19  ;;  %v12048_v19 = vpack.c.bf16 %v30278_v21, %v30275_v34  ;;  %v30295_v48 = vld [vmem:[%s28194_s20 + $0x136] sm:$0xff]  ;;  %v30298_v2 = vld [vmem:[%s28194_s20 + $0x13e] sm:$0xff] }
 0x77f   : >> { %22727 = vmatprep.subr.bf16.mxu1 %v25383_v25  ;;  %v12049_v8 = vpack.c.bf16 %v30298_v2, %v30295_v48 }
 0x782   : >> { %22728 = vmatpush3.bf16.msra.mxu1 %v25383_v25  ;;  %v16353_v25 = vpack.c.bf16 %v30082_v43, %v30065_v6  ;;  %v20020_v6 = vld [vmem:[%s28194_s20 + $0x165] sm:$0xff]  ;;  %v25395_v43 = vld [vmem:[%s30531_s3 + $0x6b0] sm:$0xff]  }
 0x783   : >> { %22729 = vmatprep.subr.bf16.mxu1 %v25385_v50  ;;  %v16356_v4 = vpack.c.bf16 %v20020_v6, %v30111_v18  ;;  %v12345_v18 = vpack.c.bf16 %v30137_v5, %v30134_v63  ;;  %v20027_v63 = vld [vmem:[%s28194_s20 + $0x19d] sm:$0xff]  ;;  %v20028_v5 = vld [vmem:[%s28194_s20 + $0x1a5] sm:$0xff] }
 0x784   : >> { %22698 = vmatmul.mubr.bf16.gmra.mrb[8].mxu1 %v12041_v27  ;;  %v16354_v27 = vpack.c.bf16 %v30088_v30, %v30085_v11  ;;  %v16355_v30 = vpack.c.bf16 %v30108_v29, %v30091_v61  ;;  %v20023_v61 = vld [vmem:[%s28194_s20 + $0x17d] sm:$0xff]  ;;  %v20024_v29 = vld [vmem:[%s28194_s20 + $0x185] sm:$0xff] }
 0x785   : >> { %23338 = vmatmul.mubr.bf16.gmra.mrb[24].mxu0 %v16053_v41  ;;  %22701 = vmatprep.mubr.bf16.mxu1 %v12042_v31  ;;  %v25394_v41 = vld [vmem:[%s30531_s3 + $0x6a8] sm:$0xff]   ;;  %v30321_v31 = vld [vmem:[%s28194_s20 + $0x156] sm:$0xff] }
 0x786   : >> { %23341 = vmatprep.mubr.bf16.mxu0 %v16054_v54  ;;  %22730 = vmatpush3.bf16.msra.mxu1 %v25385_v50  ;;  %v30324_v54 = vld [vmem:[%s28194_s20 + $0x15e] sm:$0xff] }
 0x787   : >> { %22731 = vmatprep.subr.bf16.mxu1 %v25387_v36  ;;  %v12051_v11 = vpack.c.bf16 %v30324_v54, %v30321_v31 }
 0x78a   : >> { %22732 = vmatpush3.bf16.msra.mxu1 %v25387_v36  ;;  %v12344_v36 = vpack.c.bf16 %v30131_v39, %v30115_v53  ;;  %v12346_v39 = vpack.c.bf16 %v30161_v20, %v30140_v58  ;;  %v12347_v58 = vpack.c.bf16 %v30167_v7, %v30164_v62  ;;  %v20031_v62 = vld [vmem:[%s28194_s20 + $0x1bd] sm:$0xff]  ;;  %v20032_v7 = vld [vmem:[%s28194_s20 + $0x1c5] sm:$0xff] }
 0x78b   : >> { %22733 = vmatprep.subr.bf16.mxu1 %v25389_v22 }
 0x78c   : >> { %22702 = vmatmul.mubr.bf16.gmra.mrb[12].mxu1 %v12043_v42  ;;  %v20021_v42 = vld [vmem:[%s28194_s20 + $0x16d] sm:$0xff] }
 0x78d   : >> { %23342 = vmatmul.mubr.bf16.gmra.mrb[28].mxu0 %v16055_v40  ;;  %22705 = vmatprep.mubr.bf16.mxu1 %v12044_v26  ;;  %v20022_v40 = vld [vmem:[%s28194_s20 + $0x175] sm:$0xff]  ;;  %v16358_v26 = vpack.c.bf16 %v20024_v29, %v20023_v61  ;;  %v20085_v61 = vld [vmem:[%s28194_s20 + $0x1a6] sm:$0xff] }
 0x78e   : >> { %23361 = vmatprep.mubr.bf16.mxu0 %v16348_v12  ;;  %22734 = vmatpush3.bf16.msra.mxu1 %v25389_v22  ;;  %v25396_v22 = vld [vmem:[%s30531_s3 + $0x6b8] sm:$0xff]   ;;  %v16357_v53 = vpack.c.bf16 %v20022_v40, %v20021_v42  ;;  %v20025_v12 = vld [vmem:[%s28194_s20 + $0x18d] sm:$0xff] }
 0x78f   : >> { %22735 = vmatprep.subr.bf16.mxu1 %v25391_v51  ;;  %v19344_v42 = vld [vmem:[%s28194_s20 + $0x137] sm:$0xff] }
 0x790   : >> { %v20084_v40 = vld [vmem:[%s28194_s20 + $0x19e] sm:$0xff] }
 0x792   : >> { %22736 = vmatpush3.bf16.msra.mxu1 %v25391_v51  ;;  %v20026_v51 = vld [vmem:[%s28194_s20 + $0x195] sm:$0xff] }
 0x793   : >> { %24275 = vmatprep.subr.bf16.mxu1 %v30264_v10  ;;  %v16359_v20 = vpack.c.bf16 %v20026_v51, %v20025_v12  ;;  %v19346_v12 = vld [vmem:[%s28194_s20 + $0x147] sm:$0xff] }
 0x794   : >> { %22706 = vmatmul.mubr.bf16.gmra.mrb[16].mxu1 %v12045_v16  ;;  %v25399_v16 = vld [vmem:[%s30531_s3 + $0x348] sm:$0xff]  }
 0x795   : >> { %23362 = vmatmul.mubr.bf16.vlgmr.msra.gmra.mrb[0].mxu0 %v16349_v59  ;;  %22709 = vmatprep.mubr.bf16.mxu1 %v12046_v0  ;;  %v12348_v59 = vpack.c.bf16 %v30187_v60, %v30170_v23  ;;  %v16360_v0 = vpack.c.bf16 %v20028_v5, %v20027_v63  ;;  %v25401_v23 = vld [vmem:[%s30531_s3 + $0x358] sm:$0xff]   ;;  %v12349_v60 = vpack.c.bf16 %v30193_v57, %v30190_v14  ;;  %v25403_v14 = vld [vmem:[%s30531_s3 + $0x368] sm:$0xff]  }
 0x796   : >> { %23394 = vmatpush3.bf16.msra.mxu0 %v30145_v52  ;;  %23365 = vmatprep.mubr.bf16.mxu0 %v16350_v49  ;;  %v16351_v52 = vpack.c.bf16 %v30055_v46, %v30035_v1  ;;  %v30301_v1 = vld [vmem:[%s28194_s20 + $0x146] sm:$0xff]  ;;  %v30304_v46 = vld [vmem:[%s28194_s20 + $0x14e] sm:$0xff]  ;;  %v12351_v57 = vpack.c.bf16 %v30220_v47, %v30216_v33  ;;  %v12353_v33 = vpack.c.bf16 %v30245_v32, %v30242_v28  ;;  %v19348_v5 = vld [vmem:[%s28194_s20 + $0x157] sm:$0xff] }
 0x797   : >> { %23395 = vmatprep.subr.bf16.mxu0 %v25388_v38  ;;  %v12050_v50 = vpack.c.bf16 %v30304_v46, %v30301_v1  ;;  %v25400_v49 = vld [vmem:[%s30531_s3 + $0x350] sm:$0xff]   ;;  %v12354_v47 = vpack.c.bf16 %v30268_v17, %v30248_v37  ;;  %v12357_v28 = vpack.c.bf16 %v30301_v1, %v30298_v2  ;;  %v12358_v32 = vpack.c.bf16 %v30321_v31, %v30304_v46  ;;  %v19293_v37 = vld [vmem:[%s28194_s20 + $0x166] sm:$0xff] }
 0x798   : >> { %v19335_v17 = vld [vmem:[%s28194_s20 + $0xef] sm:$0xff]  ;;  %v19338_v2 = vld [vmem:[%s28194_s20 + $0x107] sm:$0xff] }
 0x799   : >> { %v20078_v1 = vld [vmem:[%s28194_s20 + $0x16e] sm:$0xff]  ;;  %v20079_v46 = vld [vmem:[%s28194_s20 + $0x176] sm:$0xff] }
 0x79a   : >> { %23396 = vmatpush3.bf16.msra.mxu0 %v25388_v38  ;;  %v20029_v38 = vld [vmem:[%s28194_s20 + $0x1ad] sm:$0xff] }
 0x79b   : >> { %23397 = vmatprep.subr.bf16.mxu0 %v25390_v24  ;;  %v20086_v51 = vld [vmem:[%s28194_s20 + $0x1ae] sm:$0xff] }
 0x79c   : >> { %22710 = vmatmul.mubr.bf16.gmra.mrb[20].mxu1 %v12047_v56  ;;  %v12350_v56 = vpack.c.bf16 %v30213_v13, %v30196_v15  ;;  %v12352_v13 = vpack.c.bf16 %v30239_v9, %v30223_v44  ;;  %v12355_v44 = vpack.c.bf16 %v30275_v34, %v30271_v55  ;;  %v12356_v9 = vpack.c.bf16 %v30295_v48, %v30278_v21  ;;  %v19336_v55 = vld [vmem:[%s28194_s20 + $0xf7] sm:$0xff]  ;;  %v19337_v48 = vld [vmem:[%s28194_s20 + $0xff] sm:$0xff]  ;;  %v19347_v63 = vld [vmem:[%s28194_s20 + $0x14f] sm:$0xff] }
 0x79d   : >> { %23366 = vmatmul.mubr.bf16.gmra.mrb[4].mxu0 %v16351_v52  ;;  %22713 = vmatprep.mubr.bf16.mxu1 %v12048_v19  ;;  %v16362_v52 = vpack.c.bf16 %v20032_v7, %v20031_v62  ;;  %v25402_v19 = vld [vmem:[%s30531_s3 + $0x360] sm:$0xff]   ;;  %v12359_v34 = vpack.c.bf16 %v19293_v37, %v30324_v54  ;;  %v12660_v21 = vpack.c.bf16 %v19336_v55, %v19335_v17  ;;  %v20090_v7 = vld [vmem:[%s28194_s20 + $0x1ce] sm:$0xff] }
 0x79e   : >> { %23369 = vmatprep.mubr.bf16.mxu0 %v16352_v35  ;;  %23398 = vmatpush3.bf16.msra.mxu0 %v25390_v24  ;;  %v20033_v35 = vld [vmem:[%s28194_s20 + $0x1cd] sm:$0xff]  ;;  %v12661_v31 = vpack.c.bf16 %v19338_v2, %v19337_v48  ;;  %v16665_v54 = vpack.c.bf16 %v20079_v46, %v20078_v1  ;;  %v30447_v37 = vld [vmem:[%s30532_s4] ss:$0 sm:$0xff] }
 0x79f   : >> { %23399 = vmatprep.subr.bf16.mxu0 %v25392_v45  ;;  %v19350_v62 = vld [vmem:[%s28194_s20 + $0x167] sm:$0xff] }
 0x7a2   : >> { %23400 = vmatpush3.bf16.msra.mxu0 %v25392_v45  ;;  %v20034_v45 = vld [vmem:[%s28194_s20 + $0x1d5] sm:$0xff] }
 0x7a3   : >> { %23401 = vmatprep.subr.bf16.mxu0 %v25393_v3  ;;  %v16363_v15 = vpack.c.bf16 %v20034_v45, %v20033_v35 }
 0x7a4   : >> { %22714 = vmatmul.mubr.bf16.gmra.mrb[24].mxu1 %v12049_v8  ;;  %v25405_v8 = vld [vmem:[%s30531_s3 + $0x378] sm:$0xff]  }
 0x7a5   : >> { %23370 = vmatmul.mubr.bf16.gmra.mrb[8].mxu0 %v16353_v25  ;;  %22717 = vmatprep.mubr.bf16.mxu1 %v12050_v50  ;;  %v19339_v25 = vld [vmem:[%s28194_s20 + $0x10f] sm:$0xff]  ;;  %v19340_v50 = vld [vmem:[%s28194_s20 + $0x117] sm:$0xff] }
 0x7a6   : >> { %23373 = vmatprep.mubr.bf16.mxu0 %v16354_v27  ;;  %23402 = vmatpush3.bf16.msra.mxu0 %v25393_v3  ;;  %v25404_v3 = vld [vmem:[%s30531_s3 + $0x370] sm:$0xff]   ;;  %v20080_v27 = vld [vmem:[%s28194_s20 + $0x17e] sm:$0xff]  ;;  %v12662_v6 = vpack.c.bf16 %v19340_v50, %v19339_v25 }
 0x7a7   : >> { %23403 = vmatprep.subr.bf16.mxu0 %v25394_v41 }
 0x7aa   : >> { %23404 = vmatpush3.bf16.msra.mxu0 %v25394_v41  ;;  %v20081_v41 = vld [vmem:[%s28194_s20 + $0x186] sm:$0xff] }
 0x7ab   : >> { %23405 = vmatprep.subr.bf16.mxu0 %v25395_v43 }
 0x7ac   : >> { %22718 = vmatmul.mubr.bf16.gmra.mrb[28].mxu1 %v12051_v11  ;;  %v19341_v11 = vld [vmem:[%s28194_s20 + $0x11f] sm:$0xff] }
 0x7ad   : >> { %23374 = vmatmul.mubr.bf16.gmra.mrb[12].mxu0 %v16355_v30  ;;  %22737 = vmatprep.mubr.bf16.mxu1 %v12344_v36  ;;  %v19342_v30 = vld [vmem:[%s28194_s20 + $0x127] sm:$0xff] }
 0x7ae   : >> { %23377 = vmatprep.mubr.bf16.mxu0 %v16356_v4  ;;  %23406 = vmatpush3.bf16.msra.mxu0 %v25395_v43  ;;  %v16666_v43 = vpack.c.bf16 %v20081_v41, %v20080_v27  ;;  %v20082_v36 = vld [vmem:[%s28194_s20 + $0x18e] sm:$0xff]  ;;  %v20083_v4 = vld [vmem:[%s28194_s20 + $0x196] sm:$0xff]  ;;  %v12663_v29 = vpack.c.bf16 %v19342_v30, %v19341_v11 }
 0x7af   : >> { %23407 = vmatprep.subr.bf16.mxu0 %v25396_v22 }
 0x7b2   : >> { %23408 = vmatpush3.bf16.msra.mxu0 %v25396_v22  ;;  %v19343_v22 = vld [vmem:[%s28194_s20 + $0x12f] sm:$0xff] }
 0x7b4   : >> { %22738 = vmatmul.mubr.bf16.vlgmr.msra.gmra.mrb[0].mxu1 %v12345_v18  ;;  %v16667_v18 = vpack.c.bf16 %v20083_v4, %v20082_v36 }
 0x7b5   : >> { %23378 = vmatmul.mubr.bf16.gmra.mrb[16].mxu0 %v16357_v53  ;;  %24283 = vmatpush3.bf16.msra.mxu1 %v30264_v10  ;;  %v20030_v10 = vld [vmem:[%s28194_s20 + $0x1b5] sm:$0xff]  ;;  %v12664_v53 = vpack.c.bf16 %v19344_v42, %v19343_v22 }
 0x7b6   : >> { %22741 = vmatprep.mubr.bf16.mxu1 %v12346_v39  ;;  %23381 = vmatprep.mubr.bf16.mxu0 %v16358_v26  ;;  %v16361_v24 = vpack.c.bf16 %v20030_v10, %v20029_v38  ;;  %v16668_v39 = vpack.c.bf16 %v20085_v61, %v20084_v40  ;;  %v19345_v26 = vld [vmem:[%s28194_s20 + $0x13f] sm:$0xff] }
 0x7b7   : >> { %24276 = vmatprep.subr.bf16.mxu1 %v25399_v16  ;;  %v19349_v10 = vld [vmem:[%s28194_s20 + $0x15f] sm:$0xff] }
 0x7b9   : >> { %24284 = vmatpush3.bf16.msra.mxu1 %v25399_v16  ;;  %v20087_v16 = vld [vmem:[%s28194_s20 + $0x1b6] sm:$0xff] }
 0x7ba   : >> { %24277 = vmatprep.subr.bf16.mxu1 %v25400_v49 }
 0x7bc   : >> { %22742 = vmatmul.mubr.bf16.gmra.mrb[4].mxu1 %v12347_v58  ;;  %v20088_v58 = vld [vmem:[%s28194_s20 + $0x1be] sm:$0xff] }
 0x7bd   : >> { %23382 = vmatmul.mubr.bf16.gmra.mrb[20].mxu0 %v16359_v20  ;;  %22745 = vmatprep.mubr.bf16.mxu1 %v12348_v59  ;;  %v20089_v20 = vld [vmem:[%s28194_s20 + $0x1c6] sm:$0xff]  ;;  %v12665_v59 = vpack.c.bf16 %v19346_v12, %v19345_v26 }
 0x7be   : >> { %23385 = vmatprep.mubr.bf16.mxu0 %v16360_v0  ;;  %24285 = vmatpush3.bf16.msra.mxu1 %v25400_v49  ;;  %v16669_v0 = vpack.c.bf16 %v20087_v16, %v20086_v51  ;;  %v12666_v49 = vpack.c.bf16 %v19348_v5, %v19347_v63  ;;  %v16670_v38 = vpack.c.bf16 %v20089_v20, %v20088_v58 }
 0x7bf   : >> { %24278 = vmatprep.subr.bf16.mxu1 %v25401_v23 }
 0x7c2   : >> { %24286 = vmatpush3.bf16.msra.mxu1 %v25401_v23  ;;  %v20091_v23 = vld [vmem:[%s28194_s20 + $0x1d6] sm:$0xff] }
 0x7c3   : >> { %24279 = vmatprep.subr.bf16.mxu1 %v25402_v19 }
 0x7c4   : >> { %22746 = vmatmul.mubr.bf16.gmra.mrb[8].mxu1 %v12349_v60  ;;  %v12667_v60 = vpack.c.bf16 %v19350_v62, %v19349_v10 }
 0x7c5   : >> { %23386 = vmatmul.mubr.bf16.gmra.mrb[24].mxu0 %v16361_v24  ;;  %22749 = vmatprep.mubr.bf16.mxu1 %v12350_v56  ;;  %v16671_v24 = vpack.c.bf16 %v20091_v23, %v20090_v7 }
 0x7c6   : >> { %23389 = vmatprep.mubr.bf16.mxu0 %v16362_v52  ;;  %24287 = vmatpush3.bf16.msra.mxu1 %v25402_v19 }
 0x7c7   : >> { %24280 = vmatprep.subr.bf16.mxu1 %v25403_v14 }
 0x7ca   : >> { %24288 = vmatpush3.bf16.msra.mxu1 %v25403_v14 }
 0x7cb   : >> { %24281 = vmatprep.subr.bf16.mxu1 %v25404_v3 }
 0x7cc   : >> { %22750 = vmatmul.mubr.bf16.gmra.mrb[12].mxu1 %v12351_v57 }
 0x7cd   : >> { %23390 = vmatmul.mubr.bf16.gmra.mrb[28].mxu0 %v16363_v15  ;;  %22753 = vmatprep.mubr.bf16.mxu1 %v12352_v13 }
 0x7ce   : >> { %23409 = vmatprep.mubr.bf16.mxu0 %v12351_v57  ;;  %24289 = vmatpush3.bf16.msra.mxu1 %v25404_v3 }
 0x7cf   : >> { %24282 = vmatprep.subr.bf16.mxu1 %v25405_v8 }
 0x7d2   : >> { %24290 = vmatpush3.bf16.msra.mxu1 %v25405_v8 }
 0x7d4   : >> { %22754 = vmatmul.mubr.bf16.gmra.mrb[16].mxu1 %v12353_v33 }
 0x7d5   : >> { %23410 = vmatmul.mubr.bf16.vlgmr.msra.gmra.mrb[0].mxu0 %v12352_v13  ;;  %22757 = vmatprep.mubr.bf16.mxu1 %v12354_v47 }
 0x7d6   : >> { %23413 = vmatprep.mubr.bf16.mxu0 %v12353_v33 }
 0x7dc   : >> { %22758 = vmatmul.mubr.bf16.gmra.mrb[20].mxu1 %v12355_v44 }
 0x7dd   : >> { %23414 = vmatmul.mubr.bf16.gmra.mrb[4].mxu0 %v12354_v47  ;;  %22761 = vmatprep.mubr.bf16.mxu1 %v12356_v9 }
 0x7de   : >> { %23417 = vmatprep.mubr.bf16.mxu0 %v12355_v44 }
 0x7e4   : >> { %22762 = vmatmul.mubr.bf16.gmra.mrb[24].mxu1 %v12357_v28 }
 0x7e5   : >> { %23418 = vmatmul.mubr.bf16.gmra.mrb[8].mxu0 %v12356_v9  ;;  %22765 = vmatprep.mubr.bf16.mxu1 %v12358_v32 }
 0x7e6   : >> { %23421 = vmatprep.mubr.bf16.mxu0 %v12357_v28 }
 0x7ec   : >> { %22766 = vmatmul.mubr.bf16.gmra.mrb[28].mxu1 %v12359_v34 }
 0x7ed   : >> { %23422 = vmatmul.mubr.bf16.gmra.mrb[12].mxu0 %v12358_v32  ;;  %22801 = vmatprep.mubr.bf16.mxu1 %v12660_v21 }
 0x7ee   : >> { %23425 = vmatprep.mubr.bf16.mxu0 %v12359_v34 }
 0x7f4   : >> { %22802 = vmatmul.mubr.bf16.vlgmr.msra.gmra.mrb[16].mxu1 %v12661_v31 }
 0x7f5   : >> { %23426 = vmatmul.mubr.bf16.gmra.mrb[16].mxu0 %v16665_v54  ;;  %22805 = vmatprep.mubr.bf16.mxu1 %v12662_v6 }
 0x7f6   : >> { %23429 = vmatprep.mubr.bf16.mxu0 %v16666_v43 }
 0x7fc   : >> { %22806 = vmatmul.mubr.bf16.gmra.mrb[20].mxu1 %v12663_v29 }
 0x7fd   : >> { %23430 = vmatmul.mubr.bf16.gmra.mrb[20].mxu0 %v16667_v18  ;;  %22809 = vmatprep.mubr.bf16.mxu1 %v12664_v53 }
 0x7fe   : >> { %23433 = vmatprep.mubr.bf16.mxu0 %v16668_v39 }
 0x804   : >> { %22810 = vmatmul.mubr.bf16.gmra.mrb[24].mxu1 %v12665_v59 }
 0x805   : >> { %23434 = vmatmul.mubr.bf16.gmra.mrb[24].mxu0 %v16669_v0  ;;  %22813 = vmatprep.mubr.bf16.mxu1 %v12666_v49 }
 0x806   : >> { %23437 = vmatprep.mubr.bf16.mxu0 %v16670_v38 }
 0x80c   : >> { %22814 = vmatmul.mubr.bf16.gmra.mrb[28].mxu1 %v12667_v60 }
 0x80d   : >> { %23438 = vmatmul.mubr.bf16.gmra.mrb[28].mxu0 %v16671_v24 }
 0x887   : >> { %v22739_v56 = vpop.f32.mrb[0].mxu1 }
 0x888   : >> { %v12459_v52 = vpop.f32.mrb[1].mxu1 }
 0x889   : >> { %v22740_v19 = vpop.f32.mrb[2].mxu1 }
 0x88a   : >> { %v12462_v35 = vpop.f32.mrb[3].mxu1 }
 0x88f   : >> { %v22743_v45 = vpop.f32.mrb[4].mxu1 }
 0x890   : >> { %v12475_v14 = vpop.f32.mrb[5].mxu1 }
 0x891   : >> { %v22744_v57 = vpop.f32.mrb[6].mxu1 }
 0x892   : >> { %v12478_v15 = vpop.f32.mrb[7].mxu1 }
 0x897   : >> { %v22747_v13 = vpop.f32.mrb[8].mxu1 }
 0x898   : >> { %v12491_v3 = vpop.f32.mrb[9].mxu1 }
 0x899   : >> { %v22748_v8 = vpop.f32.mrb[10].mxu1 }
 0x89a   : >> { %v12494_v33 = vpop.f32.mrb[11].mxu1 }
 0x89f   : >> { %v30436_v47 = vpop.f32.mrb[12].mxu1 }
 0x8a0   : >> { %v30438_v44 = vpop.f32.mrb[13].mxu1 }
 0x8a1   : >> { %v30440_v9 = vpop.f32.mrb[14].mxu1 }
 0x8a2   : >> { %v30442_v28 = vpop.f32.mrb[15].mxu1 }
 0x8a8   : >> { %v23411_v32 = vpop.f32.mrb[0].mxu0 }
 0x8a9   : >> { %v24291_v17 = vadd.f32 %v23411_v32, %v22739_v56  ;;  %v16771_v55 = vpop.f32.mrb[1].mxu0 }
 0x8aa   : >> { %v24292_v34 = vadd.f32 %v16771_v55, %v12459_v52  ;;  %v23412_v21 = vpop.f32.mrb[2].mxu0 }
 0x8ab   : >> { %v16939_v48 = vadd.f32 %v24291_v17, %v30447_v37  ;;  %v24293_v2 = vadd.f32 %v23412_v21, %v22740_v19  ;;  %v16774_v1 = vpop.f32.mrb[3].mxu0 }
 0x8ac   : >> { %v16937_v46 = vadd.f32 %v24292_v34, %v30447_v37  ;;  %v24294_v25 = vadd.f32 %v16774_v1, %v12462_v35 }
 0x8ad   : >> { %v16971_v50 = vmax.f32 %v16939_v48, 0.0  ;;  %v16940_v27 = vadd.f32 %v24293_v2, %v30447_v37 }
 0x8ae   : >> { %v16969_v41 = vmax.f32 %v16937_v46, 0.0  ;;  %v16938_v31 = vadd.f32 %v24294_v25, %v30447_v37 }
 0x8af   : >> { %17004 = vst [vmem:[%s30453_s30 + $0x10] sm:$0xff] %v16971_v50  ;;  %v16972_v54 = vmax.f32 %v16940_v27, 0.0 }
 0x8b0   : >> { %17002 = vst [vmem:[%s30453_s30] sm:$0xff] %v16969_v41  ;;  %v16970_v6 = vmax.f32 %v16938_v31, 0.0  ;;  %v23415_v43 = vpop.f32.mrb[4].mxu0 }
 0x8b1   : >> { %17005 = vst [vmem:[%s30453_s30 + $0x18] sm:$0xff] %v16972_v54  ;;  %v24295_v11 = vadd.f32 %v23415_v43, %v22743_v45  ;;  %v16787_v30 = vpop.f32.mrb[5].mxu0 }
 0x8b2   : >> { %17003 = vst [vmem:[%s30453_s30 + $0x8] sm:$0xff] %v16970_v6  ;;  %v24296_v36 = vadd.f32 %v16787_v30, %v12475_v14  ;;  %v23416_v4 = vpop.f32.mrb[6].mxu0 }
 0x8b3   : >> { %v16943_v22 = vadd.f32 %v24295_v11, %v30447_v37  ;;  %v24297_v42 = vadd.f32 %v23416_v4, %v22744_v57  ;;  %v16790_v40 = vpop.f32.mrb[7].mxu0 }
 0x8b4   : >> { %v16941_v61 = vadd.f32 %v24296_v36, %v30447_v37  ;;  %v24298_v29 = vadd.f32 %v16790_v40, %v12478_v15 }
 0x8b5   : >> { %v16975_v18 = vmax.f32 %v16943_v22, 0.0  ;;  %v16944_v53 = vadd.f32 %v24297_v42, %v30447_v37 }
 0x8b6   : >> { %v16973_v39 = vmax.f32 %v16941_v61, 0.0  ;;  %v16942_v26 = vadd.f32 %v24298_v29, %v30447_v37 }
 0x8b7   : >> { %17008 = vst [vmem:[%s30453_s30 + $0x30] sm:$0xff] %v16975_v18  ;;  %v16976_v12 = vmax.f32 %v16944_v53, 0.0 }
 0x8b8   : >> { %17006 = vst [vmem:[%s30453_s30 + $0x20] sm:$0xff] %v16973_v39  ;;  %v16974_v51 = vmax.f32 %v16942_v26, 0.0  ;;  %v23419_v16 = vpop.f32.mrb[8].mxu0 }
 0x8b9   : >> { %17009 = vst [vmem:[%s30453_s30 + $0x38] sm:$0xff] %v16976_v12  ;;  %v24299_v63 = vadd.f32 %v23419_v16, %v22747_v13  ;;  %v16803_v5 = vpop.f32.mrb[9].mxu0 }
 0x8ba   : >> { %17007 = vst [vmem:[%s30453_s30 + $0x28] sm:$0xff] %v16974_v51  ;;  %v24300_v58 = vadd.f32 %v16803_v5, %v12491_v3  ;;  %v23420_v20 = vpop.f32.mrb[10].mxu0 }
 0x8bb   : >> { %v16947_v59 = vadd.f32 %v24299_v63, %v30447_v37  ;;  %v24301_v0 = vadd.f32 %v23420_v20, %v22748_v8  ;;  %v16806_v49 = vpop.f32.mrb[11].mxu0 }
 0x8bc   : >> { %v16945_v38 = vadd.f32 %v24300_v58, %v30447_v37  ;;  %v24302_v10 = vadd.f32 %v16806_v49, %v12494_v33 }
 0x8bd   : >> { %v16979_v62 = vmax.f32 %v16947_v59, 0.0  ;;  %v16948_v7 = vadd.f32 %v24301_v0, %v30447_v37 }
 0x8be   : >> { %v16977_v23 = vmax.f32 %v16945_v38, 0.0  ;;  %v16946_v60 = vadd.f32 %v24302_v10, %v30447_v37 }
 0x8bf   : >> { %17012 = vst [vmem:[%s30453_s30 + $0x50] sm:$0xff] %v16979_v62  ;;  %v16980_v24 = vmax.f32 %v16948_v7, 0.0 }
 0x8c0   : >> { %17010 = vst [vmem:[%s30453_s30 + $0x40] sm:$0xff] %v16977_v23  ;;  %v16978_v56 = vmax.f32 %v16946_v60, 0.0  ;;  %v23423_v52 = vpop.f32.mrb[12].mxu0 }
 0x8c1   : >> { %17013 = vst [vmem:[%s30453_s30 + $0x58] sm:$0xff] %v16980_v24  ;;  %v24303_v19 = vadd.f32 %v23423_v52, %v30436_v47  ;;  %v16819_v35 = vpop.f32.mrb[13].mxu0 }
 0x8c2   : >> { %17011 = vst [vmem:[%s30453_s30 + $0x48] sm:$0xff] %v16978_v56  ;;  %v24304_v45 = vadd.f32 %v16819_v35, %v30438_v44  ;;  %v23424_v14 = vpop.f32.mrb[14].mxu0 }
 0x8c3   : >> { %v16951_v57 = vadd.f32 %v24303_v19, %v30447_v37  ;;  %v24305_v15 = vadd.f32 %v23424_v14, %v30440_v9  ;;  %v16822_v13 = vpop.f32.mrb[15].mxu0 }
 0x8c4   : >> { %v16949_v3 = vadd.f32 %v24304_v45, %v30447_v37  ;;  %v24306_v8 = vadd.f32 %v16822_v13, %v30442_v28 }
 0x8c5   : >> { %v16983_v33 = vmax.f32 %v16951_v57, 0.0  ;;  %v16952_v47 = vadd.f32 %v24305_v15, %v30447_v37 }
 0x8c6   : >> { %v16981_v32 = vmax.f32 %v16949_v3, 0.0  ;;  %v16950_v17 = vadd.f32 %v24306_v8, %v30447_v37 }
 0x8c7   : >> { %17016 = vst [vmem:[%s30453_s30 + $0x70] sm:$0xff] %v16983_v33  ;;  %v16984_v44 = vmax.f32 %v16952_v47, 0.0  ;;  %v22803_v55 = vpop.f32.mrb[16].mxu1 }
 0x8c8   : >> { %17014 = vst [vmem:[%s30453_s30 + $0x60] sm:$0xff] %v16981_v32  ;;  %v16982_v34 = vmax.f32 %v16950_v17, 0.0  ;;  %v23427_v21 = vpop.f32.mrb[16].mxu0  ;;  %v12831_v48 = vpop.f32.mrb[17].mxu1 }
 0x8c9   : >> { %17017 = vst [vmem:[%s30453_s30 + $0x78] sm:$0xff] %v16984_v44  ;;  %v24307_v9 = vadd.f32 %v23427_v21, %v22803_v55  ;;  %v16835_v2 = vpop.f32.mrb[17].mxu0  ;;  %v22804_v1 = vpop.f32.mrb[18].mxu1 }
 0x8ca   : >> { %17015 = vst [vmem:[%s30453_s30 + $0x68] sm:$0xff] %v16982_v34  ;;  %v24308_v28 = vadd.f32 %v16835_v2, %v12831_v48  ;;  %v23428_v46 = vpop.f32.mrb[18].mxu0  ;;  %v12834_v25 = vpop.f32.mrb[19].mxu1 }
 0x8cb   : >> { %v16955_v50 = vadd.f32 %v24307_v9, %v30447_v37  ;;  %v24309_v27 = vadd.f32 %v23428_v46, %v22804_v1  ;;  %v16838_v41 = vpop.f32.mrb[19].mxu0 }
 0x8cc   : >> { %v16953_v31 = vadd.f32 %v24308_v28, %v30447_v37  ;;  %v24310_v54 = vadd.f32 %v16838_v41, %v12834_v25 }
 0x8cd   : >> { %v16987_v6 = vmax.f32 %v16955_v50, 0.0  ;;  %v16956_v43 = vadd.f32 %v24309_v27, %v30447_v37 }
 0x8ce   : >> { %v16985_v11 = vmax.f32 %v16953_v31, 0.0  ;;  %v16954_v30 = vadd.f32 %v24310_v54, %v30447_v37 }
 0x8cf   : >> { %17020 = vst [vmem:[%s30453_s30 + $0x90] sm:$0xff] %v16987_v6  ;;  %v16988_v36 = vmax.f32 %v16956_v43, 0.0  ;;  %v22807_v4 = vpop.f32.mrb[20].mxu1 }
 0x8d0   : >> { %17018 = vst [vmem:[%s30453_s30 + $0x80] sm:$0xff] %v16985_v11  ;;  %v16986_v22 = vmax.f32 %v16954_v30, 0.0  ;;  %v23431_v42 = vpop.f32.mrb[20].mxu0  ;;  %v12847_v40 = vpop.f32.mrb[21].mxu1 }
 0x8d1   : >> { %17021 = vst [vmem:[%s30453_s30 + $0x98] sm:$0xff] %v16988_v36  ;;  %v24311_v61 = vadd.f32 %v23431_v42, %v22807_v4  ;;  %v16851_v29 = vpop.f32.mrb[21].mxu0  ;;  %v22808_v18 = vpop.f32.mrb[22].mxu1 }
 0x8d2   : >> { %17019 = vst [vmem:[%s30453_s30 + $0x88] sm:$0xff] %v16986_v22  ;;  %v24312_v53 = vadd.f32 %v16851_v29, %v12847_v40  ;;  %v23432_v39 = vpop.f32.mrb[22].mxu0  ;;  %v12850_v26 = vpop.f32.mrb[23].mxu1 }
 0x8d3   : >> { %v16959_v12 = vadd.f32 %v24311_v61, %v30447_v37  ;;  %v24313_v51 = vadd.f32 %v23432_v39, %v22808_v18  ;;  %v16854_v16 = vpop.f32.mrb[23].mxu0 }
 0x8d4   : >> { %v16957_v63 = vadd.f32 %v24312_v53, %v30447_v37  ;;  %v24314_v5 = vadd.f32 %v16854_v16, %v12850_v26 }
 0x8d5   : >> { %v16991_v58 = vmax.f32 %v16959_v12, 0.0  ;;  %v16960_v20 = vadd.f32 %v24313_v51, %v30447_v37 }
 0x8d6   : >> { %v16989_v59 = vmax.f32 %v16957_v63, 0.0  ;;  %v16958_v0 = vadd.f32 %v24314_v5, %v30447_v37 }
 0x8d7   : >> { %17024 = vst [vmem:[%s30453_s30 + $0xb0] sm:$0xff] %v16991_v58  ;;  %v16992_v49 = vmax.f32 %v16960_v20, 0.0  ;;  %v22811_v38 = vpop.f32.mrb[24].mxu1 }
 0x8d8   : >> { %17022 = vst [vmem:[%s30453_s30 + $0xa0] sm:$0xff] %v16989_v59  ;;  %v16990_v10 = vmax.f32 %v16958_v0, 0.0  ;;  %v23435_v62 = vpop.f32.mrb[24].mxu0  ;;  %v12863_v7 = vpop.f32.mrb[25].mxu1 }
 0x8d9   : >> { %17025 = vst [vmem:[%s30453_s30 + $0xb8] sm:$0xff] %v16992_v49  ;;  %v24315_v23 = vadd.f32 %v23435_v62, %v22811_v38  ;;  %v16867_v60 = vpop.f32.mrb[25].mxu0  ;;  %v22812_v24 = vpop.f32.mrb[26].mxu1 }
 0x8da   : >> { %17023 = vst [vmem:[%s30453_s30 + $0xa8] sm:$0xff] %v16990_v10  ;;  %v24316_v56 = vadd.f32 %v16867_v60, %v12863_v7  ;;  %v23436_v52 = vpop.f32.mrb[26].mxu0  ;;  %v12866_v19 = vpop.f32.mrb[27].mxu1 }
 0x8db   : >> { %v16963_v35 = vadd.f32 %v24315_v23, %v30447_v37  ;;  %v24317_v45 = vadd.f32 %v23436_v52, %v22812_v24  ;;  %v16870_v14 = vpop.f32.mrb[27].mxu0 }
 0x8dc   : >> { %v16961_v57 = vadd.f32 %v24316_v56, %v30447_v37  ;;  %v24318_v15 = vadd.f32 %v16870_v14, %v12866_v19 }
 0x8dd   : >> { %v16995_v13 = vmax.f32 %v16963_v35, 0.0  ;;  %v16964_v3 = vadd.f32 %v24317_v45, %v30447_v37 }
 0x8de   : >> { %v16993_v8 = vmax.f32 %v16961_v57, 0.0  ;;  %v16962_v33 = vadd.f32 %v24318_v15, %v30447_v37 }
 0x8df   : >> { %17028 = vst [vmem:[%s30453_s30 + $0xd0] sm:$0xff] %v16995_v13  ;;  %v16996_v47 = vmax.f32 %v16964_v3, 0.0  ;;  %v22815_v32 = vpop.f32.mrb[28].mxu1 }
 0x8e0   : >> { %17026 = vst [vmem:[%s30453_s30 + $0xc0] sm:$0xff] %v16993_v8  ;;  %v16994_v17 = vmax.f32 %v16962_v33, 0.0  ;;  %v23439_v44 = vpop.f32.mrb[28].mxu0  ;;  %v12879_v55 = vpop.f32.mrb[29].mxu1 }
 0x8e1   : >> { %17029 = vst [vmem:[%s30453_s30 + $0xd8] sm:$0xff] %v16996_v47  ;;  %v24319_v34 = vadd.f32 %v23439_v44, %v22815_v32  ;;  %v16883_v21 = vpop.f32.mrb[29].mxu0  ;;  %v22816_v48 = vpop.f32.mrb[30].mxu1 }
 0x8e2   : >> { %17027 = vst [vmem:[%s30453_s30 + $0xc8] sm:$0xff] %v16994_v17  ;;  %v24320_v9 = vadd.f32 %v16883_v21, %v12879_v55  ;;  %v23440_v2 = vpop.f32.mrb[30].mxu0  ;;  %v12882_v1 = vpop.f32.mrb[31].mxu1 }
 0x8e3   : >> { %v16967_v28 = vadd.f32 %v24319_v34, %v30447_v37  ;;  %v24321_v46 = vadd.f32 %v23440_v2, %v22816_v48  ;;  %v16886_v25 = vpop.f32.mrb[31].mxu0 }
 0x8e4   : >> { %v16965_v50 = vadd.f32 %v24320_v9, %v30447_v37  ;;  %v24322_v27 = vadd.f32 %v16886_v25, %v12882_v1  ;;  %8677 = sbr.rel (!%p8675_p5) target bundleno = 1171 (0x493), region = 208 }
 0x8e5   : >> { %v16999_v41 = vmax.f32 %v16967_v28, 0.0  ;;  %v16968_v31 = vadd.f32 %v24321_v46, %v30447_v37 }
 0x8e6   : >> { %v16997_v54 = vmax.f32 %v16965_v50, 0.0  ;;  %v16966_v6 = vadd.f32 %v24322_v27, %v30447_v37 }
 0x8e7   : >> { %17032 = vst [vmem:[%s30453_s30 + $0xf0] sm:$0xff] %v16999_v41  ;;  %v17000_v43 = vmax.f32 %v16968_v31, 0.0 }
 0x8e8   : >> { %17030 = vst [vmem:[%s30453_s30 + $0xe0] sm:$0xff] %v16997_v54  ;;  %v16998_v11 = vmax.f32 %v16966_v6, 0.0 }
 0x8e9   : >> { %17033 = vst [vmem:[%s30453_s30 + $0xf8] sm:$0xff] %v17000_v43 }
 0x8ea   : >> { %17031 = vst [vmem:[%s30453_s30 + $0xe8] sm:$0xff] %v16998_v11 }
 0x8eb PF: > { %s16_s21 = sadd.s32 1, %s25420_s21  }
 0x8ec   : > { %p13_p6 = scmp.ge.s32.totalorder %s16_s21, 4  }
 0x8ee   :  { %15 = sbr.rel (!%p13_p6) target bundleno = 1 (0x1), region = 219 }

</bundles_post_ra>
